<compile_context>
chip_gen: v5e
topology: v5e:2x2
jax: 0.10.0
libtpu: 0.0.40
codegen_flags: <defaults>
</compile_context>

<pallas_src>
import jax
import jax.numpy as jnp
from jax.experimental import pallas as pl
from jax.experimental.pallas import tpu as pltpu

D_IN = 1024
H1 = 328
H2 = 75
H1_PAD = 384   # 328 padded up to a multiple of 128
H2_PAD = 128   # 75  padded up to a multiple of 128


def _ae_kernel(x_ref, w1_ref, w2_ref, w3_ref, w4_ref, o_ref):
    # Layer 1: [TB,1024] @ [1024,384] -> ReLU (padded cols stay exactly 0)
    xb = x_ref[...].astype(jnp.bfloat16)   # no-op if x already bf16
    h = jnp.dot(xb, w1_ref[...], preferred_element_type=jnp.float32)
    h = jnp.maximum(h, 0.0)
    # Layer 2: [TB,384] @ [384,128] -> ReLU
    h = jnp.dot(h.astype(jnp.bfloat16), w2_ref[...],
                preferred_element_type=jnp.float32)
    h = jnp.maximum(h, 0.0)
    # Layer 3: [TB,128] @ [128,384] -> ReLU
    h = jnp.dot(h.astype(jnp.bfloat16), w3_ref[...],
                preferred_element_type=jnp.float32)
    h = jnp.maximum(h, 0.0)
    # Layer 4: [TB,384] @ [384,1024] (no activation)
    out = jnp.dot(h.astype(jnp.bfloat16), w4_ref[...],
                  preferred_element_type=jnp.float32)
    o_ref[...] = out.astype(o_ref.dtype)


def _pad_to(w, shape):
    pads = [(0, s - d) for d, s in zip(w.shape, shape)]
    return jnp.pad(w, pads)


def prepare_weights(w1, w2, w3, w4):
    """Take nn.Linear-style weights ([out, in], f32), return kernel weights:
    transposed to [in, out], zero-padded to lane-aligned shapes, cast to bf16."""
    w1_t = _pad_to(w1.T, (D_IN, H1_PAD)).astype(jnp.bfloat16)    # [1024, 384]
    w2_t = _pad_to(w2.T, (H1_PAD, H2_PAD)).astype(jnp.bfloat16)  # [384, 128]
    w3_t = _pad_to(w3.T, (H2_PAD, H1_PAD)).astype(jnp.bfloat16)  # [128, 384]
    w4_t = _pad_to(w4.T, (H1_PAD, D_IN)).astype(jnp.bfloat16)    # [384, 1024]
    return w1_t, w2_t, w3_t, w4_t


def _round_up(n, m):
    return ((n + m - 1) // m) * m


def my_ae_forward(x, w1_t, w2_t, w3_t, w4_t, *, block_b=512, out_dtype=None):
    """x: [B, 1024] float32 or bfloat16 (bf16 halves input HBM traffic and is
    numerically identical, since the kernel feeds the MXU in bf16 anyway).
    w*_t: padded bf16 weights from prepare_weights().
    out_dtype: defaults to x.dtype; pass jnp.bfloat16 to also halve writeback
    (precision trade-off: only the stored result is rounded, accumulation is f32).
    """
    B, D = x.shape
    assert D == D_IN
    out_dtype = x.dtype if out_dtype is None else out_dtype

    # Batch tile: multiple of 8 sublanes, at most block_b rows, and capped at
    # ceil(B/2) so the grid has >=2 steps whenever B allows it (v7x megacore
    # sharding of the "parallel" batch axis across both TensorCores).
    tb = min(block_b, max(8, _round_up(pl.cdiv(B, 2), 8)))
    grid = (pl.cdiv(B, tb),)   # ragged last block: OOB reads/writes are masked

    weight_bytes = sum(int(w.size) * w.dtype.itemsize
                       for w in (w1_t, w2_t, w3_t, w4_t))
    cost = pl.CostEstimate(
        flops=2 * B * (D_IN * H1_PAD + H1_PAD * H2_PAD
                       + H2_PAD * H1_PAD + H1_PAD * D_IN),
        transcendentals=0,
        bytes_accessed=int(x.size) * x.dtype.itemsize
        + B * D_IN * jnp.dtype(out_dtype).itemsize
        + weight_bytes,
    )

    def build(single_buffer_weights):
        def w_spec(w):
            # Constant index_map -> weights fetched once, VMEM-resident.
            # Single-buffer them (they never change) to reclaim ~1.8 MB VMEM.
            kwargs = {}
            if single_buffer_weights:
                kwargs["pipeline_mode"] = pl.Buffered(buffer_count=1)
            return pl.BlockSpec(w.shape, lambda i: (0, 0), **kwargs)

        return pl.pallas_call(
            _ae_kernel,
            out_shape=jax.ShapeDtypeStruct((B, D_IN), out_dtype),
            grid=grid,
            in_specs=[
                pl.BlockSpec((tb, D_IN), lambda i: (i, 0)),
                w_spec(w1_t),
                w_spec(w2_t),
                w_spec(w3_t),
                w_spec(w4_t),
            ],
            out_specs=pl.BlockSpec((tb, D_IN), lambda i: (i, 0)),
            compiler_params=pltpu.CompilerParams(
                dimension_semantics=("parallel",),
                # Explicit limit: TB=512 footprint (~12-17 MB incl. pipelined
                # x/out buffers + resident weights + f32 intermediates) exceeds
                # v5e's 16 MiB default scoped VMEM; 32 MiB is safe on all gens.
                vmem_limit_bytes=32 * 1024 * 1024,
            ),
            cost_estimate=cost,
        )

    try:
        return build(True)(x, w1_t, w2_t, w3_t, w4_t)
    except Exception:
        # Fallback for jax versions that reject pl.Buffered(buffer_count=1):
        # identical kernel with default double-buffered weight specs.
        return build(False)(x, w1_t, w2_t, w3_t, w4_t)


def _init_linear_weight(key, out_features, in_features):
    # Deterministic stand-in for PyTorch's kaiming-uniform Linear init:
    # U(-1/sqrt(in), 1/sqrt(in)), shape [out, in] like nn.Linear.weight.
    bound = 1.0 / jnp.sqrt(jnp.float32(in_features))
    return jax.random.uniform(
        key, (out_features, in_features), jnp.float32, minval=-bound, maxval=bound
    )


def reference_forward(x, w1, w2, w3, w4):
    # Pure-JAX f32 reference matching the PyTorch forward (weights in [out, in]).
    h = jnp.maximum(x @ w1.T, 0.0)
    h = jnp.maximum(h @ w2.T, 0.0)
    h = jnp.maximum(h @ w3.T, 0.0)
    return h @ w4.T


if __name__ == "__main__":
    key = jax.random.PRNGKey(0)
    k_x, k1, k2, k3, k4 = jax.random.split(key, 5)

    B = 8  # small batch
    x = jax.random.normal(k_x, (B, D_IN), jnp.float32)

    # nn.Linear weight shapes: fc1 [328,1024], fc2 [75,328], fc3 [328,75], fc4 [1024,328]
    w1 = _init_linear_weight(k1, H1, D_IN)
    w2 = _init_linear_weight(k2, H2, H1)
    w3 = _init_linear_weight(k3, H1, H2)
    w4 = _init_linear_weight(k4, D_IN, H1)

    w1_t, w2_t, w3_t, w4_t = prepare_weights(w1, w2, w3, w4)

    out = my_ae_forward(x, w1_t, w2_t, w3_t, w4_t)
    out = jax.block_until_ready(out)

    ref = reference_forward(x, w1, w2, w3, w4)
    assert out.shape == (B, D_IN)
    # Tolerances loosened vs. the f32 reference because weights/activations feed
    # the MXU in bf16 (accumulation is still f32).
    assert jnp.allclose(out, ref, atol=2e-2, rtol=2e-2), (
        float(jnp.max(jnp.abs(out - ref)))
    )

    print("KERNEL_OK")
</pallas_src>

<mosaic_0001>
module attributes {stable_mosaic.version = 11 : i64} {
  func.func @_ae_kernel(%arg0: i32, %arg1: memref<8x1024xf32, #tpu.memory_space<vmem>>, %arg2: memref<1024x384xbf16, #tpu.memory_space<vmem>>, %arg3: memref<384x128xbf16, #tpu.memory_space<vmem>>, %arg4: memref<128x384xbf16, #tpu.memory_space<vmem>>, %arg5: memref<384x1024xbf16, #tpu.memory_space<vmem>>, %arg6: memref<8x1024xf32, #tpu.memory_space<vmem>>) attributes {dimension_semantics = [#tpu.dimension_semantics<parallel>], iteration_bounds = array<i64: 1>, scalar_prefetch = 0 : i64, scratch_operands = 0 : i64, tpu.core_type = #tpu.core_type<tc>, window_params = [{transform_indices = @transform_0, window_bounds = array<i64: 8, 1024>}, {pipeline_mode = #tpu.pipeline_mode<synchronous>, transform_indices = @transform_1, window_bounds = array<i64: 1024, 384>}, {pipeline_mode = #tpu.pipeline_mode<synchronous>, transform_indices = @transform_2, window_bounds = array<i64: 384, 128>}, {pipeline_mode = #tpu.pipeline_mode<synchronous>, transform_indices = @transform_3, window_bounds = array<i64: 128, 384>}, {pipeline_mode = #tpu.pipeline_mode<synchronous>, transform_indices = @transform_4, window_bounds = array<i64: 384, 1024>}, {transform_indices = @transform_5, window_bounds = array<i64: 8, 1024>}]} {
    %c0 = arith.constant 0 : index
    %c0_0 = arith.constant 0 : index
    %0 = vector.load %arg1[%c0, %c0_0] : memref<8x1024xf32, #tpu.memory_space<vmem>>, vector<8x1024xf32>
    %1 = arith.truncf %0 : vector<8x1024xf32> to vector<8x1024xbf16>
    %c0_1 = arith.constant 0 : index
    %c0_2 = arith.constant 0 : index
    %2 = vector.load %arg2[%c0_1, %c0_2] : memref<1024x384xbf16, #tpu.memory_space<vmem>>, vector<1024x384xbf16>
    %cst = arith.constant dense<0.000000e+00> : vector<8x384xf32>
    %3 = tpu.matmul %1, %2, %cst {dimension_numbers = #tpu.dot_dimension_numbers<[1], [0], [0], [1], [0, 0, 1, 1], [], []>} : vector<8x1024xbf16>, vector<1024x384xbf16>, vector<8x384xf32> -> vector<8x384xf32>
    %cst_3 = arith.constant 0.000000e+00 : f32
    %4 = vector.broadcast %cst_3 : f32 to vector<8x384xf32>
    %5 = arith.maximumf %3, %4 : vector<8x384xf32>
    %6 = arith.truncf %5 : vector<8x384xf32> to vector<8x384xbf16>
    %c0_4 = arith.constant 0 : index
    %c0_5 = arith.constant 0 : index
    %7 = vector.load %arg3[%c0_4, %c0_5] : memref<384x128xbf16, #tpu.memory_space<vmem>>, vector<384x128xbf16>
    %cst_6 = arith.constant dense<0.000000e+00> : vector<8x128xf32>
    %8 = tpu.matmul %6, %7, %cst_6 {dimension_numbers = #tpu.dot_dimension_numbers<[1], [0], [0], [1], [0, 0, 1, 1], [], []>} : vector<8x384xbf16>, vector<384x128xbf16>, vector<8x128xf32> -> vector<8x128xf32>
    %cst_7 = arith.constant 0.000000e+00 : f32
    %9 = vector.broadcast %cst_7 : f32 to vector<8x128xf32>
    %10 = arith.maximumf %8, %9 : vector<8x128xf32>
    %11 = arith.truncf %10 : vector<8x128xf32> to vector<8x128xbf16>
    %c0_8 = arith.constant 0 : index
    %c0_9 = arith.constant 0 : index
    %12 = vector.load %arg4[%c0_8, %c0_9] : memref<128x384xbf16, #tpu.memory_space<vmem>>, vector<128x384xbf16>
    %cst_10 = arith.constant dense<0.000000e+00> : vector<8x384xf32>
    %13 = tpu.matmul %11, %12, %cst_10 {dimension_numbers = #tpu.dot_dimension_numbers<[1], [0], [0], [1], [0, 0, 1, 1], [], []>} : vector<8x128xbf16>, vector<128x384xbf16>, vector<8x384xf32> -> vector<8x384xf32>
    %cst_11 = arith.constant 0.000000e+00 : f32
    %14 = vector.broadcast %cst_11 : f32 to vector<8x384xf32>
    %15 = arith.maximumf %13, %14 : vector<8x384xf32>
    %16 = arith.truncf %15 : vector<8x384xf32> to vector<8x384xbf16>
    %c0_12 = arith.constant 0 : index
    %c0_13 = arith.constant 0 : index
    %17 = vector.load %arg5[%c0_12, %c0_13] : memref<384x1024xbf16, #tpu.memory_space<vmem>>, vector<384x1024xbf16>
    %cst_14 = arith.constant dense<0.000000e+00> : vector<8x1024xf32>
    %18 = tpu.matmul %16, %17, %cst_14 {dimension_numbers = #tpu.dot_dimension_numbers<[1], [0], [0], [1], [0, 0, 1, 1], [], []>} : vector<8x384xbf16>, vector<384x1024xbf16>, vector<8x1024xf32> -> vector<8x1024xf32>
    %c0_15 = arith.constant 0 : index
    %c0_16 = arith.constant 0 : index
    %19 = vector.load %arg6[%c0_15, %c0_16] : memref<8x1024xf32, #tpu.memory_space<vmem>>, vector<8x1024xf32>
    tpu.vector_store %arg6[%c0_15, %c0_16], %18 {strides = array<i32>} : memref<8x1024xf32, #tpu.memory_space<vmem>>, vector<8x1024xf32>,
    return
  }
  func.func @transform_0(%arg0: i32) -> (i32, i32) {
    %c0_i32 = arith.constant 0 : i32
    %c0_i32_0 = arith.constant 0 : i32
    return %arg0, %c0_i32 : i32, i32
  }
  func.func @transform_1(%arg0: i32) -> (i32, i32) {
    %c0_i32 = arith.constant 0 : i32
    %c0_i32_0 = arith.constant 0 : i32
    %c0_i32_1 = arith.constant 0 : i32
    return %c0_i32, %c0_i32_0 : i32, i32
  }
  func.func @transform_2(%arg0: i32) -> (i32, i32) {
    %c0_i32 = arith.constant 0 : i32
    %c0_i32_0 = arith.constant 0 : i32
    %c0_i32_1 = arith.constant 0 : i32
    return %c0_i32, %c0_i32_0 : i32, i32
  }
  func.func @transform_3(%arg0: i32) -> (i32, i32) {
    %c0_i32 = arith.constant 0 : i32
    %c0_i32_0 = arith.constant 0 : i32
    %c0_i32_1 = arith.constant 0 : i32
    return %c0_i32, %c0_i32_0 : i32, i32
  }
  func.func @transform_4(%arg0: i32) -> (i32, i32) {
    %c0_i32 = arith.constant 0 : i32
    %c0_i32_0 = arith.constant 0 : i32
    %c0_i32_1 = arith.constant 0 : i32
    return %c0_i32, %c0_i32_0 : i32, i32
  }
  func.func @transform_5(%arg0: i32) -> (i32, i32) {
    %c0_i32 = arith.constant 0 : i32
    %c0_i32_0 = arith.constant 0 : i32
    return %arg0, %c0_i32 : i32, i32
  }
}

module attributes {stable_mosaic.version = 11 : i64} {
  func.func @_ae_kernel(%arg0: i32, %arg1: memref<8x1024xf32, #tpu.memory_space<vmem>>, %arg2: memref<1024x384xbf16, #tpu.memory_space<vmem>>, %arg3: memref<384x128xbf16, #tpu.memory_space<vmem>>, %arg4: memref<128x384xbf16, #tpu.memory_space<vmem>>, %arg5: memref<384x1024xbf16, #tpu.memory_space<vmem>>, %arg6: memref<8x1024xf32, #tpu.memory_space<vmem>>) attributes {dimension_semantics = [#tpu.dimension_semantics<parallel>], iteration_bounds = array<i64: 1>, scalar_prefetch = 0 : i64, scratch_operands = 0 : i64, tpu.core_type = #tpu.core_type<tc>, window_params = [{transform_indices = @transform_0, window_bounds = array<i64: 8, 1024>}, {pipeline_mode = #tpu.pipeline_mode<synchronous>, transform_indices = @transform_1, window_bounds = array<i64: 1024, 384>}, {pipeline_mode = #tpu.pipeline_mode<synchronous>, transform_indices = @transform_2, window_bounds = array<i64: 384, 128>}, {pipeline_mode = #tpu.pipeline_mode<synchronous>, transform_indices = @transform_3, window_bounds = array<i64: 128, 384>}, {pipeline_mode = #tpu.pipeline_mode<synchronous>, transform_indices = @transform_4, window_bounds = array<i64: 384, 1024>}, {transform_indices = @transform_5, window_bounds = array<i64: 8, 1024>}]} {
    %c0 = arith.constant 0 : index
    %c0_0 = arith.constant 0 : index
    %0 = vector.load %arg1[%c0, %c0_0] : memref<8x1024xf32, #tpu.memory_space<vmem>>, vector<8x1024xf32>
    %1 = arith.truncf %0 : vector<8x1024xf32> to vector<8x1024xbf16>
    %c0_1 = arith.constant 0 : index
    %c0_2 = arith.constant 0 : index
    %2 = vector.load %arg2[%c0_1, %c0_2] : memref<1024x384xbf16, #tpu.memory_space<vmem>>, vector<1024x384xbf16>
    %cst = arith.constant dense<0.000000e+00> : vector<8x384xf32>
    %3 = tpu.matmul %1, %2, %cst {dimension_numbers = #tpu.dot_dimension_numbers<[1], [0], [0], [1], [0, 0, 1, 1], [], []>} : vector<8x1024xbf16>, vector<1024x384xbf16>, vector<8x384xf32> -> vector<8x384xf32>
    %cst_3 = arith.constant 0.000000e+00 : f32
    %4 = vector.broadcast %cst_3 : f32 to vector<8x384xf32>
    %5 = arith.maximumf %3, %4 : vector<8x384xf32>
    %6 = arith.truncf %5 : vector<8x384xf32> to vector<8x384xbf16>
    %c0_4 = arith.constant 0 : index
    %c0_5 = arith.constant 0 : index
    %7 = vector.load %arg3[%c0_4, %c0_5] : memref<384x128xbf16, #tpu.memory_space<vmem>>, vector<384x128xbf16>
    %cst_6 = arith.constant dense<0.000000e+00> : vector<8x128xf32>
    %8 = tpu.matmul %6, %7, %cst_6 {dimension_numbers = #tpu.dot_dimension_numbers<[1], [0], [0], [1], [0, 0, 1, 1], [], []>} : vector<8x384xbf16>, vector<384x128xbf16>, vector<8x128xf32> -> vector<8x128xf32>
    %cst_7 = arith.constant 0.000000e+00 : f32
    %9 = vector.broadcast %cst_7 : f32 to vector<8x128xf32>
    %10 = arith.maximumf %8, %9 : vector<8x128xf32>
    %11 = arith.truncf %10 : vector<8x128xf32> to vector<8x128xbf16>
    %c0_8 = arith.constant 0 : index
    %c0_9 = arith.constant 0 : index
    %12 = vector.load %arg4[%c0_8, %c0_9] : memref<128x384xbf16, #tpu.memory_space<vmem>>, vector<128x384xbf16>
    %cst_10 = arith.constant dense<0.000000e+00> : vector<8x384xf32>
    %13 = tpu.matmul %11, %12, %cst_10 {dimension_numbers = #tpu.dot_dimension_numbers<[1], [0], [0], [1], [0, 0, 1, 1], [], []>} : vector<8x128xbf16>, vector<128x384xbf16>, vector<8x384xf32> -> vector<8x384xf32>
    %cst_11 = arith.constant 0.000000e+00 : f32
    %14 = vector.broadcast %cst_11 : f32 to vector<8x384xf32>
    %15 = arith.maximumf %13, %14 : vector<8x384xf32>
    %16 = arith.truncf %15 : vector<8x384xf32> to vector<8x384xbf16>
    %c0_12 = arith.constant 0 : index
    %c0_13 = arith.constant 0 : index
    %17 = vector.load %arg5[%c0_12, %c0_13] : memref<384x1024xbf16, #tpu.memory_space<vmem>>, vector<384x1024xbf16>
    %cst_14 = arith.constant dense<0.000000e+00> : vector<8x1024xf32>
    %18 = tpu.matmul %16, %17, %cst_14 {dimension_numbers = #tpu.dot_dimension_numbers<[1], [0], [0], [1], [0, 0, 1, 1], [], []>} : vector<8x384xbf16>, vector<384x1024xbf16>, vector<8x1024xf32> -> vector<8x1024xf32>
    %c0_15 = arith.constant 0 : index
    %c0_16 = arith.constant 0 : index
    %19 = vector.load %arg6[%c0_15, %c0_16] : memref<8x1024xf32, #tpu.memory_space<vmem>>, vector<8x1024xf32>
    tpu.vector_store %arg6[%c0_15, %c0_16], %18 {strides = array<i32>} : memref<8x1024xf32, #tpu.memory_space<vmem>>, vector<8x1024xf32>,
    return
  }
  func.func @transform_0(%arg0: i32) -> (i32, i32) {
    %c0_i32 = arith.constant 0 : i32
    %c0_i32_0 = arith.constant 0 : i32
    return %arg0, %c0_i32 : i32, i32
  }
  func.func @transform_1(%arg0: i32) -> (i32, i32) {
    %c0_i32 = arith.constant 0 : i32
    %c0_i32_0 = arith.constant 0 : i32
    %c0_i32_1 = arith.constant 0 : i32
    return %c0_i32, %c0_i32_0 : i32, i32
  }
  func.func @transform_2(%arg0: i32) -> (i32, i32) {
    %c0_i32 = arith.constant 0 : i32
    %c0_i32_0 = arith.constant 0 : i32
    %c0_i32_1 = arith.constant 0 : i32
    return %c0_i32, %c0_i32_0 : i32, i32
  }
  func.func @transform_3(%arg0: i32) -> (i32, i32) {
    %c0_i32 = arith.constant 0 : i32
    %c0_i32_0 = arith.constant 0 : i32
    %c0_i32_1 = arith.constant 0 : i32
    return %c0_i32, %c0_i32_0 : i32, i32
  }
  func.func @transform_4(%arg0: i32) -> (i32, i32) {
    %c0_i32 = arith.constant 0 : i32
    %c0_i32_0 = arith.constant 0 : i32
    %c0_i32_1 = arith.constant 0 : i32
    return %c0_i32, %c0_i32_0 : i32, i32
  }
  func.func @transform_5(%arg0: i32) -> (i32, i32) {
    %c0_i32 = arith.constant 0 : i32
    %c0_i32_0 = arith.constant 0 : i32
    return %arg0, %c0_i32 : i32, i32
  }
}

</mosaic_0001>

<bundles_post_ra>
// kernel: tpu_custom_call.1
= control target key start
LH: loop header
LB: loop body
LE: loop exit
PB: predicated region body
PF: predicated region fallthrough
CT: control target
= control target key end

     0   :  { %10 = vsyncpa [#allocation3], 0  ;;  %s6100_s0 = inlined_call_operand.hbm [shape: f32[8,1024], index: 0, kind: input, shape index: {}]   ;;  %s6101_s1 = inlined_call_operand.hbm [shape: bf16[1024,384], index: 1, kind: input, shape index: {}]   ;;  %s6102_s2 = inlined_call_operand.hbm [shape: bf16[384,128], index: 2, kind: input, shape index: {}]   ;;  %s6103_s3 = inlined_call_operand.hbm [shape: bf16[128,384], index: 3, kind: input, shape index: {}]   ;;  %s6104_s4 = inlined_call_operand.hbm [shape: bf16[384,1024], index: 4, kind: input, shape index: {}]   ;;  %s6105_s5 = inlined_call_operand.hbm [shape: f32[8,1024], index: 5, kind: output, shape index: {}]  }
   0x1   :  { %11 = vsyncpa [#allocation6], 0 }
   0x2   :  { %12 = vsyncpa [#allocation9], 0  ;;  %s29_s20 = sshll.u32 %s6101_s1, 4  ;;  %s30_s20 = int_to_ptr.hbm [resolvable:$true] %s29_s20 }
   0x3   :  { %13 = vsyncpa [#allocation4], 0  ;;  %s5964_s21 = smov [#allocation5]   ;;  %s55_s25 = sshll.u32 %s6103_s3, 4  ;;  %s56_s25 = int_to_ptr.hbm [resolvable:$true] %s55_s25 }
   0x4   :  { %s31_s22 = sshll.u32 %s5964_s21, 4  ;;  %s5965_s26 = smov 192   ;;  %s32_s22 = int_to_ptr.vmem [resolvable:$true] %s31_s22 }
   0x5   :  { %s5966_s27 = smov 12   ;;  %s5967_s28 = smov [#allocation8]  }
   0x6   :  { %37 = dma.hbm_to_vmem [thread:$0]  %s30_s20, 24576, %s32_s22, [#allocation6], %s5965_s26, %s5965_s26, %s5966_s27  }
   0x7   :  { %s57_s29 = sshll.u32 %s5967_s28, 4  ;;  %s19_s7 = sshll.u32 %s6100_s0, 4  ;;  %s58_s29 = int_to_ptr.vmem [resolvable:$true] %s57_s29  ;;  %s20_s7 = int_to_ptr.hbm [resolvable:$true] %s19_s7 }
   0x8   :  { %63 = dma.hbm_to_vmem [thread:$0]  %s56_s25, 3072, %s58_s29, [#allocation9], %s5965_s26, %s5965_s26, %s5966_s27  }
   0x9   :  { %s42_s9 = sshll.u32 %s6102_s2, 4  ;;  %s5968_s10 = smov [#allocation2]   ;;  %s43_s9 = int_to_ptr.hbm [resolvable:$true] %s42_s9 }
   0xa   :  { %s21_s11 = sshll.u32 %s5968_s10, 4  ;;  %s5969_s3 = smov [#allocation7]   ;;  %s22_s11 = int_to_ptr.vmem [resolvable:$true] %s21_s11 }
   0xb   :  { %24 = dma.hbm_to_vmem [thread:$0]  %s20_s7, 1024, %s22_s11, [#allocation3]  }
   0xc   :  { %s44_s12 = sshll.u32 %s5969_s3, 4  ;;  %s5970_s13 = smov 64   ;;  %s45_s12 = int_to_ptr.vmem [resolvable:$true] %s44_s12 }
   0xd   :  { %s5971_s14 = smov 4   ;;  %s68_s16 = sshll.u32 %s6104_s4, 4  ;;  %s69_s16 = int_to_ptr.hbm [resolvable:$true] %s68_s16 }
   0xe   :  { %50 = dma.hbm_to_vmem [thread:$0]  %s43_s9, 3072, %s45_s12, [#allocation6], %s5970_s13, %s5970_s13, %s5971_s14  }
   0xf   :  { %s5972_s17 = smov [#allocation10]   ;;  %s5973_s2 = smov 512  }
  0x10   :  { %s70_s18 = sshll.u32 %s5972_s17, 4  ;;  %s5974_s19 = smov 32   ;;  %s71_s18 = int_to_ptr.vmem [resolvable:$true] %s70_s18 }
  0x11   :  { %76 = dma.hbm_to_vmem [thread:$0]  %s69_s16, 24576, %s71_s18, [#allocation9], %s5973_s2, %s5973_s2, %s5974_s19  }
  0x12   :  { %5956 = dma.done.wait [#allocation3], 1024  }
  0x13   :  { %5957 = vsyncadd [#allocation3], 4294966272 }
  0x14   :  { %5958 = dma.done.wait [#allocation6], 27648  }
  0x15   :  { %5959 = vsyncadd [#allocation6], 4294939648 }
  0x16   :  { %5960 = dma.done.wait [#allocation9], 27648  }
  0x17   :  { %5961 = vsyncadd [#allocation9], 4294939648  ;;  %v3726_v0 = vld [vmem:[#allocation5 + $0xa8] sm:$0xf]  ;;  %v5390_v1 = vld [vmem:[#allocation5 + $0xb0] sm:$0xf0] }
  0x18   :  { %v3822_v2 = vld [vmem:[#allocation5 + $0x168] sm:$0xf]  ;;  %v3727_v3 = vor.u32 %v5390_v1, %v3726_v0  ;;  %v5414_v4 = vld [vmem:[#allocation5 + $0x170] sm:$0xf0]  ;;  %v3714_v11 = vld [vmem:[#allocation5 + $0x90] sm:$0xf] }
  0x19   :  { %v3918_v5 = vld [vmem:[#allocation5 + $0x228] sm:$0xf]  ;;  %v5438_v6 = vld [vmem:[#allocation5 + $0x230] sm:$0xf0]  ;;  %v3823_v7 = vor.u32 %v5414_v4, %v3822_v2  ;;  %v5387_v13 = vld [vmem:[#allocation5 + $0x98] sm:$0xf0] }
  0x1a   :  { %v3919_v8 = vor.u32 %v5438_v6, %v3918_v5  ;;  %v4014_v9 = vld [vmem:[#allocation5 + $0x2e8] sm:$0xf]  ;;  %v5462_v10 = vld [vmem:[#allocation5 + $0x2f0] sm:$0xf0]  ;;  %1393 = vmatpush.bf16.msra.mxu0 %v3727_v3  ;;  %v3810_v14 = vld [vmem:[#allocation5 + $0x150] sm:$0xf]  ;;  %v3715_v16 = vor.u32 %v5387_v13, %v3714_v11 }
  0x1b   :  { %v4015_v12 = vor.u32 %v5462_v10, %v4014_v9  ;;  %v5411_v15 = vld [vmem:[#allocation5 + $0x158] sm:$0xf0]  ;;  %1406 = vmatpush.bf16.msra.mxu1 %v3823_v7  ;;  %v3906_v18 = vld [vmem:[#allocation5 + $0x210] sm:$0xf]  ;;  %v3702_v23 = vld [vmem:[#allocation5 + $0x78] sm:$0xf] }
  0x1c   :  { %1419 = vmatpush.bf16.msra.mxu2 %v3919_v8  ;;  %v3811_v17 = vor.u32 %v5411_v15, %v3810_v14  ;;  %v5435_v19 = vld [vmem:[#allocation5 + $0x218] sm:$0xf0]  ;;  %v4002_v20 = vld [vmem:[#allocation5 + $0x2d0] sm:$0xf]  ;;  %v5384_v24 = vld [vmem:[#allocation5 + $0x80] sm:$0xf0] }
  0x1d   :  { %1432 = vmatpush.bf16.msra.mxu3 %v4015_v12  ;;  %v3907_v21 = vor.u32 %v5435_v19, %v3906_v18  ;;  %v5459_v22 = vld [vmem:[#allocation5 + $0x2d8] sm:$0xf0]  ;;  %v3798_v26 = vld [vmem:[#allocation5 + $0x138] sm:$0xf]  ;;  %v5408_v27 = vld [vmem:[#allocation5 + $0x140] sm:$0xf0]  ;;  %v3703_v29 = vor.u32 %v5384_v24, %v3702_v23 }
  0x1e   :  { %v4003_v25 = vor.u32 %v5459_v22, %v4002_v20  ;;  %v3894_v28 = vld [vmem:[#allocation5 + $0x1f8] sm:$0xf]  ;;  %1394 = vmatpush.bf16.msra.mxu0 %v3715_v16  ;;  %v5432_v30 = vld [vmem:[#allocation5 + $0x200] sm:$0xf0]  ;;  %v3799_v33 = vor.u32 %v5408_v27, %v3798_v26  ;;  %v3690_v35 = vld [vmem:[#allocation5 + $0x60] sm:$0xf] }
  0x1f   :  { %v3990_v31 = vld [vmem:[#allocation5 + $0x2b8] sm:$0xf]  ;;  %v5456_v32 = vld [vmem:[#allocation5 + $0x2c0] sm:$0xf0]  ;;  %1407 = vmatpush.bf16.msra.mxu1 %v3811_v17  ;;  %v3895_v34 = vor.u32 %v5432_v30, %v3894_v28  ;;  %v5381_v36 = vld [vmem:[#allocation5 + $0x68] sm:$0xf0] }
  0x20   :  { %1420 = vmatpush.bf16.msra.mxu2 %v3907_v21  ;;  %v3786_v37 = vld [vmem:[#allocation5 + $0x120] sm:$0xf]  ;;  %v3991_v38 = vor.u32 %v5456_v32, %v3990_v31  ;;  %v5405_v39 = vld [vmem:[#allocation5 + $0x128] sm:$0xf0]  ;;  %v3691_v44 = vor.u32 %v5381_v36, %v3690_v35  ;;  %v3678_v47 = vld [vmem:[#allocation5 + $0x48] sm:$0xf] }
  0x21   :  { %1433 = vmatpush.bf16.msra.mxu3 %v4003_v25  ;;  %v3882_v40 = vld [vmem:[#allocation5 + $0x1e0] sm:$0xf]  ;;  %v5429_v41 = vld [vmem:[#allocation5 + $0x1e8] sm:$0xf0]  ;;  %v3787_v45 = vor.u32 %v5405_v39, %v3786_v37  ;;  %v5378_v48 = vld [vmem:[#allocation5 + $0x50] sm:$0xf0] }
  0x22   :  { %v3978_v42 = vld [vmem:[#allocation5 + $0x2a0] sm:$0xf]  ;;  %v5453_v43 = vld [vmem:[#allocation5 + $0x2a8] sm:$0xf0]  ;;  %1395 = vmatpush.bf16.msra.mxu0 %v3703_v29  ;;  %v3883_v46 = vor.u32 %v5429_v41, %v3882_v40  ;;  %v3774_v49 = vld [vmem:[#allocation5 + $0x108] sm:$0xf]  ;;  %v3679_v56 = vor.u32 %v5378_v48, %v3678_v47 }
  0x23   :  { %1408 = vmatpush.bf16.msra.mxu1 %v3799_v33  ;;  %v3979_v50 = vor.u32 %v5453_v43, %v3978_v42  ;;  %v5402_v51 = vld [vmem:[#allocation5 + $0x110] sm:$0xf0]  ;;  %v3870_v52 = vld [vmem:[#allocation5 + $0x1c8] sm:$0xf]  ;;  %v3666_v59 = vld [vmem:[#allocation5 + $0x30] sm:$0xf] }
  0x24   :  { %1421 = vmatpush.bf16.msra.mxu2 %v3895_v34  ;;  %v5426_v53 = vld [vmem:[#allocation5 + $0x1d0] sm:$0xf0]  ;;  %v3966_v54 = vld [vmem:[#allocation5 + $0x288] sm:$0xf]  ;;  %v3775_v57 = vor.u32 %v5402_v51, %v3774_v49  ;;  %v5375_v60 = vld [vmem:[#allocation5 + $0x38] sm:$0xf0] }
  0x25   :  { %1434 = vmatpush.bf16.msra.mxu3 %v3991_v38  ;;  %v5450_v55 = vld [vmem:[#allocation5 + $0x290] sm:$0xf0]  ;;  %v3871_v58 = vor.u32 %v5426_v53, %v3870_v52  ;;  %v3762_v61 = vld [vmem:[#allocation5 + $0xf0] sm:$0xf]  ;;  %v5399_v63 = vld [vmem:[#allocation5 + $0xf8] sm:$0xf0]  ;;  %v3667_v4 = vor.u32 %v5375_v60, %v3666_v59 }
  0x26   :  { %1396 = vmatpush.bf16.msra.mxu0 %v3691_v44  ;;  %v3967_v62 = vor.u32 %v5450_v55, %v3966_v54  ;;  %v3858_v0 = vld [vmem:[#allocation5 + $0x1b0] sm:$0xf]  ;;  %v5423_v1 = vld [vmem:[#allocation5 + $0x1b8] sm:$0xf0]  ;;  %v3763_v5 = vor.u32 %v5399_v63, %v3762_v61  ;;  %v3654_v7 = vld [vmem:[#allocation5 + $0x18] sm:$0xf] }
  0x27   :  { %1409 = vmatpush.bf16.msra.mxu1 %v3787_v45  ;;  %v3954_v2 = vld [vmem:[#allocation5 + $0x270] sm:$0xf]  ;;  %v5447_v3 = vld [vmem:[#allocation5 + $0x278] sm:$0xf0]  ;;  %v3859_v6 = vor.u32 %v5423_v1, %v3858_v0  ;;  %v5372_v8 = vld [vmem:[#allocation5 + $0x20] sm:$0xf0] }
  0x28   :  { %1422 = vmatpush.bf16.msra.mxu2 %v3883_v46  ;;  %v3750_v9 = vld [vmem:[#allocation5 + $0xd8] sm:$0xf]  ;;  %v3955_v10 = vor.u32 %v5447_v3, %v3954_v2  ;;  %v5396_v11 = vld [vmem:[#allocation5 + $0xe0] sm:$0xf0]  ;;  %v3655_v16 = vor.u32 %v5372_v8, %v3654_v7  ;;  %v3642_v17 = vld [vmem:[#allocation5] sm:$0xf] }
  0x29   :  { %1435 = vmatpush.bf16.msra.mxu3 %v3979_v50  ;;  %v3846_v12 = vld [vmem:[#allocation5 + $0x198] sm:$0xf]  ;;  %v5420_v13 = vld [vmem:[#allocation5 + $0x1a0] sm:$0xf0]  ;;  %v5369_v18 = vld [vmem:[#allocation5 + $0x8] sm:$0xf0]  ;;  %v3751_v19 = vor.u32 %v5396_v11, %v3750_v9 }
  0x2a   :  { %1397 = vmatpush.bf16.msra.mxu0 %v3679_v56  ;;  %v3942_v14 = vld [vmem:[#allocation5 + $0x258] sm:$0xf]  ;;  %v5444_v15 = vld [vmem:[#allocation5 + $0x260] sm:$0xf0]  ;;  %v3847_v20 = vor.u32 %v5420_v13, %v3846_v12  ;;  %v3738_v21 = vld [vmem:[#allocation5 + $0xc0] sm:$0xf]  ;;  %v3643_v31 = vor.u32 %v5369_v18, %v3642_v17 }
  0x2b   :  { %1410 = vmatpush.bf16.msra.mxu1 %v3775_v57  ;;  %v5393_v22 = vld [vmem:[#allocation5 + $0xc8] sm:$0xf0]  ;;  %v3834_v23 = vld [vmem:[#allocation5 + $0x180] sm:$0xf]  ;;  %v3943_v24 = vor.u32 %v5444_v15, %v3942_v14  ;;  %v4110_v28 = vld [vmem:[#allocation5 + $0x3a8] sm:$0xf] }
  0x2c   :  { %1423 = vmatpush.bf16.msra.mxu2 %v3871_v58  ;;  %v5417_v25 = vld [vmem:[#allocation5 + $0x188] sm:$0xf0]  ;;  %v3930_v26 = vld [vmem:[#allocation5 + $0x240] sm:$0xf]  ;;  %v5486_v29 = vld [vmem:[#allocation5 + $0x3b0] sm:$0xf0]  ;;  %v3739_v35 = vor.u32 %v5393_v22, %v3738_v21 }
  0x2d   :  { %1436 = vmatpush.bf16.msra.mxu3 %v3967_v62  ;;  %v5441_v27 = vld [vmem:[#allocation5 + $0x248] sm:$0xf0]  ;;  %v4206_v30 = vld [vmem:[#allocation5 + $0x468] sm:$0xf]  ;;  %v5510_v32 = vld [vmem:[#allocation5 + $0x470] sm:$0xf0]  ;;  %v3835_v36 = vor.u32 %v5417_v25, %v3834_v23  ;;  %v4111_v40 = vor.u32 %v5486_v29, %v4110_v28 }
  0x2e   :  { %1398 = vmatpush.bf16.msra.mxu0 %v3667_v4  ;;  %v4302_v33 = vld [vmem:[#allocation5 + $0x528] sm:$0xf]  ;;  %v5534_v34 = vld [vmem:[#allocation5 + $0x530] sm:$0xf0]  ;;  %v3931_v39 = vor.u32 %v5441_v27, %v3930_v26  ;;  %v4207_v41 = vor.u32 %v5510_v32, %v4206_v30  ;;  %v4098_v43 = vld [vmem:[#allocation5 + $0x390] sm:$0xf] }
  0x2f   :  { %1411 = vmatpush.bf16.msra.mxu1 %v3763_v5  ;;  %v4398_v37 = vld [vmem:[#allocation5 + $0x5e8] sm:$0xf]  ;;  %v5558_v38 = vld [vmem:[#allocation5 + $0x5f0] sm:$0xf0]  ;;  %v4303_v42 = vor.u32 %v5534_v34, %v4302_v33  ;;  %v5483_v44 = vld [vmem:[#allocation5 + $0x398] sm:$0xf0] }
  0x30   :  { %1424 = vmatpush.bf16.msra.mxu2 %v3859_v6  ;;  %v4194_v45 = vld [vmem:[#allocation5 + $0x450] sm:$0xf]  ;;  %v4399_v46 = vor.u32 %v5558_v38, %v4398_v37  ;;  %v5507_v47 = vld [vmem:[#allocation5 + $0x458] sm:$0xf0]  ;;  %v4099_v52 = vor.u32 %v5483_v44, %v4098_v43  ;;  %v4086_v53 = vld [vmem:[#allocation5 + $0x378] sm:$0xf] }
  0x31   :  { %1437 = vmatpush.bf16.msra.mxu3 %v3955_v10  ;;  %v4290_v48 = vld [vmem:[#allocation5 + $0x510] sm:$0xf]  ;;  %v5531_v49 = vld [vmem:[#allocation5 + $0x518] sm:$0xf0]  ;;  %v4195_v54 = vor.u32 %v5507_v47, %v4194_v45  ;;  %v5480_v56 = vld [vmem:[#allocation5 + $0x380] sm:$0xf0] }
  0x32   :  { %1399 = vmatpush.bf16.msra.mxu0 %v3655_v16  ;;  %v4386_v50 = vld [vmem:[#allocation5 + $0x5d0] sm:$0xf]  ;;  %v5555_v51 = vld [vmem:[#allocation5 + $0x5d8] sm:$0xf0]  ;;  %v4291_v55 = vor.u32 %v5531_v49, %v4290_v48  ;;  %v4182_v57 = vld [vmem:[#allocation5 + $0x438] sm:$0xf]  ;;  %v4087_v2 = vor.u32 %v5480_v56, %v4086_v53 }
  0x33   :  { %1412 = vmatpush.bf16.msra.mxu1 %v3751_v19  ;;  %v99_v58 = vld [vmem:[#allocation2 + $0x10] sm:$0xff]  ;;  %v4387_v59 = vor.u32 %v5555_v51, %v4386_v50  ;;  %v5504_v60 = vld [vmem:[#allocation5 + $0x440] sm:$0xf0]  ;;  %v4278_v61 = vld [vmem:[#allocation5 + $0x4f8] sm:$0xf]  ;;  %s5975_s4 = smov [#allocation11]  }
  0x34   :  { %1425 = vmatpush.bf16.msra.mxu2 %v3847_v20  ;;  %v5528_v62 = vld [vmem:[#allocation5 + $0x500] sm:$0xf0]  ;;  %v6021_v63 = vpack.c.bf16 %v99_v58, %v99_v58  ;;  %v4374_v0 = vld [vmem:[#allocation5 + $0x5b8] sm:$0xf]  ;;  %v4074_v3 = vld [vmem:[#allocation5 + $0x360] sm:$0xf]  ;;  %v4183_v6 = vor.u32 %v5504_v60, %v4182_v57 }
  0x35   :  { %1438 = vmatpush.bf16.msra.mxu3 %v3943_v24  ;;  %v5552_v1 = vld [vmem:[#allocation5 + $0x5c0] sm:$0xf0]  ;;  %v5477_v4 = vld [vmem:[#allocation5 + $0x368] sm:$0xf0]  ;;  %v4279_v7 = vor.u32 %v5528_v62, %v4278_v61  ;;  %v4170_v8 = vld [vmem:[#allocation5 + $0x420] sm:$0xf] }
  0x36   :  { %1400 = vmatpush.bf16.msra.mxu0 %v3643_v31  ;;  %v97_v5 = vld [vmem:[#allocation2] sm:$0xff]  ;;  %v100_v10 = vld [vmem:[#allocation2 + $0x18] sm:$0xff]  ;;  %v98_v11 = vld [vmem:[#allocation2 + $0x8] sm:$0xff]  ;;  %v4375_v12 = vor.u32 %v5552_v1, %v4374_v0  ;;  %v4075_v20 = vor.u32 %v5477_v4, %v4074_v3  ;;  %s3626_s20 = sshll.u32 %s5975_s4, 4  ;;  %s3628_s23 = sshll.u32 %s6105_s5, 4  ;;  %s3627_s20 = int_to_ptr.vmem [resolvable:$true] %s3626_s20  ;;  %s3629_s23 = int_to_ptr.hbm [resolvable:$true] %s3628_s23 }
  0x37   :  { %1413 = vmatpush.bf16.msra.mxu1 %v3739_v35  ;;  %v6024_v9 = vpack.c.bf16 %v97_v5, %v97_v5  ;;  %v5501_v13 = vld [vmem:[#allocation5 + $0x428] sm:$0xf0]  ;;  %v4266_v14 = vld [vmem:[#allocation5 + $0x4e0] sm:$0xf]  ;;  %v6026_v16 = vpack.c.bf16 %v100_v10, %v100_v10  ;;  %v6028_v17 = vpack.c.bf16 %v98_v11, %v98_v11  ;;  %v4062_v23 = vld [vmem:[#allocation5 + $0x348] sm:$0xf] }
  0x38   :  { %1426 = vmatpush.bf16.msra.mxu2 %v3835_v36  ;;  %v5525_v15 = vld [vmem:[#allocation5 + $0x4e8] sm:$0xf0]  ;;  %v4362_v18 = vld [vmem:[#allocation5 + $0x5a0] sm:$0xf]  ;;  %v4171_v21 = vor.u32 %v5501_v13, %v4170_v8  ;;  %v5474_v24 = vld [vmem:[#allocation5 + $0x350] sm:$0xf0] }
  0x39   :  { %1439 = vmatpush.bf16.msra.mxu3 %v3931_v39  ;;  %v5549_v19 = vld [vmem:[#allocation5 + $0x5a8] sm:$0xf0]  ;;  %1401 = vmatmul.bf16.vlgmr.msra.gmra.mxu0 %v6024_v9  ;;  %v4267_v22 = vor.u32 %v5525_v15, %v4266_v14  ;;  %v4158_v25 = vld [vmem:[#allocation5 + $0x408] sm:$0xf]  ;;  %v5498_v27 = vld [vmem:[#allocation5 + $0x410] sm:$0xf0]  ;;  %v4063_v32 = vor.u32 %v5474_v24, %v4062_v23 }
  0x3a   :  { %1445 = vmatpush.bf16.msrb.mxu0 %v4111_v40  ;;  %v4363_v26 = vor.u32 %v5549_v19, %v4362_v18  ;;  %v4254_v28 = vld [vmem:[#allocation5 + $0x4c8] sm:$0xf]  ;;  %v5522_v29 = vld [vmem:[#allocation5 + $0x4d0] sm:$0xf0]  ;;  %1414 = vmatmul.bf16.vlgmr.msra.gmra.mxu1 %v6028_v17  ;;  %v4159_v33 = vor.u32 %v5498_v27, %v4158_v25  ;;  %v4050_v35 = vld [vmem:[#allocation5 + $0x330] sm:$0xf] }
  0x3b   :  { %1458 = vmatpush.bf16.msrb.mxu1 %v4207_v41  ;;  %1427 = vmatmul.bf16.vlgmr.msra.gmra.mxu2 %v6021_v63  ;;  %v4350_v30 = vld [vmem:[#allocation5 + $0x588] sm:$0xf]  ;;  %v5546_v31 = vld [vmem:[#allocation5 + $0x590] sm:$0xf0]  ;;  %v4255_v34 = vor.u32 %v5522_v29, %v4254_v28  ;;  %v5471_v36 = vld [vmem:[#allocation5 + $0x338] sm:$0xf0] }
  0x3c   :  { %1471 = vmatpush.bf16.msrb.mxu2 %v4303_v42  ;;  %1440 = vmatmul.bf16.vlgmr.msra.gmra.mxu3 %v6026_v16  ;;  %v4146_v37 = vld [vmem:[#allocation5 + $0x3f0] sm:$0xf]  ;;  %v4351_v38 = vor.u32 %v5546_v31, %v4350_v30  ;;  %v5495_v39 = vld [vmem:[#allocation5 + $0x3f8] sm:$0xf0]  ;;  %v4051_v44 = vor.u32 %v5471_v36, %v4050_v35  ;;  %v4038_v47 = vld [vmem:[#allocation5 + $0x318] sm:$0xf] }
  0x3d   :  { %1484 = vmatpush.bf16.msrb.mxu3 %v4399_v46  ;;  %v4242_v40 = vld [vmem:[#allocation5 + $0x4b0] sm:$0xf]  ;;  %v5519_v41 = vld [vmem:[#allocation5 + $0x4b8] sm:$0xf0]  ;;  %v4147_v45 = vor.u32 %v5495_v39, %v4146_v37  ;;  %v5468_v48 = vld [vmem:[#allocation5 + $0x320] sm:$0xf0] }
  0x3e   :  { %1446 = vmatpush.bf16.msrb.mxu0 %v4099_v52  ;;  %v4338_v42 = vld [vmem:[#allocation5 + $0x570] sm:$0xf]  ;;  %v5543_v43 = vld [vmem:[#allocation5 + $0x578] sm:$0xf0]  ;;  %v4243_v46 = vor.u32 %v5519_v41, %v4242_v40  ;;  %v4134_v49 = vld [vmem:[#allocation5 + $0x3d8] sm:$0xf]  ;;  %v4039_v56 = vor.u32 %v5468_v48, %v4038_v47 }
  0x3f   :  { %1459 = vmatpush.bf16.msrb.mxu1 %v4195_v54  ;;  %v4339_v50 = vor.u32 %v5543_v43, %v4338_v42  ;;  %v5492_v51 = vld [vmem:[#allocation5 + $0x3e0] sm:$0xf0]  ;;  %v4230_v52 = vld [vmem:[#allocation5 + $0x498] sm:$0xf]  ;;  %v4026_v57 = vld [vmem:[#allocation5 + $0x300] sm:$0xf] }
  0x40   :  { %1472 = vmatpush.bf16.msrb.mxu2 %v4291_v55  ;;  %v5516_v53 = vld [vmem:[#allocation5 + $0x4a0] sm:$0xf0]  ;;  %v4326_v54 = vld [vmem:[#allocation5 + $0x558] sm:$0xf]  ;;  %v5465_v58 = vld [vmem:[#allocation5 + $0x308] sm:$0xf0] }
  0x41   :  { %1485 = vmatpush.bf16.msrb.mxu3 %v4387_v59  ;;  %v5540_v55 = vld [vmem:[#allocation5 + $0x560] sm:$0xf0]  ;;  %v4135_v59 = vor.u32 %v5492_v51, %v4134_v49  ;;  %v4231_v60 = vor.u32 %v5516_v53, %v4230_v52  ;;  %v4122_v61 = vld [vmem:[#allocation5 + $0x3c0] sm:$0xf]  ;;  %v5489_v62 = vld [vmem:[#allocation5 + $0x3c8] sm:$0xf0]  ;;  %v4027_v8 = vor.u32 %v5465_v58, %v4026_v57 }
  0x42   :  { %1447 = vmatpush.bf16.msrb.mxu0 %v4087_v2  ;;  %v4218_v0 = vld [vmem:[#allocation5 + $0x480] sm:$0xf]  ;;  %v4327_v1 = vor.u32 %v5540_v55, %v4326_v54  ;;  %v5513_v2 = vld [vmem:[#allocation5 + $0x488] sm:$0xf0]  ;;  %v3824_v10 = vld [vmem:[#allocation5 + $0x174] sm:$0xf0]  ;;  %v4123_v13 = vor.u32 %v5489_v62, %v4122_v61 }
  0x43   :  { %1460 = vmatpush.bf16.msrb.mxu1 %v4183_v6  ;;  %v4314_v3 = vld [vmem:[#allocation5 + $0x540] sm:$0xf]  ;;  %v5537_v4 = vld [vmem:[#allocation5 + $0x548] sm:$0xf0]  ;;  %v3728_v6 = vld [vmem:[#allocation5 + $0xb4] sm:$0xf0]  ;;  %v4219_v14 = vor.u32 %v5513_v2, %v4218_v0 }
  0x44   :  { %1473 = vmatpush.bf16.msrb.mxu2 %v4279_v7  ;;  %v5389_v5 = vld [vmem:[#allocation5 + $0xac] sm:$0xf]  ;;  %v4016_v18 = vld [vmem:[#allocation5 + $0x2f4] sm:$0xf0]  ;;  %v103_v19 = vld [vmem:[#allocation2 + $0x30] sm:$0xff] }
  0x45   :  { %1486 = vmatpush.bf16.msrb.mxu3 %v4375_v12  ;;  %v5413_v7 = vld [vmem:[#allocation5 + $0x16c] sm:$0xf]  ;;  %v3920_v12 = vld [vmem:[#allocation5 + $0x234] sm:$0xf0]  ;;  %v101_v23 = vld [vmem:[#allocation2 + $0x20] sm:$0xff] }
  0x46   :  { %1448 = vmatpush.bf16.msrb.mxu0 %v4075_v20  ;;  %v5437_v11 = vld [vmem:[#allocation5 + $0x22c] sm:$0xf]  ;;  %v4315_v20 = vor.u32 %v5537_v4, %v4314_v3  ;;  %v104_v24 = vld [vmem:[#allocation2 + $0x38] sm:$0xff]  ;;  %v3827_v25 = vor.u32 %v5413_v7, %v3824_v10  ;;  %v3716_v27 = vld [vmem:[#allocation5 + $0x9c] sm:$0xf0]  ;;  %v6035_v37 = vpack.c.bf16 %v101_v23, %v101_v23 }
  0x47   :  { %1461 = vmatpush.bf16.msrb.mxu1 %v4171_v21  ;;  %v5461_v15 = vld [vmem:[#allocation5 + $0x2ec] sm:$0xf]  ;;  %v3731_v21 = vor.u32 %v5389_v5, %v3728_v6  ;;  %v5410_v28 = vld [vmem:[#allocation5 + $0x154] sm:$0xf]  ;;  %v3812_v31 = vld [vmem:[#allocation5 + $0x15c] sm:$0xf0] }
  0x48   :  { %1474 = vmatpush.bf16.msrb.mxu2 %v4267_v22  ;;  %v5386_v22 = vld [vmem:[#allocation5 + $0x94] sm:$0xf]  ;;  %v102_v29 = vld [vmem:[#allocation2 + $0x28] sm:$0xff]  ;;  %v4019_v30 = vor.u32 %v5461_v15, %v4016_v18  ;;  %v4004_v36 = vld [vmem:[#allocation5 + $0x2dc] sm:$0xf0]  ;;  %v3815_v41 = vor.u32 %v5410_v28, %v3812_v31 }
  0x49   :  { %1487 = vmatpush.bf16.msrb.mxu3 %v4363_v26  ;;  %v3923_v26 = vor.u32 %v5437_v11, %v3920_v12  ;;  %v5458_v35 = vld [vmem:[#allocation5 + $0x2d4] sm:$0xf]  ;;  %v3719_v39 = vor.u32 %v5386_v22, %v3716_v27  ;;  %v6039_v40 = vpack.c.bf16 %v102_v29, %v102_v29  ;;  %v5383_v43 = vld [vmem:[#allocation5 + $0x7c] sm:$0xf]  ;;  %v3800_v47 = vld [vmem:[#allocation5 + $0x144] sm:$0xf0] }
  0x4a   :  { %1449 = vmatpush.bf16.msrb.mxu0 %v4063_v32  ;;  %v5434_v32 = vld [vmem:[#allocation5 + $0x214] sm:$0xf]  ;;  %v5431_v48 = vld [vmem:[#allocation5 + $0x1fc] sm:$0xf]  ;;  %v3896_v49 = vld [vmem:[#allocation5 + $0x204] sm:$0xf0] }
  0x4b   :  { %1462 = vmatpush.bf16.msrb.mxu1 %v4159_v33  ;;  %v3908_v33 = vld [vmem:[#allocation5 + $0x21c] sm:$0xf0]  ;;  %v3992_v51 = vld [vmem:[#allocation5 + $0x2c4] sm:$0xf0]  ;;  %v3899_v54 = vor.u32 %v5431_v48, %v3896_v49  ;;  %v5380_v55 = vld [vmem:[#allocation5 + $0x64] sm:$0xf] }
  0x4c   :  { %1475 = vmatpush.bf16.msrb.mxu2 %v4255_v34  ;;  %v6033_v34 = vpack.c.bf16 %v103_v19, %v103_v19  ;;  %v3911_v42 = vor.u32 %v5434_v32, %v3908_v33  ;;  %v5404_v57 = vld [vmem:[#allocation5 + $0x124] sm:$0xf]  ;;  %v3884_v61 = vld [vmem:[#allocation5 + $0x1ec] sm:$0xf0]  ;;  %v5377_v4 = vld [vmem:[#allocation5 + $0x4c] sm:$0xf] }
  0x4d   :  { %1488 = vmatpush.bf16.msrb.mxu3 %v4351_v38  ;;  %v6037_v38 = vpack.c.bf16 %v104_v24, %v104_v24  ;;  %v5452_v62 = vld [vmem:[#allocation5 + $0x2a4] sm:$0xf]  ;;  %v3980_v0 = vld [vmem:[#allocation5 + $0x2ac] sm:$0xf0]  ;;  %v3680_v5 = vld [vmem:[#allocation5 + $0x54] sm:$0xf0] }
  0x4e   :  { %1450 = vmatpush.bf16.msrb.mxu0 %v4051_v44  ;;  %v3704_v44 = vld [vmem:[#allocation5 + $0x84] sm:$0xf0]  ;;  %v5401_v6 = vld [vmem:[#allocation5 + $0x10c] sm:$0xf]  ;;  %v3983_v7 = vor.u32 %v5452_v62, %v3980_v0  ;;  %v3872_v11 = vld [vmem:[#allocation5 + $0x1d4] sm:$0xf0] }
  0x4f   :  { %1463 = vmatpush.bf16.msrb.mxu1 %v4147_v45  ;;  %v5407_v45 = vld [vmem:[#allocation5 + $0x13c] sm:$0xf]  ;;  %v3707_v52 = vor.u32 %v5383_v43, %v3704_v44  ;;  %v5425_v10 = vld [vmem:[#allocation5 + $0x1cc] sm:$0xf]  ;;  %v5374_v19 = vld [vmem:[#allocation5 + $0x34] sm:$0xf] }
  0x50   :  { %1476 = vmatpush.bf16.msrb.mxu2 %v4243_v46  ;;  %v4007_v46 = vor.u32 %v5458_v35, %v4004_v36  ;;  %v3803_v53 = vor.u32 %v5407_v45, %v3800_v47  ;;  %v5449_v12 = vld [vmem:[#allocation5 + $0x28c] sm:$0xf]  ;;  %v3875_v18 = vor.u32 %v5425_v10, %v3872_v11  ;;  %v3764_v23 = vld [vmem:[#allocation5 + $0xfc] sm:$0xf0]  ;;  %v5422_v24 = vld [vmem:[#allocation5 + $0x1b4] sm:$0xf] }
  0x51   :  { %1489 = vmatpush.bf16.msrb.mxu3 %v4339_v50  ;;  %v5455_v50 = vld [vmem:[#allocation5 + $0x2bc] sm:$0xf]  ;;  %v3956_v27 = vld [vmem:[#allocation5 + $0x27c] sm:$0xf0]  ;;  %v3656_v32 = vld [vmem:[#allocation5 + $0x24] sm:$0xf0] }
  0x52   :  { %1451 = vmatpush.bf16.msrb.mxu0 %v4039_v56  ;;  %v3692_v56 = vld [vmem:[#allocation5 + $0x6c] sm:$0xf0]  ;;  %v3995_v58 = vor.u32 %v5455_v50, %v3992_v51  ;;  %v5371_v31 = vld [vmem:[#allocation5 + $0x1c] sm:$0xf]  ;;  %v3752_v36 = vld [vmem:[#allocation5 + $0xe4] sm:$0xf0] }
  0x53   :  { %1464 = vmatpush.bf16.msrb.mxu1 %v4135_v59  ;;  %v3788_v59 = vld [vmem:[#allocation5 + $0x12c] sm:$0xf0]  ;;  %v5395_v33 = vld [vmem:[#allocation5 + $0xdc] sm:$0xf]  ;;  %v3944_v43 = vld [vmem:[#allocation5 + $0x264] sm:$0xf0]  ;;  %v3659_v44 = vor.u32 %v5371_v31, %v3656_v32 }
  0x54   :  { %1477 = vmatpush.bf16.msrb.mxu2 %v4231_v60  ;;  %v5428_v60 = vld [vmem:[#allocation5 + $0x1e4] sm:$0xf]  ;;  %v3791_v2 = vor.u32 %v5404_v57, %v3788_v59  ;;  %v3755_v47 = vor.u32 %v5395_v33, %v3752_v36  ;;  %v3740_v50 = vld [vmem:[#allocation5 + $0xcc] sm:$0xf0]  ;;  %v4112_v57 = vld [vmem:[#allocation5 + $0x3b4] sm:$0xf0] }
  0x55   :  { %1490 = vmatpush.bf16.msrb.mxu3 %v4327_v1  ;;  %v3695_v1 = vor.u32 %v5380_v55, %v3692_v56  ;;  %v3887_v3 = vor.u32 %v5428_v60, %v3884_v61  ;;  %v5368_v45 = vld [vmem:[#allocation5 + $0x4] sm:$0xf]  ;;  %v3932_v55 = vld [vmem:[#allocation5 + $0x24c] sm:$0xf0]  ;;  %v5485_v56 = vld [vmem:[#allocation5 + $0x3ac] sm:$0xf] }
  0x56   :  { %1452 = vmatpush.bf16.msrb.mxu0 %v4027_v8  ;;  %v3776_v8 = vld [vmem:[#allocation5 + $0x114] sm:$0xf0]  ;;  %v5392_v49 = vld [vmem:[#allocation5 + $0xc4] sm:$0xf]  ;;  %v5533_v61 = vld [vmem:[#allocation5 + $0x52c] sm:$0xf] }
  0x57   :  { %1465 = vmatpush.bf16.msrb.mxu1 %v4123_v13  ;;  %v3968_v13 = vld [vmem:[#allocation5 + $0x294] sm:$0xf0]  ;;  %v3779_v15 = vor.u32 %v5401_v6, %v3776_v8  ;;  %v5416_v51 = vld [vmem:[#allocation5 + $0x184] sm:$0xf]  ;;  %v3743_v0 = vor.u32 %v5392_v49, %v3740_v50  ;;  %v5482_v8 = vld [vmem:[#allocation5 + $0x394] sm:$0xf] }
  0x58   :  { %1478 = vmatpush.bf16.msrb.mxu2 %v4219_v14  ;;  %v3683_v14 = vor.u32 %v5377_v4, %v3680_v5  ;;  %v3971_v22 = vor.u32 %v5449_v12, %v3968_v13  ;;  %v4208_v60 = vld [vmem:[#allocation5 + $0x474] sm:$0xf0]  ;;  %v4115_v5 = vor.u32 %v5485_v56, %v4112_v57  ;;  %v4100_v10 = vld [vmem:[#allocation5 + $0x39c] sm:$0xf0]  ;;  %v5506_v11 = vld [vmem:[#allocation5 + $0x454] sm:$0xf] }
  0x59   :  { %1491 = vmatpush.bf16.msrb.mxu3 %v4315_v20  ;;  %1453 = vmatmul.bf16.vlgmr.msrb.gmra.mxu0 %v6035_v37  ;;  %v3668_v20 = vld [vmem:[#allocation5 + $0x3c] sm:$0xf0]  ;;  %v4304_v62 = vld [vmem:[#allocation5 + $0x534] sm:$0xf0]  ;;  %v4376_v31 = vld [vmem:[#allocation5 + $0x5c4] sm:$0xf0] }
  0x5a   :  { %1497 = vmatpush.bf16.msra.mxu0 %v3731_v21  ;;  %1466 = vmatmul.bf16.vlgmr.msrb.gmra.mxu1 %v6039_v40  ;;  %v5398_v21 = vld [vmem:[#allocation5 + $0xf4] sm:$0xf]  ;;  %v3671_v28 = vor.u32 %v5374_v19, %v3668_v20  ;;  %v4196_v13 = vld [vmem:[#allocation5 + $0x45c] sm:$0xf0]  ;;  %v4103_v20 = vor.u32 %v5482_v8, %v4100_v10  ;;  %v5476_v36 = vld [vmem:[#allocation5 + $0x364] sm:$0xf] }
  0x5b   :  { %1510 = vmatpush.bf16.msra.mxu1 %v3827_v25  ;;  %1479 = vmatmul.bf16.vlgmr.msrb.gmra.mxu2 %v6033_v34  ;;  %v3860_v25 = vld [vmem:[#allocation5 + $0x1bc] sm:$0xf0]  ;;  %v3767_v29 = vor.u32 %v5398_v21, %v3764_v23  ;;  %v4199_v21 = vor.u32 %v5506_v11, %v4196_v13  ;;  %v5479_v23 = vld [vmem:[#allocation5 + $0x37c] sm:$0xf]  ;;  %v5521_v56 = vld [vmem:[#allocation5 + $0x4cc] sm:$0xf] }
  0x5c   :  { %1523 = vmatpush.bf16.msra.mxu2 %v3923_v26  ;;  %1492 = vmatmul.bf16.vlgmr.msrb.gmra.mxu3 %v6037_v38  ;;  %v5446_v26 = vld [vmem:[#allocation5 + $0x274] sm:$0xf]  ;;  %v4388_v19 = vld [vmem:[#allocation5 + $0x5dc] sm:$0xf0]  ;;  %v4256_v57 = vld [vmem:[#allocation5 + $0x4d4] sm:$0xf0] }
  0x5d   :  { %1536 = vmatpush.bf16.msra.mxu3 %v4019_v30  ;;  %v3863_v30 = vor.u32 %v5422_v24, %v3860_v25  ;;  %v3959_v35 = vor.u32 %v5446_v26, %v3956_v27  ;;  %v4088_v24 = vld [vmem:[#allocation5 + $0x384] sm:$0xf0]  ;;  %v5503_v25 = vld [vmem:[#allocation5 + $0x43c] sm:$0xf]  ;;  %v4340_v8 = vld [vmem:[#allocation5 + $0x57c] sm:$0xf0] }
  0x5e   :  { %1498 = vmatpush.bf16.msra.mxu0 %v3719_v39  ;;  %v5419_v39 = vld [vmem:[#allocation5 + $0x19c] sm:$0xf]  ;;  %v4184_v27 = vld [vmem:[#allocation5 + $0x444] sm:$0xf0]  ;;  %v4091_v32 = vor.u32 %v5479_v23, %v4088_v24 }
  0x5f   :  { %1511 = vmatpush.bf16.msra.mxu1 %v3815_v41  ;;  %v3848_v41 = vld [vmem:[#allocation5 + $0x1a4] sm:$0xf0]  ;;  %v4187_v33 = vor.u32 %v5503_v25, %v4184_v27  ;;  %v5467_v13 = vld [vmem:[#allocation5 + $0x31c] sm:$0xf]  ;;  %v5464_v25 = vld [vmem:[#allocation5 + $0x304] sm:$0xf] }
  0x60   :  { %1524 = vmatpush.bf16.msra.mxu2 %v3911_v42  ;;  %v5443_v42 = vld [vmem:[#allocation5 + $0x25c] sm:$0xf]  ;;  %v3851_v48 = vor.u32 %v5419_v39, %v3848_v41  ;;  %v4076_v39 = vld [vmem:[#allocation5 + $0x36c] sm:$0xf0]  ;;  %v5500_v41 = vld [vmem:[#allocation5 + $0x424] sm:$0xf] }
  0x61   :  { %1537 = vmatpush.bf16.msra.mxu3 %v4007_v46  ;;  %v3644_v46 = vld [vmem:[#allocation5 + $0xc] sm:$0xf0]  ;;  %v4328_v23 = vld [vmem:[#allocation5 + $0x564] sm:$0xf0] }
  0x62   :  { %1499 = vmatpush.bf16.msra.mxu0 %v3707_v52  ;;  %v3947_v52 = vor.u32 %v5443_v42, %v3944_v43  ;;  %v3647_v59 = vor.u32 %v5368_v45, %v3644_v46  ;;  %v4172_v43 = vld [vmem:[#allocation5 + $0x42c] sm:$0xf0]  ;;  %v5548_v46 = vld [vmem:[#allocation5 + $0x5a4] sm:$0xf] }
  0x63   :  { %1512 = vmatpush.bf16.msra.mxu1 %v3803_v53  ;;  %v3836_v53 = vld [vmem:[#allocation5 + $0x18c] sm:$0xf0]  ;;  %v4175_v49 = vor.u32 %v5500_v41, %v4172_v43  ;;  %v5391_v41 = vld [vmem:[#allocation5 + $0xb8] sm:$0xf0] }
  0x64   :  { %1525 = vmatpush.bf16.msra.mxu2 %v3899_v54  ;;  %v5440_v54 = vld [vmem:[#allocation5 + $0x244] sm:$0xf]  ;;  %v4268_v45 = vld [vmem:[#allocation5 + $0x4ec] sm:$0xf0] }
  0x65   :  { %1538 = vmatpush.bf16.msra.mxu3 %v3995_v58  ;;  %v5509_v58 = vld [vmem:[#allocation5 + $0x46c] sm:$0xf]  ;;  %v3935_v4 = vor.u32 %v5440_v54, %v3932_v55  ;;  %v4160_v55 = vld [vmem:[#allocation5 + $0x414] sm:$0xf0] }
  0x66   :  { %1500 = vmatpush.bf16.msra.mxu0 %v3695_v1  ;;  %v3839_v1 = vor.u32 %v5416_v51, %v3836_v53  ;;  %v4211_v6 = vor.u32 %v5509_v58, %v4208_v60  ;;  %v5473_v51 = vld [vmem:[#allocation5 + $0x34c] sm:$0xf] }
  0x67   :  { %1513 = vmatpush.bf16.msra.mxu1 %v3791_v2  ;;  %v5557_v2 = vld [vmem:[#allocation5 + $0x5ec] sm:$0xf] }
  0x68   :  { %1526 = vmatpush.bf16.msra.mxu2 %v3887_v3  ;;  %v4400_v3 = vld [vmem:[#allocation5 + $0x5f4] sm:$0xf0]  ;;  %v5497_v53 = vld [vmem:[#allocation5 + $0x40c] sm:$0xf] }
  0x69   :  { %1539 = vmatpush.bf16.msra.mxu3 %v3983_v7  ;;  %v4307_v7 = vor.u32 %v5533_v61, %v4304_v62  ;;  %v4403_v12 = vor.u32 %v5557_v2, %v4400_v3  ;;  %v5545_v58 = vld [vmem:[#allocation5 + $0x58c] sm:$0xf]  ;;  %v4163_v61 = vor.u32 %v5497_v53, %v4160_v55  ;;  %v4259_v62 = vor.u32 %v5521_v56, %v4256_v57  ;;  %v5494_v2 = vld [vmem:[#allocation5 + $0x3f4] sm:$0xf]  ;;  %v3722_v55 = vld [vmem:[#allocation5 + $0x98] sm:$0xf] }
  0x6a   :  { %1501 = vmatpush.bf16.msra.mxu0 %v3683_v14  ;;  %v5530_v14 = vld [vmem:[#allocation5 + $0x514] sm:$0xf]  ;;  %v5388_v56 = vld [vmem:[#allocation5 + $0xa0] sm:$0xf0]  ;;  %v3818_v57 = vld [vmem:[#allocation5 + $0x158] sm:$0xf] }
  0x6b   :  { %1514 = vmatpush.bf16.msra.mxu1 %v3779_v15  ;;  %v4292_v15 = vld [vmem:[#allocation5 + $0x51c] sm:$0xf0] }
  0x6c   :  { %1527 = vmatpush.bf16.msra.mxu2 %v3875_v18  ;;  %v5554_v18 = vld [vmem:[#allocation5 + $0x5d4] sm:$0xf] }
  0x6d   :  { %1540 = vmatpush.bf16.msra.mxu3 %v3971_v22  ;;  %v4295_v22 = vor.u32 %v5530_v14, %v4292_v15  ;;  %v4391_v26 = vor.u32 %v5554_v18, %v4388_v19  ;;  %v4040_v14 = vld [vmem:[#allocation5 + $0x324] sm:$0xf0]  ;;  %v5491_v15 = vld [vmem:[#allocation5 + $0x3dc] sm:$0xf] }
  0x6e   :  { %1502 = vmatpush.bf16.msra.mxu0 %v3671_v28  ;;  %v5527_v28 = vld [vmem:[#allocation5 + $0x4fc] sm:$0xf]  ;;  %v4136_v19 = vld [vmem:[#allocation5 + $0x3e4] sm:$0xf0]  ;;  %v4043_v24 = vor.u32 %v5467_v13, %v4040_v14  ;;  %v5457_v13 = vld [vmem:[#allocation5 + $0x2c8] sm:$0xf0] }
  0x6f   :  { %1515 = vmatpush.bf16.msra.mxu1 %v3767_v29  ;;  %v4280_v29 = vld [vmem:[#allocation5 + $0x504] sm:$0xf0]  ;;  %v4139_v27 = vor.u32 %v5491_v15, %v4136_v19 }
  0x70   :  { %1528 = vmatpush.bf16.msra.mxu2 %v3863_v30  ;;  %v5551_v30 = vld [vmem:[#allocation5 + $0x5bc] sm:$0xf]  ;;  %v3698_v19 = vld [vmem:[#allocation5 + $0x68] sm:$0xf] }
  0x71   :  { %1541 = vmatpush.bf16.msra.mxu3 %v3959_v35  ;;  %v4283_v35 = vor.u32 %v5527_v28, %v4280_v29  ;;  %v4379_v42 = vor.u32 %v5551_v30, %v4376_v31  ;;  %v5488_v29 = vld [vmem:[#allocation5 + $0x3c4] sm:$0xf]  ;;  %v4124_v30 = vld [vmem:[#allocation5 + $0x3cc] sm:$0xf0] }
  0x72   :  { %1503 = vmatpush.bf16.msra.mxu0 %v3659_v44  ;;  %v5524_v44 = vld [vmem:[#allocation5 + $0x4e4] sm:$0xf] }
  0x73   :  { %1516 = vmatpush.bf16.msra.mxu1 %v3755_v47  ;;  %v4364_v47 = vld [vmem:[#allocation5 + $0x5ac] sm:$0xf0]  ;;  %v4271_v50 = vor.u32 %v5524_v44, %v4268_v45  ;;  %v5512_v31 = vld [vmem:[#allocation5 + $0x484] sm:$0xf]  ;;  %v5415_v44 = vld [vmem:[#allocation5 + $0x178] sm:$0xf0] }
  0x74   :  { %1529 = vmatpush.bf16.msra.mxu2 %v3851_v48  ;;  %v4079_v48 = vor.u32 %v5476_v36, %v4076_v39  ;;  %v4367_v54 = vor.u32 %v5548_v46, %v4364_v47  ;;  %v4316_v36 = vld [vmem:[#allocation5 + $0x54c] sm:$0xf0]  ;;  %v5439_v46 = vld [vmem:[#allocation5 + $0x238] sm:$0xf0]  ;;  %v4127_v47 = vor.u32 %v5488_v29, %v4124_v30 }
  0x75   :  { %1542 = vmatpush.bf16.msra.mxu3 %v3947_v52  ;;  %v4064_v52 = vld [vmem:[#allocation5 + $0x354] sm:$0xf0]  ;;  %v3734_v39 = vld [vmem:[#allocation5 + $0xb0] sm:$0xf] }
  0x76   :  { %1504 = vmatpush.bf16.msra.mxu0 %v3647_v59  ;;  %v4352_v59 = vld [vmem:[#allocation5 + $0x594] sm:$0xf0]  ;;  %v4067_v60 = vor.u32 %v5473_v51, %v4064_v52  ;;  %v3926_v45 = vld [vmem:[#allocation5 + $0x230] sm:$0xf]  ;;  %v3735_v52 = vor.u32 %v5391_v41, %v3734_v39  ;;  %v5427_v41 = vld [vmem:[#allocation5 + $0x1d8] sm:$0xf0] }
  0x77   :  { %1517 = vmatpush.bf16.msra.mxu1 %v3743_v0  ;;  %v5470_v0 = vld [vmem:[#allocation5 + $0x334] sm:$0xf]  ;;  %v4355_v3 = vor.u32 %v5545_v58, %v4352_v59  ;;  %v5412_v59 = vld [vmem:[#allocation5 + $0x160] sm:$0xf0]  ;;  %v3878_v39 = vld [vmem:[#allocation5 + $0x1d0] sm:$0xf] }
  0x78   :  { %1530 = vmatpush.bf16.msra.mxu2 %v3839_v1  ;;  %v4052_v1 = vld [vmem:[#allocation5 + $0x33c] sm:$0xf0] }
  0x79   :  { %1543 = vmatpush.bf16.msra.mxu3 %v3935_v4  ;;  %1505 = vmatmul.bf16.vlgmr.msra.gmra.mxu0 %v6024_v9  ;;  %v4148_v4 = vld [vmem:[#allocation5 + $0x3fc] sm:$0xf0]  ;;  %v4055_v10 = vor.u32 %v5470_v0, %v4052_v1  ;;  %v5460_v0 = vld [vmem:[#allocation5 + $0x2e0] sm:$0xf0]  ;;  %v3723_v1 = vor.u32 %v5388_v56, %v3722_v55 }
  0x7a   :  { %1549 = vmatpush.bf16.msrb.mxu0 %v4115_v5  ;;  %1518 = vmatmul.bf16.vlgmr.msra.gmra.mxu1 %v6028_v17  ;;  %v5518_v5 = vld [vmem:[#allocation5 + $0x4b4] sm:$0xf]  ;;  %v4151_v11 = vor.u32 %v5494_v2, %v4148_v4  ;;  %v3819_v2 = vor.u32 %v5412_v59, %v3818_v57  ;;  %v3710_v4 = vld [vmem:[#allocation5 + $0x80] sm:$0xf]  ;;  %v5448_v55 = vld [vmem:[#allocation5 + $0x280] sm:$0xf0] }
  0x7b   :  { %1562 = vmatpush.bf16.msrb.mxu1 %v4211_v6  ;;  %1531 = vmatmul.bf16.vlgmr.msra.gmra.mxu2 %v6021_v63  ;;  %v4244_v6 = vld [vmem:[#allocation5 + $0x4bc] sm:$0xf0] }
  0x7c   :  { %1575 = vmatpush.bf16.msrb.mxu2 %v4307_v7  ;;  %1544 = vmatmul.bf16.vlgmr.msra.gmra.mxu3 %v6026_v16  ;;  %v5542_v7 = vld [vmem:[#allocation5 + $0x574] sm:$0xf]  ;;  %v3662_v59 = vld [vmem:[#allocation5 + $0x20] sm:$0xf] }
  0x7d   :  { %1588 = vmatpush.bf16.msrb.mxu3 %v4403_v12  ;;  %v4247_v12 = vor.u32 %v5518_v5, %v4244_v6  ;;  %v4343_v18 = vor.u32 %v5542_v7, %v4340_v8  ;;  %v5385_v5 = vld [vmem:[#allocation5 + $0x88] sm:$0xf0]  ;;  %v3806_v6 = vld [vmem:[#allocation5 + $0x140] sm:$0xf] }
  0x7e   :  { %1550 = vmatpush.bf16.msrb.mxu0 %v4103_v20  ;;  %v5515_v20 = vld [vmem:[#allocation5 + $0x49c] sm:$0xf]  ;;  %v5409_v8 = vld [vmem:[#allocation5 + $0x148] sm:$0xf0]  ;;  %v3711_v14 = vor.u32 %v5385_v5, %v3710_v4 }
  0x7f   :  { %1563 = vmatpush.bf16.msrb.mxu1 %v4199_v21  ;;  %v4232_v21 = vld [vmem:[#allocation5 + $0x4a4] sm:$0xf0]  ;;  %v3807_v15 = vor.u32 %v5409_v8, %v3806_v6  ;;  %v5445_v4 = vld [vmem:[#allocation5 + $0x268] sm:$0xf0] }
  0x80   :  { %1576 = vmatpush.bf16.msrb.mxu2 %v4295_v22  ;;  %v5539_v22 = vld [vmem:[#allocation5 + $0x55c] sm:$0xf]  ;;  %v4235_v28 = vor.u32 %v5515_v20, %v4232_v21  ;;  %v5382_v20 = vld [vmem:[#allocation5 + $0x70] sm:$0xf0]  ;;  %v3794_v21 = vld [vmem:[#allocation5 + $0x128] sm:$0xf] }
  0x81   :  { %1589 = vmatpush.bf16.msrb.mxu3 %v4391_v26  ;;  %v4028_v26 = vld [vmem:[#allocation5 + $0x30c] sm:$0xf0]  ;;  %v3650_v6 = vld [vmem:[#allocation5 + $0x8] sm:$0xf] }
  0x82   :  { %1551 = vmatpush.bf16.msrb.mxu0 %v4091_v32  ;;  %v4331_v32 = vor.u32 %v5539_v22, %v4328_v23  ;;  %v4031_v43 = vor.u32 %v5464_v25, %v4028_v26  ;;  %v5406_v23 = vld [vmem:[#allocation5 + $0x130] sm:$0xf0]  ;;  %v3986_v26 = vld [vmem:[#allocation5 + $0x2a8] sm:$0xf] }
  0x83   :  { %1564 = vmatpush.bf16.msrb.mxu1 %v4187_v33  ;;  %v4220_v33 = vld [vmem:[#allocation5 + $0x48c] sm:$0xf0]  ;;  %v5430_v25 = vld [vmem:[#allocation5 + $0x1f0] sm:$0xf0]  ;;  %v3795_v29 = vor.u32 %v5406_v23, %v3794_v21  ;;  %v5487_v21 = vld [vmem:[#allocation5 + $0x3b8] sm:$0xf0] }
  0x84   :  { %1577 = vmatpush.bf16.msrb.mxu2 %v4283_v35  ;;  %v5536_v35 = vld [vmem:[#allocation5 + $0x544] sm:$0xf] }
  0x85   :  { %1590 = vmatpush.bf16.msrb.mxu3 %v4379_v42  ;;  %v3830_v42 = vld [vmem:[#allocation5 + $0x170] sm:$0xf]  ;;  %v4319_v51 = vor.u32 %v5536_v35, %v4316_v36  ;;  %v5403_v36 = vld [vmem:[#allocation5 + $0x118] sm:$0xf0] }
  0x86   :  { %1552 = vmatpush.bf16.msrb.mxu0 %v4079_v48  ;;  %v4223_v48 = vor.u32 %v5512_v31, %v4220_v33  ;;  %v3831_v53 = vor.u32 %v5415_v44, %v3830_v42  ;;  %v3686_v31 = vld [vmem:[#allocation5 + $0x50] sm:$0xf] }
  0x87   :  { %1565 = vmatpush.bf16.msrb.mxu1 %v4175_v49  ;;  %v4022_v49 = vld [vmem:[#allocation5 + $0x2f0] sm:$0xf] }
  0x88   :  { %1578 = vmatpush.bf16.msrb.mxu2 %v4271_v50  ;;  %v5463_v50 = vld [vmem:[#allocation5 + $0x2f8] sm:$0xf0]  ;;  %v3782_v33 = vld [vmem:[#allocation5 + $0x110] sm:$0xf] }
  0x89   :  { %1591 = vmatpush.bf16.msrb.mxu3 %v4367_v54  ;;  %v3927_v54 = vor.u32 %v5439_v46, %v3926_v45  ;;  %v4023_v58 = vor.u32 %v5463_v50, %v4022_v49  ;;  %v3974_v42 = vld [vmem:[#allocation5 + $0x290] sm:$0xf]  ;;  %v3783_v45 = vor.u32 %v5403_v36, %v3782_v33  ;;  %v3879_v46 = vor.u32 %v5427_v41, %v3878_v39  ;;  %v3770_v49 = vld [vmem:[#allocation5 + $0xf8] sm:$0xf]  ;;  %v5484_v39 = vld [vmem:[#allocation5 + $0x3a0] sm:$0xf0] }
  0x8a   :  { %1553 = vmatpush.bf16.msrb.mxu0 %v4067_v60  ;;  %v3914_v60 = vld [vmem:[#allocation5 + $0x218] sm:$0xf] }
  0x8b   :  { %1566 = vmatpush.bf16.msrb.mxu1 %v4163_v61  ;;  %v5436_v61 = vld [vmem:[#allocation5 + $0x220] sm:$0xf0]  ;;  %v4106_v36 = vld [vmem:[#allocation5 + $0x398] sm:$0xf] }
  0x8c   :  { %1579 = vmatpush.bf16.msrb.mxu2 %v4259_v62  ;;  %v4010_v62 = vld [vmem:[#allocation5 + $0x2d8] sm:$0xf] }
  0x8d   :  { %1592 = vmatpush.bf16.msrb.mxu3 %v4355_v3  ;;  %v3915_v3 = vor.u32 %v5436_v61, %v3914_v60  ;;  %v4011_v7 = vor.u32 %v5460_v0, %v4010_v62  ;;  %v5373_v60 = vld [vmem:[#allocation5 + $0x28] sm:$0xf0]  ;;  %v3758_v61 = vld [vmem:[#allocation5 + $0xe0] sm:$0xf]  ;;  %v4202_v41 = vld [vmem:[#allocation5 + $0x458] sm:$0xf] }
  0x8e   :  { %1554 = vmatpush.bf16.msrb.mxu0 %v4055_v10  ;;  %v3902_v10 = vld [vmem:[#allocation5 + $0x200] sm:$0xf]  ;;  %v5397_v0 = vld [vmem:[#allocation5 + $0xe8] sm:$0xf0]  ;;  %v3663_v5 = vor.u32 %v5373_v60, %v3662_v59 }
  0x8f   :  { %1567 = vmatpush.bf16.msrb.mxu1 %v4151_v11  ;;  %v5433_v11 = vld [vmem:[#allocation5 + $0x208] sm:$0xf0]  ;;  %v3759_v8 = vor.u32 %v5397_v0, %v3758_v61  ;;  %v4082_v0 = vld [vmem:[#allocation5 + $0x368] sm:$0xf] }
  0x90   :  { %1580 = vmatpush.bf16.msrb.mxu2 %v4247_v12  ;;  %v3998_v12 = vld [vmem:[#allocation5 + $0x2c0] sm:$0xf]  ;;  %v5553_v59 = vld [vmem:[#allocation5 + $0x5c8] sm:$0xf0] }
  0x91   :  { %1593 = vmatpush.bf16.msrb.mxu3 %v4343_v18  ;;  %v3903_v18 = vor.u32 %v5433_v11, %v3902_v10  ;;  %v3999_v22 = vor.u32 %v5457_v13, %v3998_v12  ;;  %v3746_v11 = vld [vmem:[#allocation5 + $0xc8] sm:$0xf]  ;;  %v5394_v12 = vld [vmem:[#allocation5 + $0xd0] sm:$0xf0] }
  0x92   :  { %1555 = vmatpush.bf16.msrb.mxu0 %v4043_v24  ;;  %v3890_v24 = vld [vmem:[#allocation5 + $0x1e8] sm:$0xf] }
  0x93   :  { %1568 = vmatpush.bf16.msrb.mxu1 %v4139_v27  ;;  %v5454_v27 = vld [vmem:[#allocation5 + $0x2b0] sm:$0xf0]  ;;  %v3891_v30 = vor.u32 %v5430_v25, %v3890_v24  ;;  %v3842_v13 = vld [vmem:[#allocation5 + $0x188] sm:$0xf]  ;;  %v5511_v24 = vld [vmem:[#allocation5 + $0x478] sm:$0xf0] }
  0x94   :  { %1581 = vmatpush.bf16.msrb.mxu2 %v4235_v28  ;;  %v3699_v28 = vor.u32 %v5382_v20, %v3698_v19  ;;  %v3987_v35 = vor.u32 %v5454_v27, %v3986_v26  ;;  %v5442_v19 = vld [vmem:[#allocation5 + $0x250] sm:$0xf0]  ;;  %v4118_v20 = vld [vmem:[#allocation5 + $0x3b0] sm:$0xf]  ;;  %v5535_v26 = vld [vmem:[#allocation5 + $0x538] sm:$0xf0]  ;;  %v3747_v27 = vor.u32 %v5394_v12, %v3746_v11 }
  0x95   :  { %1594 = vmatpush.bf16.msrb.mxu3 %v4331_v32  ;;  %v5379_v32 = vld [vmem:[#allocation5 + $0x58] sm:$0xf0]  ;;  %v4310_v25 = vld [vmem:[#allocation5 + $0x530] sm:$0xf] }
  0x96   :  { %1556 = vmatpush.bf16.msrb.mxu0 %v4031_v43  ;;  %v5451_v43 = vld [vmem:[#allocation5 + $0x298] sm:$0xf0]  ;;  %v3687_v44 = vor.u32 %v5379_v32, %v3686_v31  ;;  %v4119_v32 = vor.u32 %v5487_v21, %v4118_v20  ;;  %v4166_v11 = vld [vmem:[#allocation5 + $0x410] sm:$0xf] }
  0x97   :  { %1569 = vmatpush.bf16.msrb.mxu1 %v4127_v47  ;;  %v3674_v47 = vld [vmem:[#allocation5 + $0x38] sm:$0xf]  ;;  %v3975_v50 = vor.u32 %v5451_v43, %v3974_v42  ;;  %v5508_v43 = vld [vmem:[#allocation5 + $0x460] sm:$0xf0] }
  0x98   :  { %1582 = vmatpush.bf16.msrb.mxu2 %v4223_v48  ;;  %v5376_v48 = vld [vmem:[#allocation5 + $0x40] sm:$0xf0] }
  0x99   :  { %1595 = vmatpush.bf16.msrb.mxu3 %v4319_v51  ;;  %1557 = vmatmul.bf16.vlgmr.msrb.gmra.mxu0 %v6035_v37  ;;  %v5400_v51 = vld [vmem:[#allocation5 + $0x100] sm:$0xf0]  ;;  %v3675_v56 = vor.u32 %v5376_v48, %v3674_v47  ;;  %v4107_v48 = vor.u32 %v5484_v39, %v4106_v36 }
  0x9a   :  { %1601 = vmatpush.bf16.msra.mxu0 %v3735_v52  ;;  %1570 = vmatmul.bf16.vlgmr.msrb.gmra.mxu1 %v6039_v40  ;;  %v3866_v52 = vld [vmem:[#allocation5 + $0x1b8] sm:$0xf]  ;;  %v3771_v57 = vor.u32 %v5400_v51, %v3770_v49  ;;  %v5556_v47 = vld [vmem:[#allocation5 + $0x5e0] sm:$0xf0]  ;;  %v4203_v49 = vor.u32 %v5508_v43, %v4202_v41  ;;  %v4094_v51 = vld [vmem:[#allocation5 + $0x380] sm:$0xf] }
  0x9b   :  { %1614 = vmatpush.bf16.msra.mxu1 %v3831_v53  ;;  %1583 = vmatmul.bf16.vlgmr.msrb.gmra.mxu2 %v6033_v34  ;;  %v5424_v53 = vld [vmem:[#allocation5 + $0x1c0] sm:$0xf0]  ;;  %v5469_v43 = vld [vmem:[#allocation5 + $0x328] sm:$0xf0] }
  0x9c   :  { %1627 = vmatpush.bf16.msra.mxu2 %v3927_v54  ;;  %1596 = vmatmul.bf16.vlgmr.msrb.gmra.mxu3 %v6037_v38  ;;  %v3962_v54 = vld [vmem:[#allocation5 + $0x278] sm:$0xf] }
  0x9d   :  { %1640 = vmatpush.bf16.msra.mxu3 %v4023_v58  ;;  %v3867_v58 = vor.u32 %v5424_v53, %v3866_v52  ;;  %v3963_v62 = vor.u32 %v5448_v55, %v3962_v54  ;;  %v5481_v52 = vld [vmem:[#allocation5 + $0x388] sm:$0xf0]  ;;  %v4190_v53 = vld [vmem:[#allocation5 + $0x440] sm:$0xf] }
  0x9e   :  { %1602 = vmatpush.bf16.msra.mxu0 %v3723_v1  ;;  %v3854_v1 = vld [vmem:[#allocation5 + $0x1a0] sm:$0xf]  ;;  %v5505_v55 = vld [vmem:[#allocation5 + $0x448] sm:$0xf0]  ;;  %v4095_v60 = vor.u32 %v5481_v52, %v4094_v51 }
  0x9f   :  { %1615 = vmatpush.bf16.msra.mxu1 %v3819_v2  ;;  %v5421_v2 = vld [vmem:[#allocation5 + $0x1a8] sm:$0xf0]  ;;  %v4191_v61 = vor.u32 %v5505_v55, %v4190_v53 }
  0xa0   :  { %1628 = vmatpush.bf16.msra.mxu2 %v3915_v3  ;;  %v3950_v3 = vld [vmem:[#allocation5 + $0x260] sm:$0xf]  ;;  %v3855_v10 = vor.u32 %v5421_v2, %v3854_v1  ;;  %v5478_v1 = vld [vmem:[#allocation5 + $0x370] sm:$0xf0] }
  0xa1   :  { %1641 = vmatpush.bf16.msra.mxu3 %v4011_v7  ;;  %v5370_v7 = vld [vmem:[#allocation5 + $0x10] sm:$0xf0] }
  0xa2   :  { %1603 = vmatpush.bf16.msra.mxu0 %v3711_v14  ;;  %v3951_v14 = vor.u32 %v5445_v4, %v3950_v3  ;;  %v3651_v23 = vor.u32 %v5370_v7, %v3650_v6  ;;  %v5502_v3 = vld [vmem:[#allocation5 + $0x430] sm:$0xf0]  ;;  %v4274_v4 = vld [vmem:[#allocation5 + $0x4e8] sm:$0xf] }
  0xa3   :  { %1616 = vmatpush.bf16.msra.mxu1 %v3807_v15  ;;  %v5418_v15 = vld [vmem:[#allocation5 + $0x190] sm:$0xf0]  ;;  %v4370_v6 = vld [vmem:[#allocation5 + $0x5a8] sm:$0xf] }
  0xa4   :  { %1629 = vmatpush.bf16.msra.mxu2 %v3903_v18  ;;  %v3938_v18 = vld [vmem:[#allocation5 + $0x248] sm:$0xf] }
  0xa5   :  { %1642 = vmatpush.bf16.msra.mxu3 %v3999_v22  ;;  %v4214_v22 = vld [vmem:[#allocation5 + $0x470] sm:$0xf]  ;;  %v3939_v31 = vor.u32 %v5442_v19, %v3938_v18  ;;  %v5547_v19 = vld [vmem:[#allocation5 + $0x598] sm:$0xf0] }
  0xa6   :  { %1604 = vmatpush.bf16.msra.mxu0 %v3699_v28  ;;  %v3843_v28 = vor.u32 %v5418_v15, %v3842_v13  ;;  %v4215_v33 = vor.u32 %v5511_v24, %v4214_v22  ;;  %v5499_v13 = vld [vmem:[#allocation5 + $0x418] sm:$0xf0]  ;;  %v4358_v18 = vld [vmem:[#allocation5 + $0x590] sm:$0xf]  ;;  %v4058_v24 = vld [vmem:[#allocation5 + $0x338] sm:$0xf] }
  0xa7   :  { %1617 = vmatpush.bf16.msra.mxu1 %v3795_v29  ;;  %v4406_v29 = vld [vmem:[#allocation5 + $0x5f0] sm:$0xf]  ;;  %v5523_v15 = vld [vmem:[#allocation5 + $0x4d8] sm:$0xf0]  ;;  %v4167_v22 = vor.u32 %v5499_v13, %v4166_v11  ;;  %v5565_v11 = vld [vmem:[#allocation7 + $0x28] sm:$0xff] }
  0xa8   :  { %1630 = vmatpush.bf16.msra.mxu2 %v3891_v30  ;;  %v5559_v30 = vld [vmem:[#allocation5 + $0x5f8] sm:$0xf0]  ;;  %v5564_v13 = vld [vmem:[#allocation7 + $0x20] sm:$0xff] }
  0xa9   :  { %1643 = vmatpush.bf16.msra.mxu3 %v3987_v35  ;;  %v4311_v35 = vor.u32 %v5535_v26, %v4310_v25  ;;  %v4407_v42 = vor.u32 %v5559_v30, %v4406_v29  ;;  %v5472_v25 = vld [vmem:[#allocation5 + $0x340] sm:$0xf0]  ;;  %v4154_v26 = vld [vmem:[#allocation5 + $0x3f8] sm:$0xf] }
  0xaa   :  { %1605 = vmatpush.bf16.msra.mxu0 %v3687_v44  ;;  %v4298_v44 = vld [vmem:[#allocation5 + $0x518] sm:$0xf]  ;;  %v5520_v30 = vld [vmem:[#allocation5 + $0x4c0] sm:$0xf0]  ;;  %v4059_v36 = vor.u32 %v5472_v25, %v4058_v24 }
  0xab   :  { %1618 = vmatpush.bf16.msra.mxu1 %v3783_v45  ;;  %v5532_v45 = vld [vmem:[#allocation5 + $0x520] sm:$0xf0]  ;;  %v4250_v29 = vld [vmem:[#allocation5 + $0x4b8] sm:$0xf] }
  0xac   :  { %1631 = vmatpush.bf16.msra.mxu2 %v3879_v46  ;;  %v4394_v46 = vld [vmem:[#allocation5 + $0x5d8] sm:$0xf]  ;;  %v4251_v41 = vor.u32 %v5520_v30, %v4250_v29  ;;  %v5572_v24 = vld [vmem:[#allocation7 + $0x60] sm:$0xff] }
  0xad   :  { %1644 = vmatpush.bf16.msra.mxu3 %v3975_v50  ;;  %v4299_v50 = vor.u32 %v5532_v45, %v4298_v44  ;;  %v4395_v54 = vor.u32 %v5556_v47, %v4394_v46  ;;  %v4142_v44 = vld [vmem:[#allocation5 + $0x3e0] sm:$0xf]  ;;  %v5493_v46 = vld [vmem:[#allocation5 + $0x3e8] sm:$0xf0] }
  0xae   :  { %1606 = vmatpush.bf16.msra.mxu0 %v3675_v56  ;;  %v4286_v56 = vld [vmem:[#allocation5 + $0x500] sm:$0xf] }
  0xaf   :  { %1619 = vmatpush.bf16.msra.mxu1 %v3771_v57  ;;  %v5529_v57 = vld [vmem:[#allocation5 + $0x508] sm:$0xf0]  ;;  %v4238_v47 = vld [vmem:[#allocation5 + $0x4a0] sm:$0xf] }
  0xb0   :  { %1632 = vmatpush.bf16.msra.mxu2 %v3867_v58  ;;  %v4382_v58 = vld [vmem:[#allocation5 + $0x5c0] sm:$0xf] }
  0xb1   :  { %1645 = vmatpush.bf16.msra.mxu3 %v3963_v62  ;;  %v4287_v62 = vor.u32 %v5529_v57, %v4286_v56  ;;  %v4383_v2 = vor.u32 %v5553_v59, %v4382_v58  ;;  %v4034_v56 = vld [vmem:[#allocation5 + $0x308] sm:$0xf]  ;;  %v5466_v57 = vld [vmem:[#allocation5 + $0x310] sm:$0xf0] }
  0xb2   :  { %1607 = vmatpush.bf16.msra.mxu0 %v3663_v5  ;;  %v5526_v5 = vld [vmem:[#allocation5 + $0x4f0] sm:$0xf0]  ;;  %v4130_v58 = vld [vmem:[#allocation5 + $0x3c8] sm:$0xf] }
  0xb3   :  { %1620 = vmatpush.bf16.msra.mxu1 %v3759_v8  ;;  %v4070_v8 = vld [vmem:[#allocation5 + $0x350] sm:$0xf] }
  0xb4   :  { %1633 = vmatpush.bf16.msra.mxu2 %v3855_v10  ;;  %v5475_v10 = vld [vmem:[#allocation5 + $0x358] sm:$0xf0] }
  0xb5   :  { %1646 = vmatpush.bf16.msra.mxu3 %v3951_v14  ;;  %v4262_v14 = vld [vmem:[#allocation5 + $0x4d0] sm:$0xf]  ;;  %v4071_v20 = vor.u32 %v5475_v10, %v4070_v8 }
  0xb6   :  { %1608 = vmatpush.bf16.msra.mxu0 %v3651_v23  ;;  %v1402_v21 = vpop.f32.mrf.mxu0  ;;  %v4263_v23 = vor.u32 %v5523_v15, %v4262_v14  ;;  %v5566_v8 = vld [vmem:[#allocation7 + $0x30] sm:$0xff] }
  0xb7   :  { %1621 = vmatpush.bf16.msra.mxu1 %v3747_v27  ;;  %v4359_v27 = vor.u32 %v5547_v19, %v4358_v18  ;;  %v5574_v15 = vld [vmem:[#allocation7 + $0x70] sm:$0xff] }
  0xb8   :  { %1634 = vmatpush.bf16.msra.mxu2 %v3843_v28  ;;  %v5496_v28 = vld [vmem:[#allocation5 + $0x400] sm:$0xf0] }
  0xb9   :  { %1647 = vmatpush.bf16.msra.mxu3 %v3939_v31  ;;  %1609 = vmatmul.bf16.vlgmr.msra.gmra.mxu0 %v6024_v9  ;;  %v5550_v9 = vld [vmem:[#allocation5 + $0x5b0] sm:$0xf0]  ;;  %v4346_v31 = vld [vmem:[#allocation5 + $0x578] sm:$0xf]  ;;  %v4155_v39 = vor.u32 %v5496_v28, %v4154_v26 }
  0xba   :  { %1653 = vmatpush.bf16.msrb.mxu0 %v4119_v32  ;;  %1622 = vmatmul.bf16.vlgmr.msra.gmra.mxu1 %v6028_v17  ;;  %v4275_v17 = vor.u32 %v5526_v5, %v4274_v4  ;;  %v4371_v12 = vor.u32 %v5550_v9, %v4370_v6  ;;  %v5544_v32 = vld [vmem:[#allocation5 + $0x580] sm:$0xf0]  ;;  %v5567_v9 = vld [vmem:[#allocation7 + $0x38] sm:$0xff] }
  0xbb   :  { %1666 = vmatpush.bf16.msrb.mxu1 %v4215_v33  ;;  %1635 = vmatmul.bf16.vlgmr.msra.gmra.mxu2 %v6021_v63  ;;  %v4178_v63 = vld [vmem:[#allocation5 + $0x428] sm:$0xf]  ;;  %v1415_v33 = vpop.f32.mrf.mxu1  ;;  %v4347_v45 = vor.u32 %v5544_v32, %v4346_v31  ;;  %v5571_v28 = vld [vmem:[#allocation7 + $0x58] sm:$0xff]  ;;  %v5560_v32 = vld [vmem:[#allocation7] sm:$0xff] }
  0xbc   :  { %1679 = vmatpush.bf16.msrb.mxu2 %v4311_v35  ;;  %1648 = vmatmul.bf16.vlgmr.msra.gmra.mxu3 %v6026_v16  ;;  %v4083_v16 = vor.u32 %v5478_v1, %v4082_v0  ;;  %v4179_v7 = vor.u32 %v5502_v3, %v4178_v63  ;;  %v4322_v0 = vld [vmem:[#allocation5 + $0x548] sm:$0xf]  ;;  %v5538_v1 = vld [vmem:[#allocation5 + $0x550] sm:$0xf0]  ;;  %v4035_v3 = vor.u32 %v5466_v57, %v4034_v56 }
  0xbd   :  { %1692 = vmatpush.bf16.msrb.mxu3 %v4407_v42  ;;  %v4046_v42 = vld [vmem:[#allocation5 + $0x320] sm:$0xf]  ;;  %v4323_v6 = vor.u32 %v5538_v1, %v4322_v0 }
  0xbe   :  { %1654 = vmatpush.bf16.msrb.mxu0 %v4107_v48  ;;  %v1428_v35 = vpop.f32.mrf.mxu2  ;;  %v5517_v48 = vld [vmem:[#allocation5 + $0x4a8] sm:$0xf0]  ;;  %v4047_v52 = vor.u32 %v5469_v43, %v4046_v42  ;;  %v1404_v53 = vpop.f32.mrf.mxu0 }
  0xbf   :  { %1667 = vmatpush.bf16.msrb.mxu1 %v4203_v49  ;;  %v4334_v49 = vld [vmem:[#allocation5 + $0x560] sm:$0xf]  ;;  %v1441_v51 = vpop.f32.mrf.mxu3  ;;  %v4239_v55 = vor.u32 %v5517_v48, %v4238_v47  ;;  %v5569_v43 = vld [vmem:[#allocation7 + $0x48] sm:$0xff] }
  0xc0   :  { %1680 = vmatpush.bf16.msrb.mxu2 %v4299_v50  ;;  %v5541_v50 = vld [vmem:[#allocation5 + $0x568] sm:$0xf0] }
  0xc1   :  { %1693 = vmatpush.bf16.msrb.mxu3 %v4395_v54  ;;  %v4143_v54 = vor.u32 %v5493_v46, %v4142_v44  ;;  %v4335_v59 = vor.u32 %v5541_v50, %v4334_v49  ;;  %v5568_v46 = vld [vmem:[#allocation7 + $0x40] sm:$0xff] }
  0xc2   :  { %1655 = vmatpush.bf16.msrb.mxu0 %v4095_v60  ;;  %v5490_v60 = vld [vmem:[#allocation5 + $0x3d0] sm:$0xf0] }
  0xc3   :  { %1668 = vmatpush.bf16.msrb.mxu1 %v4191_v61  ;;  %v4226_v61 = vld [vmem:[#allocation5 + $0x488] sm:$0xf]  ;;  %v1417_v63 = vpop.f32.mrf.mxu1  ;;  %v4131_v4 = vor.u32 %v5490_v60, %v4130_v58 }
  0xc4   :  { %1681 = vmatpush.bf16.msrb.mxu2 %v4287_v62  ;;  %v5514_v62 = vld [vmem:[#allocation5 + $0x490] sm:$0xf0] }
  0xc5   :  { %1694 = vmatpush.bf16.msrb.mxu3 %v4383_v2  ;;  %v4227_v5 = vor.u32 %v5514_v62, %v4226_v61  ;;  %v5582_v62 = vld [vmem:[#allocation7 + $0xb0] sm:$0xff] }
  0xc6   :  { %1656 = vmatpush.bf16.msrb.mxu0 %v4083_v16  ;;  %v1430_v2 = vpop.f32.mrf.mxu2  ;;  %v1416_v16 = vadd.f32 %v1415_v33, %v1402_v21 }
  0xc7   :  { %1669 = vmatpush.bf16.msrb.mxu1 %v4179_v7  ;;  %v1443_v7 = vpop.f32.mrf.mxu3  ;;  %v5581_v2 = vld [vmem:[#allocation7 + $0xa8] sm:$0xff] }
  0xc8   :  { %1682 = vmatpush.bf16.msrb.mxu2 %v4275_v17  ;;  %v5575_v17 = vld [vmem:[#allocation7 + $0x78] sm:$0xff]  ;;  %v1429_v10 = vadd.f32 %v1428_v35, %v1416_v16 }
  0xc9   :  { %1695 = vmatpush.bf16.msrb.mxu3 %v4371_v12 }
  0xca   :  { %1657 = vmatpush.bf16.msrb.mxu0 %v4071_v20  ;;  %v1442_v12 = vadd.f32 %v1441_v51, %v1429_v10 }
  0xcb   :  { %1670 = vmatpush.bf16.msrb.mxu1 %v4167_v22 }
  0xcc   :  { %1683 = vmatpush.bf16.msrb.mxu2 %v4263_v23 }
  0xcd   :  { %1696 = vmatpush.bf16.msrb.mxu3 %v4359_v27  ;;  %v5561_v27 = vld [vmem:[#allocation7 + $0x8] sm:$0xff] }
  0xce   :  { %1658 = vmatpush.bf16.msrb.mxu0 %v4059_v36 }
  0xcf   :  { %1671 = vmatpush.bf16.msrb.mxu1 %v4155_v39  ;;  %v5570_v39 = vld [vmem:[#allocation7 + $0x50] sm:$0xff] }
  0xd0   :  { %1684 = vmatpush.bf16.msrb.mxu2 %v4251_v41 }
  0xd1   :  { %1697 = vmatpush.bf16.msrb.mxu3 %v4347_v45 }
  0xd2   :  { %1659 = vmatpush.bf16.msrb.mxu0 %v4047_v52 }
  0xd3   :  { %1672 = vmatpush.bf16.msrb.mxu1 %v4143_v54 }
  0xd4   :  { %1685 = vmatpush.bf16.msrb.mxu2 %v4239_v55 }
  0xd5   :  { %1698 = vmatpush.bf16.msrb.mxu3 %v4335_v59  ;;  %v5583_v59 = vld [vmem:[#allocation7 + $0xb8] sm:$0xff] }
  0xd6   :  { %1660 = vmatpush.bf16.msrb.mxu0 %v4035_v3  ;;  %v1454_v14 = vpop.f32.mrf.mxu0 }
  0xd7   :  { %1673 = vmatpush.bf16.msrb.mxu1 %v4131_v4  ;;  %v1455_v18 = vadd.f32 %v1454_v14, %v1442_v12  ;;  %v1467_v19 = vpop.f32.mrf.mxu1  ;;  %v5576_v12 = vld [vmem:[#allocation7 + $0x80] sm:$0xff] }
  0xd8   :  { %1686 = vmatpush.bf16.msrb.mxu2 %v4227_v5  ;;  %v5580_v5 = vld [vmem:[#allocation7 + $0xa0] sm:$0xff] }
  0xd9   :  { %1699 = vmatpush.bf16.msrb.mxu3 %v4323_v6  ;;  %1661 = vmatmul.bf16.vlgmr.msrb.gmra.mxu0 %v6035_v37  ;;  %v1468_v20 = vadd.f32 %v1467_v19, %v1455_v18  ;;  %v5563_v37 = vld [vmem:[#allocation7 + $0x18] sm:$0xff] }
  0xda   :  { %1903 = vmatpush.bf16.msra.mxu0 %v5567_v9  ;;  %1674 = vmatmul.bf16.vlgmr.msrb.gmra.mxu1 %v6039_v40  ;;  %v5573_v40 = vld [vmem:[#allocation7 + $0x68] sm:$0xff]  ;;  %v5579_v6 = vld [vmem:[#allocation7 + $0x98] sm:$0xff]  ;;  %v5578_v9 = vld [vmem:[#allocation7 + $0x90] sm:$0xff] }
  0xdb   :  { %1916 = vmatpush.bf16.msra.mxu1 %v5575_v17  ;;  %1687 = vmatmul.bf16.vlgmr.msrb.gmra.mxu2 %v6033_v34  ;;  %v5562_v34 = vld [vmem:[#allocation7 + $0x10] sm:$0xff]  ;;  %v5577_v17 = vld [vmem:[#allocation7 + $0x88] sm:$0xff] }
  0xdc   :  { %1700 = vmatmul.bf16.vlgmr.msrb.gmra.mxu3 %v6037_v38  ;;  %1929 = vmatpush.bf16.msra.mxu2 %v5583_v59  ;;  %v4574_v59 = vld [vmem:[#allocation8 + $0x80] sm:$0xf] }
  0xde   :  { %1904 = vmatpush.bf16.msra.mxu0 %v5566_v8  ;;  %v1480_v21 = vpop.f32.mrf.mxu2  ;;  %v1456_v38 = vpop.f32.mrf.mxu0 }
  0xdf   :  { %1917 = vmatpush.bf16.msra.mxu1 %v5574_v15  ;;  %v1493_v22 = vpop.f32.mrf.mxu3  ;;  %v1481_v23 = vadd.f32 %v1480_v21, %v1468_v20  ;;  %v1469_v25 = vpop.f32.mrf.mxu1 }
  0xe0   :  { %1930 = vmatpush.bf16.msra.mxu2 %v5582_v62 }
  0xe1   :  { %v1494_v26 = vadd.f32 %v1493_v22, %v1481_v23 }
  0xe2   :  { %1905 = vmatpush.bf16.msra.mxu0 %v5565_v11 }
  0xe3   :  { %1918 = vmatpush.bf16.msra.mxu1 %v5573_v40  ;;  %v1705_v31 = vmax.f32 %v1494_v26, 0.0 }
  0xe4   :  { %1931 = vmatpush.bf16.msra.mxu2 %v5581_v2  ;;  %v5596_v2 = vld [vmem:[#allocation8 + $0x64] sm:$0xf] }
  0xe5   :  { %v1708_v33 = vpack.c.bf16 %v1705_v31, %v1705_v31 }
  0xe6   :  { %1906 = vmatpush.bf16.msra.mxu0 %v5564_v13  ;;  %v1482_v29 = vpop.f32.mrf.mxu2 }
  0xe7   :  { %1919 = vmatpush.bf16.msra.mxu1 %v5572_v24  ;;  %v1495_v30 = vpop.f32.mrf.mxu3 }
  0xe8   :  { %1932 = vmatpush.bf16.msra.mxu2 %v5580_v5  ;;  %v5598_v5 = vld [vmem:[#allocation8 + $0x70] sm:$0xf0] }
  0xea   :  { %1907 = vmatpush.bf16.msra.mxu0 %v5563_v37 }
  0xeb   :  { %1920 = vmatpush.bf16.msra.mxu1 %v5571_v28 }
  0xec   :  { %1933 = vmatpush.bf16.msra.mxu2 %v5579_v6 }
  0xee   :  { %1908 = vmatpush.bf16.msra.mxu0 %v5562_v34 }
  0xef   :  { %1921 = vmatpush.bf16.msra.mxu1 %v5570_v39 }
  0xf0   :  { %1934 = vmatpush.bf16.msra.mxu2 %v5578_v9 }
  0xf2   :  { %1909 = vmatpush.bf16.msra.mxu0 %v5561_v27 }
  0xf3   :  { %1922 = vmatpush.bf16.msra.mxu1 %v5569_v43  ;;  %v5607_v43 = vld [vmem:[#allocation8 + $0xb8] sm:$0xf0] }
  0xf4   :  { %1935 = vmatpush.bf16.msra.mxu2 %v5577_v17  ;;  %v5594_v17 = vld [vmem:[#allocation8 + $0x50] sm:$0xf0] }
  0xf6   :  { %1910 = vmatpush.bf16.msra.mxu0 %v5560_v32  ;;  %v1506_v35 = vpop.f32.mrf.mxu0 }
  0xf7   :  { %v1519_v36 = vpop.f32.mrf.mxu1  ;;  %1923 = vmatpush.bf16.msra.mxu1 %v5568_v46  ;;  %v4578_v46 = vld [vmem:[#allocation8 + $0x90] sm:$0xf] }
  0xf8   :  { %v1520_v49 = vadd.f32 %v1519_v36, %v1506_v35  ;;  %1936 = vmatpush.bf16.msra.mxu2 %v5576_v12  ;;  %v5606_v35 = vld [vmem:[#allocation8 + $0xb0] sm:$0xf0]  ;;  %v5605_v36 = vld [vmem:[#allocation8 + $0xac] sm:$0xf]  ;;  %v5595_v12 = vld [vmem:[#allocation8 + $0x58] sm:$0xf0] }
  0xf9   :  { %1911 = vmatmul.bf16.vlgmr.msra.gmra.mxu0 %v1708_v33  ;;  %v4590_v33 = vld [vmem:[#allocation8 + $0xa8] sm:$0xf] }
  0xfa   :  { %v4591_v39 = vor.u32 %v5606_v35, %v4590_v33  ;;  %v5589_v33 = vld [vmem:[#allocation8 + $0x28] sm:$0xf0] }
  0xfc   :  { %2104 = vmatpush.bf16.msra.mxu3 %v4591_v39  ;;  %v4506_v39 = vld [vmem:[#allocation8] sm:$0xf] }
  0xfe   :  { %v1532_v41 = vpop.f32.mrf.mxu2  ;;  %v1508_v44 = vpop.f32.mrf.mxu0 }
  0xff   :  { %v1545_v42 = vpop.f32.mrf.mxu3  ;;  %v1521_v45 = vpop.f32.mrf.mxu1  ;;  %v1533_v50 = vadd.f32 %v1532_v41, %v1520_v49  ;;  %v4592_v41 = vld [vmem:[#allocation8 + $0xb4] sm:$0xf0] }
 0x100   :  { %v4595_v44 = vor.u32 %v5605_v36, %v4592_v41  ;;  %v5585_v41 = vld [vmem:[#allocation8 + $0x8] sm:$0xf0] }
 0x101   :  { %v1546_v51 = vadd.f32 %v1545_v42, %v1533_v50  ;;  %v4598_v42 = vld [vmem:[#allocation8 + $0xb0] sm:$0xf]  ;;  %v4580_v50 = vld [vmem:[#allocation8 + $0x9c] sm:$0xf0] }
 0x102   :  { %v4599_v45 = vor.u32 %v5607_v43, %v4598_v42  ;;  %2117 = vmatpush.bf16.msrb.mxu0 %v4595_v44  ;;  %v5584_v42 = vld [vmem:[#allocation8 + $0x4] sm:$0xf]  ;;  %v4507_v43 = vor.u32 %v5585_v41, %v4506_v39  ;;  %v4508_v44 = vld [vmem:[#allocation8 + $0xc] sm:$0xf0]  ;;  %v5636_v39 = vld [vmem:[#allocation10 + $0xdc] sm:$0xf0] }
 0x103   :  { %v5632_v41 = vld [vmem:[#allocation10 + $0xc4] sm:$0xf] }
 0x104   :  { %2130 = vmatpush.bf16.msrb.mxu1 %v4599_v45  ;;  %v5586_v45 = vld [vmem:[#allocation8 + $0x10] sm:$0xf0] }
 0x106   :  { %v1534_v47 = vpop.f32.mrf.mxu2 }
 0x107   :  { %v1547_v48 = vpop.f32.mrf.mxu3  ;;  %v5603_v47 = vld [vmem:[#allocation8 + $0x98] sm:$0xf0] }
 0x108   :  { %v5602_v48 = vld [vmem:[#allocation8 + $0x94] sm:$0xf]  ;;  %v4579_v49 = vor.u32 %v5603_v47, %v4578_v46  ;;  %v4511_v46 = vor.u32 %v5584_v42, %v4508_v44  ;;  %v4700_v42 = vld [vmem:[#allocation10 + $0xe0] sm:$0xf0]  ;;  %v4922_v44 = vld [vmem:[#allocation10 + $0x280] sm:$0xf] }
 0x10a   :  { %2105 = vmatpush.bf16.msra.mxu3 %v4579_v49  ;;  %v5732_v49 = vld [vmem:[#allocation10 + $0x3dc] sm:$0xf0] }
 0x116   :  { %v1558_v52 = vpop.f32.mrf.mxu0 }
 0x117   :  { %v1559_v53 = vadd.f32 %v1558_v52, %v1546_v51  ;;  %v1571_v54 = vpop.f32.mrf.mxu1  ;;  %v4586_v51 = vld [vmem:[#allocation8 + $0x98] sm:$0xf]  ;;  %v5604_v52 = vld [vmem:[#allocation8 + $0xa0] sm:$0xf0] }
 0x119   :  { %v1572_v55 = vadd.f32 %v1571_v54, %v1559_v53  ;;  %v4583_v53 = vor.u32 %v5602_v48, %v4580_v50  ;;  %v4587_v54 = vor.u32 %v5604_v52, %v4586_v51  ;;  %v5082_v48 = vld [vmem:[#allocation10 + $0x3c0] sm:$0xf] }
 0x11a   :  { %v5338_v50 = vld [vmem:[#allocation10 + $0x5c0] sm:$0xf]  ;;  %v5083_v51 = vor.u32 %v5732_v49, %v5082_v48  ;;  %v4703_v48 = vor.u32 %v5632_v41, %v4700_v42  ;;  %v5058_v42 = vld [vmem:[#allocation10 + $0x388] sm:$0xf] }
 0x11b   :  { %2118 = vmatpush.bf16.msrb.mxu0 %v4583_v53  ;;  %2131 = vmatpush.bf16.msrb.mxu1 %v4587_v54  ;;  %v5796_v52 = vld [vmem:[#allocation10 + $0x5dc] sm:$0xf0] }
 0x11c   :  { %v5050_v53 = vld [vmem:[#allocation10 + $0x380] sm:$0xf] }
 0x11d   :  { %v5724_v54 = vld [vmem:[#allocation10 + $0x39c] sm:$0xf0] }
 0x11e   :  { %v1584_v56 = vpop.f32.mrf.mxu2  ;;  %v1560_v61 = vpop.f32.mrf.mxu0  ;;  %v4666_v49 = vld [vmem:[#allocation10 + $0x80] sm:$0xf] }
 0x11f   :  { %v1585_v57 = vadd.f32 %v1584_v56, %v1572_v55  ;;  %v1597_v58 = vpop.f32.mrf.mxu3  ;;  %v1573_v0 = vpop.f32.mrf.mxu1  ;;  %v4566_v55 = vld [vmem:[#allocation8 + $0x78] sm:$0xf]  ;;  %v5600_v56 = vld [vmem:[#allocation8 + $0x80] sm:$0xf0] }
 0x120   :  { %v4567_v61 = vor.u32 %v5600_v56, %v4566_v55  ;;  %v5339_v55 = vor.u32 %v5796_v52, %v5338_v50  ;;  %v5306_v56 = vld [vmem:[#allocation10 + $0x580] sm:$0xf]  ;;  %v5624_v52 = vld [vmem:[#allocation10 + $0x84] sm:$0xf] }
 0x121   :  { %v1598_v60 = vadd.f32 %v1597_v58, %v1585_v57  ;;  %v5599_v57 = vld [vmem:[#allocation8 + $0x7c] sm:$0xf]  ;;  %v4568_v58 = vld [vmem:[#allocation8 + $0x84] sm:$0xf0] }
 0x122   :  { %v4571_v62 = vor.u32 %v5599_v57, %v4568_v58  ;;  %2106 = vmatpush.bf16.msra.mxu3 %v4567_v61  ;;  %v5788_v57 = vld [vmem:[#allocation10 + $0x59c] sm:$0xf0]  ;;  %v5664_v61 = vld [vmem:[#allocation10 + $0x1c4] sm:$0xf] }
 0x123   :  { %v1706_v1 = vmax.f32 %v1598_v60, 0.0  ;;  %v5601_v60 = vld [vmem:[#allocation8 + $0x88] sm:$0xf0]  ;;  %v4826_v58 = vld [vmem:[#allocation10 + $0x1c0] sm:$0xf] }
 0x124   :  { %v4575_v0 = vor.u32 %v5601_v60, %v4574_v59  ;;  %2119 = vmatpush.bf16.msrb.mxu0 %v4571_v62  ;;  %v5051_v59 = vor.u32 %v5724_v54, %v5050_v53  ;;  %v5668_v60 = vld [vmem:[#allocation10 + $0x1dc] sm:$0xf0]  ;;  %v4828_v62 = vld [vmem:[#allocation10 + $0x1e0] sm:$0xf0] }
 0x125   :  { %v1709_v63 = vpack.c.bf16 %v1706_v1, %v1706_v1  ;;  %v4554_v1 = vld [vmem:[#allocation8 + $0x60] sm:$0xf]  ;;  %v4668_v53 = vld [vmem:[#allocation10 + $0xa0] sm:$0xf0] }
 0x126   :  { %v1586_v3 = vpop.f32.mrf.mxu2  ;;  %2132 = vmatpush.bf16.msrb.mxu1 %v4575_v0  ;;  %v5307_v0 = vor.u32 %v5788_v57, %v5306_v56  ;;  %v5684_v56 = vld [vmem:[#allocation10 + $0x25c] sm:$0xf0] }
 0x127   :  { %1924 = vmatmul.bf16.vlgmr.msra.gmra.mxu1 %v1709_v63  ;;  %v1599_v4 = vpop.f32.mrf.mxu3  ;;  %v5597_v63 = vld [vmem:[#allocation8 + $0x68] sm:$0xf0]  ;;  %v4556_v3 = vld [vmem:[#allocation8 + $0x6c] sm:$0xf0]  ;;  %v5146_v57 = vld [vmem:[#allocation10 + $0x440] sm:$0xf] }
 0x128   :  { %v4562_v4 = vld [vmem:[#allocation8 + $0x68] sm:$0xf]  ;;  %v4555_v6 = vor.u32 %v5597_v63, %v4554_v1  ;;  %v4559_v9 = vor.u32 %v5596_v2, %v4556_v3  ;;  %v4827_v1 = vor.u32 %v5668_v60, %v4826_v58  ;;  %v4831_v63 = vor.u32 %v5664_v61, %v4828_v62  ;;  %v5018_v2 = vld [vmem:[#allocation10 + $0x340] sm:$0xf] }
 0x129   :  { %v5716_v3 = vld [vmem:[#allocation10 + $0x35c] sm:$0xf0]  ;;  %v4671_v60 = vor.u32 %v5624_v52, %v4668_v53  ;;  %v5026_v53 = vld [vmem:[#allocation10 + $0x348] sm:$0xf] }
 0x12a   :  { %2107 = vmatpush.bf16.msra.mxu3 %v4555_v6  ;;  %2120 = vmatpush.bf16.msrb.mxu0 %v4559_v9  ;;  %v4794_v6 = vld [vmem:[#allocation10 + $0x180] sm:$0xf] }
 0x12b   :  { %v5660_v9 = vld [vmem:[#allocation10 + $0x19c] sm:$0xf0]  ;;  %3301 = vmatpush.bf16.msrb.mxu2 %v4827_v1  ;;  %v5616_v1 = vld [vmem:[#allocation10 + $0x44] sm:$0xf] }
 0x12c   :  { %v5748_v58 = vld [vmem:[#allocation10 + $0x45c] sm:$0xf0] }
 0x12d   :  { %v4634_v61 = vld [vmem:[#allocation10 + $0x40] sm:$0xf] }
 0x136   :  { %v1610_v16 = vpop.f32.mrf.mxu0 }
 0x137   :  { %v1623_v7 = vpop.f32.mrf.mxu1 }
 0x138   :  { %v1624_v18 = vadd.f32 %v1623_v7, %v1610_v16  ;;  %v4563_v16 = vor.u32 %v5598_v5, %v4562_v4  ;;  %v4542_v7 = vld [vmem:[#allocation8 + $0x48] sm:$0xf]  ;;  %v5274_v4 = vld [vmem:[#allocation10 + $0x540] sm:$0xf] }
 0x139   :  { %v5780_v5 = vld [vmem:[#allocation10 + $0x55c] sm:$0xf0] }
 0x13a   :  { %2133 = vmatpush.bf16.msrb.mxu1 %v4563_v16  ;;  %v4795_v16 = vor.u32 %v5660_v9, %v4794_v6  ;;  %v5114_v6 = vld [vmem:[#allocation10 + $0x400] sm:$0xf] }
 0x13c   :  { %3302 = vmatpush.bf16.msrb.mxu2 %v4795_v16  ;;  %v5740_v16 = vld [vmem:[#allocation10 + $0x41c] sm:$0xf0] }
 0x13e   :  { %v1636_v8 = vpop.f32.mrf.mxu2  ;;  %v1612_v11 = vpop.f32.mrf.mxu0 }
 0x13f   :  { %v1649_v10 = vpop.f32.mrf.mxu3  ;;  %v1625_v13 = vpop.f32.mrf.mxu1  ;;  %v1637_v19 = vadd.f32 %v1636_v8, %v1624_v18  ;;  %v5593_v8 = vld [vmem:[#allocation8 + $0x4c] sm:$0xf]  ;;  %v4550_v11 = vld [vmem:[#allocation8 + $0x50] sm:$0xf] }
 0x140   :  { %v4543_v13 = vor.u32 %v5594_v17, %v4542_v7  ;;  %v4530_v18 = vld [vmem:[#allocation8 + $0x30] sm:$0xf]  ;;  %v5656_v7 = vld [vmem:[#allocation10 + $0x184] sm:$0xf] }
 0x141   :  { %v1650_v20 = vadd.f32 %v1649_v10, %v1637_v19  ;;  %v4544_v10 = vld [vmem:[#allocation8 + $0x54] sm:$0xf0]  ;;  %v5591_v19 = vld [vmem:[#allocation8 + $0x38] sm:$0xf0]  ;;  %v4796_v17 = vld [vmem:[#allocation10 + $0x1a0] sm:$0xf0] }
 0x142   :  { %2108 = vmatpush.bf16.msra.mxu3 %v4543_v13  ;;  %v5275_v13 = vor.u32 %v5780_v5, %v5274_v4  ;;  %v4858_v4 = vld [vmem:[#allocation10 + $0x200] sm:$0xf] }
 0x143   :  { %v5676_v5 = vld [vmem:[#allocation10 + $0x21c] sm:$0xf0] }
 0x146   :  { %v1638_v14 = vpop.f32.mrf.mxu2 }
 0x147   :  { %v1651_v15 = vpop.f32.mrf.mxu3  ;;  %v4547_v14 = vor.u32 %v5593_v8, %v4544_v10  ;;  %v5019_v8 = vor.u32 %v5716_v3, %v5018_v2  ;;  %v4799_v10 = vor.u32 %v5656_v7, %v4796_v17  ;;  %v5147_v3 = vor.u32 %v5748_v58, %v5146_v57  ;;  %v5792_v7 = vld [vmem:[#allocation10 + $0x5c4] sm:$0xf]  ;;  %v4738_v58 = vld [vmem:[#allocation10 + $0x108] sm:$0xf] }
 0x148   :  { %v4551_v15 = vor.u32 %v5595_v12, %v4550_v11  ;;  %v4986_v11 = vld [vmem:[#allocation10 + $0x300] sm:$0xf]  ;;  %v5340_v17 = vld [vmem:[#allocation10 + $0x5e0] sm:$0xf0] }
 0x149   :  { %2121 = vmatpush.bf16.msrb.mxu0 %v4547_v14  ;;  %v5708_v12 = vld [vmem:[#allocation10 + $0x31c] sm:$0xf0]  ;;  %v5244_v57 = vld [vmem:[#allocation10 + $0x520] sm:$0xf0] }
 0x14a   :  { %2134 = vmatpush.bf16.msrb.mxu1 %v4551_v15  ;;  %v4762_v14 = vld [vmem:[#allocation10 + $0x140] sm:$0xf] }
 0x14b   :  { %v5652_v15 = vld [vmem:[#allocation10 + $0x15c] sm:$0xf0] }
 0x156   :  { %v1662_v37 = vpop.f32.mrf.mxu0 }
 0x157   :  { %v1675_v21 = vpop.f32.mrf.mxu1  ;;  %v1663_v22 = vadd.f32 %v1662_v37, %v1650_v20  ;;  %v5590_v20 = vld [vmem:[#allocation8 + $0x34] sm:$0xf]  ;;  %v4532_v37 = vld [vmem:[#allocation8 + $0x3c] sm:$0xf0] }
 0x159   :  { %v1676_v40 = vadd.f32 %v1675_v21, %v1663_v22  ;;  %v4538_v21 = vld [vmem:[#allocation8 + $0x38] sm:$0xf]  ;;  %v5592_v22 = vld [vmem:[#allocation8 + $0x40] sm:$0xf0] }
 0x15e   :  { %v1688_v23 = vpop.f32.mrf.mxu2  ;;  %v1664_v24 = vpop.f32.mrf.mxu0 }
 0x15f   :  { %v1689_v34 = vadd.f32 %v1688_v23, %v1676_v40  ;;  %v1701_v38 = vpop.f32.mrf.mxu3  ;;  %v1677_v25 = vpop.f32.mrf.mxu1  ;;  %v4531_v40 = vor.u32 %v5591_v19, %v4530_v18  ;;  %v4535_v23 = vor.u32 %v5590_v20, %v4532_v37  ;;  %v5648_v18 = vld [vmem:[#allocation10 + $0x144] sm:$0xf]  ;;  %v5242_v19 = vld [vmem:[#allocation10 + $0x500] sm:$0xf] }
 0x160   :  { %v5772_v20 = vld [vmem:[#allocation10 + $0x51c] sm:$0xf0]  ;;  %v4764_v37 = vld [vmem:[#allocation10 + $0x160] sm:$0xf0] }
 0x161   :  { %v1702_v26 = vadd.f32 %v1701_v38, %v1689_v34  ;;  %v4539_v34 = vor.u32 %v5592_v22, %v4538_v21  ;;  %2109 = vmatpush.bf16.msra.mxu3 %v4531_v40  ;;  %2122 = vmatpush.bf16.msrb.mxu0 %v4535_v23  ;;  %v4763_v21 = vor.u32 %v5652_v15, %v4762_v14  ;;  %v4730_v40 = vld [vmem:[#allocation10 + $0x100] sm:$0xf] }
 0x162   :  { %v4767_v22 = vor.u32 %v5648_v18, %v4764_v37  ;;  %v4987_v23 = vor.u32 %v5708_v12, %v4986_v11  ;;  %v5612_v15 = vld [vmem:[#allocation10 + $0x1c] sm:$0xf0]  ;;  %v5608_v18 = vld [vmem:[#allocation10 + $0x4] sm:$0xf] }
 0x163   :  { %v1707_v27 = vmax.f32 %v1702_v26, 0.0  ;;  %2135 = vmatpush.bf16.msrb.mxu1 %v4539_v34  ;;  %v4518_v26 = vld [vmem:[#allocation8 + $0x18] sm:$0xf]  ;;  %v5644_v34 = vld [vmem:[#allocation10 + $0x11c] sm:$0xf0]  ;;  %3303 = vmatpush.bf16.msrb.mxu2 %v4763_v21 }
 0x164   :  { %v5728_v37 = vld [vmem:[#allocation10 + $0x3c4] sm:$0xf] }
 0x165   :  { %v1710_v28 = vpack.c.bf16 %v1707_v27, %v1707_v27  ;;  %v5588_v27 = vld [vmem:[#allocation8 + $0x20] sm:$0xf0] }
 0x166   :  { %v1690_v29 = vpop.f32.mrf.mxu2  ;;  %v5084_v21 = vld [vmem:[#allocation10 + $0x3e0] sm:$0xf0] }
 0x167   :  { %v1703_v30 = vpop.f32.mrf.mxu3  ;;  %1937 = vmatmul.bf16.vlgmr.msra.gmra.mxu2 %v1710_v28  ;;  %v5587_v28 = vld [vmem:[#allocation8 + $0x1c] sm:$0xf]  ;;  %v4519_v29 = vor.u32 %v5588_v27, %v4518_v26  ;;  %v5243_v26 = vor.u32 %v5772_v20, %v5242_v19  ;;  %v4954_v27 = vld [vmem:[#allocation10 + $0x2c0] sm:$0xf]  ;;  %v4859_v19 = vor.u32 %v5676_v5, %v4858_v4  ;;  %v4604_v20 = vld [vmem:[#allocation10 + $0x20] sm:$0xf0] }
 0x168   :  { %v4520_v30 = vld [vmem:[#allocation8 + $0x24] sm:$0xf0]  ;;  %v5760_v4 = vld [vmem:[#allocation10 + $0x4c4] sm:$0xf] }
 0x169   :  { %v4523_v35 = vor.u32 %v5587_v28, %v4520_v30  ;;  %2110 = vmatpush.bf16.msra.mxu3 %v4519_v29  ;;  %v5700_v28 = vld [vmem:[#allocation10 + $0x2dc] sm:$0xf0]  ;;  %v5212_v5 = vld [vmem:[#allocation10 + $0x4e0] sm:$0xf0] }
 0x16a   :  { %v5210_v29 = vld [vmem:[#allocation10 + $0x4c0] sm:$0xf] }
 0x16b   :  { %2123 = vmatpush.bf16.msrb.mxu0 %v4523_v35  ;;  %v5764_v30 = vld [vmem:[#allocation10 + $0x4dc] sm:$0xf0] }
 0x16c   :  { %v4698_v35 = vld [vmem:[#allocation10 + $0xc0] sm:$0xf] }
 0x16d   :  { %2111 = vmatpush.bf16.msra.mxu3 %v4507_v43  ;;  %v5211_v43 = vor.u32 %v5764_v30, %v5210_v29  ;;  %v5661_v29 = vld [vmem:[#allocation10 + $0x1a4] sm:$0xf0]  ;;  %v4607_v30 = vor.u32 %v5608_v18, %v4604_v20 }
 0x16e   :  { %v4674_v18 = vld [vmem:[#allocation10 + $0x88] sm:$0xf] }
 0x16f   :  { %2124 = vmatpush.bf16.msrb.mxu0 %v4511_v46  ;;  %v5756_v46 = vld [vmem:[#allocation10 + $0x49c] sm:$0xf0] }
 0x171   :  { %3314 = vmatpush.bf16.msrb.mxu3 %v5083_v51  ;;  %v5628_v51 = vld [vmem:[#allocation10 + $0x9c] sm:$0xf0] }
 0x173   :  { %3327 = vmatpush.bf16.msra.mxu0 %v5339_v55  ;;  %v4890_v55 = vld [vmem:[#allocation10 + $0x240] sm:$0xf] }
 0x174   :  { %v4891_v62 = vor.u32 %v5684_v56, %v4890_v55  ;;  %v5768_v56 = vld [vmem:[#allocation10 + $0x504] sm:$0xf] }
 0x175   :  { %3315 = vmatpush.bf16.msrb.mxu3 %v5051_v59  ;;  %v4667_v59 = vor.u32 %v5628_v51, %v4666_v49  ;;  %v5020_v51 = vld [vmem:[#allocation10 + $0x360] sm:$0xf0] }
 0x176   :  { %v6061_v31 = vpop.f32.mrf.mxu0 }
 0x177   :  { %3328 = vmatpush.bf16.msra.mxu0 %v5307_v0  ;;  %v5620_v0 = vld [vmem:[#allocation10 + $0x5c] sm:$0xf0] }
 0x178   :  { %v4635_v11 = vor.u32 %v5620_v0, %v4634_v61  ;;  %v4988_v0 = vld [vmem:[#allocation10 + $0x320] sm:$0xf0] }
 0x179   :  { %3316 = vmatpush.bf16.msrb.mxu3 %v5019_v8  ;;  %v4834_v8 = vld [vmem:[#allocation10 + $0x1c8] sm:$0xf] }
 0x17b   :  { %3329 = vmatpush.bf16.msra.mxu0 %v5275_v13  ;;  %v4602_v13 = vld [vmem:[#allocation10] sm:$0xf] }
 0x17d   :  { %3317 = vmatpush.bf16.msrb.mxu3 %v4987_v23  ;;  %v5090_v23 = vld [vmem:[#allocation10 + $0x3c8] sm:$0xf] }
 0x17e   :  { %v1914_v32 = vpop.f32.mrf.mxu0 }
 0x17f   :  { %v4526_v32 = vld [vmem:[#allocation8 + $0x20] sm:$0xf]  ;;  %3330 = vmatpush.bf16.msra.mxu0 %v5243_v26  ;;  %v5308_v26 = vld [vmem:[#allocation10 + $0x5a0] sm:$0xf0] }
 0x180   :  { %v4527_v36 = vor.u32 %v5589_v33, %v4526_v32  ;;  %v4731_v32 = vor.u32 %v5644_v34, %v4730_v40  ;;  %v5343_v40 = vor.u32 %v5792_v7, %v5340_v17  ;;  %v5733_v34 = vld [vmem:[#allocation10 + $0x3e4] sm:$0xf0]  ;;  %v5696_v17 = vld [vmem:[#allocation10 + $0x2c4] sm:$0xf] }
 0x182   :  { %2136 = vmatpush.bf16.msrb.mxu1 %v4527_v36  ;;  %v4955_v36 = vor.u32 %v5700_v28, %v4954_v27  ;;  %3304 = vmatpush.bf16.msrb.mxu2 %v4731_v32  ;;  %v4603_v27 = vor.u32 %v5612_v15, %v4602_v13  ;;  %v4802_v28 = vld [vmem:[#allocation10 + $0x188] sm:$0xf]  ;;  %v5087_v32 = vor.u32 %v5728_v37, %v5084_v21  ;;  %v5180_v15 = vld [vmem:[#allocation10 + $0x4a0] sm:$0xf0] }
 0x183   :  { %3331 = vmatpush.bf16.msra.mxu0 %v5211_v43  ;;  %v5725_v43 = vld [vmem:[#allocation10 + $0x3a4] sm:$0xf0] }
 0x184   :  { %3318 = vmatpush.bf16.msrb.mxu3 %v4955_v36  ;;  %v5720_v36 = vld [vmem:[#allocation10 + $0x384] sm:$0xf]  ;;  %v5059_v49 = vor.u32 %v5725_v43, %v5058_v42 }
 0x185   :  { %v5680_v43 = vld [vmem:[#allocation10 + $0x244] sm:$0xf] }
 0x1a4   :  { %v1925_v38 = vpop.f32.mrf.mxu1 }
 0x1a5   :  { %v6064_v24 = vadd.f32 %v1925_v38, %v6061_v31  ;;  %v4514_v31 = vld [vmem:[#allocation8 + $0x8] sm:$0xf]  ;;  %v5640_v38 = vld [vmem:[#allocation10 + $0x104] sm:$0xf] }
 0x1a6   :  { %v4515_v47 = vor.u32 %v5586_v45, %v4514_v31  ;;  %v5692_v31 = vld [vmem:[#allocation10 + $0x29c] sm:$0xf0] }
 0x1a7   :  { %v5178_v45 = vld [vmem:[#allocation10 + $0x480] sm:$0xf]  ;;  %v4923_v50 = vor.u32 %v5692_v31, %v4922_v44  ;;  %v4803_v44 = vor.u32 %v5661_v29, %v4802_v28  ;;  %v5776_v31 = vld [vmem:[#allocation10 + $0x544] sm:$0xf]  ;;  %v4930_v28 = vld [vmem:[#allocation10 + $0x288] sm:$0xf] }
 0x1a8   :  { %2137 = vmatpush.bf16.msrb.mxu1 %v4515_v47  ;;  %v4699_v47 = vor.u32 %v5636_v39, %v4698_v35  ;;  %v5179_v54 = vor.u32 %v5756_v46, %v5178_v45  ;;  %v5091_v35 = vor.u32 %v5733_v34, %v5090_v23  ;;  %v5052_v39 = vld [vmem:[#allocation10 + $0x3a0] sm:$0xf0]  ;;  %v4770_v46 = vld [vmem:[#allocation10 + $0x148] sm:$0xf] }
 0x1a9   :  { %3319 = vmatpush.bf16.msrb.mxu3 %v4923_v50  ;;  %v5276_v45 = vld [vmem:[#allocation10 + $0x560] sm:$0xf0]  ;;  %v4642_v23 = vld [vmem:[#allocation10 + $0x48] sm:$0xf] }
 0x1aa   :  { %3305 = vmatpush.bf16.msrb.mxu2 %v4699_v47  ;;  %3332 = vmatpush.bf16.msra.mxu0 %v5179_v54  ;;  %v5653_v47 = vld [vmem:[#allocation10 + $0x164] sm:$0xf0]  ;;  %v5712_v50 = vld [vmem:[#allocation10 + $0x344] sm:$0xf]  ;;  %v5279_v52 = vor.u32 %v5776_v31, %v5276_v45 }
 0x1ab   :  { %v5717_v54 = vld [vmem:[#allocation10 + $0x364] sm:$0xf0]  ;;  %v4771_v55 = vor.u32 %v5653_v47, %v4770_v46 }
 0x1ac   :  { %v1927_v25 = vpop.f32.mrf.mxu1  ;;  %3340 = vmatpush.bf16.msra.mxu1 %v4831_v63  ;;  %v4636_v63 = vld [vmem:[#allocation10 + $0x60] sm:$0xf0]  ;;  %v5027_v61 = vor.u32 %v5717_v54, %v5026_v53  ;;  %v4898_v31 = vld [vmem:[#allocation10 + $0x248] sm:$0xf]  ;;  %v5665_v54 = vld [vmem:[#allocation10 + $0x1cc] sm:$0xf] }
 0x1ad   :  { %v4732_v25 = vld [vmem:[#allocation10 + $0x120] sm:$0xf0]  ;;  %v4639_v12 = vor.u32 %v5616_v1, %v4636_v63  ;;  %3320 = vmatpush.bf16.msrb.mxu3 %v4891_v62  ;;  %v5247_v1 = vor.u32 %v5768_v56, %v5244_v57  ;;  %v4994_v63 = vld [vmem:[#allocation10 + $0x308] sm:$0xf]  ;;  %v5729_v57 = vld [vmem:[#allocation10 + $0x3cc] sm:$0xf] }
 0x1ae   :  { %v4735_v33 = vor.u32 %v5640_v38, %v4732_v25  ;;  %3306 = vmatpush.bf16.msrb.mxu2 %v4667_v59  ;;  %3333 = vmatpush.bf16.msra.mxu0 %v5147_v3  ;;  %v5784_v25 = vld [vmem:[#allocation10 + $0x584] sm:$0xf]  ;;  %v5645_v59 = vld [vmem:[#allocation10 + $0x124] sm:$0xf0] }
 0x1af   :  { %v5311_v41 = vor.u32 %v5784_v25, %v5308_v26  ;;  %v5704_v62 = vld [vmem:[#allocation10 + $0x304] sm:$0xf]  ;;  %v4739_v3 = vor.u32 %v5645_v59, %v4738_v58  ;;  %v5685_v46 = vld [vmem:[#allocation10 + $0x264] sm:$0xf0]  ;;  %v5092_v58 = vld [vmem:[#allocation10 + $0x3e8] sm:$0xf0] }
 0x1b0   :  { %3341 = vmatpush.bf16.msra.mxu1 %v4799_v10  ;;  %v5669_v10 = vld [vmem:[#allocation10 + $0x1e4] sm:$0xf0]  ;;  %v5688_v26 = vld [vmem:[#allocation10 + $0x284] sm:$0xf]  ;;  %v4899_v47 = vor.u32 %v5685_v46, %v4898_v31  ;;  %v4964_v46 = vld [vmem:[#allocation10 + $0x2e8] sm:$0xf0] }
 0x1b1   :  { %v4835_v38 = vor.u32 %v5669_v10, %v4834_v8  ;;  %3321 = vmatpush.bf16.msrb.mxu3 %v4859_v19  ;;  %v4956_v8 = vld [vmem:[#allocation10 + $0x2e0] sm:$0xf0]  ;;  %v5215_v10 = vor.u32 %v5760_v4, %v5212_v5  ;;  %v5629_v19 = vld [vmem:[#allocation10 + $0xa4] sm:$0xf0]  ;;  %v5721_v4 = vld [vmem:[#allocation10 + $0x38c] sm:$0xf] }
 0x1b2   :  { %3307 = vmatpush.bf16.msrb.mxu2 %v4635_v11  ;;  %v4962_v11 = vld [vmem:[#allocation10 + $0x2c8] sm:$0xf]  ;;  %v4959_v20 = vor.u32 %v5696_v17, %v4956_v8  ;;  %v5060_v5 = vld [vmem:[#allocation10 + $0x3a8] sm:$0xf0] }
 0x1b3   :  { %v5793_v17 = vld [vmem:[#allocation10 + $0x5cc] sm:$0xf] }
 0x1b4   :  { %3342 = vmatpush.bf16.msra.mxu1 %v4767_v22  ;;  %v5115_v22 = vor.u32 %v5740_v16, %v5114_v6  ;;  %v4706_v6 = vld [vmem:[#allocation10 + $0xc8] sm:$0xf]  ;;  %v4991_v16 = vor.u32 %v5704_v62, %v4988_v0  ;;  %v5348_v8 = vld [vmem:[#allocation10 + $0x5e8] sm:$0xf0] }
 0x1b6   :  { %3334 = vmatpush.bf16.msra.mxu0 %v5115_v22  ;;  %3308 = vmatpush.bf16.msrb.mxu2 %v4603_v27  ;;  %v5744_v22 = vld [vmem:[#allocation10 + $0x444] sm:$0xf] }
 0x1b7   :  { %v4924_v27 = vld [vmem:[#allocation10 + $0x2a0] sm:$0xf0] }
 0x1b8   :  { %3343 = vmatpush.bf16.msra.mxu1 %v4735_v33  ;;  %v4927_v29 = vor.u32 %v5688_v26, %v4924_v27  ;;  %v4740_v26 = vld [vmem:[#allocation10 + $0x128] sm:$0xf0] }
 0x1ba   :  { %3353 = vmatpush.bf16.msra.mxu2 %v5087_v32 }
 0x1bc   :  { %3344 = vmatpush.bf16.msra.mxu1 %v4703_v48  ;;  %v5055_v48 = vor.u32 %v5720_v36, %v5052_v39  ;;  %v4610_v36 = vld [vmem:[#allocation10 + $0x8] sm:$0xf] }
 0x1be   :  { %3354 = vmatpush.bf16.msra.mxu2 %v5055_v48  ;;  %v5672_v48 = vld [vmem:[#allocation10 + $0x204] sm:$0xf] }
 0x1c0   :  { %3345 = vmatpush.bf16.msra.mxu1 %v4671_v60  ;;  %v5023_v60 = vor.u32 %v5712_v50, %v5020_v51  ;;  %v4866_v51 = vld [vmem:[#allocation10 + $0x208] sm:$0xf] }
 0x1c2   :  { %3355 = vmatpush.bf16.msra.mxu2 %v5023_v60 }
 0x1c4   :  { %3346 = vmatpush.bf16.msra.mxu1 %v4639_v12  ;;  %v5701_v12 = vld [vmem:[#allocation10 + $0x2e4] sm:$0xf0] }
 0x1c5   :  { %v4963_v37 = vor.u32 %v5701_v12, %v4962_v11  ;;  %v5063_v11 = vor.u32 %v5721_v4, %v5060_v5  ;;  %v5649_v12 = vld [vmem:[#allocation10 + $0x14c] sm:$0xf] }
 0x1c6   :  { %3356 = vmatpush.bf16.msra.mxu2 %v4991_v16  ;;  %v5617_v4 = vld [vmem:[#allocation10 + $0x4c] sm:$0xf] }
 0x1c7   :  { %v4644_v5 = vld [vmem:[#allocation10 + $0x68] sm:$0xf0] }
 0x1c8   :  { %3347 = vmatpush.bf16.msra.mxu1 %v4607_v30  ;;  %v5693_v30 = vld [vmem:[#allocation10 + $0x2a4] sm:$0xf0] }
 0x1c9   :  { %v4931_v32 = vor.u32 %v5693_v30, %v4930_v28  ;;  %v5705_v28 = vld [vmem:[#allocation10 + $0x30c] sm:$0xf] }
 0x1ca   :  { %3357 = vmatpush.bf16.msra.mxu2 %v4959_v20 }
 0x1ce   :  { %3358 = vmatpush.bf16.msra.mxu2 %v4927_v29  ;;  %v4996_v29 = vld [vmem:[#allocation10 + $0x328] sm:$0xf0] }
 0x1ea   :  { %v1938_v2 = vpop.f32.mrf.mxu2 }
 0x1eb   :  { %v1939_v9 = vadd.f32 %v1938_v2, %v6064_v24  ;;  %v5709_v2 = vld [vmem:[#allocation10 + $0x324] sm:$0xf0] }
 0x1ec   :  { %v4995_v7 = vor.u32 %v5709_v2, %v4994_v63  ;;  %v5657_v63 = vld [vmem:[#allocation10 + $0x18c] sm:$0xf] }
 0x1ed   :  { %v1942_v14 = vmax.f32 %v1939_v9, 0.0  ;;  %v5637_v9 = vld [vmem:[#allocation10 + $0xe4] sm:$0xf0]  ;;  %v4804_v2 = vld [vmem:[#allocation10 + $0x1a8] sm:$0xf0] }
 0x1ee   :  { %v4707_v13 = vor.u32 %v5637_v9, %v4706_v6  ;;  %v5346_v6 = vld [vmem:[#allocation10 + $0x5c8] sm:$0xf] }
 0x1ef   :  { %v1943_v24 = vpack.c.bf16 %v1942_v14, %v1942_v14  ;;  %v5752_v14 = vld [vmem:[#allocation10 + $0x484] sm:$0xf]  ;;  %v5797_v9 = vld [vmem:[#allocation10 + $0x5e4] sm:$0xf0] }
 0x1f0   :  { %v5183_v21 = vor.u32 %v5752_v14, %v5180_v15  ;;  %v5347_v15 = vor.u32 %v5797_v9, %v5346_v6  ;;  %v5681_v9 = vld [vmem:[#allocation10 + $0x24c] sm:$0xf] }
 0x1f1   :  { %2112 = vmatmul.bf16.vlgmr.msra.gmra.mxu3 %v1943_v24  ;;  %2125 = vmatmul.bf16.vlgmr.msrb.gmra.mxu0 %v1943_v24 }
 0x1f2   :  { %2138 = vmatmul.bf16.vlgmr.msrb.gmra.mxu1 %v1943_v24  ;;  %v1940_v33 = vpop.f32.mrf.mxu2  ;;  %3366 = vmatpush.bf16.msra.mxu3 %v5343_v40  ;;  %v4675_v24 = vor.u32 %v5629_v19, %v4674_v18  ;;  %v5148_v40 = vld [vmem:[#allocation10 + $0x460] sm:$0xf0]  ;;  %v5713_v18 = vld [vmem:[#allocation10 + $0x34c] sm:$0xf] }
 0x1f3   :  { %3379 = vmatpush.bf16.msrb.mxu0 %v4835_v38  ;;  %3392 = vmatpush.bf16.msrb.mxu1 %v5091_v35  ;;  %v5151_v34 = vor.u32 %v5744_v22, %v5148_v40  ;;  %v5621_v38 = vld [vmem:[#allocation10 + $0x64] sm:$0xf0]  ;;  %v5736_v33 = vld [vmem:[#allocation10 + $0x404] sm:$0xf]  ;;  %v5028_v19 = vld [vmem:[#allocation10 + $0x368] sm:$0xf0] }
 0x1f4   :  { %v4643_v25 = vor.u32 %v5621_v38, %v4642_v23  ;;  %v5116_v35 = vld [vmem:[#allocation10 + $0x420] sm:$0xf0]  ;;  %v5789_v22 = vld [vmem:[#allocation10 + $0x5a4] sm:$0xf0]  ;;  %v5785_v23 = vld [vmem:[#allocation10 + $0x58c] sm:$0xf]  ;;  %v5031_v38 = vor.u32 %v5713_v18, %v5028_v19 }
 0x1f5   :  { %v5119_v39 = vor.u32 %v5736_v33, %v5116_v35  ;;  %v5781_v33 = vld [vmem:[#allocation10 + $0x564] sm:$0xf0]  ;;  %v5673_v18 = vld [vmem:[#allocation10 + $0x20c] sm:$0xf] }
 0x1f6   :  { %3367 = vmatpush.bf16.msra.mxu3 %v5311_v41  ;;  %v5613_v41 = vld [vmem:[#allocation10 + $0x24] sm:$0xf0]  ;;  %v4868_v19 = vld [vmem:[#allocation10 + $0x228] sm:$0xf0] }
 0x1f7   :  { %3380 = vmatpush.bf16.msrb.mxu0 %v4803_v44  ;;  %3393 = vmatpush.bf16.msrb.mxu1 %v5059_v49  ;;  %v4611_v42 = vor.u32 %v5613_v41, %v4610_v36  ;;  %v4892_v44 = vld [vmem:[#allocation10 + $0x260] sm:$0xf0]  ;;  %v5284_v41 = vld [vmem:[#allocation10 + $0x568] sm:$0xf0] }
 0x1f8   :  { %v4895_v45 = vor.u32 %v5680_v43, %v4892_v44  ;;  %v4860_v49 = vld [vmem:[#allocation10 + $0x220] sm:$0xf0]  ;;  %v5633_v43 = vld [vmem:[#allocation10 + $0xcc] sm:$0xf] }
 0x1f9   :  { %v4863_v50 = vor.u32 %v5672_v48, %v4860_v49  ;;  %v4708_v44 = vld [vmem:[#allocation10 + $0xe8] sm:$0xf0]  ;;  %v5250_v48 = vld [vmem:[#allocation10 + $0x508] sm:$0xf] }
 0x1fa   :  { %3368 = vmatpush.bf16.msra.mxu3 %v5279_v52  ;;  %3359 = vmatpush.bf16.msra.mxu2 %v4895_v45  ;;  %v5677_v52 = vld [vmem:[#allocation10 + $0x224] sm:$0xf0]  ;;  %v5697_v45 = vld [vmem:[#allocation10 + $0x2cc] sm:$0xf] }
 0x1fb   :  { %3381 = vmatpush.bf16.msrb.mxu0 %v4771_v55  ;;  %3394 = vmatpush.bf16.msrb.mxu1 %v5027_v61  ;;  %v4867_v53 = vor.u32 %v5677_v52, %v4866_v51  ;;  %v4836_v55 = vld [vmem:[#allocation10 + $0x1e8] sm:$0xf0]  ;;  %v5773_v49 = vld [vmem:[#allocation10 + $0x524] sm:$0xf0] }
 0x1fc   :  { %v4839_v62 = vor.u32 %v5665_v54, %v4836_v55  ;;  %v5769_v51 = vld [vmem:[#allocation10 + $0x50c] sm:$0xf] }
 0x1fd   :  { %v5252_v52 = vld [vmem:[#allocation10 + $0x528] sm:$0xf0] }
 0x1fe   :  { %3369 = vmatpush.bf16.msra.mxu3 %v5247_v1  ;;  %3360 = vmatpush.bf16.msra.mxu2 %v4863_v50  ;;  %v5095_v1 = vor.u32 %v5729_v57, %v5092_v58  ;;  %v4711_v50 = vor.u32 %v5633_v43, %v4708_v44  ;;  %v5625_v54 = vld [vmem:[#allocation10 + $0x8c] sm:$0xf]  ;;  %v5741_v43 = vld [vmem:[#allocation10 + $0x424] sm:$0xf0] }
 0x1ff   :  { %3382 = vmatpush.bf16.msrb.mxu0 %v4739_v3  ;;  %3395 = vmatpush.bf16.msrb.mxu1 %v4995_v7  ;;  %v4807_v7 = vor.u32 %v5657_v63, %v4804_v2  ;;  %v4676_v55 = vld [vmem:[#allocation10 + $0xa8] sm:$0xf0] }
 0x200   :  { %v5689_v57 = vld [vmem:[#allocation10 + $0x28c] sm:$0xf] }
 0x201   :  { %v4932_v58 = vld [vmem:[#allocation10 + $0x2a8] sm:$0xf0] }
 0x202   :  { %3370 = vmatpush.bf16.msra.mxu3 %v5215_v10  ;;  %v5220_v63 = vld [vmem:[#allocation10 + $0x4e8] sm:$0xf0]  ;;  %v4935_v2 = vor.u32 %v5689_v57, %v4932_v58  ;;  %v5782_v57 = vld [vmem:[#allocation10 + $0x56c] sm:$0xf0] }
 0x203   :  { %3383 = vmatpush.bf16.msrb.mxu0 %v4707_v13  ;;  %3396 = vmatpush.bf16.msrb.mxu1 %v4963_v37  ;;  %v4772_v13 = vld [vmem:[#allocation10 + $0x168] sm:$0xf0] }
 0x204   :  { %v4775_v40 = vor.u32 %v5649_v12, %v4772_v13  ;;  %v5188_v12 = vld [vmem:[#allocation10 + $0x4a8] sm:$0xf0] }
 0x205   :  { %v5609_v13 = vld [vmem:[#allocation10 + $0xc] sm:$0xf] }
 0x206   :  { %3371 = vmatpush.bf16.msra.mxu3 %v5183_v21  ;;  %v5351_v21 = vor.u32 %v5793_v17, %v5348_v8  ;;  %v5186_v17 = vld [vmem:[#allocation10 + $0x488] sm:$0xf]  ;;  %v5737_v44 = vld [vmem:[#allocation10 + $0x40c] sm:$0xf] }
 0x207   :  { %3384 = vmatpush.bf16.msrb.mxu0 %v4675_v24  ;;  %3397 = vmatpush.bf16.msrb.mxu1 %v4931_v32  ;;  %v5314_v24 = vld [vmem:[#allocation10 + $0x588] sm:$0xf] }
 0x208   :  { %v5315_v27 = vor.u32 %v5789_v22, %v5314_v24  ;;  %v5282_v32 = vld [vmem:[#allocation10 + $0x548] sm:$0xf]  ;;  %v5734_v24 = vld [vmem:[#allocation10 + $0x3ec] sm:$0xf0] }
 0x209   :  { %v5283_v31 = vor.u32 %v5781_v33, %v5282_v32  ;;  %v5757_v8 = vld [vmem:[#allocation10 + $0x4a4] sm:$0xf0]  ;;  %v5354_v22 = vld [vmem:[#allocation10 + $0x5d0] sm:$0xf] }
 0x20a   :  { %3372 = vmatpush.bf16.msra.mxu3 %v5151_v34  ;;  %v5316_v34 = vld [vmem:[#allocation10 + $0x5a8] sm:$0xf0] }
 0x20b   :  { %3385 = vmatpush.bf16.msrb.mxu0 %v4643_v25  ;;  %3398 = vmatpush.bf16.msrb.mxu1 %v4899_v47  ;;  %v5641_v25 = vld [vmem:[#allocation10 + $0x10c] sm:$0xf]  ;;  %v5319_v30 = vor.u32 %v5785_v23, %v5316_v34  ;;  %v5798_v23 = vld [vmem:[#allocation10 + $0x5ec] sm:$0xf0]  ;;  %v5154_v34 = vld [vmem:[#allocation10 + $0x448] sm:$0xf] }
 0x20c   :  { %v4743_v36 = vor.u32 %v5641_v25, %v4740_v26  ;;  %v5745_v26 = vld [vmem:[#allocation10 + $0x44c] sm:$0xf]  ;;  %v5355_v32 = vor.u32 %v5798_v23, %v5354_v22  ;;  %v4748_v23 = vld [vmem:[#allocation10 + $0x130] sm:$0xf0] }
 0x20e   :  { %3373 = vmatpush.bf16.msra.mxu3 %v5119_v39  ;;  %v5777_v39 = vld [vmem:[#allocation10 + $0x54c] sm:$0xf] }
 0x20f   :  { %3386 = vmatpush.bf16.msrb.mxu0 %v4611_v42  ;;  %3399 = vmatpush.bf16.msrb.mxu1 %v4867_v53  ;;  %v4999_v42 = vor.u32 %v5705_v28, %v4996_v29  ;;  %v5287_v47 = vor.u32 %v5777_v39, %v5284_v41  ;;  %v4967_v53 = vor.u32 %v5697_v45, %v4964_v46  ;;  %v5790_v39 = vld [vmem:[#allocation10 + $0x5ac] sm:$0xf0] }
 0x210   :  { %v4871_v28 = vor.u32 %v5673_v18, %v4868_v19  ;;  %v4842_v45 = vld [vmem:[#allocation10 + $0x1d0] sm:$0xf] }
 0x211   :  { %v5670_v46 = vld [vmem:[#allocation10 + $0x1ec] sm:$0xf0] }
 0x212   :  { %v5226_v18 = vld [vmem:[#allocation10 + $0x4d0] sm:$0xf] }
 0x213   :  { %v5766_v19 = vld [vmem:[#allocation10 + $0x4ec] sm:$0xf0] }
 0x26e   :  { %v2126_v56 = vpop.f32.mrf.mxu0 }
 0x26f   :  { %v2144_v59 = vmax.f32 %v2126_v56, 0.0  ;;  %v2139_v60 = vpop.f32.mrf.mxu1  ;;  %v5251_v56 = vor.u32 %v5773_v49, %v5250_v48  ;;  %v5666_v48 = vld [vmem:[#allocation10 + $0x1d4] sm:$0xf] }
 0x270   :  { %v2145_v61 = vmax.f32 %v2139_v60, 0.0  ;;  %v5218_v60 = vld [vmem:[#allocation10 + $0x4c8] sm:$0xf]  ;;  %v4844_v49 = vld [vmem:[#allocation10 + $0x1f0] sm:$0xf0] }
 0x271   :  { %v6067_v0 = vpack.c.bf16 %v2144_v59, %v2144_v59  ;;  %v5255_v59 = vor.u32 %v5769_v51, %v5252_v52  ;;  %v5034_v52 = vld [vmem:[#allocation10 + $0x350] sm:$0xf]  ;;  %v4847_v58 = vor.u32 %v5666_v48, %v4844_v49  ;;  %v5626_v49 = vld [vmem:[#allocation10 + $0x94] sm:$0xf] }
 0x272   :  { %v6069_v3 = vpack.c.bf16 %v2145_v61, %v2145_v61  ;;  %v5765_v61 = vld [vmem:[#allocation10 + $0x4e4] sm:$0xf0] }
 0x273   :  { %3322 = vmatmul.bf16.vlgmr.msrb.gmra.mxu3 %v6067_v0  ;;  %v5219_v6 = vor.u32 %v5765_v61, %v5218_v60  ;;  %v5662_v60 = vld [vmem:[#allocation10 + $0x1ac] sm:$0xf0] }
 0x274   :  { %3335 = vmatmul.bf16.vlgmr.msra.gmra.mxu0 %v6069_v3  ;;  %3418 = vmatpush.bf16.msrb.mxu3 %v4839_v62  ;;  %v2113_v16 = vpop.f32.mrf.mxu3  ;;  %v4679_v62 = vor.u32 %v5625_v54, %v4676_v55  ;;  %v4843_v55 = vor.u32 %v5670_v46, %v4842_v45  ;;  %v4682_v46 = vld [vmem:[#allocation10 + $0x90] sm:$0xf] }
 0x275   :  { %3431 = vmatpush.bf16.msra.mxu0 %v5095_v1  ;;  %v2143_v10 = vmax.f32 %v2113_v16, 0.0  ;;  %v5761_v1 = vld [vmem:[#allocation10 + $0x4cc] sm:$0xf] }
 0x276   :  { %v2128_v14 = vpop.f32.mrf.mxu0  ;;  %v4900_v16 = vld [vmem:[#allocation10 + $0x268] sm:$0xf0] }
 0x277   :  { %v6073_v20 = vpack.c.bf16 %v2143_v10, %v2143_v10  ;;  %v2141_v37 = vpop.f32.mrf.mxu1  ;;  %v4647_v10 = vor.u32 %v5617_v4, %v4644_v5  ;;  %v4903_v14 = vor.u32 %v5681_v9, %v4900_v16  ;;  %v5710_v4 = vld [vmem:[#allocation10 + $0x32c] sm:$0xf0] }
 0x278   :  { %3419 = vmatpush.bf16.msrb.mxu3 %v4807_v7  ;;  %v5223_v7 = vor.u32 %v5761_v1, %v5220_v63  ;;  %v5187_v37 = vor.u32 %v5757_v8, %v5186_v17  ;;  %v4812_v1 = vld [vmem:[#allocation10 + $0x1b0] sm:$0xf0]  ;;  %v5774_v9 = vld [vmem:[#allocation10 + $0x52c] sm:$0xf0] }
 0x279   :  { %3432 = vmatpush.bf16.msra.mxu0 %v5063_v11  ;;  %3309 = vmatmul.bf16.vlgmr.msrb.gmra.mxu2 %v6073_v20  ;;  %v5753_v11 = vld [vmem:[#allocation10 + $0x48c] sm:$0xf]  ;;  %v5654_v17 = vld [vmem:[#allocation10 + $0x16c] sm:$0xf0] }
 0x27a   :  { %3348 = vmatmul.bf16.vlgmr.msra.gmra.mxu1 %v6073_v20  ;;  %3405 = vmatpush.bf16.msrb.mxu2 %v5347_v15  ;;  %v4612_v15 = vld [vmem:[#allocation10 + $0x28] sm:$0xf0] }
 0x27b   :  { %3444 = vmatpush.bf16.msra.mxu1 %v5351_v21  ;;  %v5098_v21 = vld [vmem:[#allocation10 + $0x3d0] sm:$0xf]  ;;  %v4615_v25 = vor.u32 %v5609_v13, %v4612_v15 }
 0x27c   :  { %3420 = vmatpush.bf16.msrb.mxu3 %v4775_v40  ;;  %v2115_v35 = vpop.f32.mrf.mxu3  ;;  %v5191_v40 = vor.u32 %v5753_v11, %v5188_v12  ;;  %v5099_v29 = vor.u32 %v5734_v24, %v5098_v21  ;;  %v4780_v11 = vld [vmem:[#allocation10 + $0x170] sm:$0xf0]  ;;  %v4970_v13 = vld [vmem:[#allocation10 + $0x2d0] sm:$0xf] }
 0x27d   :  { %3433 = vmatpush.bf16.msra.mxu0 %v5031_v38  ;;  %v5749_v38 = vld [vmem:[#allocation10 + $0x464] sm:$0xf0]  ;;  %v5726_v35 = vld [vmem:[#allocation10 + $0x3ac] sm:$0xf0] }
 0x27e   :  { %3406 = vmatpush.bf16.msrb.mxu2 %v5315_v27  ;;  %v5156_v27 = vld [vmem:[#allocation10 + $0x468] sm:$0xf0]  ;;  %v5155_v33 = vor.u32 %v5749_v38, %v5154_v34  ;;  %v4746_v21 = vld [vmem:[#allocation10 + $0x110] sm:$0xf]  ;;  %v5227_v34 = vor.u32 %v5766_v19, %v5226_v18  ;;  %v5730_v18 = vld [vmem:[#allocation10 + $0x3d4] sm:$0xf] }
 0x27f   :  { %3445 = vmatpush.bf16.msra.mxu1 %v5319_v30  ;;  %v5066_v30 = vld [vmem:[#allocation10 + $0x390] sm:$0xf]  ;;  %v5159_v41 = vor.u32 %v5745_v26, %v5156_v27  ;;  %v5100_v19 = vld [vmem:[#allocation10 + $0x3f0] sm:$0xf0] }
 0x280   :  { %3421 = vmatpush.bf16.msrb.mxu3 %v4743_v36  ;;  %v5322_v36 = vld [vmem:[#allocation10 + $0x590] sm:$0xf] }
 0x281   :  { %3434 = vmatpush.bf16.msra.mxu0 %v4999_v42  ;;  %v5122_v42 = vld [vmem:[#allocation10 + $0x408] sm:$0xf]  ;;  %v5646_v24 = vld [vmem:[#allocation10 + $0x12c] sm:$0xf0] }
 0x282   :  { %3407 = vmatpush.bf16.msrb.mxu2 %v5283_v31  ;;  %v5124_v31 = vld [vmem:[#allocation10 + $0x428] sm:$0xf0]  ;;  %v5123_v51 = vor.u32 %v5741_v43, %v5122_v42  ;;  %v4938_v38 = vld [vmem:[#allocation10 + $0x290] sm:$0xf]  ;;  %v4747_v26 = vor.u32 %v5646_v24, %v4746_v21  ;;  %v5106_v21 = vld [vmem:[#allocation10 + $0x3d8] sm:$0xf] }
 0x283   :  { %3446 = vmatpush.bf16.msra.mxu1 %v5287_v47  ;;  %3374 = vmatmul.bf16.vlgmr.msra.gmra.mxu3 %v6069_v3  ;;  %v5067_v47 = vor.u32 %v5726_v35, %v5066_v30  ;;  %v5127_v54 = vor.u32 %v5737_v44, %v5124_v31  ;;  %v5194_v27 = vld [vmem:[#allocation10 + $0x490] sm:$0xf]  ;;  %v5634_v35 = vld [vmem:[#allocation10 + $0xd4] sm:$0xf]  ;;  %v5735_v24 = vld [vmem:[#allocation10 + $0x3f4] sm:$0xf0] }
 0x284   :  { %3387 = vmatmul.bf16.vlgmr.msrb.gmra.mxu0 %v6073_v20  ;;  %3422 = vmatpush.bf16.msrb.mxu3 %v4711_v50  ;;  %v5323_v50 = vor.u32 %v5790_v39, %v5322_v36  ;;  %v4714_v30 = vld [vmem:[#allocation10 + $0xd0] sm:$0xf]  ;;  %v4716_v36 = vld [vmem:[#allocation10 + $0xf0] sm:$0xf0] }
 0x285   :  { %3435 = vmatpush.bf16.msra.mxu0 %v4967_v53  ;;  %v5718_v53 = vld [vmem:[#allocation10 + $0x36c] sm:$0xf0]  ;;  %v4719_v45 = vor.u32 %v5634_v35, %v4716_v36  ;;  %v5727_v35 = vld [vmem:[#allocation10 + $0x3b4] sm:$0xf0] }
 0x286   :  { %3408 = vmatpush.bf16.msrb.mxu2 %v5251_v56  ;;  %v5290_v56 = vld [vmem:[#allocation10 + $0x550] sm:$0xf]  ;;  %v5035_v61 = vor.u32 %v5718_v53, %v5034_v52 }
 0x287   :  { %3447 = vmatpush.bf16.msra.mxu1 %v5255_v59  ;;  %v4810_v59 = vld [vmem:[#allocation10 + $0x190] sm:$0xf]  ;;  %v5291_v63 = vor.u32 %v5782_v57, %v5290_v56  ;;  %v5794_v57 = vld [vmem:[#allocation10 + $0x5d4] sm:$0xf] }
 0x288   :  { %3423 = vmatpush.bf16.msrb.mxu3 %v4679_v62  ;;  %v5658_v62 = vld [vmem:[#allocation10 + $0x194] sm:$0xf]  ;;  %v4811_v5 = vor.u32 %v5662_v60, %v4810_v59  ;;  %v5686_v42 = vld [vmem:[#allocation10 + $0x26c] sm:$0xf0]  ;;  %v4850_v59 = vld [vmem:[#allocation10 + $0x1d8] sm:$0xf] }
 0x289   :  { %3436 = vmatpush.bf16.msra.mxu0 %v4935_v2  ;;  %3361 = vmatmul.bf16.vlgmr.msra.gmra.mxu2 %v6067_v0  ;;  %v5002_v2 = vld [vmem:[#allocation10 + $0x310] sm:$0xf]  ;;  %v4815_v16 = vor.u32 %v5658_v62, %v4812_v1 }
 0x28a   :  { %3400 = vmatmul.bf16.vlgmr.msrb.gmra.mxu1 %v6067_v0  ;;  %3409 = vmatpush.bf16.msrb.mxu2 %v5219_v6  ;;  %v5258_v6 = vld [vmem:[#allocation10 + $0x510] sm:$0xf]  ;;  %v5003_v8 = vor.u32 %v5710_v4, %v5002_v2  ;;  %v5618_v2 = vld [vmem:[#allocation10 + $0x54] sm:$0xf] }
 0x28b   :  { %3448 = vmatpush.bf16.msra.mxu1 %v5223_v7  ;;  %v4778_v7 = vld [vmem:[#allocation10 + $0x150] sm:$0xf]  ;;  %v5259_v12 = vor.u32 %v5774_v9, %v5258_v6  ;;  %v4652_v4 = vld [vmem:[#allocation10 + $0x70] sm:$0xf0] }
 0x28c   :  { %3424 = vmatpush.bf16.msrb.mxu3 %v4647_v10  ;;  %v5650_v10 = vld [vmem:[#allocation10 + $0x154] sm:$0xf]  ;;  %v4779_v15 = vor.u32 %v5654_v17, %v4778_v7  ;;  %v5162_v44 = vld [vmem:[#allocation10 + $0x450] sm:$0xf] }
 0x28d   :  { %3437 = vmatpush.bf16.msra.mxu0 %v4903_v14  ;;  %v5702_v14 = vld [vmem:[#allocation10 + $0x2ec] sm:$0xf0]  ;;  %v5786_v9 = vld [vmem:[#allocation10 + $0x594] sm:$0xf] }
 0x28e   :  { %3410 = vmatpush.bf16.msrb.mxu2 %v5187_v37  ;;  %v4783_v37 = vor.u32 %v5650_v10, %v4780_v11  ;;  %v4971_v22 = vor.u32 %v5702_v14, %v4970_v13  ;;  %v5750_v31 = vld [vmem:[#allocation10 + $0x46c] sm:$0xf0]  ;;  %v5324_v17 = vld [vmem:[#allocation10 + $0x5b0] sm:$0xf0]  ;;  %v5663_v10 = vld [vmem:[#allocation10 + $0x1b4] sm:$0xf0]  ;;  %v4655_v11 = vor.u32 %v5618_v2, %v4652_v4 }
 0x28f   :  { %3449 = vmatpush.bf16.msra.mxu1 %v5191_v40  ;;  %v5642_v40 = vld [vmem:[#allocation10 + $0x114] sm:$0xf]  ;;  %v5163_v52 = vor.u32 %v5750_v31, %v5162_v44  ;;  %v5678_v53 = vld [vmem:[#allocation10 + $0x22c] sm:$0xf0]  ;;  %v5647_v44 = vld [vmem:[#allocation10 + $0x134] sm:$0xf0] }
 0x290   :  { %3425 = vmatpush.bf16.msrb.mxu3 %v4615_v25  ;;  %v5694_v25 = vld [vmem:[#allocation10 + $0x2ac] sm:$0xf0]  ;;  %v5610_v14 = vld [vmem:[#allocation10 + $0x14] sm:$0xf]  ;;  %v4690_v4 = vld [vmem:[#allocation10 + $0x98] sm:$0xf] }
 0x291   :  { %3438 = vmatpush.bf16.msra.mxu0 %v4871_v28  ;;  %v5758_v28 = vld [vmem:[#allocation10 + $0x4ac] sm:$0xf0] }
 0x292   :  { %3411 = vmatpush.bf16.msrb.mxu2 %v5155_v33  ;;  %v4939_v33 = vor.u32 %v5694_v25, %v4938_v38  ;;  %v5195_v39 = vor.u32 %v5758_v28, %v5194_v27  ;;  %v4650_v62 = vld [vmem:[#allocation10 + $0x50] sm:$0xf]  ;;  %v5103_v25 = vor.u32 %v5730_v18, %v5100_v19  ;;  %v5655_v27 = vld [vmem:[#allocation10 + $0x174] sm:$0xf0]  ;;  %v5107_v28 = vor.u32 %v5735_v24, %v5106_v21  ;;  %v5690_v19 = vld [vmem:[#allocation10 + $0x294] sm:$0xf] }
 0x293   :  { %3450 = vmatpush.bf16.msra.mxu1 %v5159_v41  ;;  %3426 = vmatmul.bf16.vlgmr.msrb.gmra.mxu3 %v6073_v20  ;;  %v4906_v41 = vld [vmem:[#allocation10 + $0x250] sm:$0xf]  ;;  %v4946_v24 = vld [vmem:[#allocation10 + $0x298] sm:$0xf] }
 0x294   :  { %3470 = vmatpush.bf16.msra.mxu3 %v5099_v29  ;;  %3439 = vmatmul.bf16.vlgmr.msra.gmra.mxu0 %v6067_v0  ;;  %v4751_v29 = vor.u32 %v5642_v40, %v4748_v23  ;;  %v4907_v48 = vor.u32 %v5686_v42, %v4906_v41  ;;  %v5622_v1 = vld [vmem:[#allocation10 + $0x6c] sm:$0xf0]  ;;  %v5778_v23 = vld [vmem:[#allocation10 + $0x554] sm:$0xf] }
 0x295   :  { %3483 = vmatpush.bf16.msrb.mxu0 %v5355_v32  ;;  %v5638_v32 = vld [vmem:[#allocation10 + $0xec] sm:$0xf0]  ;;  %v4651_v7 = vor.u32 %v5622_v1, %v4650_v62  ;;  %v5260_v41 = vld [vmem:[#allocation10 + $0x530] sm:$0xf0] }
 0x296   :  { %3412 = vmatpush.bf16.msrb.mxu2 %v5123_v51  ;;  %v4715_v43 = vor.u32 %v5638_v32, %v4714_v30  ;;  %v4874_v51 = vld [vmem:[#allocation10 + $0x210] sm:$0xf]  ;;  %v5068_v30 = vld [vmem:[#allocation10 + $0x3b0] sm:$0xf0] }
 0x297   :  { %3451 = vmatpush.bf16.msra.mxu1 %v5127_v54  ;;  %v5130_v54 = vld [vmem:[#allocation10 + $0x410] sm:$0xf]  ;;  %v5754_v1 = vld [vmem:[#allocation10 + $0x494] sm:$0xf] }
 0x298   :  { %3471 = vmatpush.bf16.msra.mxu3 %v5067_v47  ;;  %v5630_v47 = vld [vmem:[#allocation10 + $0xac] sm:$0xf0] }
 0x299   :  { %3484 = vmatpush.bf16.msrb.mxu0 %v5323_v50  ;;  %3413 = vmatmul.bf16.vlgmr.msrb.gmra.mxu2 %v6069_v3  ;;  %v4684_v50 = vld [vmem:[#allocation10 + $0xb0] sm:$0xf0]  ;;  %v4683_v56 = vor.u32 %v5630_v47, %v4682_v46  ;;  %v5614_v13 = vld [vmem:[#allocation10 + $0x2c] sm:$0xf0] }
 0x29a   :  { %3457 = vmatpush.bf16.msra.mxu2 %v4843_v55  ;;  %3452 = vmatmul.bf16.vlgmr.msra.gmra.mxu1 %v6069_v3  ;;  %v5742_v55 = vld [vmem:[#allocation10 + $0x42c] sm:$0xf0]  ;;  %v4687_v60 = vor.u32 %v5626_v49, %v4684_v50  ;;  %v5036_v46 = vld [vmem:[#allocation10 + $0x370] sm:$0xf0]  ;;  %v5719_v49 = vld [vmem:[#allocation10 + $0x374] sm:$0xf0] }
 0x29b   :  { %3496 = vmatpush.bf16.msrb.mxu1 %v4847_v58  ;;  %v5356_v58 = vld [vmem:[#allocation10 + $0x5f0] sm:$0xf0] }
 0x29c   :  { %3472 = vmatpush.bf16.msra.mxu3 %v5035_v61  ;;  %v5671_v61 = vld [vmem:[#allocation10 + $0x1f4] sm:$0xf0]  ;;  %v5359_v6 = vor.u32 %v5794_v57, %v5356_v58  ;;  %v5706_v57 = vld [vmem:[#allocation10 + $0x314] sm:$0xf] }
 0x29d   :  { %3485 = vmatpush.bf16.msrb.mxu0 %v5291_v63  ;;  %v4875_v63 = vor.u32 %v5678_v53, %v4874_v51  ;;  %v5762_v51 = vld [vmem:[#allocation10 + $0x4d4] sm:$0xf] }
 0x29e   :  { %3458 = vmatpush.bf16.msra.mxu2 %v4811_v5  ;;  %v5131_v5 = vor.u32 %v5742_v55, %v5130_v54  ;;  %v4722_v54 = vld [vmem:[#allocation10 + $0xd8] sm:$0xf]  ;;  %v5004_v58 = vld [vmem:[#allocation10 + $0x330] sm:$0xf0] }
 0x29f   :  { %3497 = vmatpush.bf16.msrb.mxu1 %v4815_v16  ;;  %v4851_v16 = vor.u32 %v5671_v61, %v4850_v59  ;;  %v5639_v55 = vld [vmem:[#allocation10 + $0xf4] sm:$0xf0]  ;;  %v5007_v2 = vor.u32 %v5706_v57, %v5004_v58  ;;  %v5795_v57 = vld [vmem:[#allocation10 + $0x5dc] sm:$0xf] }
 0x2a0   :  { %3473 = vmatpush.bf16.msra.mxu3 %v5003_v8  ;;  %v4818_v8 = vld [vmem:[#allocation10 + $0x198] sm:$0xf]  ;;  %v4723_v62 = vor.u32 %v5639_v55, %v4722_v54  ;;  %v5364_v58 = vld [vmem:[#allocation10 + $0x5f8] sm:$0xf0] }
 0x2a1   :  { %3486 = vmatpush.bf16.msrb.mxu0 %v5259_v12  ;;  %v4618_v12 = vld [vmem:[#allocation10 + $0x10] sm:$0xf]  ;;  %v5711_v61 = vld [vmem:[#allocation10 + $0x334] sm:$0xf0] }
 0x2a2   :  { %3459 = vmatpush.bf16.msra.mxu2 %v4779_v15  ;;  %v4620_v15 = vld [vmem:[#allocation10 + $0x30] sm:$0xf0]  ;;  %v4619_v40 = vor.u32 %v5614_v13, %v4618_v12  ;;  %v5362_v54 = vld [vmem:[#allocation10 + $0x5d8] sm:$0xf] }
 0x2a3   :  { %3498 = vmatpush.bf16.msrb.mxu1 %v4783_v37  ;;  %v5327_v37 = vor.u32 %v5786_v9, %v5324_v17  ;;  %v4623_v38 = vor.u32 %v5610_v14, %v4620_v15  ;;  %v5698_v9 = vld [vmem:[#allocation10 + $0x2d4] sm:$0xf]  ;;  %v4978_v17 = vld [vmem:[#allocation10 + $0x2d8] sm:$0xf] }
 0x2a4   :  { %3474 = vmatpush.bf16.msra.mxu3 %v4971_v22  ;;  %v4819_v22 = vor.u32 %v5663_v10, %v4818_v8  ;;  %v5703_v8 = vld [vmem:[#allocation10 + $0x2f4] sm:$0xf0]  ;;  %v5164_v12 = vld [vmem:[#allocation10 + $0x470] sm:$0xf0] }
 0x2a5   :  { %3487 = vmatpush.bf16.msrb.mxu0 %v5227_v34  ;;  %v5292_v34 = vld [vmem:[#allocation10 + $0x570] sm:$0xf0]  ;;  %v4658_v14 = vld [vmem:[#allocation10 + $0x58] sm:$0xf]  ;;  %v4979_v18 = vor.u32 %v5703_v8, %v4978_v17  ;;  %v5332_v17 = vld [vmem:[#allocation10 + $0x5b8] sm:$0xf0] }
 0x2a6   :  { %3460 = vmatpush.bf16.msra.mxu2 %v4747_v26  ;;  %v4786_v26 = vld [vmem:[#allocation10 + $0x158] sm:$0xf]  ;;  %v5295_v32 = vor.u32 %v5778_v23, %v5292_v34  ;;  %v5132_v34 = vld [vmem:[#allocation10 + $0x430] sm:$0xf0] }
 0x2a7   :  { %3499 = vmatpush.bf16.msrb.mxu1 %v4751_v29  ;;  %v5722_v29 = vld [vmem:[#allocation10 + $0x394] sm:$0xf]  ;;  %v4787_v36 = vor.u32 %v5655_v27, %v4786_v26  ;;  %v5623_v15 = vld [vmem:[#allocation10 + $0x74] sm:$0xf0]  ;;  %v5667_v27 = vld [vmem:[#allocation10 + $0x1dc] sm:$0xf] }
 0x2a8   :  { %3475 = vmatpush.bf16.msra.mxu3 %v4939_v33  ;;  %v5074_v33 = vld [vmem:[#allocation10 + $0x398] sm:$0xf]  ;;  %v5071_v42 = vor.u32 %v5722_v29, %v5068_v30  ;;  %v4659_v23 = vor.u32 %v5623_v15, %v4658_v14  ;;  %v5731_v29 = vld [vmem:[#allocation10 + $0x3dc] sm:$0xf] }
 0x2a9   :  { %3488 = vmatpush.bf16.msrb.mxu0 %v5195_v39  ;;  %v5770_v39 = vld [vmem:[#allocation10 + $0x514] sm:$0xf]  ;;  %v5075_v31 = vor.u32 %v5727_v35, %v5074_v33  ;;  %v5799_v55 = vld [vmem:[#allocation10 + $0x5f4] sm:$0xf0]  ;;  %v5012_v14 = vld [vmem:[#allocation10 + $0x338] sm:$0xf0] }
 0x2aa   :  { %3461 = vmatpush.bf16.msra.mxu2 %v4715_v43  ;;  %v4754_v43 = vld [vmem:[#allocation10 + $0x118] sm:$0xf]  ;;  %v5263_v47 = vor.u32 %v5770_v39, %v5260_v41  ;;  %v5682_v33 = vld [vmem:[#allocation10 + $0x254] sm:$0xf] }
 0x2ab   :  { %3500 = vmatpush.bf16.msrb.mxu1 %v4719_v45  ;;  %v5714_v45 = vld [vmem:[#allocation10 + $0x354] sm:$0xf]  ;;  %v4755_v50 = vor.u32 %v5647_v44, %v4754_v43  ;;  %v4914_v39 = vld [vmem:[#allocation10 + $0x258] sm:$0xf]  ;;  %v5659_v44 = vld [vmem:[#allocation10 + $0x19c] sm:$0xf] }
 0x2ac   :  { %3476 = vmatpush.bf16.msra.mxu3 %v4907_v48  ;;  %v5042_v48 = vld [vmem:[#allocation10 + $0x358] sm:$0xf]  ;;  %v5039_v53 = vor.u32 %v5714_v45, %v5036_v46  ;;  %v4908_v35 = vld [vmem:[#allocation10 + $0x270] sm:$0xf0]  ;;  %v4820_v46 = vld [vmem:[#allocation10 + $0x1b8] sm:$0xf0] }
 0x2ad   :  { %3489 = vmatpush.bf16.msrb.mxu0 %v5163_v52  ;;  %v5228_v52 = vld [vmem:[#allocation10 + $0x4f0] sm:$0xf0]  ;;  %v5687_v41 = vld [vmem:[#allocation10 + $0x274] sm:$0xf0]  ;;  %v4911_v45 = vor.u32 %v5682_v33, %v4908_v35  ;;  %v5627_v35 = vld [vmem:[#allocation10 + $0x9c] sm:$0xf] }
 0x2ae   :  { %3462 = vmatpush.bf16.msra.mxu2 %v4683_v56  ;;  %v5043_v56 = vor.u32 %v5719_v49, %v5042_v48  ;;  %v5231_v59 = vor.u32 %v5762_v51, %v5228_v52  ;;  %v5076_v48 = vld [vmem:[#allocation10 + $0x3b8] sm:$0xf0]  ;;  %v4915_v49 = vor.u32 %v5687_v41, %v4914_v39  ;;  %v4876_v51 = vld [vmem:[#allocation10 + $0x230] sm:$0xf0]  ;;  %v4882_v52 = vld [vmem:[#allocation10 + $0x218] sm:$0xf] }
 0x2af   :  { %3501 = vmatpush.bf16.msrb.mxu1 %v4687_v60  ;;  %v5010_v60 = vld [vmem:[#allocation10 + $0x318] sm:$0xf]  ;;  %v5691_v41 = vld [vmem:[#allocation10 + $0x29c] sm:$0xf] }
 0x2b0   :  { %3477 = vmatpush.bf16.msra.mxu3 %v4875_v63  ;;  %v5196_v63 = vld [vmem:[#allocation10 + $0x4b0] sm:$0xf0] }
 0x2b1   :  { %3490 = vmatpush.bf16.msrb.mxu0 %v5131_v5  ;;  %v5631_v5 = vld [vmem:[#allocation10 + $0xb4] sm:$0xf0] }
 0x2b2   :  { %3463 = vmatpush.bf16.msra.mxu2 %v4651_v7  ;;  %v5199_v7 = vor.u32 %v5754_v1, %v5196_v63  ;;  %v4691_v10 = vor.u32 %v5631_v5, %v4690_v4  ;;  %v5363_v63 = vor.u32 %v5799_v55, %v5362_v54  ;;  %v5044_v4 = vld [vmem:[#allocation10 + $0x378] sm:$0xf0]  ;;  %v5367_v5 = vor.u32 %v5795_v57, %v5364_v58  ;;  %v5202_v55 = vld [vmem:[#allocation10 + $0x498] sm:$0xf] }
 0x2b3   :  { %3502 = vmatpush.bf16.msrb.mxu1 %v4655_v11  ;;  %3478 = vmatmul.bf16.vlgmr.msra.gmra.mxu3 %v6067_v0  ;;  %v5746_v11 = vld [vmem:[#allocation10 + $0x454] sm:$0xf]  ;;  %v5755_v58 = vld [vmem:[#allocation10 + $0x49c] sm:$0xf] }
 0x2b4   :  { %3522 = vmatpush.bf16.msrb.mxu3 %v5359_v6  ;;  %3491 = vmatmul.bf16.vlgmr.msrb.gmra.mxu0 %v6069_v3  ;;  %v5011_v6 = vor.u32 %v5711_v61, %v5010_v60  ;;  %v5167_v21 = vor.u32 %v5746_v11, %v5164_v12  ;;  %v5651_v61 = vld [vmem:[#allocation10 + $0x15c] sm:$0xf] }
 0x2b5   :  { %3535 = vmatpush.bf16.msra.mxu0 %v4851_v16  ;;  %v4972_v16 = vld [vmem:[#allocation10 + $0x2f0] sm:$0xf0]  ;;  %v4756_v11 = vld [vmem:[#allocation10 + $0x138] sm:$0xf0] }
 0x2b6   :  { %3464 = vmatpush.bf16.msra.mxu2 %v4619_v40  ;;  %v4975_v13 = vor.u32 %v5698_v9, %v4972_v16  ;;  %v5738_v40 = vld [vmem:[#allocation10 + $0x414] sm:$0xf]  ;;  %v5791_v9 = vld [vmem:[#allocation10 + $0x5b4] sm:$0xf0] }
 0x2b7   :  { %3503 = vmatpush.bf16.msrb.mxu1 %v4623_v38  ;;  %v4626_v38 = vld [vmem:[#allocation10 + $0x18] sm:$0xf] }
 0x2b8   :  { %3523 = vmatpush.bf16.msrb.mxu3 %v5327_v37  ;;  %v4940_v37 = vld [vmem:[#allocation10 + $0x2b0] sm:$0xf0] }
 0x2b9   :  { %3536 = vmatpush.bf16.msra.mxu0 %v4819_v22  ;;  %3465 = vmatmul.bf16.vlgmr.msra.gmra.mxu2 %v6073_v20  ;;  %v5695_v22 = vld [vmem:[#allocation10 + $0x2b4] sm:$0xf0]  ;;  %v4943_v26 = vor.u32 %v5690_v19, %v4940_v37 }
 0x2ba   :  { %3509 = vmatpush.bf16.msrb.mxu2 %v5103_v25  ;;  %3504 = vmatmul.bf16.vlgmr.msrb.gmra.mxu1 %v6073_v20  ;;  %v5615_v25 = vld [vmem:[#allocation10 + $0x34] sm:$0xf0]  ;;  %v4947_v30 = vor.u32 %v5695_v22, %v4946_v24  ;;  %v5300_v24 = vld [vmem:[#allocation10 + $0x578] sm:$0xf0] }
 0x2bb   :  { %3548 = vmatpush.bf16.msra.mxu1 %v5107_v28  ;;  %v4852_v28 = vld [vmem:[#allocation10 + $0x1f8] sm:$0xf0]  ;;  %v5783_v19 = vld [vmem:[#allocation10 + $0x574] sm:$0xf0] }
 0x2bc   :  { %3524 = vmatpush.bf16.msrb.mxu3 %v5295_v32  ;;  %v5108_v32 = vld [vmem:[#allocation10 + $0x3f8] sm:$0xf0]  ;;  %v4855_v43 = vor.u32 %v5667_v27, %v4852_v28  ;;  %v5266_v27 = vld [vmem:[#allocation10 + $0x518] sm:$0xf] }
 0x2bd   :  { %3537 = vmatpush.bf16.msra.mxu0 %v4787_v36  ;;  %v5135_v36 = vor.u32 %v5738_v40, %v5132_v34  ;;  %v5635_v40 = vld [vmem:[#allocation10 + $0xdc] sm:$0xf]  ;;  %v5775_v28 = vld [vmem:[#allocation10 + $0x534] sm:$0xf0] }
 0x2be   :  { %3510 = vmatpush.bf16.msrb.mxu2 %v5071_v42  ;;  %v4627_v42 = vor.u32 %v5615_v25, %v4626_v38  ;;  %v5699_v38 = vld [vmem:[#allocation10 + $0x2dc] sm:$0xf]  ;;  %v5267_v39 = vor.u32 %v5775_v28, %v5266_v27 }
 0x2bf   :  { %3549 = vmatpush.bf16.msra.mxu1 %v5075_v31  ;;  %v5111_v31 = vor.u32 %v5731_v29, %v5108_v32  ;;  %v4980_v25 = vld [vmem:[#allocation10 + $0x2f8] sm:$0xf0] }
 0x2c0   :  { %3525 = vmatpush.bf16.msrb.mxu3 %v5263_v47  ;;  %v5723_v47 = vld [vmem:[#allocation10 + $0x39c] sm:$0xf]  ;;  %v4983_v33 = vor.u32 %v5699_v38, %v4980_v25 }
 0x2c1   :  { %3538 = vmatpush.bf16.msra.mxu0 %v4755_v50  ;;  %v5674_v50 = vld [vmem:[#allocation10 + $0x214] sm:$0xf]  ;;  %v5268_v32 = vld [vmem:[#allocation10 + $0x538] sm:$0xf0] }
 0x2c2   :  { %3511 = vmatpush.bf16.msrb.mxu2 %v5039_v53  ;;  %v5679_v53 = vld [vmem:[#allocation10 + $0x234] sm:$0xf0]  ;;  %v4879_v60 = vor.u32 %v5674_v50, %v4876_v51  ;;  %v4660_v50 = vld [vmem:[#allocation10 + $0x78] sm:$0xf0] }
 0x2c3   :  { %3550 = vmatpush.bf16.msra.mxu1 %v5043_v56  ;;  %v4823_v56 = vor.u32 %v5659_v44, %v4820_v46  ;;  %v4883_v1 = vor.u32 %v5679_v53, %v4882_v52  ;;  %v5234_v44 = vld [vmem:[#allocation10 + $0x4d8] sm:$0xf]  ;;  %v5763_v46 = vld [vmem:[#allocation10 + $0x4dc] sm:$0xf] }
 0x2c4   :  { %3526 = vmatpush.bf16.msrb.mxu3 %v5231_v59  ;;  %v5079_v59 = vor.u32 %v5723_v47, %v5076_v48  ;;  %v5236_v47 = vld [vmem:[#allocation10 + $0x4f8] sm:$0xf0] }
 0x2c5   :  { %3539 = vmatpush.bf16.msra.mxu0 %v4723_v62  ;;  %v4788_v62 = vld [vmem:[#allocation10 + $0x178] sm:$0xf0]  ;;  %v5239_v54 = vor.u32 %v5763_v46, %v5236_v47 }
 0x2c6   :  { %3512 = vmatpush.bf16.msrb.mxu2 %v5007_v2  ;;  %v5715_v2 = vld [vmem:[#allocation10 + $0x35c] sm:$0xf]  ;;  %v4791_v16 = vor.u32 %v5651_v61, %v4788_v62 }
 0x2c7   :  { %3551 = vmatpush.bf16.msra.mxu1 %v5011_v6  ;;  %v5330_v6 = vld [vmem:[#allocation10 + $0x598] sm:$0xf]  ;;  %v5047_v8 = vor.u32 %v5715_v2, %v5044_v4  ;;  %v5683_v52 = vld [vmem:[#allocation10 + $0x25c] sm:$0xf] }
 0x2c8   :  { %3527 = vmatpush.bf16.msrb.mxu3 %v5199_v7  ;;  %v5787_v7 = vld [vmem:[#allocation10 + $0x59c] sm:$0xf]  ;;  %v5331_v12 = vor.u32 %v5791_v9, %v5330_v6  ;;  %v5751_v6 = vld [vmem:[#allocation10 + $0x474] sm:$0xf0] }
 0x2c9   :  { %3540 = vmatpush.bf16.msra.mxu0 %v4691_v10  ;;  %v5643_v10 = vld [vmem:[#allocation10 + $0x11c] sm:$0xf]  ;;  %v5335_v15 = vor.u32 %v5787_v7, %v5332_v17 }
 0x2ca   :  { %3513 = vmatpush.bf16.msrb.mxu2 %v4975_v13  ;;  %v5707_v13 = vld [vmem:[#allocation10 + $0x31c] sm:$0xf]  ;;  %v4759_v37 = vor.u32 %v5643_v10, %v4756_v11  ;;  %v5138_v11 = vld [vmem:[#allocation10 + $0x418] sm:$0xf] }
 0x2cb   :  { %3552 = vmatpush.bf16.msra.mxu1 %v4979_v18  ;;  %v5298_v18 = vld [vmem:[#allocation10 + $0x558] sm:$0xf]  ;;  %v5015_v22 = vor.u32 %v5707_v13, %v5012_v14  ;;  %v4916_v53 = vld [vmem:[#allocation10 + $0x278] sm:$0xf0] }
 0x2cc   :  { %3528 = vmatpush.bf16.msrb.mxu3 %v5167_v21  ;;  %v5779_v21 = vld [vmem:[#allocation10 + $0x55c] sm:$0xf]  ;;  %v5299_v34 = vor.u32 %v5783_v19, %v5298_v18 }
 0x2cd   :  { %3541 = vmatpush.bf16.msra.mxu0 %v4659_v23  ;;  %v4724_v23 = vld [vmem:[#allocation10 + $0xf8] sm:$0xf0] }
 0x2ce   :  { %3514 = vmatpush.bf16.msrb.mxu2 %v4943_v26  ;;  %v5303_v26 = vor.u32 %v5779_v21, %v5300_v24  ;;  %v4727_v29 = vor.u32 %v5635_v40, %v4724_v23  ;;  %v5611_v61 = vld [vmem:[#allocation10 + $0x1c] sm:$0xf] }
 0x2cf   :  { %3553 = vmatpush.bf16.msra.mxu1 %v4947_v30  ;;  %v5771_v30 = vld [vmem:[#allocation10 + $0x51c] sm:$0xf] }
 0x2d0   :  { %3529 = vmatpush.bf16.msrb.mxu3 %v5135_v36  ;;  %v4692_v36 = vld [vmem:[#allocation10 + $0xb8] sm:$0xf0] }
 0x2d1   :  { %3542 = vmatpush.bf16.msra.mxu0 %v4627_v42  ;;  %v4948_v42 = vld [vmem:[#allocation10 + $0x2b8] sm:$0xf0] }
 0x2d2   :  { %3515 = vmatpush.bf16.msrb.mxu2 %v4911_v45  ;;  %v4695_v45 = vor.u32 %v5627_v35, %v4692_v36  ;;  %v4951_v48 = vor.u32 %v5691_v41, %v4948_v42  ;;  %v4628_v62 = vld [vmem:[#allocation10 + $0x38] sm:$0xf0] }
 0x2d3   :  { %3554 = vmatpush.bf16.msra.mxu1 %v4915_v49  ;;  %3530 = vmatmul.bf16.vlgmr.msrb.gmra.mxu3 %v6069_v3  ;;  %v5619_v49 = vld [vmem:[#allocation10 + $0x5c] sm:$0xf]  ;;  %v4631_v9 = vor.u32 %v5611_v61, %v4628_v62 }
 0x2d4   :  { %3574 = vmatpush.bf16.msra.mxu3 %v4855_v43  ;;  %3543 = vmatmul.bf16.vlgmr.msra.gmra.mxu0 %v6073_v20  ;;  %v5271_v43 = vor.u32 %v5771_v30, %v5268_v32  ;;  %v4663_v57 = vor.u32 %v5619_v49, %v4660_v50  ;;  %v4884_v2 = vld [vmem:[#allocation10 + $0x238] sm:$0xf0] }
 0x2d5   :  { %3587 = vmatpush.bf16.msrb.mxu0 %v5111_v31  ;;  %v5767_v31 = vld [vmem:[#allocation10 + $0x4f4] sm:$0xf0]  ;;  %v5172_v7 = vld [vmem:[#allocation10 + $0x478] sm:$0xf0] }
 0x2d6   :  { %3516 = vmatpush.bf16.msrb.mxu2 %v4879_v60  ;;  %v5235_v51 = vor.u32 %v5767_v31, %v5234_v44  ;;  %v4919_v60 = vor.u32 %v5683_v52, %v4916_v53  ;;  %v5739_v13 = vld [vmem:[#allocation10 + $0x41c] sm:$0xf] }
 0x2d7   :  { %3555 = vmatpush.bf16.msra.mxu1 %v4883_v1  ;;  %v5140_v14 = vld [vmem:[#allocation10 + $0x438] sm:$0xf0] }
 0x2d8   :  { %3575 = vmatpush.bf16.msra.mxu3 %v4823_v56  ;;  %v5759_v56 = vld [vmem:[#allocation10 + $0x4b4] sm:$0xf0]  ;;  %v5143_v18 = vor.u32 %v5739_v13, %v5140_v14 }
 0x2d9   :  { %3588 = vmatpush.bf16.msrb.mxu0 %v5079_v59  ;;  %3517 = vmatmul.bf16.vlgmr.msrb.gmra.mxu2 %v6067_v0  ;;  %v5204_v59 = vld [vmem:[#allocation10 + $0x4b8] sm:$0xf0]  ;;  %v5203_v1 = vor.u32 %v5759_v56, %v5202_v55 }
 0x2da   :  { %3561 = vmatpush.bf16.msra.mxu2 %v5363_v63  ;;  %3556 = vmatmul.bf16.vlgmr.msra.gmra.mxu1 %v6067_v0  ;;  %v5675_v63 = vld [vmem:[#allocation10 + $0x21c] sm:$0xf]  ;;  %v5207_v4 = vor.u32 %v5755_v58, %v5204_v59 }
 0x2db   :  { %3600 = vmatpush.bf16.msrb.mxu1 %v5367_v5  ;;  %v5170_v5 = vld [vmem:[#allocation10 + $0x458] sm:$0xf]  ;;  %v4887_v17 = vor.u32 %v5675_v63, %v4884_v2 }
 0x2dc   :  { %3576 = vmatpush.bf16.msra.mxu3 %v4791_v16  ;;  %v5747_v16 = vld [vmem:[#allocation10 + $0x45c] sm:$0xf] }
 0x2dd   :  { %3589 = vmatpush.bf16.msrb.mxu0 %v5047_v8  ;;  %v5171_v8 = vor.u32 %v5751_v6, %v5170_v5  ;;  %v5175_v10 = vor.u32 %v5747_v16, %v5172_v7 }
 0x2de   :  { %3562 = vmatpush.bf16.msra.mxu2 %v5331_v12  ;;  %v5743_v12 = vld [vmem:[#allocation10 + $0x434] sm:$0xf0] }
 0x2df   :  { %3601 = vmatpush.bf16.msrb.mxu1 %v5335_v15  ;;  %v5139_v15 = vor.u32 %v5743_v12, %v5138_v11 }
 0x2e0   :  { %3577 = vmatpush.bf16.msra.mxu3 %v4759_v37 }
 0x2e1   :  { %3590 = vmatpush.bf16.msrb.mxu0 %v5015_v22 }
 0x2e2   :  { %3563 = vmatpush.bf16.msra.mxu2 %v5299_v34 }
 0x2e3   :  { %3602 = vmatpush.bf16.msrb.mxu1 %v5303_v26 }
 0x2e4   :  { %3578 = vmatpush.bf16.msra.mxu3 %v4727_v29 }
 0x2e5   :  { %3591 = vmatpush.bf16.msrb.mxu0 %v4983_v33 }
 0x2e6   :  { %3564 = vmatpush.bf16.msra.mxu2 %v5267_v39 }
 0x2e7   :  { %3603 = vmatpush.bf16.msrb.mxu1 %v5271_v43 }
 0x2e8   :  { %3579 = vmatpush.bf16.msra.mxu3 %v4695_v45 }
 0x2e9   :  { %3592 = vmatpush.bf16.msrb.mxu0 %v4951_v48 }
 0x2ea   :  { %3565 = vmatpush.bf16.msra.mxu2 %v5235_v51 }
 0x2eb   :  { %3604 = vmatpush.bf16.msrb.mxu1 %v5239_v54 }
 0x2ec   :  { %3580 = vmatpush.bf16.msra.mxu3 %v4663_v57 }
 0x2ed   :  { %3593 = vmatpush.bf16.msrb.mxu0 %v4919_v60 }
 0x2ee   :  { %3566 = vmatpush.bf16.msra.mxu2 %v5203_v1 }
 0x2ef   :  { %3605 = vmatpush.bf16.msrb.mxu1 %v5207_v4 }
 0x2f0   :  { %3581 = vmatpush.bf16.msra.mxu3 %v4631_v9 }
 0x2f1   :  { %3594 = vmatpush.bf16.msrb.mxu0 %v4887_v17  ;;  %v3336_v19 = vpop.f32.mrf.mxu0 }
 0x2f2   :  { %3567 = vmatpush.bf16.msra.mxu2 %v5171_v8 }
 0x2f3   :  { %3606 = vmatpush.bf16.msrb.mxu1 %v5175_v10  ;;  %3582 = vmatmul.bf16.vlgmr.msra.gmra.mxu3 %v6073_v20 }
 0x2f4   :  { %3595 = vmatmul.bf16.vlgmr.msrb.gmra.mxu0 %v6067_v0 }
 0x2f6   :  { %3568 = vmatpush.bf16.msra.mxu2 %v5139_v15  ;;  %v3323_v37 = vpop.f32.mrf.mxu3 }
 0x2f7   :  { %3607 = vmatpush.bf16.msrb.mxu1 %v5143_v18  ;;  %v3349_v21 = vpop.f32.mrf.mxu1 }
 0x2f9   :  { %3569 = vmatmul.bf16.vlgmr.msra.gmra.mxu2 %v6069_v3  ;;  %v3338_v24 = vpop.f32.mrf.mxu0 }
 0x2fa   :  { %3608 = vmatmul.bf16.vlgmr.msrb.gmra.mxu1 %v6069_v3 }
 0x2fc   :  { %v3310_v22 = vpop.f32.mrf.mxu2 }
 0x2fd   :  { %v3324_v40 = vadd.f32 %v3323_v37, %v3310_v22 }
 0x2fe   :  { %v3325_v23 = vpop.f32.mrf.mxu3 }
 0x2ff   :  { %v3337_v34 = vadd.f32 %v3336_v19, %v3324_v40  ;;  %v3351_v38 = vpop.f32.mrf.mxu1 }
 0x301   :  { %3613 = vst [vmem:[#allocation11] sm:$0xff] %v3337_v34  ;;  %v3388_v20 = vpop.f32.mrf.mxu0 }
 0x304   :  { %v3312_v25 = vpop.f32.mrf.mxu2 }
 0x306   :  { %v3375_v26 = vpop.f32.mrf.mxu3 }
 0x307   :  { %v3401_v0 = vpop.f32.mrf.mxu1 }
 0x308   :  { %v3402_v44 = vadd.f32 %v3401_v0, %v3388_v20 }
 0x309   :  { %v3390_v27 = vpop.f32.mrf.mxu0 }
 0x30c   :  { %v3362_v28 = vpop.f32.mrf.mxu2 }
 0x30d   :  { %v3363_v29 = vadd.f32 %v3362_v28, %v3349_v21 }
 0x30e   :  { %v3377_v30 = vpop.f32.mrf.mxu3 }
 0x30f   :  { %v3376_v32 = vadd.f32 %v3375_v26, %v3363_v29  ;;  %v3403_v3 = vpop.f32.mrf.mxu1 }
 0x311   :  { %3614 = vst [vmem:[#allocation11 + $0x8] sm:$0xff] %v3376_v32  ;;  %v3440_v33 = vpop.f32.mrf.mxu0 }
 0x314   :  { %v3364_v35 = vpop.f32.mrf.mxu2 }
 0x316   :  { %v3427_v36 = vpop.f32.mrf.mxu3 }
 0x317   :  { %v3441_v39 = vadd.f32 %v3440_v33, %v3427_v36  ;;  %v3453_v41 = vpop.f32.mrf.mxu1 }
 0x319   :  { %v3454_v42 = vadd.f32 %v3453_v41, %v3441_v39  ;;  %v3442_v43 = vpop.f32.mrf.mxu0 }
 0x31b   :  { %3616 = vst [vmem:[#allocation11 + $0x18] sm:$0xff] %v3454_v42 }
 0x31c   :  { %v3414_v31 = vpop.f32.mrf.mxu2 }
 0x31d   :  { %v3415_v45 = vadd.f32 %v3414_v31, %v3402_v44 }
 0x31e   :  { %v3429_v46 = vpop.f32.mrf.mxu3 }
 0x31f   :  { %3615 = vst [vmem:[#allocation11 + $0x10] sm:$0xff] %v3415_v45  ;;  %v3455_v47 = vpop.f32.mrf.mxu1 }
 0x324   :  { %v3416_v48 = vpop.f32.mrf.mxu2 }
 0x331   :  { %v3492_v49 = vpop.f32.mrf.mxu0 }
 0x336   :  { %v3479_v50 = vpop.f32.mrf.mxu3 }
 0x337   :  { %v3505_v51 = vpop.f32.mrf.mxu1 }
 0x339   :  { %v3494_v52 = vpop.f32.mrf.mxu0 }
 0x33c   :  { %v3466_v53 = vpop.f32.mrf.mxu2 }
 0x33d   :  { %v3480_v54 = vadd.f32 %v3479_v50, %v3466_v53 }
 0x33e   :  { %v3481_v55 = vpop.f32.mrf.mxu3 }
 0x33f   :  { %v3493_v56 = vadd.f32 %v3492_v49, %v3480_v54  ;;  %v3507_v57 = vpop.f32.mrf.mxu1 }
 0x341   :  { %3617 = vst [vmem:[#allocation11 + $0x20] sm:$0xff] %v3493_v56 }
 0x344   :  { %v3468_v58 = vpop.f32.mrf.mxu2 }
 0x351   :  { %v3544_v59 = vpop.f32.mrf.mxu0 }
 0x356   :  { %v3531_v60 = vpop.f32.mrf.mxu3 }
 0x357   :  { %v3557_v61 = vpop.f32.mrf.mxu1 }
 0x358   :  { %v3558_v11 = vadd.f32 %v3557_v61, %v3544_v59 }
 0x359   :  { %v3546_v62 = vpop.f32.mrf.mxu0 }
 0x35c   :  { %v3518_v1 = vpop.f32.mrf.mxu2 }
 0x35d   :  { %v3519_v63 = vadd.f32 %v3518_v1, %v3505_v51 }
 0x35e   :  { %v3533_v2 = vpop.f32.mrf.mxu3 }
 0x35f   :  { %v3532_v4 = vadd.f32 %v3531_v60, %v3519_v63  ;;  %v3559_v5 = vpop.f32.mrf.mxu1 }
 0x361   :  { %3618 = vst [vmem:[#allocation11 + $0x28] sm:$0xff] %v3532_v4 }
 0x364   :  { %v3520_v6 = vpop.f32.mrf.mxu2 }
 0x371   :  { %v3596_v9 = vpop.f32.mrf.mxu0 }
 0x376   :  { %v3583_v16 = vpop.f32.mrf.mxu3 }
 0x377   :  { %v3597_v7 = vadd.f32 %v3596_v9, %v3583_v16  ;;  %v3609_v17 = vpop.f32.mrf.mxu1 }
 0x379   :  { %v3610_v8 = vadd.f32 %v3609_v17, %v3597_v7  ;;  %v3598_v10 = vpop.f32.mrf.mxu0 }
 0x37b   :  { %3620 = vst [vmem:[#allocation11 + $0x38] sm:$0xff] %v3610_v8 }
 0x37c   :  { %v3570_v12 = vpop.f32.mrf.mxu2 }
 0x37d   :  { %v3571_v13 = vadd.f32 %v3570_v12, %v3558_v11 }
 0x37e   :  { %v3585_v14 = vpop.f32.mrf.mxu3 }
 0x37f   :  { %3619 = vst [vmem:[#allocation11 + $0x30] sm:$0xff] %v3571_v13  ;;  %v3611_v15 = vpop.f32.mrf.mxu1 }
 0x380   :  { %3631 = dma.vmem_to_hbm [thread:$0]  %s3627_s20, 1024, %s3629_s23, [#allocation4]  }
 0x384   :  { %v3572_v18 = vpop.f32.mrf.mxu2 }
 0x385   :  { %5962 = dma.done.wait [#allocation4], 1024  }
 0x386   :  { %5963 = vsyncadd [#allocation4], 4294966272 }
 0x387   :  { %3636 = vsyncpa [#allocation3], 1 }
 0x388   :  { %3637 = vsyncpa [#allocation6], 1 }
 0x389   :  { %3638 = vsyncpa [#allocation9], 1 }
 0x38a   :  { %3639 = vsyncpa [#allocation4], 1 }

// kernel: tpu_custom_call.1
= control target key start
LH: loop header
LB: loop body
LE: loop exit
PB: predicated region body
PF: predicated region fallthrough
CT: control target
= control target key end

     0   :  { %10 = vsyncpa [#allocation3], 0  ;;  %s6100_s0 = inlined_call_operand.hbm [shape: f32[8,1024], index: 0, kind: input, shape index: {}]   ;;  %s6101_s1 = inlined_call_operand.hbm [shape: bf16[1024,384], index: 1, kind: input, shape index: {}]   ;;  %s6102_s2 = inlined_call_operand.hbm [shape: bf16[384,128], index: 2, kind: input, shape index: {}]   ;;  %s6103_s3 = inlined_call_operand.hbm [shape: bf16[128,384], index: 3, kind: input, shape index: {}]   ;;  %s6104_s4 = inlined_call_operand.hbm [shape: bf16[384,1024], index: 4, kind: input, shape index: {}]   ;;  %s6105_s5 = inlined_call_operand.hbm [shape: f32[8,1024], index: 5, kind: output, shape index: {}]  }
   0x1   :  { %11 = vsyncpa [#allocation6], 0 }
   0x2   :  { %12 = vsyncpa [#allocation9], 0  ;;  %s29_s20 = sshll.u32 %s6101_s1, 4  ;;  %s30_s20 = int_to_ptr.hbm [resolvable:$true] %s29_s20 }
   0x3   :  { %13 = vsyncpa [#allocation4], 0  ;;  %s5964_s21 = smov [#allocation5]   ;;  %s55_s25 = sshll.u32 %s6103_s3, 4  ;;  %s56_s25 = int_to_ptr.hbm [resolvable:$true] %s55_s25 }
   0x4   :  { %s31_s22 = sshll.u32 %s5964_s21, 4  ;;  %s5965_s26 = smov 192   ;;  %s32_s22 = int_to_ptr.vmem [resolvable:$true] %s31_s22 }
   0x5   :  { %s5966_s27 = smov 12   ;;  %s5967_s28 = smov [#allocation8]  }
   0x6   :  { %37 = dma.hbm_to_vmem [thread:$0]  %s30_s20, 24576, %s32_s22, [#allocation6], %s5965_s26, %s5965_s26, %s5966_s27  }
   0x7   :  { %s57_s29 = sshll.u32 %s5967_s28, 4  ;;  %s19_s7 = sshll.u32 %s6100_s0, 4  ;;  %s58_s29 = int_to_ptr.vmem [resolvable:$true] %s57_s29  ;;  %s20_s7 = int_to_ptr.hbm [resolvable:$true] %s19_s7 }
   0x8   :  { %63 = dma.hbm_to_vmem [thread:$0]  %s56_s25, 3072, %s58_s29, [#allocation9], %s5965_s26, %s5965_s26, %s5966_s27  }
   0x9   :  { %s42_s9 = sshll.u32 %s6102_s2, 4  ;;  %s5968_s10 = smov [#allocation2]   ;;  %s43_s9 = int_to_ptr.hbm [resolvable:$true] %s42_s9 }
   0xa   :  { %s21_s11 = sshll.u32 %s5968_s10, 4  ;;  %s5969_s3 = smov [#allocation7]   ;;  %s22_s11 = int_to_ptr.vmem [resolvable:$true] %s21_s11 }
   0xb   :  { %24 = dma.hbm_to_vmem [thread:$0]  %s20_s7, 1024, %s22_s11, [#allocation3]  }
   0xc   :  { %s44_s12 = sshll.u32 %s5969_s3, 4  ;;  %s5970_s13 = smov 64   ;;  %s45_s12 = int_to_ptr.vmem [resolvable:$true] %s44_s12 }
   0xd   :  { %s5971_s14 = smov 4   ;;  %s68_s16 = sshll.u32 %s6104_s4, 4  ;;  %s69_s16 = int_to_ptr.hbm [resolvable:$true] %s68_s16 }
   0xe   :  { %50 = dma.hbm_to_vmem [thread:$0]  %s43_s9, 3072, %s45_s12, [#allocation6], %s5970_s13, %s5970_s13, %s5971_s14  }
   0xf   :  { %s5972_s17 = smov [#allocation10]   ;;  %s5973_s2 = smov 512  }
  0x10   :  { %s70_s18 = sshll.u32 %s5972_s17, 4  ;;  %s5974_s19 = smov 32   ;;  %s71_s18 = int_to_ptr.vmem [resolvable:$true] %s70_s18 }
  0x11   :  { %76 = dma.hbm_to_vmem [thread:$0]  %s69_s16, 24576, %s71_s18, [#allocation9], %s5973_s2, %s5973_s2, %s5974_s19  }
  0x12   :  { %5956 = dma.done.wait [#allocation3], 1024  }
  0x13   :  { %5957 = vsyncadd [#allocation3], 4294966272 }
  0x14   :  { %5958 = dma.done.wait [#allocation6], 27648  }
  0x15   :  { %5959 = vsyncadd [#allocation6], 4294939648 }
  0x16   :  { %5960 = dma.done.wait [#allocation9], 27648  }
  0x17   :  { %5961 = vsyncadd [#allocation9], 4294939648  ;;  %v3726_v0 = vld [vmem:[#allocation5 + $0xa8] sm:$0xf]  ;;  %v5390_v1 = vld [vmem:[#allocation5 + $0xb0] sm:$0xf0] }
  0x18   :  { %v3822_v2 = vld [vmem:[#allocation5 + $0x168] sm:$0xf]  ;;  %v3727_v3 = vor.u32 %v5390_v1, %v3726_v0  ;;  %v5414_v4 = vld [vmem:[#allocation5 + $0x170] sm:$0xf0]  ;;  %v3714_v11 = vld [vmem:[#allocation5 + $0x90] sm:$0xf] }
  0x19   :  { %v3918_v5 = vld [vmem:[#allocation5 + $0x228] sm:$0xf]  ;;  %v5438_v6 = vld [vmem:[#allocation5 + $0x230] sm:$0xf0]  ;;  %v3823_v7 = vor.u32 %v5414_v4, %v3822_v2  ;;  %v5387_v13 = vld [vmem:[#allocation5 + $0x98] sm:$0xf0] }
  0x1a   :  { %v3919_v8 = vor.u32 %v5438_v6, %v3918_v5  ;;  %v4014_v9 = vld [vmem:[#allocation5 + $0x2e8] sm:$0xf]  ;;  %v5462_v10 = vld [vmem:[#allocation5 + $0x2f0] sm:$0xf0]  ;;  %1393 = vmatpush.bf16.msra.mxu0 %v3727_v3  ;;  %v3810_v14 = vld [vmem:[#allocation5 + $0x150] sm:$0xf]  ;;  %v3715_v16 = vor.u32 %v5387_v13, %v3714_v11 }
  0x1b   :  { %v4015_v12 = vor.u32 %v5462_v10, %v4014_v9  ;;  %v5411_v15 = vld [vmem:[#allocation5 + $0x158] sm:$0xf0]  ;;  %1406 = vmatpush.bf16.msra.mxu1 %v3823_v7  ;;  %v3906_v18 = vld [vmem:[#allocation5 + $0x210] sm:$0xf]  ;;  %v3702_v23 = vld [vmem:[#allocation5 + $0x78] sm:$0xf] }
  0x1c   :  { %1419 = vmatpush.bf16.msra.mxu2 %v3919_v8  ;;  %v3811_v17 = vor.u32 %v5411_v15, %v3810_v14  ;;  %v5435_v19 = vld [vmem:[#allocation5 + $0x218] sm:$0xf0]  ;;  %v4002_v20 = vld [vmem:[#allocation5 + $0x2d0] sm:$0xf]  ;;  %v5384_v24 = vld [vmem:[#allocation5 + $0x80] sm:$0xf0] }
  0x1d   :  { %1432 = vmatpush.bf16.msra.mxu3 %v4015_v12  ;;  %v3907_v21 = vor.u32 %v5435_v19, %v3906_v18  ;;  %v5459_v22 = vld [vmem:[#allocation5 + $0x2d8] sm:$0xf0]  ;;  %v3798_v26 = vld [vmem:[#allocation5 + $0x138] sm:$0xf]  ;;  %v5408_v27 = vld [vmem:[#allocation5 + $0x140] sm:$0xf0]  ;;  %v3703_v29 = vor.u32 %v5384_v24, %v3702_v23 }
  0x1e   :  { %v4003_v25 = vor.u32 %v5459_v22, %v4002_v20  ;;  %v3894_v28 = vld [vmem:[#allocation5 + $0x1f8] sm:$0xf]  ;;  %1394 = vmatpush.bf16.msra.mxu0 %v3715_v16  ;;  %v5432_v30 = vld [vmem:[#allocation5 + $0x200] sm:$0xf0]  ;;  %v3799_v33 = vor.u32 %v5408_v27, %v3798_v26  ;;  %v3690_v35 = vld [vmem:[#allocation5 + $0x60] sm:$0xf] }
  0x1f   :  { %v3990_v31 = vld [vmem:[#allocation5 + $0x2b8] sm:$0xf]  ;;  %v5456_v32 = vld [vmem:[#allocation5 + $0x2c0] sm:$0xf0]  ;;  %1407 = vmatpush.bf16.msra.mxu1 %v3811_v17  ;;  %v3895_v34 = vor.u32 %v5432_v30, %v3894_v28  ;;  %v5381_v36 = vld [vmem:[#allocation5 + $0x68] sm:$0xf0] }
  0x20   :  { %1420 = vmatpush.bf16.msra.mxu2 %v3907_v21  ;;  %v3786_v37 = vld [vmem:[#allocation5 + $0x120] sm:$0xf]  ;;  %v3991_v38 = vor.u32 %v5456_v32, %v3990_v31  ;;  %v5405_v39 = vld [vmem:[#allocation5 + $0x128] sm:$0xf0]  ;;  %v3691_v44 = vor.u32 %v5381_v36, %v3690_v35  ;;  %v3678_v47 = vld [vmem:[#allocation5 + $0x48] sm:$0xf] }
  0x21   :  { %1433 = vmatpush.bf16.msra.mxu3 %v4003_v25  ;;  %v3882_v40 = vld [vmem:[#allocation5 + $0x1e0] sm:$0xf]  ;;  %v5429_v41 = vld [vmem:[#allocation5 + $0x1e8] sm:$0xf0]  ;;  %v3787_v45 = vor.u32 %v5405_v39, %v3786_v37  ;;  %v5378_v48 = vld [vmem:[#allocation5 + $0x50] sm:$0xf0] }
  0x22   :  { %v3978_v42 = vld [vmem:[#allocation5 + $0x2a0] sm:$0xf]  ;;  %v5453_v43 = vld [vmem:[#allocation5 + $0x2a8] sm:$0xf0]  ;;  %1395 = vmatpush.bf16.msra.mxu0 %v3703_v29  ;;  %v3883_v46 = vor.u32 %v5429_v41, %v3882_v40  ;;  %v3774_v49 = vld [vmem:[#allocation5 + $0x108] sm:$0xf]  ;;  %v3679_v56 = vor.u32 %v5378_v48, %v3678_v47 }
  0x23   :  { %1408 = vmatpush.bf16.msra.mxu1 %v3799_v33  ;;  %v3979_v50 = vor.u32 %v5453_v43, %v3978_v42  ;;  %v5402_v51 = vld [vmem:[#allocation5 + $0x110] sm:$0xf0]  ;;  %v3870_v52 = vld [vmem:[#allocation5 + $0x1c8] sm:$0xf]  ;;  %v3666_v59 = vld [vmem:[#allocation5 + $0x30] sm:$0xf] }
  0x24   :  { %1421 = vmatpush.bf16.msra.mxu2 %v3895_v34  ;;  %v5426_v53 = vld [vmem:[#allocation5 + $0x1d0] sm:$0xf0]  ;;  %v3966_v54 = vld [vmem:[#allocation5 + $0x288] sm:$0xf]  ;;  %v3775_v57 = vor.u32 %v5402_v51, %v3774_v49  ;;  %v5375_v60 = vld [vmem:[#allocation5 + $0x38] sm:$0xf0] }
  0x25   :  { %1434 = vmatpush.bf16.msra.mxu3 %v3991_v38  ;;  %v5450_v55 = vld [vmem:[#allocation5 + $0x290] sm:$0xf0]  ;;  %v3871_v58 = vor.u32 %v5426_v53, %v3870_v52  ;;  %v3762_v61 = vld [vmem:[#allocation5 + $0xf0] sm:$0xf]  ;;  %v5399_v63 = vld [vmem:[#allocation5 + $0xf8] sm:$0xf0]  ;;  %v3667_v4 = vor.u32 %v5375_v60, %v3666_v59 }
  0x26   :  { %1396 = vmatpush.bf16.msra.mxu0 %v3691_v44  ;;  %v3967_v62 = vor.u32 %v5450_v55, %v3966_v54  ;;  %v3858_v0 = vld [vmem:[#allocation5 + $0x1b0] sm:$0xf]  ;;  %v5423_v1 = vld [vmem:[#allocation5 + $0x1b8] sm:$0xf0]  ;;  %v3763_v5 = vor.u32 %v5399_v63, %v3762_v61  ;;  %v3654_v7 = vld [vmem:[#allocation5 + $0x18] sm:$0xf] }
  0x27   :  { %1409 = vmatpush.bf16.msra.mxu1 %v3787_v45  ;;  %v3954_v2 = vld [vmem:[#allocation5 + $0x270] sm:$0xf]  ;;  %v5447_v3 = vld [vmem:[#allocation5 + $0x278] sm:$0xf0]  ;;  %v3859_v6 = vor.u32 %v5423_v1, %v3858_v0  ;;  %v5372_v8 = vld [vmem:[#allocation5 + $0x20] sm:$0xf0] }
  0x28   :  { %1422 = vmatpush.bf16.msra.mxu2 %v3883_v46  ;;  %v3750_v9 = vld [vmem:[#allocation5 + $0xd8] sm:$0xf]  ;;  %v3955_v10 = vor.u32 %v5447_v3, %v3954_v2  ;;  %v5396_v11 = vld [vmem:[#allocation5 + $0xe0] sm:$0xf0]  ;;  %v3655_v16 = vor.u32 %v5372_v8, %v3654_v7  ;;  %v3642_v17 = vld [vmem:[#allocation5] sm:$0xf] }
  0x29   :  { %1435 = vmatpush.bf16.msra.mxu3 %v3979_v50  ;;  %v3846_v12 = vld [vmem:[#allocation5 + $0x198] sm:$0xf]  ;;  %v5420_v13 = vld [vmem:[#allocation5 + $0x1a0] sm:$0xf0]  ;;  %v5369_v18 = vld [vmem:[#allocation5 + $0x8] sm:$0xf0]  ;;  %v3751_v19 = vor.u32 %v5396_v11, %v3750_v9 }
  0x2a   :  { %1397 = vmatpush.bf16.msra.mxu0 %v3679_v56  ;;  %v3942_v14 = vld [vmem:[#allocation5 + $0x258] sm:$0xf]  ;;  %v5444_v15 = vld [vmem:[#allocation5 + $0x260] sm:$0xf0]  ;;  %v3847_v20 = vor.u32 %v5420_v13, %v3846_v12  ;;  %v3738_v21 = vld [vmem:[#allocation5 + $0xc0] sm:$0xf]  ;;  %v3643_v31 = vor.u32 %v5369_v18, %v3642_v17 }
  0x2b   :  { %1410 = vmatpush.bf16.msra.mxu1 %v3775_v57  ;;  %v5393_v22 = vld [vmem:[#allocation5 + $0xc8] sm:$0xf0]  ;;  %v3834_v23 = vld [vmem:[#allocation5 + $0x180] sm:$0xf]  ;;  %v3943_v24 = vor.u32 %v5444_v15, %v3942_v14  ;;  %v4110_v28 = vld [vmem:[#allocation5 + $0x3a8] sm:$0xf] }
  0x2c   :  { %1423 = vmatpush.bf16.msra.mxu2 %v3871_v58  ;;  %v5417_v25 = vld [vmem:[#allocation5 + $0x188] sm:$0xf0]  ;;  %v3930_v26 = vld [vmem:[#allocation5 + $0x240] sm:$0xf]  ;;  %v5486_v29 = vld [vmem:[#allocation5 + $0x3b0] sm:$0xf0]  ;;  %v3739_v35 = vor.u32 %v5393_v22, %v3738_v21 }
  0x2d   :  { %1436 = vmatpush.bf16.msra.mxu3 %v3967_v62  ;;  %v5441_v27 = vld [vmem:[#allocation5 + $0x248] sm:$0xf0]  ;;  %v4206_v30 = vld [vmem:[#allocation5 + $0x468] sm:$0xf]  ;;  %v5510_v32 = vld [vmem:[#allocation5 + $0x470] sm:$0xf0]  ;;  %v3835_v36 = vor.u32 %v5417_v25, %v3834_v23  ;;  %v4111_v40 = vor.u32 %v5486_v29, %v4110_v28 }
  0x2e   :  { %1398 = vmatpush.bf16.msra.mxu0 %v3667_v4  ;;  %v4302_v33 = vld [vmem:[#allocation5 + $0x528] sm:$0xf]  ;;  %v5534_v34 = vld [vmem:[#allocation5 + $0x530] sm:$0xf0]  ;;  %v3931_v39 = vor.u32 %v5441_v27, %v3930_v26  ;;  %v4207_v41 = vor.u32 %v5510_v32, %v4206_v30  ;;  %v4098_v43 = vld [vmem:[#allocation5 + $0x390] sm:$0xf] }
  0x2f   :  { %1411 = vmatpush.bf16.msra.mxu1 %v3763_v5  ;;  %v4398_v37 = vld [vmem:[#allocation5 + $0x5e8] sm:$0xf]  ;;  %v5558_v38 = vld [vmem:[#allocation5 + $0x5f0] sm:$0xf0]  ;;  %v4303_v42 = vor.u32 %v5534_v34, %v4302_v33  ;;  %v5483_v44 = vld [vmem:[#allocation5 + $0x398] sm:$0xf0] }
  0x30   :  { %1424 = vmatpush.bf16.msra.mxu2 %v3859_v6  ;;  %v4194_v45 = vld [vmem:[#allocation5 + $0x450] sm:$0xf]  ;;  %v4399_v46 = vor.u32 %v5558_v38, %v4398_v37  ;;  %v5507_v47 = vld [vmem:[#allocation5 + $0x458] sm:$0xf0]  ;;  %v4099_v52 = vor.u32 %v5483_v44, %v4098_v43  ;;  %v4086_v53 = vld [vmem:[#allocation5 + $0x378] sm:$0xf] }
  0x31   :  { %1437 = vmatpush.bf16.msra.mxu3 %v3955_v10  ;;  %v4290_v48 = vld [vmem:[#allocation5 + $0x510] sm:$0xf]  ;;  %v5531_v49 = vld [vmem:[#allocation5 + $0x518] sm:$0xf0]  ;;  %v4195_v54 = vor.u32 %v5507_v47, %v4194_v45  ;;  %v5480_v56 = vld [vmem:[#allocation5 + $0x380] sm:$0xf0] }
  0x32   :  { %1399 = vmatpush.bf16.msra.mxu0 %v3655_v16  ;;  %v4386_v50 = vld [vmem:[#allocation5 + $0x5d0] sm:$0xf]  ;;  %v5555_v51 = vld [vmem:[#allocation5 + $0x5d8] sm:$0xf0]  ;;  %v4291_v55 = vor.u32 %v5531_v49, %v4290_v48  ;;  %v4182_v57 = vld [vmem:[#allocation5 + $0x438] sm:$0xf]  ;;  %v4087_v2 = vor.u32 %v5480_v56, %v4086_v53 }
  0x33   :  { %1412 = vmatpush.bf16.msra.mxu1 %v3751_v19  ;;  %v99_v58 = vld [vmem:[#allocation2 + $0x10] sm:$0xff]  ;;  %v4387_v59 = vor.u32 %v5555_v51, %v4386_v50  ;;  %v5504_v60 = vld [vmem:[#allocation5 + $0x440] sm:$0xf0]  ;;  %v4278_v61 = vld [vmem:[#allocation5 + $0x4f8] sm:$0xf]  ;;  %s5975_s4 = smov [#allocation11]  }
  0x34   :  { %1425 = vmatpush.bf16.msra.mxu2 %v3847_v20  ;;  %v5528_v62 = vld [vmem:[#allocation5 + $0x500] sm:$0xf0]  ;;  %v6021_v63 = vpack.c.bf16 %v99_v58, %v99_v58  ;;  %v4374_v0 = vld [vmem:[#allocation5 + $0x5b8] sm:$0xf]  ;;  %v4074_v3 = vld [vmem:[#allocation5 + $0x360] sm:$0xf]  ;;  %v4183_v6 = vor.u32 %v5504_v60, %v4182_v57 }
  0x35   :  { %1438 = vmatpush.bf16.msra.mxu3 %v3943_v24  ;;  %v5552_v1 = vld [vmem:[#allocation5 + $0x5c0] sm:$0xf0]  ;;  %v5477_v4 = vld [vmem:[#allocation5 + $0x368] sm:$0xf0]  ;;  %v4279_v7 = vor.u32 %v5528_v62, %v4278_v61  ;;  %v4170_v8 = vld [vmem:[#allocation5 + $0x420] sm:$0xf] }
  0x36   :  { %1400 = vmatpush.bf16.msra.mxu0 %v3643_v31  ;;  %v97_v5 = vld [vmem:[#allocation2] sm:$0xff]  ;;  %v100_v10 = vld [vmem:[#allocation2 + $0x18] sm:$0xff]  ;;  %v98_v11 = vld [vmem:[#allocation2 + $0x8] sm:$0xff]  ;;  %v4375_v12 = vor.u32 %v5552_v1, %v4374_v0  ;;  %v4075_v20 = vor.u32 %v5477_v4, %v4074_v3  ;;  %s3626_s20 = sshll.u32 %s5975_s4, 4  ;;  %s3628_s23 = sshll.u32 %s6105_s5, 4  ;;  %s3627_s20 = int_to_ptr.vmem [resolvable:$true] %s3626_s20  ;;  %s3629_s23 = int_to_ptr.hbm [resolvable:$true] %s3628_s23 }
  0x37   :  { %1413 = vmatpush.bf16.msra.mxu1 %v3739_v35  ;;  %v6024_v9 = vpack.c.bf16 %v97_v5, %v97_v5  ;;  %v5501_v13 = vld [vmem:[#allocation5 + $0x428] sm:$0xf0]  ;;  %v4266_v14 = vld [vmem:[#allocation5 + $0x4e0] sm:$0xf]  ;;  %v6026_v16 = vpack.c.bf16 %v100_v10, %v100_v10  ;;  %v6028_v17 = vpack.c.bf16 %v98_v11, %v98_v11  ;;  %v4062_v23 = vld [vmem:[#allocation5 + $0x348] sm:$0xf] }
  0x38   :  { %1426 = vmatpush.bf16.msra.mxu2 %v3835_v36  ;;  %v5525_v15 = vld [vmem:[#allocation5 + $0x4e8] sm:$0xf0]  ;;  %v4362_v18 = vld [vmem:[#allocation5 + $0x5a0] sm:$0xf]  ;;  %v4171_v21 = vor.u32 %v5501_v13, %v4170_v8  ;;  %v5474_v24 = vld [vmem:[#allocation5 + $0x350] sm:$0xf0] }
  0x39   :  { %1439 = vmatpush.bf16.msra.mxu3 %v3931_v39  ;;  %v5549_v19 = vld [vmem:[#allocation5 + $0x5a8] sm:$0xf0]  ;;  %1401 = vmatmul.bf16.vlgmr.msra.gmra.mxu0 %v6024_v9  ;;  %v4267_v22 = vor.u32 %v5525_v15, %v4266_v14  ;;  %v4158_v25 = vld [vmem:[#allocation5 + $0x408] sm:$0xf]  ;;  %v5498_v27 = vld [vmem:[#allocation5 + $0x410] sm:$0xf0]  ;;  %v4063_v32 = vor.u32 %v5474_v24, %v4062_v23 }
  0x3a   :  { %1445 = vmatpush.bf16.msrb.mxu0 %v4111_v40  ;;  %v4363_v26 = vor.u32 %v5549_v19, %v4362_v18  ;;  %v4254_v28 = vld [vmem:[#allocation5 + $0x4c8] sm:$0xf]  ;;  %v5522_v29 = vld [vmem:[#allocation5 + $0x4d0] sm:$0xf0]  ;;  %1414 = vmatmul.bf16.vlgmr.msra.gmra.mxu1 %v6028_v17  ;;  %v4159_v33 = vor.u32 %v5498_v27, %v4158_v25  ;;  %v4050_v35 = vld [vmem:[#allocation5 + $0x330] sm:$0xf] }
  0x3b   :  { %1458 = vmatpush.bf16.msrb.mxu1 %v4207_v41  ;;  %1427 = vmatmul.bf16.vlgmr.msra.gmra.mxu2 %v6021_v63  ;;  %v4350_v30 = vld [vmem:[#allocation5 + $0x588] sm:$0xf]  ;;  %v5546_v31 = vld [vmem:[#allocation5 + $0x590] sm:$0xf0]  ;;  %v4255_v34 = vor.u32 %v5522_v29, %v4254_v28  ;;  %v5471_v36 = vld [vmem:[#allocation5 + $0x338] sm:$0xf0] }
  0x3c   :  { %1471 = vmatpush.bf16.msrb.mxu2 %v4303_v42  ;;  %1440 = vmatmul.bf16.vlgmr.msra.gmra.mxu3 %v6026_v16  ;;  %v4146_v37 = vld [vmem:[#allocation5 + $0x3f0] sm:$0xf]  ;;  %v4351_v38 = vor.u32 %v5546_v31, %v4350_v30  ;;  %v5495_v39 = vld [vmem:[#allocation5 + $0x3f8] sm:$0xf0]  ;;  %v4051_v44 = vor.u32 %v5471_v36, %v4050_v35  ;;  %v4038_v47 = vld [vmem:[#allocation5 + $0x318] sm:$0xf] }
  0x3d   :  { %1484 = vmatpush.bf16.msrb.mxu3 %v4399_v46  ;;  %v4242_v40 = vld [vmem:[#allocation5 + $0x4b0] sm:$0xf]  ;;  %v5519_v41 = vld [vmem:[#allocation5 + $0x4b8] sm:$0xf0]  ;;  %v4147_v45 = vor.u32 %v5495_v39, %v4146_v37  ;;  %v5468_v48 = vld [vmem:[#allocation5 + $0x320] sm:$0xf0] }
  0x3e   :  { %1446 = vmatpush.bf16.msrb.mxu0 %v4099_v52  ;;  %v4338_v42 = vld [vmem:[#allocation5 + $0x570] sm:$0xf]  ;;  %v5543_v43 = vld [vmem:[#allocation5 + $0x578] sm:$0xf0]  ;;  %v4243_v46 = vor.u32 %v5519_v41, %v4242_v40  ;;  %v4134_v49 = vld [vmem:[#allocation5 + $0x3d8] sm:$0xf]  ;;  %v4039_v56 = vor.u32 %v5468_v48, %v4038_v47 }
  0x3f   :  { %1459 = vmatpush.bf16.msrb.mxu1 %v4195_v54  ;;  %v4339_v50 = vor.u32 %v5543_v43, %v4338_v42  ;;  %v5492_v51 = vld [vmem:[#allocation5 + $0x3e0] sm:$0xf0]  ;;  %v4230_v52 = vld [vmem:[#allocation5 + $0x498] sm:$0xf]  ;;  %v4026_v57 = vld [vmem:[#allocation5 + $0x300] sm:$0xf] }
  0x40   :  { %1472 = vmatpush.bf16.msrb.mxu2 %v4291_v55  ;;  %v5516_v53 = vld [vmem:[#allocation5 + $0x4a0] sm:$0xf0]  ;;  %v4326_v54 = vld [vmem:[#allocation5 + $0x558] sm:$0xf]  ;;  %v5465_v58 = vld [vmem:[#allocation5 + $0x308] sm:$0xf0] }
  0x41   :  { %1485 = vmatpush.bf16.msrb.mxu3 %v4387_v59  ;;  %v5540_v55 = vld [vmem:[#allocation5 + $0x560] sm:$0xf0]  ;;  %v4135_v59 = vor.u32 %v5492_v51, %v4134_v49  ;;  %v4231_v60 = vor.u32 %v5516_v53, %v4230_v52  ;;  %v4122_v61 = vld [vmem:[#allocation5 + $0x3c0] sm:$0xf]  ;;  %v5489_v62 = vld [vmem:[#allocation5 + $0x3c8] sm:$0xf0]  ;;  %v4027_v8 = vor.u32 %v5465_v58, %v4026_v57 }
  0x42   :  { %1447 = vmatpush.bf16.msrb.mxu0 %v4087_v2  ;;  %v4218_v0 = vld [vmem:[#allocation5 + $0x480] sm:$0xf]  ;;  %v4327_v1 = vor.u32 %v5540_v55, %v4326_v54  ;;  %v5513_v2 = vld [vmem:[#allocation5 + $0x488] sm:$0xf0]  ;;  %v3824_v10 = vld [vmem:[#allocation5 + $0x174] sm:$0xf0]  ;;  %v4123_v13 = vor.u32 %v5489_v62, %v4122_v61 }
  0x43   :  { %1460 = vmatpush.bf16.msrb.mxu1 %v4183_v6  ;;  %v4314_v3 = vld [vmem:[#allocation5 + $0x540] sm:$0xf]  ;;  %v5537_v4 = vld [vmem:[#allocation5 + $0x548] sm:$0xf0]  ;;  %v3728_v6 = vld [vmem:[#allocation5 + $0xb4] sm:$0xf0]  ;;  %v4219_v14 = vor.u32 %v5513_v2, %v4218_v0 }
  0x44   :  { %1473 = vmatpush.bf16.msrb.mxu2 %v4279_v7  ;;  %v5389_v5 = vld [vmem:[#allocation5 + $0xac] sm:$0xf]  ;;  %v4016_v18 = vld [vmem:[#allocation5 + $0x2f4] sm:$0xf0]  ;;  %v103_v19 = vld [vmem:[#allocation2 + $0x30] sm:$0xff] }
  0x45   :  { %1486 = vmatpush.bf16.msrb.mxu3 %v4375_v12  ;;  %v5413_v7 = vld [vmem:[#allocation5 + $0x16c] sm:$0xf]  ;;  %v3920_v12 = vld [vmem:[#allocation5 + $0x234] sm:$0xf0]  ;;  %v101_v23 = vld [vmem:[#allocation2 + $0x20] sm:$0xff] }
  0x46   :  { %1448 = vmatpush.bf16.msrb.mxu0 %v4075_v20  ;;  %v5437_v11 = vld [vmem:[#allocation5 + $0x22c] sm:$0xf]  ;;  %v4315_v20 = vor.u32 %v5537_v4, %v4314_v3  ;;  %v104_v24 = vld [vmem:[#allocation2 + $0x38] sm:$0xff]  ;;  %v3827_v25 = vor.u32 %v5413_v7, %v3824_v10  ;;  %v3716_v27 = vld [vmem:[#allocation5 + $0x9c] sm:$0xf0]  ;;  %v6035_v37 = vpack.c.bf16 %v101_v23, %v101_v23 }
  0x47   :  { %1461 = vmatpush.bf16.msrb.mxu1 %v4171_v21  ;;  %v5461_v15 = vld [vmem:[#allocation5 + $0x2ec] sm:$0xf]  ;;  %v3731_v21 = vor.u32 %v5389_v5, %v3728_v6  ;;  %v5410_v28 = vld [vmem:[#allocation5 + $0x154] sm:$0xf]  ;;  %v3812_v31 = vld [vmem:[#allocation5 + $0x15c] sm:$0xf0] }
  0x48   :  { %1474 = vmatpush.bf16.msrb.mxu2 %v4267_v22  ;;  %v5386_v22 = vld [vmem:[#allocation5 + $0x94] sm:$0xf]  ;;  %v102_v29 = vld [vmem:[#allocation2 + $0x28] sm:$0xff]  ;;  %v4019_v30 = vor.u32 %v5461_v15, %v4016_v18  ;;  %v4004_v36 = vld [vmem:[#allocation5 + $0x2dc] sm:$0xf0]  ;;  %v3815_v41 = vor.u32 %v5410_v28, %v3812_v31 }
  0x49   :  { %1487 = vmatpush.bf16.msrb.mxu3 %v4363_v26  ;;  %v3923_v26 = vor.u32 %v5437_v11, %v3920_v12  ;;  %v5458_v35 = vld [vmem:[#allocation5 + $0x2d4] sm:$0xf]  ;;  %v3719_v39 = vor.u32 %v5386_v22, %v3716_v27  ;;  %v6039_v40 = vpack.c.bf16 %v102_v29, %v102_v29  ;;  %v5383_v43 = vld [vmem:[#allocation5 + $0x7c] sm:$0xf]  ;;  %v3800_v47 = vld [vmem:[#allocation5 + $0x144] sm:$0xf0] }
  0x4a   :  { %1449 = vmatpush.bf16.msrb.mxu0 %v4063_v32  ;;  %v5434_v32 = vld [vmem:[#allocation5 + $0x214] sm:$0xf]  ;;  %v5431_v48 = vld [vmem:[#allocation5 + $0x1fc] sm:$0xf]  ;;  %v3896_v49 = vld [vmem:[#allocation5 + $0x204] sm:$0xf0] }
  0x4b   :  { %1462 = vmatpush.bf16.msrb.mxu1 %v4159_v33  ;;  %v3908_v33 = vld [vmem:[#allocation5 + $0x21c] sm:$0xf0]  ;;  %v3992_v51 = vld [vmem:[#allocation5 + $0x2c4] sm:$0xf0]  ;;  %v3899_v54 = vor.u32 %v5431_v48, %v3896_v49  ;;  %v5380_v55 = vld [vmem:[#allocation5 + $0x64] sm:$0xf] }
  0x4c   :  { %1475 = vmatpush.bf16.msrb.mxu2 %v4255_v34  ;;  %v6033_v34 = vpack.c.bf16 %v103_v19, %v103_v19  ;;  %v3911_v42 = vor.u32 %v5434_v32, %v3908_v33  ;;  %v5404_v57 = vld [vmem:[#allocation5 + $0x124] sm:$0xf]  ;;  %v3884_v61 = vld [vmem:[#allocation5 + $0x1ec] sm:$0xf0]  ;;  %v5377_v4 = vld [vmem:[#allocation5 + $0x4c] sm:$0xf] }
  0x4d   :  { %1488 = vmatpush.bf16.msrb.mxu3 %v4351_v38  ;;  %v6037_v38 = vpack.c.bf16 %v104_v24, %v104_v24  ;;  %v5452_v62 = vld [vmem:[#allocation5 + $0x2a4] sm:$0xf]  ;;  %v3980_v0 = vld [vmem:[#allocation5 + $0x2ac] sm:$0xf0]  ;;  %v3680_v5 = vld [vmem:[#allocation5 + $0x54] sm:$0xf0] }
  0x4e   :  { %1450 = vmatpush.bf16.msrb.mxu0 %v4051_v44  ;;  %v3704_v44 = vld [vmem:[#allocation5 + $0x84] sm:$0xf0]  ;;  %v5401_v6 = vld [vmem:[#allocation5 + $0x10c] sm:$0xf]  ;;  %v3983_v7 = vor.u32 %v5452_v62, %v3980_v0  ;;  %v3872_v11 = vld [vmem:[#allocation5 + $0x1d4] sm:$0xf0] }
  0x4f   :  { %1463 = vmatpush.bf16.msrb.mxu1 %v4147_v45  ;;  %v5407_v45 = vld [vmem:[#allocation5 + $0x13c] sm:$0xf]  ;;  %v3707_v52 = vor.u32 %v5383_v43, %v3704_v44  ;;  %v5425_v10 = vld [vmem:[#allocation5 + $0x1cc] sm:$0xf]  ;;  %v5374_v19 = vld [vmem:[#allocation5 + $0x34] sm:$0xf] }
  0x50   :  { %1476 = vmatpush.bf16.msrb.mxu2 %v4243_v46  ;;  %v4007_v46 = vor.u32 %v5458_v35, %v4004_v36  ;;  %v3803_v53 = vor.u32 %v5407_v45, %v3800_v47  ;;  %v5449_v12 = vld [vmem:[#allocation5 + $0x28c] sm:$0xf]  ;;  %v3875_v18 = vor.u32 %v5425_v10, %v3872_v11  ;;  %v3764_v23 = vld [vmem:[#allocation5 + $0xfc] sm:$0xf0]  ;;  %v5422_v24 = vld [vmem:[#allocation5 + $0x1b4] sm:$0xf] }
  0x51   :  { %1489 = vmatpush.bf16.msrb.mxu3 %v4339_v50  ;;  %v5455_v50 = vld [vmem:[#allocation5 + $0x2bc] sm:$0xf]  ;;  %v3956_v27 = vld [vmem:[#allocation5 + $0x27c] sm:$0xf0]  ;;  %v3656_v32 = vld [vmem:[#allocation5 + $0x24] sm:$0xf0] }
  0x52   :  { %1451 = vmatpush.bf16.msrb.mxu0 %v4039_v56  ;;  %v3692_v56 = vld [vmem:[#allocation5 + $0x6c] sm:$0xf0]  ;;  %v3995_v58 = vor.u32 %v5455_v50, %v3992_v51  ;;  %v5371_v31 = vld [vmem:[#allocation5 + $0x1c] sm:$0xf]  ;;  %v3752_v36 = vld [vmem:[#allocation5 + $0xe4] sm:$0xf0] }
  0x53   :  { %1464 = vmatpush.bf16.msrb.mxu1 %v4135_v59  ;;  %v3788_v59 = vld [vmem:[#allocation5 + $0x12c] sm:$0xf0]  ;;  %v5395_v33 = vld [vmem:[#allocation5 + $0xdc] sm:$0xf]  ;;  %v3944_v43 = vld [vmem:[#allocation5 + $0x264] sm:$0xf0]  ;;  %v3659_v44 = vor.u32 %v5371_v31, %v3656_v32 }
  0x54   :  { %1477 = vmatpush.bf16.msrb.mxu2 %v4231_v60  ;;  %v5428_v60 = vld [vmem:[#allocation5 + $0x1e4] sm:$0xf]  ;;  %v3791_v2 = vor.u32 %v5404_v57, %v3788_v59  ;;  %v3755_v47 = vor.u32 %v5395_v33, %v3752_v36  ;;  %v3740_v50 = vld [vmem:[#allocation5 + $0xcc] sm:$0xf0]  ;;  %v4112_v57 = vld [vmem:[#allocation5 + $0x3b4] sm:$0xf0] }
  0x55   :  { %1490 = vmatpush.bf16.msrb.mxu3 %v4327_v1  ;;  %v3695_v1 = vor.u32 %v5380_v55, %v3692_v56  ;;  %v3887_v3 = vor.u32 %v5428_v60, %v3884_v61  ;;  %v5368_v45 = vld [vmem:[#allocation5 + $0x4] sm:$0xf]  ;;  %v3932_v55 = vld [vmem:[#allocation5 + $0x24c] sm:$0xf0]  ;;  %v5485_v56 = vld [vmem:[#allocation5 + $0x3ac] sm:$0xf] }
  0x56   :  { %1452 = vmatpush.bf16.msrb.mxu0 %v4027_v8  ;;  %v3776_v8 = vld [vmem:[#allocation5 + $0x114] sm:$0xf0]  ;;  %v5392_v49 = vld [vmem:[#allocation5 + $0xc4] sm:$0xf]  ;;  %v5533_v61 = vld [vmem:[#allocation5 + $0x52c] sm:$0xf] }
  0x57   :  { %1465 = vmatpush.bf16.msrb.mxu1 %v4123_v13  ;;  %v3968_v13 = vld [vmem:[#allocation5 + $0x294] sm:$0xf0]  ;;  %v3779_v15 = vor.u32 %v5401_v6, %v3776_v8  ;;  %v5416_v51 = vld [vmem:[#allocation5 + $0x184] sm:$0xf]  ;;  %v3743_v0 = vor.u32 %v5392_v49, %v3740_v50  ;;  %v5482_v8 = vld [vmem:[#allocation5 + $0x394] sm:$0xf] }
  0x58   :  { %1478 = vmatpush.bf16.msrb.mxu2 %v4219_v14  ;;  %v3683_v14 = vor.u32 %v5377_v4, %v3680_v5  ;;  %v3971_v22 = vor.u32 %v5449_v12, %v3968_v13  ;;  %v4208_v60 = vld [vmem:[#allocation5 + $0x474] sm:$0xf0]  ;;  %v4115_v5 = vor.u32 %v5485_v56, %v4112_v57  ;;  %v4100_v10 = vld [vmem:[#allocation5 + $0x39c] sm:$0xf0]  ;;  %v5506_v11 = vld [vmem:[#allocation5 + $0x454] sm:$0xf] }
  0x59   :  { %1491 = vmatpush.bf16.msrb.mxu3 %v4315_v20  ;;  %1453 = vmatmul.bf16.vlgmr.msrb.gmra.mxu0 %v6035_v37  ;;  %v3668_v20 = vld [vmem:[#allocation5 + $0x3c] sm:$0xf0]  ;;  %v4304_v62 = vld [vmem:[#allocation5 + $0x534] sm:$0xf0]  ;;  %v4376_v31 = vld [vmem:[#allocation5 + $0x5c4] sm:$0xf0] }
  0x5a   :  { %1497 = vmatpush.bf16.msra.mxu0 %v3731_v21  ;;  %1466 = vmatmul.bf16.vlgmr.msrb.gmra.mxu1 %v6039_v40  ;;  %v5398_v21 = vld [vmem:[#allocation5 + $0xf4] sm:$0xf]  ;;  %v3671_v28 = vor.u32 %v5374_v19, %v3668_v20  ;;  %v4196_v13 = vld [vmem:[#allocation5 + $0x45c] sm:$0xf0]  ;;  %v4103_v20 = vor.u32 %v5482_v8, %v4100_v10  ;;  %v5476_v36 = vld [vmem:[#allocation5 + $0x364] sm:$0xf] }
  0x5b   :  { %1510 = vmatpush.bf16.msra.mxu1 %v3827_v25  ;;  %1479 = vmatmul.bf16.vlgmr.msrb.gmra.mxu2 %v6033_v34  ;;  %v3860_v25 = vld [vmem:[#allocation5 + $0x1bc] sm:$0xf0]  ;;  %v3767_v29 = vor.u32 %v5398_v21, %v3764_v23  ;;  %v4199_v21 = vor.u32 %v5506_v11, %v4196_v13  ;;  %v5479_v23 = vld [vmem:[#allocation5 + $0x37c] sm:$0xf]  ;;  %v5521_v56 = vld [vmem:[#allocation5 + $0x4cc] sm:$0xf] }
  0x5c   :  { %1523 = vmatpush.bf16.msra.mxu2 %v3923_v26  ;;  %1492 = vmatmul.bf16.vlgmr.msrb.gmra.mxu3 %v6037_v38  ;;  %v5446_v26 = vld [vmem:[#allocation5 + $0x274] sm:$0xf]  ;;  %v4388_v19 = vld [vmem:[#allocation5 + $0x5dc] sm:$0xf0]  ;;  %v4256_v57 = vld [vmem:[#allocation5 + $0x4d4] sm:$0xf0] }
  0x5d   :  { %1536 = vmatpush.bf16.msra.mxu3 %v4019_v30  ;;  %v3863_v30 = vor.u32 %v5422_v24, %v3860_v25  ;;  %v3959_v35 = vor.u32 %v5446_v26, %v3956_v27  ;;  %v4088_v24 = vld [vmem:[#allocation5 + $0x384] sm:$0xf0]  ;;  %v5503_v25 = vld [vmem:[#allocation5 + $0x43c] sm:$0xf]  ;;  %v4340_v8 = vld [vmem:[#allocation5 + $0x57c] sm:$0xf0] }
  0x5e   :  { %1498 = vmatpush.bf16.msra.mxu0 %v3719_v39  ;;  %v5419_v39 = vld [vmem:[#allocation5 + $0x19c] sm:$0xf]  ;;  %v4184_v27 = vld [vmem:[#allocation5 + $0x444] sm:$0xf0]  ;;  %v4091_v32 = vor.u32 %v5479_v23, %v4088_v24 }
  0x5f   :  { %1511 = vmatpush.bf16.msra.mxu1 %v3815_v41  ;;  %v3848_v41 = vld [vmem:[#allocation5 + $0x1a4] sm:$0xf0]  ;;  %v4187_v33 = vor.u32 %v5503_v25, %v4184_v27  ;;  %v5467_v13 = vld [vmem:[#allocation5 + $0x31c] sm:$0xf]  ;;  %v5464_v25 = vld [vmem:[#allocation5 + $0x304] sm:$0xf] }
  0x60   :  { %1524 = vmatpush.bf16.msra.mxu2 %v3911_v42  ;;  %v5443_v42 = vld [vmem:[#allocation5 + $0x25c] sm:$0xf]  ;;  %v3851_v48 = vor.u32 %v5419_v39, %v3848_v41  ;;  %v4076_v39 = vld [vmem:[#allocation5 + $0x36c] sm:$0xf0]  ;;  %v5500_v41 = vld [vmem:[#allocation5 + $0x424] sm:$0xf] }
  0x61   :  { %1537 = vmatpush.bf16.msra.mxu3 %v4007_v46  ;;  %v3644_v46 = vld [vmem:[#allocation5 + $0xc] sm:$0xf0]  ;;  %v4328_v23 = vld [vmem:[#allocation5 + $0x564] sm:$0xf0] }
  0x62   :  { %1499 = vmatpush.bf16.msra.mxu0 %v3707_v52  ;;  %v3947_v52 = vor.u32 %v5443_v42, %v3944_v43  ;;  %v3647_v59 = vor.u32 %v5368_v45, %v3644_v46  ;;  %v4172_v43 = vld [vmem:[#allocation5 + $0x42c] sm:$0xf0]  ;;  %v5548_v46 = vld [vmem:[#allocation5 + $0x5a4] sm:$0xf] }
  0x63   :  { %1512 = vmatpush.bf16.msra.mxu1 %v3803_v53  ;;  %v3836_v53 = vld [vmem:[#allocation5 + $0x18c] sm:$0xf0]  ;;  %v4175_v49 = vor.u32 %v5500_v41, %v4172_v43  ;;  %v5391_v41 = vld [vmem:[#allocation5 + $0xb8] sm:$0xf0] }
  0x64   :  { %1525 = vmatpush.bf16.msra.mxu2 %v3899_v54  ;;  %v5440_v54 = vld [vmem:[#allocation5 + $0x244] sm:$0xf]  ;;  %v4268_v45 = vld [vmem:[#allocation5 + $0x4ec] sm:$0xf0] }
  0x65   :  { %1538 = vmatpush.bf16.msra.mxu3 %v3995_v58  ;;  %v5509_v58 = vld [vmem:[#allocation5 + $0x46c] sm:$0xf]  ;;  %v3935_v4 = vor.u32 %v5440_v54, %v3932_v55  ;;  %v4160_v55 = vld [vmem:[#allocation5 + $0x414] sm:$0xf0] }
  0x66   :  { %1500 = vmatpush.bf16.msra.mxu0 %v3695_v1  ;;  %v3839_v1 = vor.u32 %v5416_v51, %v3836_v53  ;;  %v4211_v6 = vor.u32 %v5509_v58, %v4208_v60  ;;  %v5473_v51 = vld [vmem:[#allocation5 + $0x34c] sm:$0xf] }
  0x67   :  { %1513 = vmatpush.bf16.msra.mxu1 %v3791_v2  ;;  %v5557_v2 = vld [vmem:[#allocation5 + $0x5ec] sm:$0xf] }
  0x68   :  { %1526 = vmatpush.bf16.msra.mxu2 %v3887_v3  ;;  %v4400_v3 = vld [vmem:[#allocation5 + $0x5f4] sm:$0xf0]  ;;  %v5497_v53 = vld [vmem:[#allocation5 + $0x40c] sm:$0xf] }
  0x69   :  { %1539 = vmatpush.bf16.msra.mxu3 %v3983_v7  ;;  %v4307_v7 = vor.u32 %v5533_v61, %v4304_v62  ;;  %v4403_v12 = vor.u32 %v5557_v2, %v4400_v3  ;;  %v5545_v58 = vld [vmem:[#allocation5 + $0x58c] sm:$0xf]  ;;  %v4163_v61 = vor.u32 %v5497_v53, %v4160_v55  ;;  %v4259_v62 = vor.u32 %v5521_v56, %v4256_v57  ;;  %v5494_v2 = vld [vmem:[#allocation5 + $0x3f4] sm:$0xf]  ;;  %v3722_v55 = vld [vmem:[#allocation5 + $0x98] sm:$0xf] }
  0x6a   :  { %1501 = vmatpush.bf16.msra.mxu0 %v3683_v14  ;;  %v5530_v14 = vld [vmem:[#allocation5 + $0x514] sm:$0xf]  ;;  %v5388_v56 = vld [vmem:[#allocation5 + $0xa0] sm:$0xf0]  ;;  %v3818_v57 = vld [vmem:[#allocation5 + $0x158] sm:$0xf] }
  0x6b   :  { %1514 = vmatpush.bf16.msra.mxu1 %v3779_v15  ;;  %v4292_v15 = vld [vmem:[#allocation5 + $0x51c] sm:$0xf0] }
  0x6c   :  { %1527 = vmatpush.bf16.msra.mxu2 %v3875_v18  ;;  %v5554_v18 = vld [vmem:[#allocation5 + $0x5d4] sm:$0xf] }
  0x6d   :  { %1540 = vmatpush.bf16.msra.mxu3 %v3971_v22  ;;  %v4295_v22 = vor.u32 %v5530_v14, %v4292_v15  ;;  %v4391_v26 = vor.u32 %v5554_v18, %v4388_v19  ;;  %v4040_v14 = vld [vmem:[#allocation5 + $0x324] sm:$0xf0]  ;;  %v5491_v15 = vld [vmem:[#allocation5 + $0x3dc] sm:$0xf] }
  0x6e   :  { %1502 = vmatpush.bf16.msra.mxu0 %v3671_v28  ;;  %v5527_v28 = vld [vmem:[#allocation5 + $0x4fc] sm:$0xf]  ;;  %v4136_v19 = vld [vmem:[#allocation5 + $0x3e4] sm:$0xf0]  ;;  %v4043_v24 = vor.u32 %v5467_v13, %v4040_v14  ;;  %v5457_v13 = vld [vmem:[#allocation5 + $0x2c8] sm:$0xf0] }
  0x6f   :  { %1515 = vmatpush.bf16.msra.mxu1 %v3767_v29  ;;  %v4280_v29 = vld [vmem:[#allocation5 + $0x504] sm:$0xf0]  ;;  %v4139_v27 = vor.u32 %v5491_v15, %v4136_v19 }
  0x70   :  { %1528 = vmatpush.bf16.msra.mxu2 %v3863_v30  ;;  %v5551_v30 = vld [vmem:[#allocation5 + $0x5bc] sm:$0xf]  ;;  %v3698_v19 = vld [vmem:[#allocation5 + $0x68] sm:$0xf] }
  0x71   :  { %1541 = vmatpush.bf16.msra.mxu3 %v3959_v35  ;;  %v4283_v35 = vor.u32 %v5527_v28, %v4280_v29  ;;  %v4379_v42 = vor.u32 %v5551_v30, %v4376_v31  ;;  %v5488_v29 = vld [vmem:[#allocation5 + $0x3c4] sm:$0xf]  ;;  %v4124_v30 = vld [vmem:[#allocation5 + $0x3cc] sm:$0xf0] }
  0x72   :  { %1503 = vmatpush.bf16.msra.mxu0 %v3659_v44  ;;  %v5524_v44 = vld [vmem:[#allocation5 + $0x4e4] sm:$0xf] }
  0x73   :  { %1516 = vmatpush.bf16.msra.mxu1 %v3755_v47  ;;  %v4364_v47 = vld [vmem:[#allocation5 + $0x5ac] sm:$0xf0]  ;;  %v4271_v50 = vor.u32 %v5524_v44, %v4268_v45  ;;  %v5512_v31 = vld [vmem:[#allocation5 + $0x484] sm:$0xf]  ;;  %v5415_v44 = vld [vmem:[#allocation5 + $0x178] sm:$0xf0] }
  0x74   :  { %1529 = vmatpush.bf16.msra.mxu2 %v3851_v48  ;;  %v4079_v48 = vor.u32 %v5476_v36, %v4076_v39  ;;  %v4367_v54 = vor.u32 %v5548_v46, %v4364_v47  ;;  %v4316_v36 = vld [vmem:[#allocation5 + $0x54c] sm:$0xf0]  ;;  %v5439_v46 = vld [vmem:[#allocation5 + $0x238] sm:$0xf0]  ;;  %v4127_v47 = vor.u32 %v5488_v29, %v4124_v30 }
  0x75   :  { %1542 = vmatpush.bf16.msra.mxu3 %v3947_v52  ;;  %v4064_v52 = vld [vmem:[#allocation5 + $0x354] sm:$0xf0]  ;;  %v3734_v39 = vld [vmem:[#allocation5 + $0xb0] sm:$0xf] }
  0x76   :  { %1504 = vmatpush.bf16.msra.mxu0 %v3647_v59  ;;  %v4352_v59 = vld [vmem:[#allocation5 + $0x594] sm:$0xf0]  ;;  %v4067_v60 = vor.u32 %v5473_v51, %v4064_v52  ;;  %v3926_v45 = vld [vmem:[#allocation5 + $0x230] sm:$0xf]  ;;  %v3735_v52 = vor.u32 %v5391_v41, %v3734_v39  ;;  %v5427_v41 = vld [vmem:[#allocation5 + $0x1d8] sm:$0xf0] }
  0x77   :  { %1517 = vmatpush.bf16.msra.mxu1 %v3743_v0  ;;  %v5470_v0 = vld [vmem:[#allocation5 + $0x334] sm:$0xf]  ;;  %v4355_v3 = vor.u32 %v5545_v58, %v4352_v59  ;;  %v5412_v59 = vld [vmem:[#allocation5 + $0x160] sm:$0xf0]  ;;  %v3878_v39 = vld [vmem:[#allocation5 + $0x1d0] sm:$0xf] }
  0x78   :  { %1530 = vmatpush.bf16.msra.mxu2 %v3839_v1  ;;  %v4052_v1 = vld [vmem:[#allocation5 + $0x33c] sm:$0xf0] }
  0x79   :  { %1543 = vmatpush.bf16.msra.mxu3 %v3935_v4  ;;  %1505 = vmatmul.bf16.vlgmr.msra.gmra.mxu0 %v6024_v9  ;;  %v4148_v4 = vld [vmem:[#allocation5 + $0x3fc] sm:$0xf0]  ;;  %v4055_v10 = vor.u32 %v5470_v0, %v4052_v1  ;;  %v5460_v0 = vld [vmem:[#allocation5 + $0x2e0] sm:$0xf0]  ;;  %v3723_v1 = vor.u32 %v5388_v56, %v3722_v55 }
  0x7a   :  { %1549 = vmatpush.bf16.msrb.mxu0 %v4115_v5  ;;  %1518 = vmatmul.bf16.vlgmr.msra.gmra.mxu1 %v6028_v17  ;;  %v5518_v5 = vld [vmem:[#allocation5 + $0x4b4] sm:$0xf]  ;;  %v4151_v11 = vor.u32 %v5494_v2, %v4148_v4  ;;  %v3819_v2 = vor.u32 %v5412_v59, %v3818_v57  ;;  %v3710_v4 = vld [vmem:[#allocation5 + $0x80] sm:$0xf]  ;;  %v5448_v55 = vld [vmem:[#allocation5 + $0x280] sm:$0xf0] }
  0x7b   :  { %1562 = vmatpush.bf16.msrb.mxu1 %v4211_v6  ;;  %1531 = vmatmul.bf16.vlgmr.msra.gmra.mxu2 %v6021_v63  ;;  %v4244_v6 = vld [vmem:[#allocation5 + $0x4bc] sm:$0xf0] }
  0x7c   :  { %1575 = vmatpush.bf16.msrb.mxu2 %v4307_v7  ;;  %1544 = vmatmul.bf16.vlgmr.msra.gmra.mxu3 %v6026_v16  ;;  %v5542_v7 = vld [vmem:[#allocation5 + $0x574] sm:$0xf]  ;;  %v3662_v59 = vld [vmem:[#allocation5 + $0x20] sm:$0xf] }
  0x7d   :  { %1588 = vmatpush.bf16.msrb.mxu3 %v4403_v12  ;;  %v4247_v12 = vor.u32 %v5518_v5, %v4244_v6  ;;  %v4343_v18 = vor.u32 %v5542_v7, %v4340_v8  ;;  %v5385_v5 = vld [vmem:[#allocation5 + $0x88] sm:$0xf0]  ;;  %v3806_v6 = vld [vmem:[#allocation5 + $0x140] sm:$0xf] }
  0x7e   :  { %1550 = vmatpush.bf16.msrb.mxu0 %v4103_v20  ;;  %v5515_v20 = vld [vmem:[#allocation5 + $0x49c] sm:$0xf]  ;;  %v5409_v8 = vld [vmem:[#allocation5 + $0x148] sm:$0xf0]  ;;  %v3711_v14 = vor.u32 %v5385_v5, %v3710_v4 }
  0x7f   :  { %1563 = vmatpush.bf16.msrb.mxu1 %v4199_v21  ;;  %v4232_v21 = vld [vmem:[#allocation5 + $0x4a4] sm:$0xf0]  ;;  %v3807_v15 = vor.u32 %v5409_v8, %v3806_v6  ;;  %v5445_v4 = vld [vmem:[#allocation5 + $0x268] sm:$0xf0] }
  0x80   :  { %1576 = vmatpush.bf16.msrb.mxu2 %v4295_v22  ;;  %v5539_v22 = vld [vmem:[#allocation5 + $0x55c] sm:$0xf]  ;;  %v4235_v28 = vor.u32 %v5515_v20, %v4232_v21  ;;  %v5382_v20 = vld [vmem:[#allocation5 + $0x70] sm:$0xf0]  ;;  %v3794_v21 = vld [vmem:[#allocation5 + $0x128] sm:$0xf] }
  0x81   :  { %1589 = vmatpush.bf16.msrb.mxu3 %v4391_v26  ;;  %v4028_v26 = vld [vmem:[#allocation5 + $0x30c] sm:$0xf0]  ;;  %v3650_v6 = vld [vmem:[#allocation5 + $0x8] sm:$0xf] }
  0x82   :  { %1551 = vmatpush.bf16.msrb.mxu0 %v4091_v32  ;;  %v4331_v32 = vor.u32 %v5539_v22, %v4328_v23  ;;  %v4031_v43 = vor.u32 %v5464_v25, %v4028_v26  ;;  %v5406_v23 = vld [vmem:[#allocation5 + $0x130] sm:$0xf0]  ;;  %v3986_v26 = vld [vmem:[#allocation5 + $0x2a8] sm:$0xf] }
  0x83   :  { %1564 = vmatpush.bf16.msrb.mxu1 %v4187_v33  ;;  %v4220_v33 = vld [vmem:[#allocation5 + $0x48c] sm:$0xf0]  ;;  %v5430_v25 = vld [vmem:[#allocation5 + $0x1f0] sm:$0xf0]  ;;  %v3795_v29 = vor.u32 %v5406_v23, %v3794_v21  ;;  %v5487_v21 = vld [vmem:[#allocation5 + $0x3b8] sm:$0xf0] }
  0x84   :  { %1577 = vmatpush.bf16.msrb.mxu2 %v4283_v35  ;;  %v5536_v35 = vld [vmem:[#allocation5 + $0x544] sm:$0xf] }
  0x85   :  { %1590 = vmatpush.bf16.msrb.mxu3 %v4379_v42  ;;  %v3830_v42 = vld [vmem:[#allocation5 + $0x170] sm:$0xf]  ;;  %v4319_v51 = vor.u32 %v5536_v35, %v4316_v36  ;;  %v5403_v36 = vld [vmem:[#allocation5 + $0x118] sm:$0xf0] }
  0x86   :  { %1552 = vmatpush.bf16.msrb.mxu0 %v4079_v48  ;;  %v4223_v48 = vor.u32 %v5512_v31, %v4220_v33  ;;  %v3831_v53 = vor.u32 %v5415_v44, %v3830_v42  ;;  %v3686_v31 = vld [vmem:[#allocation5 + $0x50] sm:$0xf] }
  0x87   :  { %1565 = vmatpush.bf16.msrb.mxu1 %v4175_v49  ;;  %v4022_v49 = vld [vmem:[#allocation5 + $0x2f0] sm:$0xf] }
  0x88   :  { %1578 = vmatpush.bf16.msrb.mxu2 %v4271_v50  ;;  %v5463_v50 = vld [vmem:[#allocation5 + $0x2f8] sm:$0xf0]  ;;  %v3782_v33 = vld [vmem:[#allocation5 + $0x110] sm:$0xf] }
  0x89   :  { %1591 = vmatpush.bf16.msrb.mxu3 %v4367_v54  ;;  %v3927_v54 = vor.u32 %v5439_v46, %v3926_v45  ;;  %v4023_v58 = vor.u32 %v5463_v50, %v4022_v49  ;;  %v3974_v42 = vld [vmem:[#allocation5 + $0x290] sm:$0xf]  ;;  %v3783_v45 = vor.u32 %v5403_v36, %v3782_v33  ;;  %v3879_v46 = vor.u32 %v5427_v41, %v3878_v39  ;;  %v3770_v49 = vld [vmem:[#allocation5 + $0xf8] sm:$0xf]  ;;  %v5484_v39 = vld [vmem:[#allocation5 + $0x3a0] sm:$0xf0] }
  0x8a   :  { %1553 = vmatpush.bf16.msrb.mxu0 %v4067_v60  ;;  %v3914_v60 = vld [vmem:[#allocation5 + $0x218] sm:$0xf] }
  0x8b   :  { %1566 = vmatpush.bf16.msrb.mxu1 %v4163_v61  ;;  %v5436_v61 = vld [vmem:[#allocation5 + $0x220] sm:$0xf0]  ;;  %v4106_v36 = vld [vmem:[#allocation5 + $0x398] sm:$0xf] }
  0x8c   :  { %1579 = vmatpush.bf16.msrb.mxu2 %v4259_v62  ;;  %v4010_v62 = vld [vmem:[#allocation5 + $0x2d8] sm:$0xf] }
  0x8d   :  { %1592 = vmatpush.bf16.msrb.mxu3 %v4355_v3  ;;  %v3915_v3 = vor.u32 %v5436_v61, %v3914_v60  ;;  %v4011_v7 = vor.u32 %v5460_v0, %v4010_v62  ;;  %v5373_v60 = vld [vmem:[#allocation5 + $0x28] sm:$0xf0]  ;;  %v3758_v61 = vld [vmem:[#allocation5 + $0xe0] sm:$0xf]  ;;  %v4202_v41 = vld [vmem:[#allocation5 + $0x458] sm:$0xf] }
  0x8e   :  { %1554 = vmatpush.bf16.msrb.mxu0 %v4055_v10  ;;  %v3902_v10 = vld [vmem:[#allocation5 + $0x200] sm:$0xf]  ;;  %v5397_v0 = vld [vmem:[#allocation5 + $0xe8] sm:$0xf0]  ;;  %v3663_v5 = vor.u32 %v5373_v60, %v3662_v59 }
  0x8f   :  { %1567 = vmatpush.bf16.msrb.mxu1 %v4151_v11  ;;  %v5433_v11 = vld [vmem:[#allocation5 + $0x208] sm:$0xf0]  ;;  %v3759_v8 = vor.u32 %v5397_v0, %v3758_v61  ;;  %v4082_v0 = vld [vmem:[#allocation5 + $0x368] sm:$0xf] }
  0x90   :  { %1580 = vmatpush.bf16.msrb.mxu2 %v4247_v12  ;;  %v3998_v12 = vld [vmem:[#allocation5 + $0x2c0] sm:$0xf]  ;;  %v5553_v59 = vld [vmem:[#allocation5 + $0x5c8] sm:$0xf0] }
  0x91   :  { %1593 = vmatpush.bf16.msrb.mxu3 %v4343_v18  ;;  %v3903_v18 = vor.u32 %v5433_v11, %v3902_v10  ;;  %v3999_v22 = vor.u32 %v5457_v13, %v3998_v12  ;;  %v3746_v11 = vld [vmem:[#allocation5 + $0xc8] sm:$0xf]  ;;  %v5394_v12 = vld [vmem:[#allocation5 + $0xd0] sm:$0xf0] }
  0x92   :  { %1555 = vmatpush.bf16.msrb.mxu0 %v4043_v24  ;;  %v3890_v24 = vld [vmem:[#allocation5 + $0x1e8] sm:$0xf] }
  0x93   :  { %1568 = vmatpush.bf16.msrb.mxu1 %v4139_v27  ;;  %v5454_v27 = vld [vmem:[#allocation5 + $0x2b0] sm:$0xf0]  ;;  %v3891_v30 = vor.u32 %v5430_v25, %v3890_v24  ;;  %v3842_v13 = vld [vmem:[#allocation5 + $0x188] sm:$0xf]  ;;  %v5511_v24 = vld [vmem:[#allocation5 + $0x478] sm:$0xf0] }
  0x94   :  { %1581 = vmatpush.bf16.msrb.mxu2 %v4235_v28  ;;  %v3699_v28 = vor.u32 %v5382_v20, %v3698_v19  ;;  %v3987_v35 = vor.u32 %v5454_v27, %v3986_v26  ;;  %v5442_v19 = vld [vmem:[#allocation5 + $0x250] sm:$0xf0]  ;;  %v4118_v20 = vld [vmem:[#allocation5 + $0x3b0] sm:$0xf]  ;;  %v5535_v26 = vld [vmem:[#allocation5 + $0x538] sm:$0xf0]  ;;  %v3747_v27 = vor.u32 %v5394_v12, %v3746_v11 }
  0x95   :  { %1594 = vmatpush.bf16.msrb.mxu3 %v4331_v32  ;;  %v5379_v32 = vld [vmem:[#allocation5 + $0x58] sm:$0xf0]  ;;  %v4310_v25 = vld [vmem:[#allocation5 + $0x530] sm:$0xf] }
  0x96   :  { %1556 = vmatpush.bf16.msrb.mxu0 %v4031_v43  ;;  %v5451_v43 = vld [vmem:[#allocation5 + $0x298] sm:$0xf0]  ;;  %v3687_v44 = vor.u32 %v5379_v32, %v3686_v31  ;;  %v4119_v32 = vor.u32 %v5487_v21, %v4118_v20  ;;  %v4166_v11 = vld [vmem:[#allocation5 + $0x410] sm:$0xf] }
  0x97   :  { %1569 = vmatpush.bf16.msrb.mxu1 %v4127_v47  ;;  %v3674_v47 = vld [vmem:[#allocation5 + $0x38] sm:$0xf]  ;;  %v3975_v50 = vor.u32 %v5451_v43, %v3974_v42  ;;  %v5508_v43 = vld [vmem:[#allocation5 + $0x460] sm:$0xf0] }
  0x98   :  { %1582 = vmatpush.bf16.msrb.mxu2 %v4223_v48  ;;  %v5376_v48 = vld [vmem:[#allocation5 + $0x40] sm:$0xf0] }
  0x99   :  { %1595 = vmatpush.bf16.msrb.mxu3 %v4319_v51  ;;  %1557 = vmatmul.bf16.vlgmr.msrb.gmra.mxu0 %v6035_v37  ;;  %v5400_v51 = vld [vmem:[#allocation5 + $0x100] sm:$0xf0]  ;;  %v3675_v56 = vor.u32 %v5376_v48, %v3674_v47  ;;  %v4107_v48 = vor.u32 %v5484_v39, %v4106_v36 }
  0x9a   :  { %1601 = vmatpush.bf16.msra.mxu0 %v3735_v52  ;;  %1570 = vmatmul.bf16.vlgmr.msrb.gmra.mxu1 %v6039_v40  ;;  %v3866_v52 = vld [vmem:[#allocation5 + $0x1b8] sm:$0xf]  ;;  %v3771_v57 = vor.u32 %v5400_v51, %v3770_v49  ;;  %v5556_v47 = vld [vmem:[#allocation5 + $0x5e0] sm:$0xf0]  ;;  %v4203_v49 = vor.u32 %v5508_v43, %v4202_v41  ;;  %v4094_v51 = vld [vmem:[#allocation5 + $0x380] sm:$0xf] }
  0x9b   :  { %1614 = vmatpush.bf16.msra.mxu1 %v3831_v53  ;;  %1583 = vmatmul.bf16.vlgmr.msrb.gmra.mxu2 %v6033_v34  ;;  %v5424_v53 = vld [vmem:[#allocation5 + $0x1c0] sm:$0xf0]  ;;  %v5469_v43 = vld [vmem:[#allocation5 + $0x328] sm:$0xf0] }
  0x9c   :  { %1627 = vmatpush.bf16.msra.mxu2 %v3927_v54  ;;  %1596 = vmatmul.bf16.vlgmr.msrb.gmra.mxu3 %v6037_v38  ;;  %v3962_v54 = vld [vmem:[#allocation5 + $0x278] sm:$0xf] }
  0x9d   :  { %1640 = vmatpush.bf16.msra.mxu3 %v4023_v58  ;;  %v3867_v58 = vor.u32 %v5424_v53, %v3866_v52  ;;  %v3963_v62 = vor.u32 %v5448_v55, %v3962_v54  ;;  %v5481_v52 = vld [vmem:[#allocation5 + $0x388] sm:$0xf0]  ;;  %v4190_v53 = vld [vmem:[#allocation5 + $0x440] sm:$0xf] }
  0x9e   :  { %1602 = vmatpush.bf16.msra.mxu0 %v3723_v1  ;;  %v3854_v1 = vld [vmem:[#allocation5 + $0x1a0] sm:$0xf]  ;;  %v5505_v55 = vld [vmem:[#allocation5 + $0x448] sm:$0xf0]  ;;  %v4095_v60 = vor.u32 %v5481_v52, %v4094_v51 }
  0x9f   :  { %1615 = vmatpush.bf16.msra.mxu1 %v3819_v2  ;;  %v5421_v2 = vld [vmem:[#allocation5 + $0x1a8] sm:$0xf0]  ;;  %v4191_v61 = vor.u32 %v5505_v55, %v4190_v53 }
  0xa0   :  { %1628 = vmatpush.bf16.msra.mxu2 %v3915_v3  ;;  %v3950_v3 = vld [vmem:[#allocation5 + $0x260] sm:$0xf]  ;;  %v3855_v10 = vor.u32 %v5421_v2, %v3854_v1  ;;  %v5478_v1 = vld [vmem:[#allocation5 + $0x370] sm:$0xf0] }
  0xa1   :  { %1641 = vmatpush.bf16.msra.mxu3 %v4011_v7  ;;  %v5370_v7 = vld [vmem:[#allocation5 + $0x10] sm:$0xf0] }
  0xa2   :  { %1603 = vmatpush.bf16.msra.mxu0 %v3711_v14  ;;  %v3951_v14 = vor.u32 %v5445_v4, %v3950_v3  ;;  %v3651_v23 = vor.u32 %v5370_v7, %v3650_v6  ;;  %v5502_v3 = vld [vmem:[#allocation5 + $0x430] sm:$0xf0]  ;;  %v4274_v4 = vld [vmem:[#allocation5 + $0x4e8] sm:$0xf] }
  0xa3   :  { %1616 = vmatpush.bf16.msra.mxu1 %v3807_v15  ;;  %v5418_v15 = vld [vmem:[#allocation5 + $0x190] sm:$0xf0]  ;;  %v4370_v6 = vld [vmem:[#allocation5 + $0x5a8] sm:$0xf] }
  0xa4   :  { %1629 = vmatpush.bf16.msra.mxu2 %v3903_v18  ;;  %v3938_v18 = vld [vmem:[#allocation5 + $0x248] sm:$0xf] }
  0xa5   :  { %1642 = vmatpush.bf16.msra.mxu3 %v3999_v22  ;;  %v4214_v22 = vld [vmem:[#allocation5 + $0x470] sm:$0xf]  ;;  %v3939_v31 = vor.u32 %v5442_v19, %v3938_v18  ;;  %v5547_v19 = vld [vmem:[#allocation5 + $0x598] sm:$0xf0] }
  0xa6   :  { %1604 = vmatpush.bf16.msra.mxu0 %v3699_v28  ;;  %v3843_v28 = vor.u32 %v5418_v15, %v3842_v13  ;;  %v4215_v33 = vor.u32 %v5511_v24, %v4214_v22  ;;  %v5499_v13 = vld [vmem:[#allocation5 + $0x418] sm:$0xf0]  ;;  %v4358_v18 = vld [vmem:[#allocation5 + $0x590] sm:$0xf]  ;;  %v4058_v24 = vld [vmem:[#allocation5 + $0x338] sm:$0xf] }
  0xa7   :  { %1617 = vmatpush.bf16.msra.mxu1 %v3795_v29  ;;  %v4406_v29 = vld [vmem:[#allocation5 + $0x5f0] sm:$0xf]  ;;  %v5523_v15 = vld [vmem:[#allocation5 + $0x4d8] sm:$0xf0]  ;;  %v4167_v22 = vor.u32 %v5499_v13, %v4166_v11  ;;  %v5565_v11 = vld [vmem:[#allocation7 + $0x28] sm:$0xff] }
  0xa8   :  { %1630 = vmatpush.bf16.msra.mxu2 %v3891_v30  ;;  %v5559_v30 = vld [vmem:[#allocation5 + $0x5f8] sm:$0xf0]  ;;  %v5564_v13 = vld [vmem:[#allocation7 + $0x20] sm:$0xff] }
  0xa9   :  { %1643 = vmatpush.bf16.msra.mxu3 %v3987_v35  ;;  %v4311_v35 = vor.u32 %v5535_v26, %v4310_v25  ;;  %v4407_v42 = vor.u32 %v5559_v30, %v4406_v29  ;;  %v5472_v25 = vld [vmem:[#allocation5 + $0x340] sm:$0xf0]  ;;  %v4154_v26 = vld [vmem:[#allocation5 + $0x3f8] sm:$0xf] }
  0xaa   :  { %1605 = vmatpush.bf16.msra.mxu0 %v3687_v44  ;;  %v4298_v44 = vld [vmem:[#allocation5 + $0x518] sm:$0xf]  ;;  %v5520_v30 = vld [vmem:[#allocation5 + $0x4c0] sm:$0xf0]  ;;  %v4059_v36 = vor.u32 %v5472_v25, %v4058_v24 }
  0xab   :  { %1618 = vmatpush.bf16.msra.mxu1 %v3783_v45  ;;  %v5532_v45 = vld [vmem:[#allocation5 + $0x520] sm:$0xf0]  ;;  %v4250_v29 = vld [vmem:[#allocation5 + $0x4b8] sm:$0xf] }
  0xac   :  { %1631 = vmatpush.bf16.msra.mxu2 %v3879_v46  ;;  %v4394_v46 = vld [vmem:[#allocation5 + $0x5d8] sm:$0xf]  ;;  %v4251_v41 = vor.u32 %v5520_v30, %v4250_v29  ;;  %v5572_v24 = vld [vmem:[#allocation7 + $0x60] sm:$0xff] }
  0xad   :  { %1644 = vmatpush.bf16.msra.mxu3 %v3975_v50  ;;  %v4299_v50 = vor.u32 %v5532_v45, %v4298_v44  ;;  %v4395_v54 = vor.u32 %v5556_v47, %v4394_v46  ;;  %v4142_v44 = vld [vmem:[#allocation5 + $0x3e0] sm:$0xf]  ;;  %v5493_v46 = vld [vmem:[#allocation5 + $0x3e8] sm:$0xf0] }
  0xae   :  { %1606 = vmatpush.bf16.msra.mxu0 %v3675_v56  ;;  %v4286_v56 = vld [vmem:[#allocation5 + $0x500] sm:$0xf] }
  0xaf   :  { %1619 = vmatpush.bf16.msra.mxu1 %v3771_v57  ;;  %v5529_v57 = vld [vmem:[#allocation5 + $0x508] sm:$0xf0]  ;;  %v4238_v47 = vld [vmem:[#allocation5 + $0x4a0] sm:$0xf] }
  0xb0   :  { %1632 = vmatpush.bf16.msra.mxu2 %v3867_v58  ;;  %v4382_v58 = vld [vmem:[#allocation5 + $0x5c0] sm:$0xf] }
  0xb1   :  { %1645 = vmatpush.bf16.msra.mxu3 %v3963_v62  ;;  %v4287_v62 = vor.u32 %v5529_v57, %v4286_v56  ;;  %v4383_v2 = vor.u32 %v5553_v59, %v4382_v58  ;;  %v4034_v56 = vld [vmem:[#allocation5 + $0x308] sm:$0xf]  ;;  %v5466_v57 = vld [vmem:[#allocation5 + $0x310] sm:$0xf0] }
  0xb2   :  { %1607 = vmatpush.bf16.msra.mxu0 %v3663_v5  ;;  %v5526_v5 = vld [vmem:[#allocation5 + $0x4f0] sm:$0xf0]  ;;  %v4130_v58 = vld [vmem:[#allocation5 + $0x3c8] sm:$0xf] }
  0xb3   :  { %1620 = vmatpush.bf16.msra.mxu1 %v3759_v8  ;;  %v4070_v8 = vld [vmem:[#allocation5 + $0x350] sm:$0xf] }
  0xb4   :  { %1633 = vmatpush.bf16.msra.mxu2 %v3855_v10  ;;  %v5475_v10 = vld [vmem:[#allocation5 + $0x358] sm:$0xf0] }
  0xb5   :  { %1646 = vmatpush.bf16.msra.mxu3 %v3951_v14  ;;  %v4262_v14 = vld [vmem:[#allocation5 + $0x4d0] sm:$0xf]  ;;  %v4071_v20 = vor.u32 %v5475_v10, %v4070_v8 }
  0xb6   :  { %1608 = vmatpush.bf16.msra.mxu0 %v3651_v23  ;;  %v1402_v21 = vpop.f32.mrf.mxu0  ;;  %v4263_v23 = vor.u32 %v5523_v15, %v4262_v14  ;;  %v5566_v8 = vld [vmem:[#allocation7 + $0x30] sm:$0xff] }
  0xb7   :  { %1621 = vmatpush.bf16.msra.mxu1 %v3747_v27  ;;  %v4359_v27 = vor.u32 %v5547_v19, %v4358_v18  ;;  %v5574_v15 = vld [vmem:[#allocation7 + $0x70] sm:$0xff] }
  0xb8   :  { %1634 = vmatpush.bf16.msra.mxu2 %v3843_v28  ;;  %v5496_v28 = vld [vmem:[#allocation5 + $0x400] sm:$0xf0] }
  0xb9   :  { %1647 = vmatpush.bf16.msra.mxu3 %v3939_v31  ;;  %1609 = vmatmul.bf16.vlgmr.msra.gmra.mxu0 %v6024_v9  ;;  %v5550_v9 = vld [vmem:[#allocation5 + $0x5b0] sm:$0xf0]  ;;  %v4346_v31 = vld [vmem:[#allocation5 + $0x578] sm:$0xf]  ;;  %v4155_v39 = vor.u32 %v5496_v28, %v4154_v26 }
  0xba   :  { %1653 = vmatpush.bf16.msrb.mxu0 %v4119_v32  ;;  %1622 = vmatmul.bf16.vlgmr.msra.gmra.mxu1 %v6028_v17  ;;  %v4275_v17 = vor.u32 %v5526_v5, %v4274_v4  ;;  %v4371_v12 = vor.u32 %v5550_v9, %v4370_v6  ;;  %v5544_v32 = vld [vmem:[#allocation5 + $0x580] sm:$0xf0]  ;;  %v5567_v9 = vld [vmem:[#allocation7 + $0x38] sm:$0xff] }
  0xbb   :  { %1666 = vmatpush.bf16.msrb.mxu1 %v4215_v33  ;;  %1635 = vmatmul.bf16.vlgmr.msra.gmra.mxu2 %v6021_v63  ;;  %v4178_v63 = vld [vmem:[#allocation5 + $0x428] sm:$0xf]  ;;  %v1415_v33 = vpop.f32.mrf.mxu1  ;;  %v4347_v45 = vor.u32 %v5544_v32, %v4346_v31  ;;  %v5571_v28 = vld [vmem:[#allocation7 + $0x58] sm:$0xff]  ;;  %v5560_v32 = vld [vmem:[#allocation7] sm:$0xff] }
  0xbc   :  { %1679 = vmatpush.bf16.msrb.mxu2 %v4311_v35  ;;  %1648 = vmatmul.bf16.vlgmr.msra.gmra.mxu3 %v6026_v16  ;;  %v4083_v16 = vor.u32 %v5478_v1, %v4082_v0  ;;  %v4179_v7 = vor.u32 %v5502_v3, %v4178_v63  ;;  %v4322_v0 = vld [vmem:[#allocation5 + $0x548] sm:$0xf]  ;;  %v5538_v1 = vld [vmem:[#allocation5 + $0x550] sm:$0xf0]  ;;  %v4035_v3 = vor.u32 %v5466_v57, %v4034_v56 }
  0xbd   :  { %1692 = vmatpush.bf16.msrb.mxu3 %v4407_v42  ;;  %v4046_v42 = vld [vmem:[#allocation5 + $0x320] sm:$0xf]  ;;  %v4323_v6 = vor.u32 %v5538_v1, %v4322_v0 }
  0xbe   :  { %1654 = vmatpush.bf16.msrb.mxu0 %v4107_v48  ;;  %v1428_v35 = vpop.f32.mrf.mxu2  ;;  %v5517_v48 = vld [vmem:[#allocation5 + $0x4a8] sm:$0xf0]  ;;  %v4047_v52 = vor.u32 %v5469_v43, %v4046_v42  ;;  %v1404_v53 = vpop.f32.mrf.mxu0 }
  0xbf   :  { %1667 = vmatpush.bf16.msrb.mxu1 %v4203_v49  ;;  %v4334_v49 = vld [vmem:[#allocation5 + $0x560] sm:$0xf]  ;;  %v1441_v51 = vpop.f32.mrf.mxu3  ;;  %v4239_v55 = vor.u32 %v5517_v48, %v4238_v47  ;;  %v5569_v43 = vld [vmem:[#allocation7 + $0x48] sm:$0xff] }
  0xc0   :  { %1680 = vmatpush.bf16.msrb.mxu2 %v4299_v50  ;;  %v5541_v50 = vld [vmem:[#allocation5 + $0x568] sm:$0xf0] }
  0xc1   :  { %1693 = vmatpush.bf16.msrb.mxu3 %v4395_v54  ;;  %v4143_v54 = vor.u32 %v5493_v46, %v4142_v44  ;;  %v4335_v59 = vor.u32 %v5541_v50, %v4334_v49  ;;  %v5568_v46 = vld [vmem:[#allocation7 + $0x40] sm:$0xff] }
  0xc2   :  { %1655 = vmatpush.bf16.msrb.mxu0 %v4095_v60  ;;  %v5490_v60 = vld [vmem:[#allocation5 + $0x3d0] sm:$0xf0] }
  0xc3   :  { %1668 = vmatpush.bf16.msrb.mxu1 %v4191_v61  ;;  %v4226_v61 = vld [vmem:[#allocation5 + $0x488] sm:$0xf]  ;;  %v1417_v63 = vpop.f32.mrf.mxu1  ;;  %v4131_v4 = vor.u32 %v5490_v60, %v4130_v58 }
  0xc4   :  { %1681 = vmatpush.bf16.msrb.mxu2 %v4287_v62  ;;  %v5514_v62 = vld [vmem:[#allocation5 + $0x490] sm:$0xf0] }
  0xc5   :  { %1694 = vmatpush.bf16.msrb.mxu3 %v4383_v2  ;;  %v4227_v5 = vor.u32 %v5514_v62, %v4226_v61  ;;  %v5582_v62 = vld [vmem:[#allocation7 + $0xb0] sm:$0xff] }
  0xc6   :  { %1656 = vmatpush.bf16.msrb.mxu0 %v4083_v16  ;;  %v1430_v2 = vpop.f32.mrf.mxu2  ;;  %v1416_v16 = vadd.f32 %v1415_v33, %v1402_v21 }
  0xc7   :  { %1669 = vmatpush.bf16.msrb.mxu1 %v4179_v7  ;;  %v1443_v7 = vpop.f32.mrf.mxu3  ;;  %v5581_v2 = vld [vmem:[#allocation7 + $0xa8] sm:$0xff] }
  0xc8   :  { %1682 = vmatpush.bf16.msrb.mxu2 %v4275_v17  ;;  %v5575_v17 = vld [vmem:[#allocation7 + $0x78] sm:$0xff]  ;;  %v1429_v10 = vadd.f32 %v1428_v35, %v1416_v16 }
  0xc9   :  { %1695 = vmatpush.bf16.msrb.mxu3 %v4371_v12 }
  0xca   :  { %1657 = vmatpush.bf16.msrb.mxu0 %v4071_v20  ;;  %v1442_v12 = vadd.f32 %v1441_v51, %v1429_v10 }
  0xcb   :  { %1670 = vmatpush.bf16.msrb.mxu1 %v4167_v22 }
  0xcc   :  { %1683 = vmatpush.bf16.msrb.mxu2 %v4263_v23 }
  0xcd   :  { %1696 = vmatpush.bf16.msrb.mxu3 %v4359_v27  ;;  %v5561_v27 = vld [vmem:[#allocation7 + $0x8] sm:$0xff] }
  0xce   :  { %1658 = vmatpush.bf16.msrb.mxu0 %v4059_v36 }
  0xcf   :  { %1671 = vmatpush.bf16.msrb.mxu1 %v4155_v39  ;;  %v5570_v39 = vld [vmem:[#allocation7 + $0x50] sm:$0xff] }
  0xd0   :  { %1684 = vmatpush.bf16.msrb.mxu2 %v4251_v41 }
  0xd1   :  { %1697 = vmatpush.bf16.msrb.mxu3 %v4347_v45 }
  0xd2   :  { %1659 = vmatpush.bf16.msrb.mxu0 %v4047_v52 }
  0xd3   :  { %1672 = vmatpush.bf16.msrb.mxu1 %v4143_v54 }
  0xd4   :  { %1685 = vmatpush.bf16.msrb.mxu2 %v4239_v55 }
  0xd5   :  { %1698 = vmatpush.bf16.msrb.mxu3 %v4335_v59  ;;  %v5583_v59 = vld [vmem:[#allocation7 + $0xb8] sm:$0xff] }
  0xd6   :  { %1660 = vmatpush.bf16.msrb.mxu0 %v4035_v3  ;;  %v1454_v14 = vpop.f32.mrf.mxu0 }
  0xd7   :  { %1673 = vmatpush.bf16.msrb.mxu1 %v4131_v4  ;;  %v1455_v18 = vadd.f32 %v1454_v14, %v1442_v12  ;;  %v1467_v19 = vpop.f32.mrf.mxu1  ;;  %v5576_v12 = vld [vmem:[#allocation7 + $0x80] sm:$0xff] }
  0xd8   :  { %1686 = vmatpush.bf16.msrb.mxu2 %v4227_v5  ;;  %v5580_v5 = vld [vmem:[#allocation7 + $0xa0] sm:$0xff] }
  0xd9   :  { %1699 = vmatpush.bf16.msrb.mxu3 %v4323_v6  ;;  %1661 = vmatmul.bf16.vlgmr.msrb.gmra.mxu0 %v6035_v37  ;;  %v1468_v20 = vadd.f32 %v1467_v19, %v1455_v18  ;;  %v5563_v37 = vld [vmem:[#allocation7 + $0x18] sm:$0xff] }
  0xda   :  { %1903 = vmatpush.bf16.msra.mxu0 %v5567_v9  ;;  %1674 = vmatmul.bf16.vlgmr.msrb.gmra.mxu1 %v6039_v40  ;;  %v5573_v40 = vld [vmem:[#allocation7 + $0x68] sm:$0xff]  ;;  %v5579_v6 = vld [vmem:[#allocation7 + $0x98] sm:$0xff]  ;;  %v5578_v9 = vld [vmem:[#allocation7 + $0x90] sm:$0xff] }
  0xdb   :  { %1916 = vmatpush.bf16.msra.mxu1 %v5575_v17  ;;  %1687 = vmatmul.bf16.vlgmr.msrb.gmra.mxu2 %v6033_v34  ;;  %v5562_v34 = vld [vmem:[#allocation7 + $0x10] sm:$0xff]  ;;  %v5577_v17 = vld [vmem:[#allocation7 + $0x88] sm:$0xff] }
  0xdc   :  { %1700 = vmatmul.bf16.vlgmr.msrb.gmra.mxu3 %v6037_v38  ;;  %1929 = vmatpush.bf16.msra.mxu2 %v5583_v59  ;;  %v4574_v59 = vld [vmem:[#allocation8 + $0x80] sm:$0xf] }
  0xde   :  { %1904 = vmatpush.bf16.msra.mxu0 %v5566_v8  ;;  %v1480_v21 = vpop.f32.mrf.mxu2  ;;  %v1456_v38 = vpop.f32.mrf.mxu0 }
  0xdf   :  { %1917 = vmatpush.bf16.msra.mxu1 %v5574_v15  ;;  %v1493_v22 = vpop.f32.mrf.mxu3  ;;  %v1481_v23 = vadd.f32 %v1480_v21, %v1468_v20  ;;  %v1469_v25 = vpop.f32.mrf.mxu1 }
  0xe0   :  { %1930 = vmatpush.bf16.msra.mxu2 %v5582_v62 }
  0xe1   :  { %v1494_v26 = vadd.f32 %v1493_v22, %v1481_v23 }
  0xe2   :  { %1905 = vmatpush.bf16.msra.mxu0 %v5565_v11 }
  0xe3   :  { %1918 = vmatpush.bf16.msra.mxu1 %v5573_v40  ;;  %v1705_v31 = vmax.f32 %v1494_v26, 0.0 }
  0xe4   :  { %1931 = vmatpush.bf16.msra.mxu2 %v5581_v2  ;;  %v5596_v2 = vld [vmem:[#allocation8 + $0x64] sm:$0xf] }
  0xe5   :  { %v1708_v33 = vpack.c.bf16 %v1705_v31, %v1705_v31 }
  0xe6   :  { %1906 = vmatpush.bf16.msra.mxu0 %v5564_v13  ;;  %v1482_v29 = vpop.f32.mrf.mxu2 }
  0xe7   :  { %1919 = vmatpush.bf16.msra.mxu1 %v5572_v24  ;;  %v1495_v30 = vpop.f32.mrf.mxu3 }
  0xe8   :  { %1932 = vmatpush.bf16.msra.mxu2 %v5580_v5  ;;  %v5598_v5 = vld [vmem:[#allocation8 + $0x70] sm:$0xf0] }
  0xea   :  { %1907 = vmatpush.bf16.msra.mxu0 %v5563_v37 }
  0xeb   :  { %1920 = vmatpush.bf16.msra.mxu1 %v5571_v28 }
  0xec   :  { %1933 = vmatpush.bf16.msra.mxu2 %v5579_v6 }
  0xee   :  { %1908 = vmatpush.bf16.msra.mxu0 %v5562_v34 }
  0xef   :  { %1921 = vmatpush.bf16.msra.mxu1 %v5570_v39 }
  0xf0   :  { %1934 = vmatpush.bf16.msra.mxu2 %v5578_v9 }
  0xf2   :  { %1909 = vmatpush.bf16.msra.mxu0 %v5561_v27 }
  0xf3   :  { %1922 = vmatpush.bf16.msra.mxu1 %v5569_v43  ;;  %v5607_v43 = vld [vmem:[#allocation8 + $0xb8] sm:$0xf0] }
  0xf4   :  { %1935 = vmatpush.bf16.msra.mxu2 %v5577_v17  ;;  %v5594_v17 = vld [vmem:[#allocation8 + $0x50] sm:$0xf0] }
  0xf6   :  { %1910 = vmatpush.bf16.msra.mxu0 %v5560_v32  ;;  %v1506_v35 = vpop.f32.mrf.mxu0 }
  0xf7   :  { %v1519_v36 = vpop.f32.mrf.mxu1  ;;  %1923 = vmatpush.bf16.msra.mxu1 %v5568_v46  ;;  %v4578_v46 = vld [vmem:[#allocation8 + $0x90] sm:$0xf] }
  0xf8   :  { %v1520_v49 = vadd.f32 %v1519_v36, %v1506_v35  ;;  %1936 = vmatpush.bf16.msra.mxu2 %v5576_v12  ;;  %v5606_v35 = vld [vmem:[#allocation8 + $0xb0] sm:$0xf0]  ;;  %v5605_v36 = vld [vmem:[#allocation8 + $0xac] sm:$0xf]  ;;  %v5595_v12 = vld [vmem:[#allocation8 + $0x58] sm:$0xf0] }
  0xf9   :  { %1911 = vmatmul.bf16.vlgmr.msra.gmra.mxu0 %v1708_v33  ;;  %v4590_v33 = vld [vmem:[#allocation8 + $0xa8] sm:$0xf] }
  0xfa   :  { %v4591_v39 = vor.u32 %v5606_v35, %v4590_v33  ;;  %v5589_v33 = vld [vmem:[#allocation8 + $0x28] sm:$0xf0] }
  0xfc   :  { %2104 = vmatpush.bf16.msra.mxu3 %v4591_v39  ;;  %v4506_v39 = vld [vmem:[#allocation8] sm:$0xf] }
  0xfe   :  { %v1532_v41 = vpop.f32.mrf.mxu2  ;;  %v1508_v44 = vpop.f32.mrf.mxu0 }
  0xff   :  { %v1545_v42 = vpop.f32.mrf.mxu3  ;;  %v1521_v45 = vpop.f32.mrf.mxu1  ;;  %v1533_v50 = vadd.f32 %v1532_v41, %v1520_v49  ;;  %v4592_v41 = vld [vmem:[#allocation8 + $0xb4] sm:$0xf0] }
 0x100   :  { %v4595_v44 = vor.u32 %v5605_v36, %v4592_v41  ;;  %v5585_v41 = vld [vmem:[#allocation8 + $0x8] sm:$0xf0] }
 0x101   :  { %v1546_v51 = vadd.f32 %v1545_v42, %v1533_v50  ;;  %v4598_v42 = vld [vmem:[#allocation8 + $0xb0] sm:$0xf]  ;;  %v4580_v50 = vld [vmem:[#allocation8 + $0x9c] sm:$0xf0] }
 0x102   :  { %v4599_v45 = vor.u32 %v5607_v43, %v4598_v42  ;;  %2117 = vmatpush.bf16.msrb.mxu0 %v4595_v44  ;;  %v5584_v42 = vld [vmem:[#allocation8 + $0x4] sm:$0xf]  ;;  %v4507_v43 = vor.u32 %v5585_v41, %v4506_v39  ;;  %v4508_v44 = vld [vmem:[#allocation8 + $0xc] sm:$0xf0]  ;;  %v5636_v39 = vld [vmem:[#allocation10 + $0xdc] sm:$0xf0] }
 0x103   :  { %v5632_v41 = vld [vmem:[#allocation10 + $0xc4] sm:$0xf] }
 0x104   :  { %2130 = vmatpush.bf16.msrb.mxu1 %v4599_v45  ;;  %v5586_v45 = vld [vmem:[#allocation8 + $0x10] sm:$0xf0] }
 0x106   :  { %v1534_v47 = vpop.f32.mrf.mxu2 }
 0x107   :  { %v1547_v48 = vpop.f32.mrf.mxu3  ;;  %v5603_v47 = vld [vmem:[#allocation8 + $0x98] sm:$0xf0] }
 0x108   :  { %v5602_v48 = vld [vmem:[#allocation8 + $0x94] sm:$0xf]  ;;  %v4579_v49 = vor.u32 %v5603_v47, %v4578_v46  ;;  %v4511_v46 = vor.u32 %v5584_v42, %v4508_v44  ;;  %v4700_v42 = vld [vmem:[#allocation10 + $0xe0] sm:$0xf0]  ;;  %v4922_v44 = vld [vmem:[#allocation10 + $0x280] sm:$0xf] }
 0x10a   :  { %2105 = vmatpush.bf16.msra.mxu3 %v4579_v49  ;;  %v5732_v49 = vld [vmem:[#allocation10 + $0x3dc] sm:$0xf0] }
 0x116   :  { %v1558_v52 = vpop.f32.mrf.mxu0 }
 0x117   :  { %v1559_v53 = vadd.f32 %v1558_v52, %v1546_v51  ;;  %v1571_v54 = vpop.f32.mrf.mxu1  ;;  %v4586_v51 = vld [vmem:[#allocation8 + $0x98] sm:$0xf]  ;;  %v5604_v52 = vld [vmem:[#allocation8 + $0xa0] sm:$0xf0] }
 0x119   :  { %v1572_v55 = vadd.f32 %v1571_v54, %v1559_v53  ;;  %v4583_v53 = vor.u32 %v5602_v48, %v4580_v50  ;;  %v4587_v54 = vor.u32 %v5604_v52, %v4586_v51  ;;  %v5082_v48 = vld [vmem:[#allocation10 + $0x3c0] sm:$0xf] }
 0x11a   :  { %v5338_v50 = vld [vmem:[#allocation10 + $0x5c0] sm:$0xf]  ;;  %v5083_v51 = vor.u32 %v5732_v49, %v5082_v48  ;;  %v4703_v48 = vor.u32 %v5632_v41, %v4700_v42  ;;  %v5058_v42 = vld [vmem:[#allocation10 + $0x388] sm:$0xf] }
 0x11b   :  { %2118 = vmatpush.bf16.msrb.mxu0 %v4583_v53  ;;  %2131 = vmatpush.bf16.msrb.mxu1 %v4587_v54  ;;  %v5796_v52 = vld [vmem:[#allocation10 + $0x5dc] sm:$0xf0] }
 0x11c   :  { %v5050_v53 = vld [vmem:[#allocation10 + $0x380] sm:$0xf] }
 0x11d   :  { %v5724_v54 = vld [vmem:[#allocation10 + $0x39c] sm:$0xf0] }
 0x11e   :  { %v1584_v56 = vpop.f32.mrf.mxu2  ;;  %v1560_v61 = vpop.f32.mrf.mxu0  ;;  %v4666_v49 = vld [vmem:[#allocation10 + $0x80] sm:$0xf] }
 0x11f   :  { %v1585_v57 = vadd.f32 %v1584_v56, %v1572_v55  ;;  %v1597_v58 = vpop.f32.mrf.mxu3  ;;  %v1573_v0 = vpop.f32.mrf.mxu1  ;;  %v4566_v55 = vld [vmem:[#allocation8 + $0x78] sm:$0xf]  ;;  %v5600_v56 = vld [vmem:[#allocation8 + $0x80] sm:$0xf0] }
 0x120   :  { %v4567_v61 = vor.u32 %v5600_v56, %v4566_v55  ;;  %v5339_v55 = vor.u32 %v5796_v52, %v5338_v50  ;;  %v5306_v56 = vld [vmem:[#allocation10 + $0x580] sm:$0xf]  ;;  %v5624_v52 = vld [vmem:[#allocation10 + $0x84] sm:$0xf] }
 0x121   :  { %v1598_v60 = vadd.f32 %v1597_v58, %v1585_v57  ;;  %v5599_v57 = vld [vmem:[#allocation8 + $0x7c] sm:$0xf]  ;;  %v4568_v58 = vld [vmem:[#allocation8 + $0x84] sm:$0xf0] }
 0x122   :  { %v4571_v62 = vor.u32 %v5599_v57, %v4568_v58  ;;  %2106 = vmatpush.bf16.msra.mxu3 %v4567_v61  ;;  %v5788_v57 = vld [vmem:[#allocation10 + $0x59c] sm:$0xf0]  ;;  %v5664_v61 = vld [vmem:[#allocation10 + $0x1c4] sm:$0xf] }
 0x123   :  { %v1706_v1 = vmax.f32 %v1598_v60, 0.0  ;;  %v5601_v60 = vld [vmem:[#allocation8 + $0x88] sm:$0xf0]  ;;  %v4826_v58 = vld [vmem:[#allocation10 + $0x1c0] sm:$0xf] }
 0x124   :  { %v4575_v0 = vor.u32 %v5601_v60, %v4574_v59  ;;  %2119 = vmatpush.bf16.msrb.mxu0 %v4571_v62  ;;  %v5051_v59 = vor.u32 %v5724_v54, %v5050_v53  ;;  %v5668_v60 = vld [vmem:[#allocation10 + $0x1dc] sm:$0xf0]  ;;  %v4828_v62 = vld [vmem:[#allocation10 + $0x1e0] sm:$0xf0] }
 0x125   :  { %v1709_v63 = vpack.c.bf16 %v1706_v1, %v1706_v1  ;;  %v4554_v1 = vld [vmem:[#allocation8 + $0x60] sm:$0xf]  ;;  %v4668_v53 = vld [vmem:[#allocation10 + $0xa0] sm:$0xf0] }
 0x126   :  { %v1586_v3 = vpop.f32.mrf.mxu2  ;;  %2132 = vmatpush.bf16.msrb.mxu1 %v4575_v0  ;;  %v5307_v0 = vor.u32 %v5788_v57, %v5306_v56  ;;  %v5684_v56 = vld [vmem:[#allocation10 + $0x25c] sm:$0xf0] }
 0x127   :  { %1924 = vmatmul.bf16.vlgmr.msra.gmra.mxu1 %v1709_v63  ;;  %v1599_v4 = vpop.f32.mrf.mxu3  ;;  %v5597_v63 = vld [vmem:[#allocation8 + $0x68] sm:$0xf0]  ;;  %v4556_v3 = vld [vmem:[#allocation8 + $0x6c] sm:$0xf0]  ;;  %v5146_v57 = vld [vmem:[#allocation10 + $0x440] sm:$0xf] }
 0x128   :  { %v4562_v4 = vld [vmem:[#allocation8 + $0x68] sm:$0xf]  ;;  %v4555_v6 = vor.u32 %v5597_v63, %v4554_v1  ;;  %v4559_v9 = vor.u32 %v5596_v2, %v4556_v3  ;;  %v4827_v1 = vor.u32 %v5668_v60, %v4826_v58  ;;  %v4831_v63 = vor.u32 %v5664_v61, %v4828_v62  ;;  %v5018_v2 = vld [vmem:[#allocation10 + $0x340] sm:$0xf] }
 0x129   :  { %v5716_v3 = vld [vmem:[#allocation10 + $0x35c] sm:$0xf0]  ;;  %v4671_v60 = vor.u32 %v5624_v52, %v4668_v53  ;;  %v5026_v53 = vld [vmem:[#allocation10 + $0x348] sm:$0xf] }
 0x12a   :  { %2107 = vmatpush.bf16.msra.mxu3 %v4555_v6  ;;  %2120 = vmatpush.bf16.msrb.mxu0 %v4559_v9  ;;  %v4794_v6 = vld [vmem:[#allocation10 + $0x180] sm:$0xf] }
 0x12b   :  { %v5660_v9 = vld [vmem:[#allocation10 + $0x19c] sm:$0xf0]  ;;  %3301 = vmatpush.bf16.msrb.mxu2 %v4827_v1  ;;  %v5616_v1 = vld [vmem:[#allocation10 + $0x44] sm:$0xf] }
 0x12c   :  { %v5748_v58 = vld [vmem:[#allocation10 + $0x45c] sm:$0xf0] }
 0x12d   :  { %v4634_v61 = vld [vmem:[#allocation10 + $0x40] sm:$0xf] }
 0x136   :  { %v1610_v16 = vpop.f32.mrf.mxu0 }
 0x137   :  { %v1623_v7 = vpop.f32.mrf.mxu1 }
 0x138   :  { %v1624_v18 = vadd.f32 %v1623_v7, %v1610_v16  ;;  %v4563_v16 = vor.u32 %v5598_v5, %v4562_v4  ;;  %v4542_v7 = vld [vmem:[#allocation8 + $0x48] sm:$0xf]  ;;  %v5274_v4 = vld [vmem:[#allocation10 + $0x540] sm:$0xf] }
 0x139   :  { %v5780_v5 = vld [vmem:[#allocation10 + $0x55c] sm:$0xf0] }
 0x13a   :  { %2133 = vmatpush.bf16.msrb.mxu1 %v4563_v16  ;;  %v4795_v16 = vor.u32 %v5660_v9, %v4794_v6  ;;  %v5114_v6 = vld [vmem:[#allocation10 + $0x400] sm:$0xf] }
 0x13c   :  { %3302 = vmatpush.bf16.msrb.mxu2 %v4795_v16  ;;  %v5740_v16 = vld [vmem:[#allocation10 + $0x41c] sm:$0xf0] }
 0x13e   :  { %v1636_v8 = vpop.f32.mrf.mxu2  ;;  %v1612_v11 = vpop.f32.mrf.mxu0 }
 0x13f   :  { %v1649_v10 = vpop.f32.mrf.mxu3  ;;  %v1625_v13 = vpop.f32.mrf.mxu1  ;;  %v1637_v19 = vadd.f32 %v1636_v8, %v1624_v18  ;;  %v5593_v8 = vld [vmem:[#allocation8 + $0x4c] sm:$0xf]  ;;  %v4550_v11 = vld [vmem:[#allocation8 + $0x50] sm:$0xf] }
 0x140   :  { %v4543_v13 = vor.u32 %v5594_v17, %v4542_v7  ;;  %v4530_v18 = vld [vmem:[#allocation8 + $0x30] sm:$0xf]  ;;  %v5656_v7 = vld [vmem:[#allocation10 + $0x184] sm:$0xf] }
 0x141   :  { %v1650_v20 = vadd.f32 %v1649_v10, %v1637_v19  ;;  %v4544_v10 = vld [vmem:[#allocation8 + $0x54] sm:$0xf0]  ;;  %v5591_v19 = vld [vmem:[#allocation8 + $0x38] sm:$0xf0]  ;;  %v4796_v17 = vld [vmem:[#allocation10 + $0x1a0] sm:$0xf0] }
 0x142   :  { %2108 = vmatpush.bf16.msra.mxu3 %v4543_v13  ;;  %v5275_v13 = vor.u32 %v5780_v5, %v5274_v4  ;;  %v4858_v4 = vld [vmem:[#allocation10 + $0x200] sm:$0xf] }
 0x143   :  { %v5676_v5 = vld [vmem:[#allocation10 + $0x21c] sm:$0xf0] }
 0x146   :  { %v1638_v14 = vpop.f32.mrf.mxu2 }
 0x147   :  { %v1651_v15 = vpop.f32.mrf.mxu3  ;;  %v4547_v14 = vor.u32 %v5593_v8, %v4544_v10  ;;  %v5019_v8 = vor.u32 %v5716_v3, %v5018_v2  ;;  %v4799_v10 = vor.u32 %v5656_v7, %v4796_v17  ;;  %v5147_v3 = vor.u32 %v5748_v58, %v5146_v57  ;;  %v5792_v7 = vld [vmem:[#allocation10 + $0x5c4] sm:$0xf]  ;;  %v4738_v58 = vld [vmem:[#allocation10 + $0x108] sm:$0xf] }
 0x148   :  { %v4551_v15 = vor.u32 %v5595_v12, %v4550_v11  ;;  %v4986_v11 = vld [vmem:[#allocation10 + $0x300] sm:$0xf]  ;;  %v5340_v17 = vld [vmem:[#allocation10 + $0x5e0] sm:$0xf0] }
 0x149   :  { %2121 = vmatpush.bf16.msrb.mxu0 %v4547_v14  ;;  %v5708_v12 = vld [vmem:[#allocation10 + $0x31c] sm:$0xf0]  ;;  %v5244_v57 = vld [vmem:[#allocation10 + $0x520] sm:$0xf0] }
 0x14a   :  { %2134 = vmatpush.bf16.msrb.mxu1 %v4551_v15  ;;  %v4762_v14 = vld [vmem:[#allocation10 + $0x140] sm:$0xf] }
 0x14b   :  { %v5652_v15 = vld [vmem:[#allocation10 + $0x15c] sm:$0xf0] }
 0x156   :  { %v1662_v37 = vpop.f32.mrf.mxu0 }
 0x157   :  { %v1675_v21 = vpop.f32.mrf.mxu1  ;;  %v1663_v22 = vadd.f32 %v1662_v37, %v1650_v20  ;;  %v5590_v20 = vld [vmem:[#allocation8 + $0x34] sm:$0xf]  ;;  %v4532_v37 = vld [vmem:[#allocation8 + $0x3c] sm:$0xf0] }
 0x159   :  { %v1676_v40 = vadd.f32 %v1675_v21, %v1663_v22  ;;  %v4538_v21 = vld [vmem:[#allocation8 + $0x38] sm:$0xf]  ;;  %v5592_v22 = vld [vmem:[#allocation8 + $0x40] sm:$0xf0] }
 0x15e   :  { %v1688_v23 = vpop.f32.mrf.mxu2  ;;  %v1664_v24 = vpop.f32.mrf.mxu0 }
 0x15f   :  { %v1689_v34 = vadd.f32 %v1688_v23, %v1676_v40  ;;  %v1701_v38 = vpop.f32.mrf.mxu3  ;;  %v1677_v25 = vpop.f32.mrf.mxu1  ;;  %v4531_v40 = vor.u32 %v5591_v19, %v4530_v18  ;;  %v4535_v23 = vor.u32 %v5590_v20, %v4532_v37  ;;  %v5648_v18 = vld [vmem:[#allocation10 + $0x144] sm:$0xf]  ;;  %v5242_v19 = vld [vmem:[#allocation10 + $0x500] sm:$0xf] }
 0x160   :  { %v5772_v20 = vld [vmem:[#allocation10 + $0x51c] sm:$0xf0]  ;;  %v4764_v37 = vld [vmem:[#allocation10 + $0x160] sm:$0xf0] }
 0x161   :  { %v1702_v26 = vadd.f32 %v1701_v38, %v1689_v34  ;;  %v4539_v34 = vor.u32 %v5592_v22, %v4538_v21  ;;  %2109 = vmatpush.bf16.msra.mxu3 %v4531_v40  ;;  %2122 = vmatpush.bf16.msrb.mxu0 %v4535_v23  ;;  %v4763_v21 = vor.u32 %v5652_v15, %v4762_v14  ;;  %v4730_v40 = vld [vmem:[#allocation10 + $0x100] sm:$0xf] }
 0x162   :  { %v4767_v22 = vor.u32 %v5648_v18, %v4764_v37  ;;  %v4987_v23 = vor.u32 %v5708_v12, %v4986_v11  ;;  %v5612_v15 = vld [vmem:[#allocation10 + $0x1c] sm:$0xf0]  ;;  %v5608_v18 = vld [vmem:[#allocation10 + $0x4] sm:$0xf] }
 0x163   :  { %v1707_v27 = vmax.f32 %v1702_v26, 0.0  ;;  %2135 = vmatpush.bf16.msrb.mxu1 %v4539_v34  ;;  %v4518_v26 = vld [vmem:[#allocation8 + $0x18] sm:$0xf]  ;;  %v5644_v34 = vld [vmem:[#allocation10 + $0x11c] sm:$0xf0]  ;;  %3303 = vmatpush.bf16.msrb.mxu2 %v4763_v21 }
 0x164   :  { %v5728_v37 = vld [vmem:[#allocation10 + $0x3c4] sm:$0xf] }
 0x165   :  { %v1710_v28 = vpack.c.bf16 %v1707_v27, %v1707_v27  ;;  %v5588_v27 = vld [vmem:[#allocation8 + $0x20] sm:$0xf0] }
 0x166   :  { %v1690_v29 = vpop.f32.mrf.mxu2  ;;  %v5084_v21 = vld [vmem:[#allocation10 + $0x3e0] sm:$0xf0] }
 0x167   :  { %v1703_v30 = vpop.f32.mrf.mxu3  ;;  %1937 = vmatmul.bf16.vlgmr.msra.gmra.mxu2 %v1710_v28  ;;  %v5587_v28 = vld [vmem:[#allocation8 + $0x1c] sm:$0xf]  ;;  %v4519_v29 = vor.u32 %v5588_v27, %v4518_v26  ;;  %v5243_v26 = vor.u32 %v5772_v20, %v5242_v19  ;;  %v4954_v27 = vld [vmem:[#allocation10 + $0x2c0] sm:$0xf]  ;;  %v4859_v19 = vor.u32 %v5676_v5, %v4858_v4  ;;  %v4604_v20 = vld [vmem:[#allocation10 + $0x20] sm:$0xf0] }
 0x168   :  { %v4520_v30 = vld [vmem:[#allocation8 + $0x24] sm:$0xf0]  ;;  %v5760_v4 = vld [vmem:[#allocation10 + $0x4c4] sm:$0xf] }
 0x169   :  { %v4523_v35 = vor.u32 %v5587_v28, %v4520_v30  ;;  %2110 = vmatpush.bf16.msra.mxu3 %v4519_v29  ;;  %v5700_v28 = vld [vmem:[#allocation10 + $0x2dc] sm:$0xf0]  ;;  %v5212_v5 = vld [vmem:[#allocation10 + $0x4e0] sm:$0xf0] }
 0x16a   :  { %v5210_v29 = vld [vmem:[#allocation10 + $0x4c0] sm:$0xf] }
 0x16b   :  { %2123 = vmatpush.bf16.msrb.mxu0 %v4523_v35  ;;  %v5764_v30 = vld [vmem:[#allocation10 + $0x4dc] sm:$0xf0] }
 0x16c   :  { %v4698_v35 = vld [vmem:[#allocation10 + $0xc0] sm:$0xf] }
 0x16d   :  { %2111 = vmatpush.bf16.msra.mxu3 %v4507_v43  ;;  %v5211_v43 = vor.u32 %v5764_v30, %v5210_v29  ;;  %v5661_v29 = vld [vmem:[#allocation10 + $0x1a4] sm:$0xf0]  ;;  %v4607_v30 = vor.u32 %v5608_v18, %v4604_v20 }
 0x16e   :  { %v4674_v18 = vld [vmem:[#allocation10 + $0x88] sm:$0xf] }
 0x16f   :  { %2124 = vmatpush.bf16.msrb.mxu0 %v4511_v46  ;;  %v5756_v46 = vld [vmem:[#allocation10 + $0x49c] sm:$0xf0] }
 0x171   :  { %3314 = vmatpush.bf16.msrb.mxu3 %v5083_v51  ;;  %v5628_v51 = vld [vmem:[#allocation10 + $0x9c] sm:$0xf0] }
 0x173   :  { %3327 = vmatpush.bf16.msra.mxu0 %v5339_v55  ;;  %v4890_v55 = vld [vmem:[#allocation10 + $0x240] sm:$0xf] }
 0x174   :  { %v4891_v62 = vor.u32 %v5684_v56, %v4890_v55  ;;  %v5768_v56 = vld [vmem:[#allocation10 + $0x504] sm:$0xf] }
 0x175   :  { %3315 = vmatpush.bf16.msrb.mxu3 %v5051_v59  ;;  %v4667_v59 = vor.u32 %v5628_v51, %v4666_v49  ;;  %v5020_v51 = vld [vmem:[#allocation10 + $0x360] sm:$0xf0] }
 0x176   :  { %v6061_v31 = vpop.f32.mrf.mxu0 }
 0x177   :  { %3328 = vmatpush.bf16.msra.mxu0 %v5307_v0  ;;  %v5620_v0 = vld [vmem:[#allocation10 + $0x5c] sm:$0xf0] }
 0x178   :  { %v4635_v11 = vor.u32 %v5620_v0, %v4634_v61  ;;  %v4988_v0 = vld [vmem:[#allocation10 + $0x320] sm:$0xf0] }
 0x179   :  { %3316 = vmatpush.bf16.msrb.mxu3 %v5019_v8  ;;  %v4834_v8 = vld [vmem:[#allocation10 + $0x1c8] sm:$0xf] }
 0x17b   :  { %3329 = vmatpush.bf16.msra.mxu0 %v5275_v13  ;;  %v4602_v13 = vld [vmem:[#allocation10] sm:$0xf] }
 0x17d   :  { %3317 = vmatpush.bf16.msrb.mxu3 %v4987_v23  ;;  %v5090_v23 = vld [vmem:[#allocation10 + $0x3c8] sm:$0xf] }
 0x17e   :  { %v1914_v32 = vpop.f32.mrf.mxu0 }
 0x17f   :  { %v4526_v32 = vld [vmem:[#allocation8 + $0x20] sm:$0xf]  ;;  %3330 = vmatpush.bf16.msra.mxu0 %v5243_v26  ;;  %v5308_v26 = vld [vmem:[#allocation10 + $0x5a0] sm:$0xf0] }
 0x180   :  { %v4527_v36 = vor.u32 %v5589_v33, %v4526_v32  ;;  %v4731_v32 = vor.u32 %v5644_v34, %v4730_v40  ;;  %v5343_v40 = vor.u32 %v5792_v7, %v5340_v17  ;;  %v5733_v34 = vld [vmem:[#allocation10 + $0x3e4] sm:$0xf0]  ;;  %v5696_v17 = vld [vmem:[#allocation10 + $0x2c4] sm:$0xf] }
 0x182   :  { %2136 = vmatpush.bf16.msrb.mxu1 %v4527_v36  ;;  %v4955_v36 = vor.u32 %v5700_v28, %v4954_v27  ;;  %3304 = vmatpush.bf16.msrb.mxu2 %v4731_v32  ;;  %v4603_v27 = vor.u32 %v5612_v15, %v4602_v13  ;;  %v4802_v28 = vld [vmem:[#allocation10 + $0x188] sm:$0xf]  ;;  %v5087_v32 = vor.u32 %v5728_v37, %v5084_v21  ;;  %v5180_v15 = vld [vmem:[#allocation10 + $0x4a0] sm:$0xf0] }
 0x183   :  { %3331 = vmatpush.bf16.msra.mxu0 %v5211_v43  ;;  %v5725_v43 = vld [vmem:[#allocation10 + $0x3a4] sm:$0xf0] }
 0x184   :  { %3318 = vmatpush.bf16.msrb.mxu3 %v4955_v36  ;;  %v5720_v36 = vld [vmem:[#allocation10 + $0x384] sm:$0xf]  ;;  %v5059_v49 = vor.u32 %v5725_v43, %v5058_v42 }
 0x185   :  { %v5680_v43 = vld [vmem:[#allocation10 + $0x244] sm:$0xf] }
 0x1a4   :  { %v1925_v38 = vpop.f32.mrf.mxu1 }
 0x1a5   :  { %v6064_v24 = vadd.f32 %v1925_v38, %v6061_v31  ;;  %v4514_v31 = vld [vmem:[#allocation8 + $0x8] sm:$0xf]  ;;  %v5640_v38 = vld [vmem:[#allocation10 + $0x104] sm:$0xf] }
 0x1a6   :  { %v4515_v47 = vor.u32 %v5586_v45, %v4514_v31  ;;  %v5692_v31 = vld [vmem:[#allocation10 + $0x29c] sm:$0xf0] }
 0x1a7   :  { %v5178_v45 = vld [vmem:[#allocation10 + $0x480] sm:$0xf]  ;;  %v4923_v50 = vor.u32 %v5692_v31, %v4922_v44  ;;  %v4803_v44 = vor.u32 %v5661_v29, %v4802_v28  ;;  %v5776_v31 = vld [vmem:[#allocation10 + $0x544] sm:$0xf]  ;;  %v4930_v28 = vld [vmem:[#allocation10 + $0x288] sm:$0xf] }
 0x1a8   :  { %2137 = vmatpush.bf16.msrb.mxu1 %v4515_v47  ;;  %v4699_v47 = vor.u32 %v5636_v39, %v4698_v35  ;;  %v5179_v54 = vor.u32 %v5756_v46, %v5178_v45  ;;  %v5091_v35 = vor.u32 %v5733_v34, %v5090_v23  ;;  %v5052_v39 = vld [vmem:[#allocation10 + $0x3a0] sm:$0xf0]  ;;  %v4770_v46 = vld [vmem:[#allocation10 + $0x148] sm:$0xf] }
 0x1a9   :  { %3319 = vmatpush.bf16.msrb.mxu3 %v4923_v50  ;;  %v5276_v45 = vld [vmem:[#allocation10 + $0x560] sm:$0xf0]  ;;  %v4642_v23 = vld [vmem:[#allocation10 + $0x48] sm:$0xf] }
 0x1aa   :  { %3305 = vmatpush.bf16.msrb.mxu2 %v4699_v47  ;;  %3332 = vmatpush.bf16.msra.mxu0 %v5179_v54  ;;  %v5653_v47 = vld [vmem:[#allocation10 + $0x164] sm:$0xf0]  ;;  %v5712_v50 = vld [vmem:[#allocation10 + $0x344] sm:$0xf]  ;;  %v5279_v52 = vor.u32 %v5776_v31, %v5276_v45 }
 0x1ab   :  { %v5717_v54 = vld [vmem:[#allocation10 + $0x364] sm:$0xf0]  ;;  %v4771_v55 = vor.u32 %v5653_v47, %v4770_v46 }
 0x1ac   :  { %v1927_v25 = vpop.f32.mrf.mxu1  ;;  %3340 = vmatpush.bf16.msra.mxu1 %v4831_v63  ;;  %v4636_v63 = vld [vmem:[#allocation10 + $0x60] sm:$0xf0]  ;;  %v5027_v61 = vor.u32 %v5717_v54, %v5026_v53  ;;  %v4898_v31 = vld [vmem:[#allocation10 + $0x248] sm:$0xf]  ;;  %v5665_v54 = vld [vmem:[#allocation10 + $0x1cc] sm:$0xf] }
 0x1ad   :  { %v4732_v25 = vld [vmem:[#allocation10 + $0x120] sm:$0xf0]  ;;  %v4639_v12 = vor.u32 %v5616_v1, %v4636_v63  ;;  %3320 = vmatpush.bf16.msrb.mxu3 %v4891_v62  ;;  %v5247_v1 = vor.u32 %v5768_v56, %v5244_v57  ;;  %v4994_v63 = vld [vmem:[#allocation10 + $0x308] sm:$0xf]  ;;  %v5729_v57 = vld [vmem:[#allocation10 + $0x3cc] sm:$0xf] }
 0x1ae   :  { %v4735_v33 = vor.u32 %v5640_v38, %v4732_v25  ;;  %3306 = vmatpush.bf16.msrb.mxu2 %v4667_v59  ;;  %3333 = vmatpush.bf16.msra.mxu0 %v5147_v3  ;;  %v5784_v25 = vld [vmem:[#allocation10 + $0x584] sm:$0xf]  ;;  %v5645_v59 = vld [vmem:[#allocation10 + $0x124] sm:$0xf0] }
 0x1af   :  { %v5311_v41 = vor.u32 %v5784_v25, %v5308_v26  ;;  %v5704_v62 = vld [vmem:[#allocation10 + $0x304] sm:$0xf]  ;;  %v4739_v3 = vor.u32 %v5645_v59, %v4738_v58  ;;  %v5685_v46 = vld [vmem:[#allocation10 + $0x264] sm:$0xf0]  ;;  %v5092_v58 = vld [vmem:[#allocation10 + $0x3e8] sm:$0xf0] }
 0x1b0   :  { %3341 = vmatpush.bf16.msra.mxu1 %v4799_v10  ;;  %v5669_v10 = vld [vmem:[#allocation10 + $0x1e4] sm:$0xf0]  ;;  %v5688_v26 = vld [vmem:[#allocation10 + $0x284] sm:$0xf]  ;;  %v4899_v47 = vor.u32 %v5685_v46, %v4898_v31  ;;  %v4964_v46 = vld [vmem:[#allocation10 + $0x2e8] sm:$0xf0] }
 0x1b1   :  { %v4835_v38 = vor.u32 %v5669_v10, %v4834_v8  ;;  %3321 = vmatpush.bf16.msrb.mxu3 %v4859_v19  ;;  %v4956_v8 = vld [vmem:[#allocation10 + $0x2e0] sm:$0xf0]  ;;  %v5215_v10 = vor.u32 %v5760_v4, %v5212_v5  ;;  %v5629_v19 = vld [vmem:[#allocation10 + $0xa4] sm:$0xf0]  ;;  %v5721_v4 = vld [vmem:[#allocation10 + $0x38c] sm:$0xf] }
 0x1b2   :  { %3307 = vmatpush.bf16.msrb.mxu2 %v4635_v11  ;;  %v4962_v11 = vld [vmem:[#allocation10 + $0x2c8] sm:$0xf]  ;;  %v4959_v20 = vor.u32 %v5696_v17, %v4956_v8  ;;  %v5060_v5 = vld [vmem:[#allocation10 + $0x3a8] sm:$0xf0] }
 0x1b3   :  { %v5793_v17 = vld [vmem:[#allocation10 + $0x5cc] sm:$0xf] }
 0x1b4   :  { %3342 = vmatpush.bf16.msra.mxu1 %v4767_v22  ;;  %v5115_v22 = vor.u32 %v5740_v16, %v5114_v6  ;;  %v4706_v6 = vld [vmem:[#allocation10 + $0xc8] sm:$0xf]  ;;  %v4991_v16 = vor.u32 %v5704_v62, %v4988_v0  ;;  %v5348_v8 = vld [vmem:[#allocation10 + $0x5e8] sm:$0xf0] }
 0x1b6   :  { %3334 = vmatpush.bf16.msra.mxu0 %v5115_v22  ;;  %3308 = vmatpush.bf16.msrb.mxu2 %v4603_v27  ;;  %v5744_v22 = vld [vmem:[#allocation10 + $0x444] sm:$0xf] }
 0x1b7   :  { %v4924_v27 = vld [vmem:[#allocation10 + $0x2a0] sm:$0xf0] }
 0x1b8   :  { %3343 = vmatpush.bf16.msra.mxu1 %v4735_v33  ;;  %v4927_v29 = vor.u32 %v5688_v26, %v4924_v27  ;;  %v4740_v26 = vld [vmem:[#allocation10 + $0x128] sm:$0xf0] }
 0x1ba   :  { %3353 = vmatpush.bf16.msra.mxu2 %v5087_v32 }
 0x1bc   :  { %3344 = vmatpush.bf16.msra.mxu1 %v4703_v48  ;;  %v5055_v48 = vor.u32 %v5720_v36, %v5052_v39  ;;  %v4610_v36 = vld [vmem:[#allocation10 + $0x8] sm:$0xf] }
 0x1be   :  { %3354 = vmatpush.bf16.msra.mxu2 %v5055_v48  ;;  %v5672_v48 = vld [vmem:[#allocation10 + $0x204] sm:$0xf] }
 0x1c0   :  { %3345 = vmatpush.bf16.msra.mxu1 %v4671_v60  ;;  %v5023_v60 = vor.u32 %v5712_v50, %v5020_v51  ;;  %v4866_v51 = vld [vmem:[#allocation10 + $0x208] sm:$0xf] }
 0x1c2   :  { %3355 = vmatpush.bf16.msra.mxu2 %v5023_v60 }
 0x1c4   :  { %3346 = vmatpush.bf16.msra.mxu1 %v4639_v12  ;;  %v5701_v12 = vld [vmem:[#allocation10 + $0x2e4] sm:$0xf0] }
 0x1c5   :  { %v4963_v37 = vor.u32 %v5701_v12, %v4962_v11  ;;  %v5063_v11 = vor.u32 %v5721_v4, %v5060_v5  ;;  %v5649_v12 = vld [vmem:[#allocation10 + $0x14c] sm:$0xf] }
 0x1c6   :  { %3356 = vmatpush.bf16.msra.mxu2 %v4991_v16  ;;  %v5617_v4 = vld [vmem:[#allocation10 + $0x4c] sm:$0xf] }
 0x1c7   :  { %v4644_v5 = vld [vmem:[#allocation10 + $0x68] sm:$0xf0] }
 0x1c8   :  { %3347 = vmatpush.bf16.msra.mxu1 %v4607_v30  ;;  %v5693_v30 = vld [vmem:[#allocation10 + $0x2a4] sm:$0xf0] }
 0x1c9   :  { %v4931_v32 = vor.u32 %v5693_v30, %v4930_v28  ;;  %v5705_v28 = vld [vmem:[#allocation10 + $0x30c] sm:$0xf] }
 0x1ca   :  { %3357 = vmatpush.bf16.msra.mxu2 %v4959_v20 }
 0x1ce   :  { %3358 = vmatpush.bf16.msra.mxu2 %v4927_v29  ;;  %v4996_v29 = vld [vmem:[#allocation10 + $0x328] sm:$0xf0] }
 0x1ea   :  { %v1938_v2 = vpop.f32.mrf.mxu2 }
 0x1eb   :  { %v1939_v9 = vadd.f32 %v1938_v2, %v6064_v24  ;;  %v5709_v2 = vld [vmem:[#allocation10 + $0x324] sm:$0xf0] }
 0x1ec   :  { %v4995_v7 = vor.u32 %v5709_v2, %v4994_v63  ;;  %v5657_v63 = vld [vmem:[#allocation10 + $0x18c] sm:$0xf] }
 0x1ed   :  { %v1942_v14 = vmax.f32 %v1939_v9, 0.0  ;;  %v5637_v9 = vld [vmem:[#allocation10 + $0xe4] sm:$0xf0]  ;;  %v4804_v2 = vld [vmem:[#allocation10 + $0x1a8] sm:$0xf0] }
 0x1ee   :  { %v4707_v13 = vor.u32 %v5637_v9, %v4706_v6  ;;  %v5346_v6 = vld [vmem:[#allocation10 + $0x5c8] sm:$0xf] }
 0x1ef   :  { %v1943_v24 = vpack.c.bf16 %v1942_v14, %v1942_v14  ;;  %v5752_v14 = vld [vmem:[#allocation10 + $0x484] sm:$0xf]  ;;  %v5797_v9 = vld [vmem:[#allocation10 + $0x5e4] sm:$0xf0] }
 0x1f0   :  { %v5183_v21 = vor.u32 %v5752_v14, %v5180_v15  ;;  %v5347_v15 = vor.u32 %v5797_v9, %v5346_v6  ;;  %v5681_v9 = vld [vmem:[#allocation10 + $0x24c] sm:$0xf] }
 0x1f1   :  { %2112 = vmatmul.bf16.vlgmr.msra.gmra.mxu3 %v1943_v24  ;;  %2125 = vmatmul.bf16.vlgmr.msrb.gmra.mxu0 %v1943_v24 }
 0x1f2   :  { %2138 = vmatmul.bf16.vlgmr.msrb.gmra.mxu1 %v1943_v24  ;;  %v1940_v33 = vpop.f32.mrf.mxu2  ;;  %3366 = vmatpush.bf16.msra.mxu3 %v5343_v40  ;;  %v4675_v24 = vor.u32 %v5629_v19, %v4674_v18  ;;  %v5148_v40 = vld [vmem:[#allocation10 + $0x460] sm:$0xf0]  ;;  %v5713_v18 = vld [vmem:[#allocation10 + $0x34c] sm:$0xf] }
 0x1f3   :  { %3379 = vmatpush.bf16.msrb.mxu0 %v4835_v38  ;;  %3392 = vmatpush.bf16.msrb.mxu1 %v5091_v35  ;;  %v5151_v34 = vor.u32 %v5744_v22, %v5148_v40  ;;  %v5621_v38 = vld [vmem:[#allocation10 + $0x64] sm:$0xf0]  ;;  %v5736_v33 = vld [vmem:[#allocation10 + $0x404] sm:$0xf]  ;;  %v5028_v19 = vld [vmem:[#allocation10 + $0x368] sm:$0xf0] }
 0x1f4   :  { %v4643_v25 = vor.u32 %v5621_v38, %v4642_v23  ;;  %v5116_v35 = vld [vmem:[#allocation10 + $0x420] sm:$0xf0]  ;;  %v5789_v22 = vld [vmem:[#allocation10 + $0x5a4] sm:$0xf0]  ;;  %v5785_v23 = vld [vmem:[#allocation10 + $0x58c] sm:$0xf]  ;;  %v5031_v38 = vor.u32 %v5713_v18, %v5028_v19 }
 0x1f5   :  { %v5119_v39 = vor.u32 %v5736_v33, %v5116_v35  ;;  %v5781_v33 = vld [vmem:[#allocation10 + $0x564] sm:$0xf0]  ;;  %v5673_v18 = vld [vmem:[#allocation10 + $0x20c] sm:$0xf] }
 0x1f6   :  { %3367 = vmatpush.bf16.msra.mxu3 %v5311_v41  ;;  %v5613_v41 = vld [vmem:[#allocation10 + $0x24] sm:$0xf0]  ;;  %v4868_v19 = vld [vmem:[#allocation10 + $0x228] sm:$0xf0] }
 0x1f7   :  { %3380 = vmatpush.bf16.msrb.mxu0 %v4803_v44  ;;  %3393 = vmatpush.bf16.msrb.mxu1 %v5059_v49  ;;  %v4611_v42 = vor.u32 %v5613_v41, %v4610_v36  ;;  %v4892_v44 = vld [vmem:[#allocation10 + $0x260] sm:$0xf0]  ;;  %v5284_v41 = vld [vmem:[#allocation10 + $0x568] sm:$0xf0] }
 0x1f8   :  { %v4895_v45 = vor.u32 %v5680_v43, %v4892_v44  ;;  %v4860_v49 = vld [vmem:[#allocation10 + $0x220] sm:$0xf0]  ;;  %v5633_v43 = vld [vmem:[#allocation10 + $0xcc] sm:$0xf] }
 0x1f9   :  { %v4863_v50 = vor.u32 %v5672_v48, %v4860_v49  ;;  %v4708_v44 = vld [vmem:[#allocation10 + $0xe8] sm:$0xf0]  ;;  %v5250_v48 = vld [vmem:[#allocation10 + $0x508] sm:$0xf] }
 0x1fa   :  { %3368 = vmatpush.bf16.msra.mxu3 %v5279_v52  ;;  %3359 = vmatpush.bf16.msra.mxu2 %v4895_v45  ;;  %v5677_v52 = vld [vmem:[#allocation10 + $0x224] sm:$0xf0]  ;;  %v5697_v45 = vld [vmem:[#allocation10 + $0x2cc] sm:$0xf] }
 0x1fb   :  { %3381 = vmatpush.bf16.msrb.mxu0 %v4771_v55  ;;  %3394 = vmatpush.bf16.msrb.mxu1 %v5027_v61  ;;  %v4867_v53 = vor.u32 %v5677_v52, %v4866_v51  ;;  %v4836_v55 = vld [vmem:[#allocation10 + $0x1e8] sm:$0xf0]  ;;  %v5773_v49 = vld [vmem:[#allocation10 + $0x524] sm:$0xf0] }
 0x1fc   :  { %v4839_v62 = vor.u32 %v5665_v54, %v4836_v55  ;;  %v5769_v51 = vld [vmem:[#allocation10 + $0x50c] sm:$0xf] }
 0x1fd   :  { %v5252_v52 = vld [vmem:[#allocation10 + $0x528] sm:$0xf0] }
 0x1fe   :  { %3369 = vmatpush.bf16.msra.mxu3 %v5247_v1  ;;  %3360 = vmatpush.bf16.msra.mxu2 %v4863_v50  ;;  %v5095_v1 = vor.u32 %v5729_v57, %v5092_v58  ;;  %v4711_v50 = vor.u32 %v5633_v43, %v4708_v44  ;;  %v5625_v54 = vld [vmem:[#allocation10 + $0x8c] sm:$0xf]  ;;  %v5741_v43 = vld [vmem:[#allocation10 + $0x424] sm:$0xf0] }
 0x1ff   :  { %3382 = vmatpush.bf16.msrb.mxu0 %v4739_v3  ;;  %3395 = vmatpush.bf16.msrb.mxu1 %v4995_v7  ;;  %v4807_v7 = vor.u32 %v5657_v63, %v4804_v2  ;;  %v4676_v55 = vld [vmem:[#allocation10 + $0xa8] sm:$0xf0] }
 0x200   :  { %v5689_v57 = vld [vmem:[#allocation10 + $0x28c] sm:$0xf] }
 0x201   :  { %v4932_v58 = vld [vmem:[#allocation10 + $0x2a8] sm:$0xf0] }
 0x202   :  { %3370 = vmatpush.bf16.msra.mxu3 %v5215_v10  ;;  %v5220_v63 = vld [vmem:[#allocation10 + $0x4e8] sm:$0xf0]  ;;  %v4935_v2 = vor.u32 %v5689_v57, %v4932_v58  ;;  %v5782_v57 = vld [vmem:[#allocation10 + $0x56c] sm:$0xf0] }
 0x203   :  { %3383 = vmatpush.bf16.msrb.mxu0 %v4707_v13  ;;  %3396 = vmatpush.bf16.msrb.mxu1 %v4963_v37  ;;  %v4772_v13 = vld [vmem:[#allocation10 + $0x168] sm:$0xf0] }
 0x204   :  { %v4775_v40 = vor.u32 %v5649_v12, %v4772_v13  ;;  %v5188_v12 = vld [vmem:[#allocation10 + $0x4a8] sm:$0xf0] }
 0x205   :  { %v5609_v13 = vld [vmem:[#allocation10 + $0xc] sm:$0xf] }
 0x206   :  { %3371 = vmatpush.bf16.msra.mxu3 %v5183_v21  ;;  %v5351_v21 = vor.u32 %v5793_v17, %v5348_v8  ;;  %v5186_v17 = vld [vmem:[#allocation10 + $0x488] sm:$0xf]  ;;  %v5737_v44 = vld [vmem:[#allocation10 + $0x40c] sm:$0xf] }
 0x207   :  { %3384 = vmatpush.bf16.msrb.mxu0 %v4675_v24  ;;  %3397 = vmatpush.bf16.msrb.mxu1 %v4931_v32  ;;  %v5314_v24 = vld [vmem:[#allocation10 + $0x588] sm:$0xf] }
 0x208   :  { %v5315_v27 = vor.u32 %v5789_v22, %v5314_v24  ;;  %v5282_v32 = vld [vmem:[#allocation10 + $0x548] sm:$0xf]  ;;  %v5734_v24 = vld [vmem:[#allocation10 + $0x3ec] sm:$0xf0] }
 0x209   :  { %v5283_v31 = vor.u32 %v5781_v33, %v5282_v32  ;;  %v5757_v8 = vld [vmem:[#allocation10 + $0x4a4] sm:$0xf0]  ;;  %v5354_v22 = vld [vmem:[#allocation10 + $0x5d0] sm:$0xf] }
 0x20a   :  { %3372 = vmatpush.bf16.msra.mxu3 %v5151_v34  ;;  %v5316_v34 = vld [vmem:[#allocation10 + $0x5a8] sm:$0xf0] }
 0x20b   :  { %3385 = vmatpush.bf16.msrb.mxu0 %v4643_v25  ;;  %3398 = vmatpush.bf16.msrb.mxu1 %v4899_v47  ;;  %v5641_v25 = vld [vmem:[#allocation10 + $0x10c] sm:$0xf]  ;;  %v5319_v30 = vor.u32 %v5785_v23, %v5316_v34  ;;  %v5798_v23 = vld [vmem:[#allocation10 + $0x5ec] sm:$0xf0]  ;;  %v5154_v34 = vld [vmem:[#allocation10 + $0x448] sm:$0xf] }
 0x20c   :  { %v4743_v36 = vor.u32 %v5641_v25, %v4740_v26  ;;  %v5745_v26 = vld [vmem:[#allocation10 + $0x44c] sm:$0xf]  ;;  %v5355_v32 = vor.u32 %v5798_v23, %v5354_v22  ;;  %v4748_v23 = vld [vmem:[#allocation10 + $0x130] sm:$0xf0] }
 0x20e   :  { %3373 = vmatpush.bf16.msra.mxu3 %v5119_v39  ;;  %v5777_v39 = vld [vmem:[#allocation10 + $0x54c] sm:$0xf] }
 0x20f   :  { %3386 = vmatpush.bf16.msrb.mxu0 %v4611_v42  ;;  %3399 = vmatpush.bf16.msrb.mxu1 %v4867_v53  ;;  %v4999_v42 = vor.u32 %v5705_v28, %v4996_v29  ;;  %v5287_v47 = vor.u32 %v5777_v39, %v5284_v41  ;;  %v4967_v53 = vor.u32 %v5697_v45, %v4964_v46  ;;  %v5790_v39 = vld [vmem:[#allocation10 + $0x5ac] sm:$0xf0] }
 0x210   :  { %v4871_v28 = vor.u32 %v5673_v18, %v4868_v19  ;;  %v4842_v45 = vld [vmem:[#allocation10 + $0x1d0] sm:$0xf] }
 0x211   :  { %v5670_v46 = vld [vmem:[#allocation10 + $0x1ec] sm:$0xf0] }
 0x212   :  { %v5226_v18 = vld [vmem:[#allocation10 + $0x4d0] sm:$0xf] }
 0x213   :  { %v5766_v19 = vld [vmem:[#allocation10 + $0x4ec] sm:$0xf0] }
 0x26e   :  { %v2126_v56 = vpop.f32.mrf.mxu0 }
 0x26f   :  { %v2144_v59 = vmax.f32 %v2126_v56, 0.0  ;;  %v2139_v60 = vpop.f32.mrf.mxu1  ;;  %v5251_v56 = vor.u32 %v5773_v49, %v5250_v48  ;;  %v5666_v48 = vld [vmem:[#allocation10 + $0x1d4] sm:$0xf] }
 0x270   :  { %v2145_v61 = vmax.f32 %v2139_v60, 0.0  ;;  %v5218_v60 = vld [vmem:[#allocation10 + $0x4c8] sm:$0xf]  ;;  %v4844_v49 = vld [vmem:[#allocation10 + $0x1f0] sm:$0xf0] }
 0x271   :  { %v6067_v0 = vpack.c.bf16 %v2144_v59, %v2144_v59  ;;  %v5255_v59 = vor.u32 %v5769_v51, %v5252_v52  ;;  %v5034_v52 = vld [vmem:[#allocation10 + $0x350] sm:$0xf]  ;;  %v4847_v58 = vor.u32 %v5666_v48, %v4844_v49  ;;  %v5626_v49 = vld [vmem:[#allocation10 + $0x94] sm:$0xf] }
 0x272   :  { %v6069_v3 = vpack.c.bf16 %v2145_v61, %v2145_v61  ;;  %v5765_v61 = vld [vmem:[#allocation10 + $0x4e4] sm:$0xf0] }
 0x273   :  { %3322 = vmatmul.bf16.vlgmr.msrb.gmra.mxu3 %v6067_v0  ;;  %v5219_v6 = vor.u32 %v5765_v61, %v5218_v60  ;;  %v5662_v60 = vld [vmem:[#allocation10 + $0x1ac] sm:$0xf0] }
 0x274   :  { %3335 = vmatmul.bf16.vlgmr.msra.gmra.mxu0 %v6069_v3  ;;  %3418 = vmatpush.bf16.msrb.mxu3 %v4839_v62  ;;  %v2113_v16 = vpop.f32.mrf.mxu3  ;;  %v4679_v62 = vor.u32 %v5625_v54, %v4676_v55  ;;  %v4843_v55 = vor.u32 %v5670_v46, %v4842_v45  ;;  %v4682_v46 = vld [vmem:[#allocation10 + $0x90] sm:$0xf] }
 0x275   :  { %3431 = vmatpush.bf16.msra.mxu0 %v5095_v1  ;;  %v2143_v10 = vmax.f32 %v2113_v16, 0.0  ;;  %v5761_v1 = vld [vmem:[#allocation10 + $0x4cc] sm:$0xf] }
 0x276   :  { %v2128_v14 = vpop.f32.mrf.mxu0  ;;  %v4900_v16 = vld [vmem:[#allocation10 + $0x268] sm:$0xf0] }
 0x277   :  { %v6073_v20 = vpack.c.bf16 %v2143_v10, %v2143_v10  ;;  %v2141_v37 = vpop.f32.mrf.mxu1  ;;  %v4647_v10 = vor.u32 %v5617_v4, %v4644_v5  ;;  %v4903_v14 = vor.u32 %v5681_v9, %v4900_v16  ;;  %v5710_v4 = vld [vmem:[#allocation10 + $0x32c] sm:$0xf0] }
 0x278   :  { %3419 = vmatpush.bf16.msrb.mxu3 %v4807_v7  ;;  %v5223_v7 = vor.u32 %v5761_v1, %v5220_v63  ;;  %v5187_v37 = vor.u32 %v5757_v8, %v5186_v17  ;;  %v4812_v1 = vld [vmem:[#allocation10 + $0x1b0] sm:$0xf0]  ;;  %v5774_v9 = vld [vmem:[#allocation10 + $0x52c] sm:$0xf0] }
 0x279   :  { %3432 = vmatpush.bf16.msra.mxu0 %v5063_v11  ;;  %3309 = vmatmul.bf16.vlgmr.msrb.gmra.mxu2 %v6073_v20  ;;  %v5753_v11 = vld [vmem:[#allocation10 + $0x48c] sm:$0xf]  ;;  %v5654_v17 = vld [vmem:[#allocation10 + $0x16c] sm:$0xf0] }
 0x27a   :  { %3348 = vmatmul.bf16.vlgmr.msra.gmra.mxu1 %v6073_v20  ;;  %3405 = vmatpush.bf16.msrb.mxu2 %v5347_v15  ;;  %v4612_v15 = vld [vmem:[#allocation10 + $0x28] sm:$0xf0] }
 0x27b   :  { %3444 = vmatpush.bf16.msra.mxu1 %v5351_v21  ;;  %v5098_v21 = vld [vmem:[#allocation10 + $0x3d0] sm:$0xf]  ;;  %v4615_v25 = vor.u32 %v5609_v13, %v4612_v15 }
 0x27c   :  { %3420 = vmatpush.bf16.msrb.mxu3 %v4775_v40  ;;  %v2115_v35 = vpop.f32.mrf.mxu3  ;;  %v5191_v40 = vor.u32 %v5753_v11, %v5188_v12  ;;  %v5099_v29 = vor.u32 %v5734_v24, %v5098_v21  ;;  %v4780_v11 = vld [vmem:[#allocation10 + $0x170] sm:$0xf0]  ;;  %v4970_v13 = vld [vmem:[#allocation10 + $0x2d0] sm:$0xf] }
 0x27d   :  { %3433 = vmatpush.bf16.msra.mxu0 %v5031_v38  ;;  %v5749_v38 = vld [vmem:[#allocation10 + $0x464] sm:$0xf0]  ;;  %v5726_v35 = vld [vmem:[#allocation10 + $0x3ac] sm:$0xf0] }
 0x27e   :  { %3406 = vmatpush.bf16.msrb.mxu2 %v5315_v27  ;;  %v5156_v27 = vld [vmem:[#allocation10 + $0x468] sm:$0xf0]  ;;  %v5155_v33 = vor.u32 %v5749_v38, %v5154_v34  ;;  %v4746_v21 = vld [vmem:[#allocation10 + $0x110] sm:$0xf]  ;;  %v5227_v34 = vor.u32 %v5766_v19, %v5226_v18  ;;  %v5730_v18 = vld [vmem:[#allocation10 + $0x3d4] sm:$0xf] }
 0x27f   :  { %3445 = vmatpush.bf16.msra.mxu1 %v5319_v30  ;;  %v5066_v30 = vld [vmem:[#allocation10 + $0x390] sm:$0xf]  ;;  %v5159_v41 = vor.u32 %v5745_v26, %v5156_v27  ;;  %v5100_v19 = vld [vmem:[#allocation10 + $0x3f0] sm:$0xf0] }
 0x280   :  { %3421 = vmatpush.bf16.msrb.mxu3 %v4743_v36  ;;  %v5322_v36 = vld [vmem:[#allocation10 + $0x590] sm:$0xf] }
 0x281   :  { %3434 = vmatpush.bf16.msra.mxu0 %v4999_v42  ;;  %v5122_v42 = vld [vmem:[#allocation10 + $0x408] sm:$0xf]  ;;  %v5646_v24 = vld [vmem:[#allocation10 + $0x12c] sm:$0xf0] }
 0x282   :  { %3407 = vmatpush.bf16.msrb.mxu2 %v5283_v31  ;;  %v5124_v31 = vld [vmem:[#allocation10 + $0x428] sm:$0xf0]  ;;  %v5123_v51 = vor.u32 %v5741_v43, %v5122_v42  ;;  %v4938_v38 = vld [vmem:[#allocation10 + $0x290] sm:$0xf]  ;;  %v4747_v26 = vor.u32 %v5646_v24, %v4746_v21  ;;  %v5106_v21 = vld [vmem:[#allocation10 + $0x3d8] sm:$0xf] }
 0x283   :  { %3446 = vmatpush.bf16.msra.mxu1 %v5287_v47  ;;  %3374 = vmatmul.bf16.vlgmr.msra.gmra.mxu3 %v6069_v3  ;;  %v5067_v47 = vor.u32 %v5726_v35, %v5066_v30  ;;  %v5127_v54 = vor.u32 %v5737_v44, %v5124_v31  ;;  %v5194_v27 = vld [vmem:[#allocation10 + $0x490] sm:$0xf]  ;;  %v5634_v35 = vld [vmem:[#allocation10 + $0xd4] sm:$0xf]  ;;  %v5735_v24 = vld [vmem:[#allocation10 + $0x3f4] sm:$0xf0] }
 0x284   :  { %3387 = vmatmul.bf16.vlgmr.msrb.gmra.mxu0 %v6073_v20  ;;  %3422 = vmatpush.bf16.msrb.mxu3 %v4711_v50  ;;  %v5323_v50 = vor.u32 %v5790_v39, %v5322_v36  ;;  %v4714_v30 = vld [vmem:[#allocation10 + $0xd0] sm:$0xf]  ;;  %v4716_v36 = vld [vmem:[#allocation10 + $0xf0] sm:$0xf0] }
 0x285   :  { %3435 = vmatpush.bf16.msra.mxu0 %v4967_v53  ;;  %v5718_v53 = vld [vmem:[#allocation10 + $0x36c] sm:$0xf0]  ;;  %v4719_v45 = vor.u32 %v5634_v35, %v4716_v36  ;;  %v5727_v35 = vld [vmem:[#allocation10 + $0x3b4] sm:$0xf0] }
 0x286   :  { %3408 = vmatpush.bf16.msrb.mxu2 %v5251_v56  ;;  %v5290_v56 = vld [vmem:[#allocation10 + $0x550] sm:$0xf]  ;;  %v5035_v61 = vor.u32 %v5718_v53, %v5034_v52 }
 0x287   :  { %3447 = vmatpush.bf16.msra.mxu1 %v5255_v59  ;;  %v4810_v59 = vld [vmem:[#allocation10 + $0x190] sm:$0xf]  ;;  %v5291_v63 = vor.u32 %v5782_v57, %v5290_v56  ;;  %v5794_v57 = vld [vmem:[#allocation10 + $0x5d4] sm:$0xf] }
 0x288   :  { %3423 = vmatpush.bf16.msrb.mxu3 %v4679_v62  ;;  %v5658_v62 = vld [vmem:[#allocation10 + $0x194] sm:$0xf]  ;;  %v4811_v5 = vor.u32 %v5662_v60, %v4810_v59  ;;  %v5686_v42 = vld [vmem:[#allocation10 + $0x26c] sm:$0xf0]  ;;  %v4850_v59 = vld [vmem:[#allocation10 + $0x1d8] sm:$0xf] }
 0x289   :  { %3436 = vmatpush.bf16.msra.mxu0 %v4935_v2  ;;  %3361 = vmatmul.bf16.vlgmr.msra.gmra.mxu2 %v6067_v0  ;;  %v5002_v2 = vld [vmem:[#allocation10 + $0x310] sm:$0xf]  ;;  %v4815_v16 = vor.u32 %v5658_v62, %v4812_v1 }
 0x28a   :  { %3400 = vmatmul.bf16.vlgmr.msrb.gmra.mxu1 %v6067_v0  ;;  %3409 = vmatpush.bf16.msrb.mxu2 %v5219_v6  ;;  %v5258_v6 = vld [vmem:[#allocation10 + $0x510] sm:$0xf]  ;;  %v5003_v8 = vor.u32 %v5710_v4, %v5002_v2  ;;  %v5618_v2 = vld [vmem:[#allocation10 + $0x54] sm:$0xf] }
 0x28b   :  { %3448 = vmatpush.bf16.msra.mxu1 %v5223_v7  ;;  %v4778_v7 = vld [vmem:[#allocation10 + $0x150] sm:$0xf]  ;;  %v5259_v12 = vor.u32 %v5774_v9, %v5258_v6  ;;  %v4652_v4 = vld [vmem:[#allocation10 + $0x70] sm:$0xf0] }
 0x28c   :  { %3424 = vmatpush.bf16.msrb.mxu3 %v4647_v10  ;;  %v5650_v10 = vld [vmem:[#allocation10 + $0x154] sm:$0xf]  ;;  %v4779_v15 = vor.u32 %v5654_v17, %v4778_v7  ;;  %v5162_v44 = vld [vmem:[#allocation10 + $0x450] sm:$0xf] }
 0x28d   :  { %3437 = vmatpush.bf16.msra.mxu0 %v4903_v14  ;;  %v5702_v14 = vld [vmem:[#allocation10 + $0x2ec] sm:$0xf0]  ;;  %v5786_v9 = vld [vmem:[#allocation10 + $0x594] sm:$0xf] }
 0x28e   :  { %3410 = vmatpush.bf16.msrb.mxu2 %v5187_v37  ;;  %v4783_v37 = vor.u32 %v5650_v10, %v4780_v11  ;;  %v4971_v22 = vor.u32 %v5702_v14, %v4970_v13  ;;  %v5750_v31 = vld [vmem:[#allocation10 + $0x46c] sm:$0xf0]  ;;  %v5324_v17 = vld [vmem:[#allocation10 + $0x5b0] sm:$0xf0]  ;;  %v5663_v10 = vld [vmem:[#allocation10 + $0x1b4] sm:$0xf0]  ;;  %v4655_v11 = vor.u32 %v5618_v2, %v4652_v4 }
 0x28f   :  { %3449 = vmatpush.bf16.msra.mxu1 %v5191_v40  ;;  %v5642_v40 = vld [vmem:[#allocation10 + $0x114] sm:$0xf]  ;;  %v5163_v52 = vor.u32 %v5750_v31, %v5162_v44  ;;  %v5678_v53 = vld [vmem:[#allocation10 + $0x22c] sm:$0xf0]  ;;  %v5647_v44 = vld [vmem:[#allocation10 + $0x134] sm:$0xf0] }
 0x290   :  { %3425 = vmatpush.bf16.msrb.mxu3 %v4615_v25  ;;  %v5694_v25 = vld [vmem:[#allocation10 + $0x2ac] sm:$0xf0]  ;;  %v5610_v14 = vld [vmem:[#allocation10 + $0x14] sm:$0xf]  ;;  %v4690_v4 = vld [vmem:[#allocation10 + $0x98] sm:$0xf] }
 0x291   :  { %3438 = vmatpush.bf16.msra.mxu0 %v4871_v28  ;;  %v5758_v28 = vld [vmem:[#allocation10 + $0x4ac] sm:$0xf0] }
 0x292   :  { %3411 = vmatpush.bf16.msrb.mxu2 %v5155_v33  ;;  %v4939_v33 = vor.u32 %v5694_v25, %v4938_v38  ;;  %v5195_v39 = vor.u32 %v5758_v28, %v5194_v27  ;;  %v4650_v62 = vld [vmem:[#allocation10 + $0x50] sm:$0xf]  ;;  %v5103_v25 = vor.u32 %v5730_v18, %v5100_v19  ;;  %v5655_v27 = vld [vmem:[#allocation10 + $0x174] sm:$0xf0]  ;;  %v5107_v28 = vor.u32 %v5735_v24, %v5106_v21  ;;  %v5690_v19 = vld [vmem:[#allocation10 + $0x294] sm:$0xf] }
 0x293   :  { %3450 = vmatpush.bf16.msra.mxu1 %v5159_v41  ;;  %3426 = vmatmul.bf16.vlgmr.msrb.gmra.mxu3 %v6073_v20  ;;  %v4906_v41 = vld [vmem:[#allocation10 + $0x250] sm:$0xf]  ;;  %v4946_v24 = vld [vmem:[#allocation10 + $0x298] sm:$0xf] }
 0x294   :  { %3470 = vmatpush.bf16.msra.mxu3 %v5099_v29  ;;  %3439 = vmatmul.bf16.vlgmr.msra.gmra.mxu0 %v6067_v0  ;;  %v4751_v29 = vor.u32 %v5642_v40, %v4748_v23  ;;  %v4907_v48 = vor.u32 %v5686_v42, %v4906_v41  ;;  %v5622_v1 = vld [vmem:[#allocation10 + $0x6c] sm:$0xf0]  ;;  %v5778_v23 = vld [vmem:[#allocation10 + $0x554] sm:$0xf] }
 0x295   :  { %3483 = vmatpush.bf16.msrb.mxu0 %v5355_v32  ;;  %v5638_v32 = vld [vmem:[#allocation10 + $0xec] sm:$0xf0]  ;;  %v4651_v7 = vor.u32 %v5622_v1, %v4650_v62  ;;  %v5260_v41 = vld [vmem:[#allocation10 + $0x530] sm:$0xf0] }
 0x296   :  { %3412 = vmatpush.bf16.msrb.mxu2 %v5123_v51  ;;  %v4715_v43 = vor.u32 %v5638_v32, %v4714_v30  ;;  %v4874_v51 = vld [vmem:[#allocation10 + $0x210] sm:$0xf]  ;;  %v5068_v30 = vld [vmem:[#allocation10 + $0x3b0] sm:$0xf0] }
 0x297   :  { %3451 = vmatpush.bf16.msra.mxu1 %v5127_v54  ;;  %v5130_v54 = vld [vmem:[#allocation10 + $0x410] sm:$0xf]  ;;  %v5754_v1 = vld [vmem:[#allocation10 + $0x494] sm:$0xf] }
 0x298   :  { %3471 = vmatpush.bf16.msra.mxu3 %v5067_v47  ;;  %v5630_v47 = vld [vmem:[#allocation10 + $0xac] sm:$0xf0] }
 0x299   :  { %3484 = vmatpush.bf16.msrb.mxu0 %v5323_v50  ;;  %3413 = vmatmul.bf16.vlgmr.msrb.gmra.mxu2 %v6069_v3  ;;  %v4684_v50 = vld [vmem:[#allocation10 + $0xb0] sm:$0xf0]  ;;  %v4683_v56 = vor.u32 %v5630_v47, %v4682_v46  ;;  %v5614_v13 = vld [vmem:[#allocation10 + $0x2c] sm:$0xf0] }
 0x29a   :  { %3457 = vmatpush.bf16.msra.mxu2 %v4843_v55  ;;  %3452 = vmatmul.bf16.vlgmr.msra.gmra.mxu1 %v6069_v3  ;;  %v5742_v55 = vld [vmem:[#allocation10 + $0x42c] sm:$0xf0]  ;;  %v4687_v60 = vor.u32 %v5626_v49, %v4684_v50  ;;  %v5036_v46 = vld [vmem:[#allocation10 + $0x370] sm:$0xf0]  ;;  %v5719_v49 = vld [vmem:[#allocation10 + $0x374] sm:$0xf0] }
 0x29b   :  { %3496 = vmatpush.bf16.msrb.mxu1 %v4847_v58  ;;  %v5356_v58 = vld [vmem:[#allocation10 + $0x5f0] sm:$0xf0] }
 0x29c   :  { %3472 = vmatpush.bf16.msra.mxu3 %v5035_v61  ;;  %v5671_v61 = vld [vmem:[#allocation10 + $0x1f4] sm:$0xf0]  ;;  %v5359_v6 = vor.u32 %v5794_v57, %v5356_v58  ;;  %v5706_v57 = vld [vmem:[#allocation10 + $0x314] sm:$0xf] }
 0x29d   :  { %3485 = vmatpush.bf16.msrb.mxu0 %v5291_v63  ;;  %v4875_v63 = vor.u32 %v5678_v53, %v4874_v51  ;;  %v5762_v51 = vld [vmem:[#allocation10 + $0x4d4] sm:$0xf] }
 0x29e   :  { %3458 = vmatpush.bf16.msra.mxu2 %v4811_v5  ;;  %v5131_v5 = vor.u32 %v5742_v55, %v5130_v54  ;;  %v4722_v54 = vld [vmem:[#allocation10 + $0xd8] sm:$0xf]  ;;  %v5004_v58 = vld [vmem:[#allocation10 + $0x330] sm:$0xf0] }
 0x29f   :  { %3497 = vmatpush.bf16.msrb.mxu1 %v4815_v16  ;;  %v4851_v16 = vor.u32 %v5671_v61, %v4850_v59  ;;  %v5639_v55 = vld [vmem:[#allocation10 + $0xf4] sm:$0xf0]  ;;  %v5007_v2 = vor.u32 %v5706_v57, %v5004_v58  ;;  %v5795_v57 = vld [vmem:[#allocation10 + $0x5dc] sm:$0xf] }
 0x2a0   :  { %3473 = vmatpush.bf16.msra.mxu3 %v5003_v8  ;;  %v4818_v8 = vld [vmem:[#allocation10 + $0x198] sm:$0xf]  ;;  %v4723_v62 = vor.u32 %v5639_v55, %v4722_v54  ;;  %v5364_v58 = vld [vmem:[#allocation10 + $0x5f8] sm:$0xf0] }
 0x2a1   :  { %3486 = vmatpush.bf16.msrb.mxu0 %v5259_v12  ;;  %v4618_v12 = vld [vmem:[#allocation10 + $0x10] sm:$0xf]  ;;  %v5711_v61 = vld [vmem:[#allocation10 + $0x334] sm:$0xf0] }
 0x2a2   :  { %3459 = vmatpush.bf16.msra.mxu2 %v4779_v15  ;;  %v4620_v15 = vld [vmem:[#allocation10 + $0x30] sm:$0xf0]  ;;  %v4619_v40 = vor.u32 %v5614_v13, %v4618_v12  ;;  %v5362_v54 = vld [vmem:[#allocation10 + $0x5d8] sm:$0xf] }
 0x2a3   :  { %3498 = vmatpush.bf16.msrb.mxu1 %v4783_v37  ;;  %v5327_v37 = vor.u32 %v5786_v9, %v5324_v17  ;;  %v4623_v38 = vor.u32 %v5610_v14, %v4620_v15  ;;  %v5698_v9 = vld [vmem:[#allocation10 + $0x2d4] sm:$0xf]  ;;  %v4978_v17 = vld [vmem:[#allocation10 + $0x2d8] sm:$0xf] }
 0x2a4   :  { %3474 = vmatpush.bf16.msra.mxu3 %v4971_v22  ;;  %v4819_v22 = vor.u32 %v5663_v10, %v4818_v8  ;;  %v5703_v8 = vld [vmem:[#allocation10 + $0x2f4] sm:$0xf0]  ;;  %v5164_v12 = vld [vmem:[#allocation10 + $0x470] sm:$0xf0] }
 0x2a5   :  { %3487 = vmatpush.bf16.msrb.mxu0 %v5227_v34  ;;  %v5292_v34 = vld [vmem:[#allocation10 + $0x570] sm:$0xf0]  ;;  %v4658_v14 = vld [vmem:[#allocation10 + $0x58] sm:$0xf]  ;;  %v4979_v18 = vor.u32 %v5703_v8, %v4978_v17  ;;  %v5332_v17 = vld [vmem:[#allocation10 + $0x5b8] sm:$0xf0] }
 0x2a6   :  { %3460 = vmatpush.bf16.msra.mxu2 %v4747_v26  ;;  %v4786_v26 = vld [vmem:[#allocation10 + $0x158] sm:$0xf]  ;;  %v5295_v32 = vor.u32 %v5778_v23, %v5292_v34  ;;  %v5132_v34 = vld [vmem:[#allocation10 + $0x430] sm:$0xf0] }
 0x2a7   :  { %3499 = vmatpush.bf16.msrb.mxu1 %v4751_v29  ;;  %v5722_v29 = vld [vmem:[#allocation10 + $0x394] sm:$0xf]  ;;  %v4787_v36 = vor.u32 %v5655_v27, %v4786_v26  ;;  %v5623_v15 = vld [vmem:[#allocation10 + $0x74] sm:$0xf0]  ;;  %v5667_v27 = vld [vmem:[#allocation10 + $0x1dc] sm:$0xf] }
 0x2a8   :  { %3475 = vmatpush.bf16.msra.mxu3 %v4939_v33  ;;  %v5074_v33 = vld [vmem:[#allocation10 + $0x398] sm:$0xf]  ;;  %v5071_v42 = vor.u32 %v5722_v29, %v5068_v30  ;;  %v4659_v23 = vor.u32 %v5623_v15, %v4658_v14  ;;  %v5731_v29 = vld [vmem:[#allocation10 + $0x3dc] sm:$0xf] }
 0x2a9   :  { %3488 = vmatpush.bf16.msrb.mxu0 %v5195_v39  ;;  %v5770_v39 = vld [vmem:[#allocation10 + $0x514] sm:$0xf]  ;;  %v5075_v31 = vor.u32 %v5727_v35, %v5074_v33  ;;  %v5799_v55 = vld [vmem:[#allocation10 + $0x5f4] sm:$0xf0]  ;;  %v5012_v14 = vld [vmem:[#allocation10 + $0x338] sm:$0xf0] }
 0x2aa   :  { %3461 = vmatpush.bf16.msra.mxu2 %v4715_v43  ;;  %v4754_v43 = vld [vmem:[#allocation10 + $0x118] sm:$0xf]  ;;  %v5263_v47 = vor.u32 %v5770_v39, %v5260_v41  ;;  %v5682_v33 = vld [vmem:[#allocation10 + $0x254] sm:$0xf] }
 0x2ab   :  { %3500 = vmatpush.bf16.msrb.mxu1 %v4719_v45  ;;  %v5714_v45 = vld [vmem:[#allocation10 + $0x354] sm:$0xf]  ;;  %v4755_v50 = vor.u32 %v5647_v44, %v4754_v43  ;;  %v4914_v39 = vld [vmem:[#allocation10 + $0x258] sm:$0xf]  ;;  %v5659_v44 = vld [vmem:[#allocation10 + $0x19c] sm:$0xf] }
 0x2ac   :  { %3476 = vmatpush.bf16.msra.mxu3 %v4907_v48  ;;  %v5042_v48 = vld [vmem:[#allocation10 + $0x358] sm:$0xf]  ;;  %v5039_v53 = vor.u32 %v5714_v45, %v5036_v46  ;;  %v4908_v35 = vld [vmem:[#allocation10 + $0x270] sm:$0xf0]  ;;  %v4820_v46 = vld [vmem:[#allocation10 + $0x1b8] sm:$0xf0] }
 0x2ad   :  { %3489 = vmatpush.bf16.msrb.mxu0 %v5163_v52  ;;  %v5228_v52 = vld [vmem:[#allocation10 + $0x4f0] sm:$0xf0]  ;;  %v5687_v41 = vld [vmem:[#allocation10 + $0x274] sm:$0xf0]  ;;  %v4911_v45 = vor.u32 %v5682_v33, %v4908_v35  ;;  %v5627_v35 = vld [vmem:[#allocation10 + $0x9c] sm:$0xf] }
 0x2ae   :  { %3462 = vmatpush.bf16.msra.mxu2 %v4683_v56  ;;  %v5043_v56 = vor.u32 %v5719_v49, %v5042_v48  ;;  %v5231_v59 = vor.u32 %v5762_v51, %v5228_v52  ;;  %v5076_v48 = vld [vmem:[#allocation10 + $0x3b8] sm:$0xf0]  ;;  %v4915_v49 = vor.u32 %v5687_v41, %v4914_v39  ;;  %v4876_v51 = vld [vmem:[#allocation10 + $0x230] sm:$0xf0]  ;;  %v4882_v52 = vld [vmem:[#allocation10 + $0x218] sm:$0xf] }
 0x2af   :  { %3501 = vmatpush.bf16.msrb.mxu1 %v4687_v60  ;;  %v5010_v60 = vld [vmem:[#allocation10 + $0x318] sm:$0xf]  ;;  %v5691_v41 = vld [vmem:[#allocation10 + $0x29c] sm:$0xf] }
 0x2b0   :  { %3477 = vmatpush.bf16.msra.mxu3 %v4875_v63  ;;  %v5196_v63 = vld [vmem:[#allocation10 + $0x4b0] sm:$0xf0] }
 0x2b1   :  { %3490 = vmatpush.bf16.msrb.mxu0 %v5131_v5  ;;  %v5631_v5 = vld [vmem:[#allocation10 + $0xb4] sm:$0xf0] }
 0x2b2   :  { %3463 = vmatpush.bf16.msra.mxu2 %v4651_v7  ;;  %v5199_v7 = vor.u32 %v5754_v1, %v5196_v63  ;;  %v4691_v10 = vor.u32 %v5631_v5, %v4690_v4  ;;  %v5363_v63 = vor.u32 %v5799_v55, %v5362_v54  ;;  %v5044_v4 = vld [vmem:[#allocation10 + $0x378] sm:$0xf0]  ;;  %v5367_v5 = vor.u32 %v5795_v57, %v5364_v58  ;;  %v5202_v55 = vld [vmem:[#allocation10 + $0x498] sm:$0xf] }
 0x2b3   :  { %3502 = vmatpush.bf16.msrb.mxu1 %v4655_v11  ;;  %3478 = vmatmul.bf16.vlgmr.msra.gmra.mxu3 %v6067_v0  ;;  %v5746_v11 = vld [vmem:[#allocation10 + $0x454] sm:$0xf]  ;;  %v5755_v58 = vld [vmem:[#allocation10 + $0x49c] sm:$0xf] }
 0x2b4   :  { %3522 = vmatpush.bf16.msrb.mxu3 %v5359_v6  ;;  %3491 = vmatmul.bf16.vlgmr.msrb.gmra.mxu0 %v6069_v3  ;;  %v5011_v6 = vor.u32 %v5711_v61, %v5010_v60  ;;  %v5167_v21 = vor.u32 %v5746_v11, %v5164_v12  ;;  %v5651_v61 = vld [vmem:[#allocation10 + $0x15c] sm:$0xf] }
 0x2b5   :  { %3535 = vmatpush.bf16.msra.mxu0 %v4851_v16  ;;  %v4972_v16 = vld [vmem:[#allocation10 + $0x2f0] sm:$0xf0]  ;;  %v4756_v11 = vld [vmem:[#allocation10 + $0x138] sm:$0xf0] }
 0x2b6   :  { %3464 = vmatpush.bf16.msra.mxu2 %v4619_v40  ;;  %v4975_v13 = vor.u32 %v5698_v9, %v4972_v16  ;;  %v5738_v40 = vld [vmem:[#allocation10 + $0x414] sm:$0xf]  ;;  %v5791_v9 = vld [vmem:[#allocation10 + $0x5b4] sm:$0xf0] }
 0x2b7   :  { %3503 = vmatpush.bf16.msrb.mxu1 %v4623_v38  ;;  %v4626_v38 = vld [vmem:[#allocation10 + $0x18] sm:$0xf] }
 0x2b8   :  { %3523 = vmatpush.bf16.msrb.mxu3 %v5327_v37  ;;  %v4940_v37 = vld [vmem:[#allocation10 + $0x2b0] sm:$0xf0] }
 0x2b9   :  { %3536 = vmatpush.bf16.msra.mxu0 %v4819_v22  ;;  %3465 = vmatmul.bf16.vlgmr.msra.gmra.mxu2 %v6073_v20  ;;  %v5695_v22 = vld [vmem:[#allocation10 + $0x2b4] sm:$0xf0]  ;;  %v4943_v26 = vor.u32 %v5690_v19, %v4940_v37 }
 0x2ba   :  { %3509 = vmatpush.bf16.msrb.mxu2 %v5103_v25  ;;  %3504 = vmatmul.bf16.vlgmr.msrb.gmra.mxu1 %v6073_v20  ;;  %v5615_v25 = vld [vmem:[#allocation10 + $0x34] sm:$0xf0]  ;;  %v4947_v30 = vor.u32 %v5695_v22, %v4946_v24  ;;  %v5300_v24 = vld [vmem:[#allocation10 + $0x578] sm:$0xf0] }
 0x2bb   :  { %3548 = vmatpush.bf16.msra.mxu1 %v5107_v28  ;;  %v4852_v28 = vld [vmem:[#allocation10 + $0x1f8] sm:$0xf0]  ;;  %v5783_v19 = vld [vmem:[#allocation10 + $0x574] sm:$0xf0] }
 0x2bc   :  { %3524 = vmatpush.bf16.msrb.mxu3 %v5295_v32  ;;  %v5108_v32 = vld [vmem:[#allocation10 + $0x3f8] sm:$0xf0]  ;;  %v4855_v43 = vor.u32 %v5667_v27, %v4852_v28  ;;  %v5266_v27 = vld [vmem:[#allocation10 + $0x518] sm:$0xf] }
 0x2bd   :  { %3537 = vmatpush.bf16.msra.mxu0 %v4787_v36  ;;  %v5135_v36 = vor.u32 %v5738_v40, %v5132_v34  ;;  %v5635_v40 = vld [vmem:[#allocation10 + $0xdc] sm:$0xf]  ;;  %v5775_v28 = vld [vmem:[#allocation10 + $0x534] sm:$0xf0] }
 0x2be   :  { %3510 = vmatpush.bf16.msrb.mxu2 %v5071_v42  ;;  %v4627_v42 = vor.u32 %v5615_v25, %v4626_v38  ;;  %v5699_v38 = vld [vmem:[#allocation10 + $0x2dc] sm:$0xf]  ;;  %v5267_v39 = vor.u32 %v5775_v28, %v5266_v27 }
 0x2bf   :  { %3549 = vmatpush.bf16.msra.mxu1 %v5075_v31  ;;  %v5111_v31 = vor.u32 %v5731_v29, %v5108_v32  ;;  %v4980_v25 = vld [vmem:[#allocation10 + $0x2f8] sm:$0xf0] }
 0x2c0   :  { %3525 = vmatpush.bf16.msrb.mxu3 %v5263_v47  ;;  %v5723_v47 = vld [vmem:[#allocation10 + $0x39c] sm:$0xf]  ;;  %v4983_v33 = vor.u32 %v5699_v38, %v4980_v25 }
 0x2c1   :  { %3538 = vmatpush.bf16.msra.mxu0 %v4755_v50  ;;  %v5674_v50 = vld [vmem:[#allocation10 + $0x214] sm:$0xf]  ;;  %v5268_v32 = vld [vmem:[#allocation10 + $0x538] sm:$0xf0] }
 0x2c2   :  { %3511 = vmatpush.bf16.msrb.mxu2 %v5039_v53  ;;  %v5679_v53 = vld [vmem:[#allocation10 + $0x234] sm:$0xf0]  ;;  %v4879_v60 = vor.u32 %v5674_v50, %v4876_v51  ;;  %v4660_v50 = vld [vmem:[#allocation10 + $0x78] sm:$0xf0] }
 0x2c3   :  { %3550 = vmatpush.bf16.msra.mxu1 %v5043_v56  ;;  %v4823_v56 = vor.u32 %v5659_v44, %v4820_v46  ;;  %v4883_v1 = vor.u32 %v5679_v53, %v4882_v52  ;;  %v5234_v44 = vld [vmem:[#allocation10 + $0x4d8] sm:$0xf]  ;;  %v5763_v46 = vld [vmem:[#allocation10 + $0x4dc] sm:$0xf] }
 0x2c4   :  { %3526 = vmatpush.bf16.msrb.mxu3 %v5231_v59  ;;  %v5079_v59 = vor.u32 %v5723_v47, %v5076_v48  ;;  %v5236_v47 = vld [vmem:[#allocation10 + $0x4f8] sm:$0xf0] }
 0x2c5   :  { %3539 = vmatpush.bf16.msra.mxu0 %v4723_v62  ;;  %v4788_v62 = vld [vmem:[#allocation10 + $0x178] sm:$0xf0]  ;;  %v5239_v54 = vor.u32 %v5763_v46, %v5236_v47 }
 0x2c6   :  { %3512 = vmatpush.bf16.msrb.mxu2 %v5007_v2  ;;  %v5715_v2 = vld [vmem:[#allocation10 + $0x35c] sm:$0xf]  ;;  %v4791_v16 = vor.u32 %v5651_v61, %v4788_v62 }
 0x2c7   :  { %3551 = vmatpush.bf16.msra.mxu1 %v5011_v6  ;;  %v5330_v6 = vld [vmem:[#allocation10 + $0x598] sm:$0xf]  ;;  %v5047_v8 = vor.u32 %v5715_v2, %v5044_v4  ;;  %v5683_v52 = vld [vmem:[#allocation10 + $0x25c] sm:$0xf] }
 0x2c8   :  { %3527 = vmatpush.bf16.msrb.mxu3 %v5199_v7  ;;  %v5787_v7 = vld [vmem:[#allocation10 + $0x59c] sm:$0xf]  ;;  %v5331_v12 = vor.u32 %v5791_v9, %v5330_v6  ;;  %v5751_v6 = vld [vmem:[#allocation10 + $0x474] sm:$0xf0] }
 0x2c9   :  { %3540 = vmatpush.bf16.msra.mxu0 %v4691_v10  ;;  %v5643_v10 = vld [vmem:[#allocation10 + $0x11c] sm:$0xf]  ;;  %v5335_v15 = vor.u32 %v5787_v7, %v5332_v17 }
 0x2ca   :  { %3513 = vmatpush.bf16.msrb.mxu2 %v4975_v13  ;;  %v5707_v13 = vld [vmem:[#allocation10 + $0x31c] sm:$0xf]  ;;  %v4759_v37 = vor.u32 %v5643_v10, %v4756_v11  ;;  %v5138_v11 = vld [vmem:[#allocation10 + $0x418] sm:$0xf] }
 0x2cb   :  { %3552 = vmatpush.bf16.msra.mxu1 %v4979_v18  ;;  %v5298_v18 = vld [vmem:[#allocation10 + $0x558] sm:$0xf]  ;;  %v5015_v22 = vor.u32 %v5707_v13, %v5012_v14  ;;  %v4916_v53 = vld [vmem:[#allocation10 + $0x278] sm:$0xf0] }
 0x2cc   :  { %3528 = vmatpush.bf16.msrb.mxu3 %v5167_v21  ;;  %v5779_v21 = vld [vmem:[#allocation10 + $0x55c] sm:$0xf]  ;;  %v5299_v34 = vor.u32 %v5783_v19, %v5298_v18 }
 0x2cd   :  { %3541 = vmatpush.bf16.msra.mxu0 %v4659_v23  ;;  %v4724_v23 = vld [vmem:[#allocation10 + $0xf8] sm:$0xf0] }
 0x2ce   :  { %3514 = vmatpush.bf16.msrb.mxu2 %v4943_v26  ;;  %v5303_v26 = vor.u32 %v5779_v21, %v5300_v24  ;;  %v4727_v29 = vor.u32 %v5635_v40, %v4724_v23  ;;  %v5611_v61 = vld [vmem:[#allocation10 + $0x1c] sm:$0xf] }
 0x2cf   :  { %3553 = vmatpush.bf16.msra.mxu1 %v4947_v30  ;;  %v5771_v30 = vld [vmem:[#allocation10 + $0x51c] sm:$0xf] }
 0x2d0   :  { %3529 = vmatpush.bf16.msrb.mxu3 %v5135_v36  ;;  %v4692_v36 = vld [vmem:[#allocation10 + $0xb8] sm:$0xf0] }
 0x2d1   :  { %3542 = vmatpush.bf16.msra.mxu0 %v4627_v42  ;;  %v4948_v42 = vld [vmem:[#allocation10 + $0x2b8] sm:$0xf0] }
 0x2d2   :  { %3515 = vmatpush.bf16.msrb.mxu2 %v4911_v45  ;;  %v4695_v45 = vor.u32 %v5627_v35, %v4692_v36  ;;  %v4951_v48 = vor.u32 %v5691_v41, %v4948_v42  ;;  %v4628_v62 = vld [vmem:[#allocation10 + $0x38] sm:$0xf0] }
 0x2d3   :  { %3554 = vmatpush.bf16.msra.mxu1 %v4915_v49  ;;  %3530 = vmatmul.bf16.vlgmr.msrb.gmra.mxu3 %v6069_v3  ;;  %v5619_v49 = vld [vmem:[#allocation10 + $0x5c] sm:$0xf]  ;;  %v4631_v9 = vor.u32 %v5611_v61, %v4628_v62 }
 0x2d4   :  { %3574 = vmatpush.bf16.msra.mxu3 %v4855_v43  ;;  %3543 = vmatmul.bf16.vlgmr.msra.gmra.mxu0 %v6073_v20  ;;  %v5271_v43 = vor.u32 %v5771_v30, %v5268_v32  ;;  %v4663_v57 = vor.u32 %v5619_v49, %v4660_v50  ;;  %v4884_v2 = vld [vmem:[#allocation10 + $0x238] sm:$0xf0] }
 0x2d5   :  { %3587 = vmatpush.bf16.msrb.mxu0 %v5111_v31  ;;  %v5767_v31 = vld [vmem:[#allocation10 + $0x4f4] sm:$0xf0]  ;;  %v5172_v7 = vld [vmem:[#allocation10 + $0x478] sm:$0xf0] }
 0x2d6   :  { %3516 = vmatpush.bf16.msrb.mxu2 %v4879_v60  ;;  %v5235_v51 = vor.u32 %v5767_v31, %v5234_v44  ;;  %v4919_v60 = vor.u32 %v5683_v52, %v4916_v53  ;;  %v5739_v13 = vld [vmem:[#allocation10 + $0x41c] sm:$0xf] }
 0x2d7   :  { %3555 = vmatpush.bf16.msra.mxu1 %v4883_v1  ;;  %v5140_v14 = vld [vmem:[#allocation10 + $0x438] sm:$0xf0] }
 0x2d8   :  { %3575 = vmatpush.bf16.msra.mxu3 %v4823_v56  ;;  %v5759_v56 = vld [vmem:[#allocation10 + $0x4b4] sm:$0xf0]  ;;  %v5143_v18 = vor.u32 %v5739_v13, %v5140_v14 }
 0x2d9   :  { %3588 = vmatpush.bf16.msrb.mxu0 %v5079_v59  ;;  %3517 = vmatmul.bf16.vlgmr.msrb.gmra.mxu2 %v6067_v0  ;;  %v5204_v59 = vld [vmem:[#allocation10 + $0x4b8] sm:$0xf0]  ;;  %v5203_v1 = vor.u32 %v5759_v56, %v5202_v55 }
 0x2da   :  { %3561 = vmatpush.bf16.msra.mxu2 %v5363_v63  ;;  %3556 = vmatmul.bf16.vlgmr.msra.gmra.mxu1 %v6067_v0  ;;  %v5675_v63 = vld [vmem:[#allocation10 + $0x21c] sm:$0xf]  ;;  %v5207_v4 = vor.u32 %v5755_v58, %v5204_v59 }
 0x2db   :  { %3600 = vmatpush.bf16.msrb.mxu1 %v5367_v5  ;;  %v5170_v5 = vld [vmem:[#allocation10 + $0x458] sm:$0xf]  ;;  %v4887_v17 = vor.u32 %v5675_v63, %v4884_v2 }
 0x2dc   :  { %3576 = vmatpush.bf16.msra.mxu3 %v4791_v16  ;;  %v5747_v16 = vld [vmem:[#allocation10 + $0x45c] sm:$0xf] }
 0x2dd   :  { %3589 = vmatpush.bf16.msrb.mxu0 %v5047_v8  ;;  %v5171_v8 = vor.u32 %v5751_v6, %v5170_v5  ;;  %v5175_v10 = vor.u32 %v5747_v16, %v5172_v7 }
 0x2de   :  { %3562 = vmatpush.bf16.msra.mxu2 %v5331_v12  ;;  %v5743_v12 = vld [vmem:[#allocation10 + $0x434] sm:$0xf0] }
 0x2df   :  { %3601 = vmatpush.bf16.msrb.mxu1 %v5335_v15  ;;  %v5139_v15 = vor.u32 %v5743_v12, %v5138_v11 }
 0x2e0   :  { %3577 = vmatpush.bf16.msra.mxu3 %v4759_v37 }
 0x2e1   :  { %3590 = vmatpush.bf16.msrb.mxu0 %v5015_v22 }
 0x2e2   :  { %3563 = vmatpush.bf16.msra.mxu2 %v5299_v34 }
 0x2e3   :  { %3602 = vmatpush.bf16.msrb.mxu1 %v5303_v26 }
 0x2e4   :  { %3578 = vmatpush.bf16.msra.mxu3 %v4727_v29 }
 0x2e5   :  { %3591 = vmatpush.bf16.msrb.mxu0 %v4983_v33 }
 0x2e6   :  { %3564 = vmatpush.bf16.msra.mxu2 %v5267_v39 }
 0x2e7   :  { %3603 = vmatpush.bf16.msrb.mxu1 %v5271_v43 }
 0x2e8   :  { %3579 = vmatpush.bf16.msra.mxu3 %v4695_v45 }
 0x2e9   :  { %3592 = vmatpush.bf16.msrb.mxu0 %v4951_v48 }
 0x2ea   :  { %3565 = vmatpush.bf16.msra.mxu2 %v5235_v51 }
 0x2eb   :  { %3604 = vmatpush.bf16.msrb.mxu1 %v5239_v54 }
 0x2ec   :  { %3580 = vmatpush.bf16.msra.mxu3 %v4663_v57 }
 0x2ed   :  { %3593 = vmatpush.bf16.msrb.mxu0 %v4919_v60 }
 0x2ee   :  { %3566 = vmatpush.bf16.msra.mxu2 %v5203_v1 }
 0x2ef   :  { %3605 = vmatpush.bf16.msrb.mxu1 %v5207_v4 }
 0x2f0   :  { %3581 = vmatpush.bf16.msra.mxu3 %v4631_v9 }
 0x2f1   :  { %3594 = vmatpush.bf16.msrb.mxu0 %v4887_v17  ;;  %v3336_v19 = vpop.f32.mrf.mxu0 }
 0x2f2   :  { %3567 = vmatpush.bf16.msra.mxu2 %v5171_v8 }
 0x2f3   :  { %3606 = vmatpush.bf16.msrb.mxu1 %v5175_v10  ;;  %3582 = vmatmul.bf16.vlgmr.msra.gmra.mxu3 %v6073_v20 }
 0x2f4   :  { %3595 = vmatmul.bf16.vlgmr.msrb.gmra.mxu0 %v6067_v0 }
 0x2f6   :  { %3568 = vmatpush.bf16.msra.mxu2 %v5139_v15  ;;  %v3323_v37 = vpop.f32.mrf.mxu3 }
 0x2f7   :  { %3607 = vmatpush.bf16.msrb.mxu1 %v5143_v18  ;;  %v3349_v21 = vpop.f32.mrf.mxu1 }
 0x2f9   :  { %3569 = vmatmul.bf16.vlgmr.msra.gmra.mxu2 %v6069_v3  ;;  %v3338_v24 = vpop.f32.mrf.mxu0 }
 0x2fa   :  { %3608 = vmatmul.bf16.vlgmr.msrb.gmra.mxu1 %v6069_v3 }
 0x2fc   :  { %v3310_v22 = vpop.f32.mrf.mxu2 }
 0x2fd   :  { %v3324_v40 = vadd.f32 %v3323_v37, %v3310_v22 }
 0x2fe   :  { %v3325_v23 = vpop.f32.mrf.mxu3 }
 0x2ff   :  { %v3337_v34 = vadd.f32 %v3336_v19, %v3324_v40  ;;  %v3351_v38 = vpop.f32.mrf.mxu1 }
 0x301   :  { %3613 = vst [vmem:[#allocation11] sm:$0xff] %v3337_v34  ;;  %v3388_v20 = vpop.f32.mrf.mxu0 }
 0x304   :  { %v3312_v25 = vpop.f32.mrf.mxu2 }
 0x306   :  { %v3375_v26 = vpop.f32.mrf.mxu3 }
 0x307   :  { %v3401_v0 = vpop.f32.mrf.mxu1 }
 0x308   :  { %v3402_v44 = vadd.f32 %v3401_v0, %v3388_v20 }
 0x309   :  { %v3390_v27 = vpop.f32.mrf.mxu0 }
 0x30c   :  { %v3362_v28 = vpop.f32.mrf.mxu2 }
 0x30d   :  { %v3363_v29 = vadd.f32 %v3362_v28, %v3349_v21 }
 0x30e   :  { %v3377_v30 = vpop.f32.mrf.mxu3 }
 0x30f   :  { %v3376_v32 = vadd.f32 %v3375_v26, %v3363_v29  ;;  %v3403_v3 = vpop.f32.mrf.mxu1 }
 0x311   :  { %3614 = vst [vmem:[#allocation11 + $0x8] sm:$0xff] %v3376_v32  ;;  %v3440_v33 = vpop.f32.mrf.mxu0 }
 0x314   :  { %v3364_v35 = vpop.f32.mrf.mxu2 }
 0x316   :  { %v3427_v36 = vpop.f32.mrf.mxu3 }
 0x317   :  { %v3441_v39 = vadd.f32 %v3440_v33, %v3427_v36  ;;  %v3453_v41 = vpop.f32.mrf.mxu1 }
 0x319   :  { %v3454_v42 = vadd.f32 %v3453_v41, %v3441_v39  ;;  %v3442_v43 = vpop.f32.mrf.mxu0 }
 0x31b   :  { %3616 = vst [vmem:[#allocation11 + $0x18] sm:$0xff] %v3454_v42 }
 0x31c   :  { %v3414_v31 = vpop.f32.mrf.mxu2 }
 0x31d   :  { %v3415_v45 = vadd.f32 %v3414_v31, %v3402_v44 }
 0x31e   :  { %v3429_v46 = vpop.f32.mrf.mxu3 }
 0x31f   :  { %3615 = vst [vmem:[#allocation11 + $0x10] sm:$0xff] %v3415_v45  ;;  %v3455_v47 = vpop.f32.mrf.mxu1 }
 0x324   :  { %v3416_v48 = vpop.f32.mrf.mxu2 }
 0x331   :  { %v3492_v49 = vpop.f32.mrf.mxu0 }
 0x336   :  { %v3479_v50 = vpop.f32.mrf.mxu3 }
 0x337   :  { %v3505_v51 = vpop.f32.mrf.mxu1 }
 0x339   :  { %v3494_v52 = vpop.f32.mrf.mxu0 }
 0x33c   :  { %v3466_v53 = vpop.f32.mrf.mxu2 }
 0x33d   :  { %v3480_v54 = vadd.f32 %v3479_v50, %v3466_v53 }
 0x33e   :  { %v3481_v55 = vpop.f32.mrf.mxu3 }
 0x33f   :  { %v3493_v56 = vadd.f32 %v3492_v49, %v3480_v54  ;;  %v3507_v57 = vpop.f32.mrf.mxu1 }
 0x341   :  { %3617 = vst [vmem:[#allocation11 + $0x20] sm:$0xff] %v3493_v56 }
 0x344   :  { %v3468_v58 = vpop.f32.mrf.mxu2 }
 0x351   :  { %v3544_v59 = vpop.f32.mrf.mxu0 }
 0x356   :  { %v3531_v60 = vpop.f32.mrf.mxu3 }
 0x357   :  { %v3557_v61 = vpop.f32.mrf.mxu1 }
 0x358   :  { %v3558_v11 = vadd.f32 %v3557_v61, %v3544_v59 }
 0x359   :  { %v3546_v62 = vpop.f32.mrf.mxu0 }
 0x35c   :  { %v3518_v1 = vpop.f32.mrf.mxu2 }
 0x35d   :  { %v3519_v63 = vadd.f32 %v3518_v1, %v3505_v51 }
 0x35e   :  { %v3533_v2 = vpop.f32.mrf.mxu3 }
 0x35f   :  { %v3532_v4 = vadd.f32 %v3531_v60, %v3519_v63  ;;  %v3559_v5 = vpop.f32.mrf.mxu1 }
 0x361   :  { %3618 = vst [vmem:[#allocation11 + $0x28] sm:$0xff] %v3532_v4 }
 0x364   :  { %v3520_v6 = vpop.f32.mrf.mxu2 }
 0x371   :  { %v3596_v9 = vpop.f32.mrf.mxu0 }
 0x376   :  { %v3583_v16 = vpop.f32.mrf.mxu3 }
 0x377   :  { %v3597_v7 = vadd.f32 %v3596_v9, %v3583_v16  ;;  %v3609_v17 = vpop.f32.mrf.mxu1 }
 0x379   :  { %v3610_v8 = vadd.f32 %v3609_v17, %v3597_v7  ;;  %v3598_v10 = vpop.f32.mrf.mxu0 }
 0x37b   :  { %3620 = vst [vmem:[#allocation11 + $0x38] sm:$0xff] %v3610_v8 }
 0x37c   :  { %v3570_v12 = vpop.f32.mrf.mxu2 }
 0x37d   :  { %v3571_v13 = vadd.f32 %v3570_v12, %v3558_v11 }
 0x37e   :  { %v3585_v14 = vpop.f32.mrf.mxu3 }
 0x37f   :  { %3619 = vst [vmem:[#allocation11 + $0x30] sm:$0xff] %v3571_v13  ;;  %v3611_v15 = vpop.f32.mrf.mxu1 }
 0x380   :  { %3631 = dma.vmem_to_hbm [thread:$0]  %s3627_s20, 1024, %s3629_s23, [#allocation4]  }
 0x384   :  { %v3572_v18 = vpop.f32.mrf.mxu2 }
 0x385   :  { %5962 = dma.done.wait [#allocation4], 1024  }
 0x386   :  { %5963 = vsyncadd [#allocation4], 4294966272 }
 0x387   :  { %3636 = vsyncpa [#allocation3], 1 }
 0x388   :  { %3637 = vsyncpa [#allocation6], 1 }
 0x389   :  { %3638 = vsyncpa [#allocation9], 1 }
 0x38a   :  { %3639 = vsyncpa [#allocation4], 1 }

</bundles_post_ra>
